<compile_context>
chip_gen: v7x
topology: tpu7x:2x2x1
jax: 0.10.0
libtpu: 0.0.40
codegen_flags: <defaults>
</compile_context>

<pallas_src>
import random

import jax
import jax.numpy as jnp
from jax import lax
from jax.experimental import pallas as pl
from jax.experimental.pallas import tpu as pltpu

NEG_BIG = -1e30  # bias padding for the padded vocab lanes (f32 only; softmax -> 0)


def _uniform(key, shape, scale):
    return jax.random.uniform(key, shape, jnp.float32, -scale, scale)


# ----------------------------------------------------------------------------
# Fused encoder + decoder kernel (single invocation, no grid, fully unrolled).
# ----------------------------------------------------------------------------
def make_seq2seq_kernel(S, T, B, H, Vp, tf_flags):
    """tf_flags: tuple of T-1 Python bools (teacher forcing per decode step)."""

    def kernel(src_emb_ref, tgt_ref,
               enc_wih_ref, enc_whh_ref, enc_b_ref,
               fch_f_ref, fch_b_ref, fch_bias_ref,
               fcc_f_ref, fcc_b_ref, fcc_bias_ref,
               att_wh_ref, att_wf_ref, att_wb_ref, att_b_ref,
               wih_cf_ref, wih_cb_ref, wih_e_ref, dec_whh_ref, dec_b_ref,
               emb_ref, wfc_ref, bfc_ref,
               out_ref):
        f32 = jnp.float32

        def lstm_cell(gates, c):                      # PyTorch gate order i,f,g,o
            i = jax.nn.sigmoid(gates[:, 0:H])
            f = jax.nn.sigmoid(gates[:, H:2 * H])
            g = jnp.tanh(gates[:, 2 * H:3 * H])
            o = jax.nn.sigmoid(gates[:, 3 * H:4 * H])
            c_new = f * c + i * g
            return o * jnp.tanh(c_new), c_new

        # ------------------ encoder: bidirectional LSTM (static indices) ----
        wih_f = enc_wih_ref[0]
        wih_b = enc_wih_ref[1]
        whh_f = enc_whh_ref[0]
        whh_b = enc_whh_ref[1]
        b_f = enc_b_ref[0]
        b_b = enc_b_ref[1]

        embs = [src_emb_ref[t] for t in range(S)]                    # (B,E) each
        xg_f = [jnp.dot(embs[t], wih_f, preferred_element_type=f32) + b_f
                for t in range(S)]
        xg_b = [jnp.dot(embs[t], wih_b, preferred_element_type=f32) + b_b
                for t in range(S)]

        h = jnp.zeros((B, H), f32)
        c = jnp.zeros((B, H), f32)
        h_fwd = []
        for t in range(S):
            gates = xg_f[t] + jnp.dot(h, whh_f, preferred_element_type=f32)
            h, c = lstm_cell(gates, c)
            h_fwd.append(h)
        h_f_fin, c_f_fin = h, c

        h = jnp.zeros((B, H), f32)
        c = jnp.zeros((B, H), f32)
        h_bwd = [None] * S
        for t in range(S - 1, -1, -1):               # reversed, but static ints
            gates = xg_b[t] + jnp.dot(h, whh_b, preferred_element_type=f32)
            h, c = lstm_cell(gates, c)
            h_bwd[t] = h
        h_b_fin, c_b_fin = h, c

        # ------------------ bridge: fc_hidden / fc_cell (split dots) --------
        h_dec = (jnp.dot(h_f_fin, fch_f_ref[...], preferred_element_type=f32)
                 + jnp.dot(h_b_fin, fch_b_ref[...], preferred_element_type=f32)
                 + fch_bias_ref[...])
        c_dec = (jnp.dot(c_f_fin, fcc_f_ref[...], preferred_element_type=f32)
                 + jnp.dot(c_b_fin, fcc_b_ref[...], preferred_element_type=f32)
                 + fcc_bias_ref[...])

        # step-invariant attention-energy term per source position: (B,1) each
        att_wf = att_wf_ref[...]
        att_wb = att_wb_ref[...]
        att_b = att_b_ref[...]
        e_enc = [jnp.sum(h_fwd[t] * att_wf, axis=-1, keepdims=True)
                 + jnp.sum(h_bwd[t] * att_wb, axis=-1, keepdims=True) + att_b
                 for t in range(S)]

        att_wh = att_wh_ref[...]
        wih_cf = wih_cf_ref[...]
        wih_cb = wih_cb_ref[...]
        wih_e = wih_e_ref[...]
        dec_whh = dec_whh_ref[...]
        dec_b = dec_b_ref[...]
        emb_tab = emb_ref[...]
        wfc = wfc_ref[...]
        bfc = bfc_ref[...]

        lane_iota = lax.broadcasted_iota(jnp.int32, (B, Vp), 1)

        out_ref[0] = jnp.zeros((B, Vp), f32)         # outputs[0] stays zero

        prev_oh = jnp.zeros((B, Vp), f32)
        for s in range(T - 1):
            # ---- input token one-hot: teacher forcing is a static decision ----
            if tf_flags[s]:
                x_oh = (lane_iota == tgt_ref[s]).astype(f32)        # (B,Vp)
            else:
                x_oh = prev_oh
            # embedding gather == one-hot @ table (MXU)
            x_emb = jnp.dot(x_oh, emb_tab, preferred_element_type=f32)   # (B,E)

            # ---- attention over the S source positions (relu then softmax) ----
            e_h = jnp.sum(h_dec * att_wh, axis=-1, keepdims=True)        # (B,1)
            en = [jnp.maximum(e_enc[t] + e_h, 0.0) for t in range(S)]
            m = en[0]
            for t in range(1, S):
                m = jnp.maximum(m, en[t])
            ex = [jnp.exp(en[t] - m) for t in range(S)]
            den = ex[0]
            for t in range(1, S):
                den = den + ex[t]
            inv = 1.0 / den                                           # exact divide
            ctx_f = jnp.zeros((B, H), f32)
            ctx_b = jnp.zeros((B, H), f32)
            for t in range(S):
                a = ex[t] * inv
                ctx_f = ctx_f + a * h_fwd[t]
                ctx_b = ctx_b + a * h_bwd[t]

            # ---- decoder LSTM cell (split matmuls: no lane-axis concat) ----
            gates = (jnp.dot(ctx_f, wih_cf, preferred_element_type=f32)
                     + jnp.dot(ctx_b, wih_cb, preferred_element_type=f32)
                     + jnp.dot(x_emb, wih_e, preferred_element_type=f32)
                     + jnp.dot(h_dec, dec_whh, preferred_element_type=f32)
                     + dec_b)
            h_dec, c_dec = lstm_cell(gates, c_dec)

            # ---- vocab projection, exact softmax, greedy argmax from logits ----
            logits = jnp.dot(h_dec, wfc, preferred_element_type=f32) + bfc  # (B,Vp)
            mx = jnp.max(logits, axis=-1, keepdims=True)
            le = jnp.exp(logits - mx)
            out_ref[s + 1] = le / jnp.sum(le, axis=-1, keepdims=True)

            cand = jnp.where(logits == mx, lane_iota, Vp)
            best = jnp.min(cand, axis=-1, keepdims=True)
            prev_oh = (lane_iota == best).astype(f32)

    return kernel


# ----------------------------------------------------------------------------
# parameter init (PyTorch-like uniform ranges) and one-time kernel packing
# ----------------------------------------------------------------------------
def init_params(key, src_vocab, tgt_vocab, E, H):
    ks = iter(jax.random.split(key, 24))
    s = 1.0 / jnp.sqrt(H)
    p = {}
    p['enc_emb'] = jax.random.normal(next(ks), (src_vocab, E), jnp.float32)
    for d in ('f', 'b'):
        p[f'enc_wih_t_{d}'] = _uniform(next(ks), (E, 4 * H), s)
        p[f'enc_whh_t_{d}'] = _uniform(next(ks), (H, 4 * H), s)
        p[f'enc_bih_{d}'] = _uniform(next(ks), (1, 4 * H), s)
        p[f'enc_bhh_{d}'] = _uniform(next(ks), (1, 4 * H), s)
    s2 = 1.0 / jnp.sqrt(2 * H)
    p['enc_fch_w_t'] = _uniform(next(ks), (2 * H, H), s2)
    p['enc_fch_b'] = _uniform(next(ks), (1, H), s2)
    p['enc_fcc_w_t'] = _uniform(next(ks), (2 * H, H), s2)
    p['enc_fcc_b'] = _uniform(next(ks), (1, H), s2)
    p['dec_emb'] = jax.random.normal(next(ks), (tgt_vocab, E), jnp.float32)
    s3 = 1.0 / jnp.sqrt(3 * H)
    p['dec_we'] = _uniform(next(ks), (1, 3 * H), s3)   # energy W over [h|enc_f|enc_b]
    p['dec_be'] = _uniform(next(ks), (1, 1), s3)
    p['dec_wih_t'] = _uniform(next(ks), (2 * H + E, 4 * H), s)
    p['dec_whh_t'] = _uniform(next(ks), (H, 4 * H), s)
    p['dec_bih'] = _uniform(next(ks), (1, 4 * H), s)
    p['dec_bhh'] = _uniform(next(ks), (1, 4 * H), s)
    p['dec_wfc_t'] = _uniform(next(ks), (H, tgt_vocab), s)
    p['dec_bfc'] = _uniform(next(ks), (1, tgt_vocab), s)
    return p


def pack_params(p, E, H, V):
    """One-time repack: stack/split/pad weights into the kernel-ready layout."""
    Vp = ((V + 127) // 128) * 128
    q = {}
    q['enc_emb'] = p['enc_emb']
    q['enc_wih'] = jnp.stack([p['enc_wih_t_f'], p['enc_wih_t_b']])       # (2,E,4H)
    q['enc_whh'] = jnp.stack([p['enc_whh_t_f'], p['enc_whh_t_b']])       # (2,H,4H)
    q['enc_b'] = jnp.stack([p['enc_bih_f'] + p['enc_bhh_f'],
                            p['enc_bih_b'] + p['enc_bhh_b']])            # (2,1,4H)
    q['fch_f'] = p['enc_fch_w_t'][:H]
    q['fch_b'] = p['enc_fch_w_t'][H:]
    q['fch_bias'] = p['enc_fch_b']
    q['fcc_f'] = p['enc_fcc_w_t'][:H]
    q['fcc_b'] = p['enc_fcc_w_t'][H:]
    q['fcc_bias'] = p['enc_fcc_b']
    q['att_wh'] = p['dec_we'][:, 0:H]                                    # (1,H)
    q['att_wf'] = p['dec_we'][:, H:2 * H]
    q['att_wb'] = p['dec_we'][:, 2 * H:3 * H]
    q['att_b'] = p['dec_be']                                             # (1,1)
    q['wih_cf'] = p['dec_wih_t'][0:H]                                    # ctx fwd
    q['wih_cb'] = p['dec_wih_t'][H:2 * H]                                # ctx bwd
    q['wih_e'] = p['dec_wih_t'][2 * H:]                                  # embedding
    q['dec_whh'] = p['dec_whh_t']
    q['dec_b'] = p['dec_bih'] + p['dec_bhh']
    q['dec_emb'] = jnp.zeros((Vp, E), jnp.float32).at[:V].set(p['dec_emb'])
    q['dec_wfc'] = jnp.pad(p['dec_wfc_t'], ((0, 0), (0, Vp - V)))
    q['dec_bfc'] = jnp.pad(p['dec_bfc'], ((0, 0), (0, Vp - V)),
                           constant_values=NEG_BIG)
    q['out_vocab'] = V
    return q


# ----------------------------------------------------------------------------
# full forward pass (EnteSeq2SeqAttn.forward) — one pallas_call
# ----------------------------------------------------------------------------
def seq2seq_forward(packed, source, target, tfr=0.5):
    S, B = source.shape
    T = target.shape[0]
    H = packed['dec_whh'].shape[0]
    Vp = packed['dec_wfc'].shape[1]
    V = packed['out_vocab']

    # teacher-forcing coins: host-side decision baked statically into the trace
    # (mirrors the reference's host random.random(); deterministic seed here).
    coin = random.Random(0)
    tf_flags = (True,) + tuple(coin.random() < tfr for _ in range(1, T - 1))

    src_emb = jnp.take(packed['enc_emb'], source, axis=0)                # (S,B,E)
    tgt_tok = target[:T - 1].astype(jnp.int32)[:, :, None]               # (T-1,B,1)

    kernel = make_seq2seq_kernel(S, T, B, H, Vp, tf_flags)

    args = (src_emb, tgt_tok,
            packed['enc_wih'], packed['enc_whh'], packed['enc_b'],
            packed['fch_f'], packed['fch_b'], packed['fch_bias'],
            packed['fcc_f'], packed['fcc_b'], packed['fcc_bias'],
            packed['att_wh'], packed['att_wf'], packed['att_wb'], packed['att_b'],
            packed['wih_cf'], packed['wih_cb'], packed['wih_e'],
            packed['dec_whh'], packed['dec_b'],
            packed['dec_emb'], packed['dec_wfc'], packed['dec_bfc'])

    vmem_spec = pl.BlockSpec(memory_space=pltpu.MemorySpace.VMEM)
    out = pl.pallas_call(
        kernel,
        in_specs=[vmem_spec] * len(args),
        out_specs=vmem_spec,
        out_shape=jax.ShapeDtypeStruct((T, B, Vp), jnp.float32),
    )(*args)
    return out[:, :, :V]                                                  # (T,B,V)


# ----------------------------------------------------------------------------
if __name__ == "__main__":
    S, T, B = 8, 6, 2
    E, H = 16, 32
    SRC_VOCAB, TGT_VOCAB = 20, 22

    key = jax.random.PRNGKey(0)
    k_src, k_tgt, k_par = jax.random.split(key, 3)
    source = jax.random.randint(k_src, (S, B), 0, SRC_VOCAB, dtype=jnp.int32)
    target = jax.random.randint(k_tgt, (T, B), 0, TGT_VOCAB, dtype=jnp.int32)

    params = init_params(k_par, SRC_VOCAB, TGT_VOCAB, E, H)
    packed = pack_params(params, E, H, TGT_VOCAB)

    out = seq2seq_forward(packed, source, target, tfr=0.5)
    jax.block_until_ready(out)
    assert out.shape == (T, B, TGT_VOCAB)
    print("KERNEL_OK")
</pallas_src>

<mosaic_0001>
module attributes {stable_mosaic.version = 11 : i64} {
  func.func @kernel(%arg0: memref<8x2x16xf32, #tpu.memory_space<vmem>>, %arg1: memref<5x2x1xi32, #tpu.memory_space<vmem>>, %arg2: memref<2x16x128xf32, #tpu.memory_space<vmem>>, %arg3: memref<2x32x128xf32, #tpu.memory_space<vmem>>, %arg4: memref<2x1x128xf32, #tpu.memory_space<vmem>>, %arg5: memref<32x32xf32, #tpu.memory_space<vmem>>, %arg6: memref<32x32xf32, #tpu.memory_space<vmem>>, %arg7: memref<1x32xf32, #tpu.memory_space<vmem>>, %arg8: memref<32x32xf32, #tpu.memory_space<vmem>>, %arg9: memref<32x32xf32, #tpu.memory_space<vmem>>, %arg10: memref<1x32xf32, #tpu.memory_space<vmem>>, %arg11: memref<1x32xf32, #tpu.memory_space<vmem>>, %arg12: memref<1x32xf32, #tpu.memory_space<vmem>>, %arg13: memref<1x32xf32, #tpu.memory_space<vmem>>, %arg14: memref<1x1xf32, #tpu.memory_space<vmem>>, %arg15: memref<32x128xf32, #tpu.memory_space<vmem>>, %arg16: memref<32x128xf32, #tpu.memory_space<vmem>>, %arg17: memref<16x128xf32, #tpu.memory_space<vmem>>, %arg18: memref<32x128xf32, #tpu.memory_space<vmem>>, %arg19: memref<1x128xf32, #tpu.memory_space<vmem>>, %arg20: memref<128x16xf32, #tpu.memory_space<vmem>>, %arg21: memref<32x128xf32, #tpu.memory_space<vmem>>, %arg22: memref<1x128xf32, #tpu.memory_space<vmem>>, %arg23: memref<6x2x128xf32, #tpu.memory_space<vmem>>) attributes {dimension_semantics = [], scalar_prefetch = 0 : i64, scratch_operands = 0 : i64, tpu.core_type = #tpu.core_type<tc>} {
    %c0 = arith.constant 0 : index
    %c0_0 = arith.constant 0 : index
    %c0_1 = arith.constant 0 : index
    %0 = vector.load %arg2[%c0, %c0_0, %c0_1] : memref<2x16x128xf32, #tpu.memory_space<vmem>>, vector<1x16x128xf32>
    %1 = vector.shape_cast %0 : vector<1x16x128xf32> to vector<16x128xf32>
    %c1 = arith.constant 1 : index
    %c0_2 = arith.constant 0 : index
    %c0_3 = arith.constant 0 : index
    %2 = vector.load %arg2[%c1, %c0_2, %c0_3] : memref<2x16x128xf32, #tpu.memory_space<vmem>>, vector<1x16x128xf32>
    %3 = vector.shape_cast %2 : vector<1x16x128xf32> to vector<16x128xf32>
    %c0_4 = arith.constant 0 : index
    %c0_5 = arith.constant 0 : index
    %c0_6 = arith.constant 0 : index
    %4 = vector.load %arg3[%c0_4, %c0_5, %c0_6] : memref<2x32x128xf32, #tpu.memory_space<vmem>>, vector<1x32x128xf32>
    %5 = vector.shape_cast %4 : vector<1x32x128xf32> to vector<32x128xf32>
    %c1_7 = arith.constant 1 : index
    %c0_8 = arith.constant 0 : index
    %c0_9 = arith.constant 0 : index
    %6 = vector.load %arg3[%c1_7, %c0_8, %c0_9] : memref<2x32x128xf32, #tpu.memory_space<vmem>>, vector<1x32x128xf32>
    %7 = vector.shape_cast %6 : vector<1x32x128xf32> to vector<32x128xf32>
    %c0_10 = arith.constant 0 : index
    %c0_11 = arith.constant 0 : index
    %c0_12 = arith.constant 0 : index
    %8 = vector.load %arg4[%c0_10, %c0_11, %c0_12] : memref<2x1x128xf32, #tpu.memory_space<vmem>>, vector<1x1x128xf32>
    %9 = vector.shape_cast %8 : vector<1x1x128xf32> to vector<1x128xf32>
    %c1_13 = arith.constant 1 : index
    %c0_14 = arith.constant 0 : index
    %c0_15 = arith.constant 0 : index
    %10 = vector.load %arg4[%c1_13, %c0_14, %c0_15] : memref<2x1x128xf32, #tpu.memory_space<vmem>>, vector<1x1x128xf32>
    %11 = vector.shape_cast %10 : vector<1x1x128xf32> to vector<1x128xf32>
    %c0_16 = arith.constant 0 : index
    %c0_17 = arith.constant 0 : index
    %c0_18 = arith.constant 0 : index
    %12 = vector.load %arg0[%c0_16, %c0_17, %c0_18] : memref<8x2x16xf32, #tpu.memory_space<vmem>>, vector<1x2x16xf32>
    %13 = vector.shape_cast %12 : vector<1x2x16xf32> to vector<2x16xf32>
    %c1_19 = arith.constant 1 : index
    %c0_20 = arith.constant 0 : index
    %c0_21 = arith.constant 0 : index
    %14 = vector.load %arg0[%c1_19, %c0_20, %c0_21] : memref<8x2x16xf32, #tpu.memory_space<vmem>>, vector<1x2x16xf32>
    %15 = vector.shape_cast %14 : vector<1x2x16xf32> to vector<2x16xf32>
    %c2 = arith.constant 2 : index
    %c0_22 = arith.constant 0 : index
    %c0_23 = arith.constant 0 : index
    %16 = vector.load %arg0[%c2, %c0_22, %c0_23] : memref<8x2x16xf32, #tpu.memory_space<vmem>>, vector<1x2x16xf32>
    %17 = vector.shape_cast %16 : vector<1x2x16xf32> to vector<2x16xf32>
    %c3 = arith.constant 3 : index
    %c0_24 = arith.constant 0 : index
    %c0_25 = arith.constant 0 : index
    %18 = vector.load %arg0[%c3, %c0_24, %c0_25] : memref<8x2x16xf32, #tpu.memory_space<vmem>>, vector<1x2x16xf32>
    %19 = vector.shape_cast %18 : vector<1x2x16xf32> to vector<2x16xf32>
    %c4 = arith.constant 4 : index
    %c0_26 = arith.constant 0 : index
    %c0_27 = arith.constant 0 : index
    %20 = vector.load %arg0[%c4, %c0_26, %c0_27] : memref<8x2x16xf32, #tpu.memory_space<vmem>>, vector<1x2x16xf32>
    %21 = vector.shape_cast %20 : vector<1x2x16xf32> to vector<2x16xf32>
    %c5 = arith.constant 5 : index
    %c0_28 = arith.constant 0 : index
    %c0_29 = arith.constant 0 : index
    %22 = vector.load %arg0[%c5, %c0_28, %c0_29] : memref<8x2x16xf32, #tpu.memory_space<vmem>>, vector<1x2x16xf32>
    %23 = vector.shape_cast %22 : vector<1x2x16xf32> to vector<2x16xf32>
    %c6 = arith.constant 6 : index
    %c0_30 = arith.constant 0 : index
    %c0_31 = arith.constant 0 : index
    %24 = vector.load %arg0[%c6, %c0_30, %c0_31] : memref<8x2x16xf32, #tpu.memory_space<vmem>>, vector<1x2x16xf32>
    %25 = vector.shape_cast %24 : vector<1x2x16xf32> to vector<2x16xf32>
    %c7 = arith.constant 7 : index
    %c0_32 = arith.constant 0 : index
    %c0_33 = arith.constant 0 : index
    %26 = vector.load %arg0[%c7, %c0_32, %c0_33] : memref<8x2x16xf32, #tpu.memory_space<vmem>>, vector<1x2x16xf32>
    %27 = vector.shape_cast %26 : vector<1x2x16xf32> to vector<2x16xf32>
    %cst = arith.constant dense<0.000000e+00> : vector<2x128xf32>
    %28 = tpu.matmul %13, %1, %cst {dimension_numbers = #tpu.dot_dimension_numbers<[1], [0], [0], [1], [0, 0, 1, 1], [], []>} : vector<2x16xf32>, vector<16x128xf32>, vector<2x128xf32> -> vector<2x128xf32>
    %29 = vector.broadcast %9 : vector<1x128xf32> to vector<2x128xf32>
    %30 = arith.addf %28, %29 : vector<2x128xf32>
    %cst_34 = arith.constant dense<0.000000e+00> : vector<2x128xf32>
    %31 = tpu.matmul %15, %1, %cst_34 {dimension_numbers = #tpu.dot_dimension_numbers<[1], [0], [0], [1], [0, 0, 1, 1], [], []>} : vector<2x16xf32>, vector<16x128xf32>, vector<2x128xf32> -> vector<2x128xf32>
    %32 = vector.broadcast %9 : vector<1x128xf32> to vector<2x128xf32>
    %33 = arith.addf %31, %32 : vector<2x128xf32>
    %cst_35 = arith.constant dense<0.000000e+00> : vector<2x128xf32>
    %34 = tpu.matmul %17, %1, %cst_35 {dimension_numbers = #tpu.dot_dimension_numbers<[1], [0], [0], [1], [0, 0, 1, 1], [], []>} : vector<2x16xf32>, vector<16x128xf32>, vector<2x128xf32> -> vector<2x128xf32>
    %35 = vector.broadcast %9 : vector<1x128xf32> to vector<2x128xf32>
    %36 = arith.addf %34, %35 : vector<2x128xf32>
    %cst_36 = arith.constant dense<0.000000e+00> : vector<2x128xf32>
    %37 = tpu.matmul %19, %1, %cst_36 {dimension_numbers = #tpu.dot_dimension_numbers<[1], [0], [0], [1], [0, 0, 1, 1], [], []>} : vector<2x16xf32>, vector<16x128xf32>, vector<2x128xf32> -> vector<2x128xf32>
    %38 = vector.broadcast %9 : vector<1x128xf32> to vector<2x128xf32>
    %39 = arith.addf %37, %38 : vector<2x128xf32>
    %cst_37 = arith.constant dense<0.000000e+00> : vector<2x128xf32>
    %40 = tpu.matmul %21, %1, %cst_37 {dimension_numbers = #tpu.dot_dimension_numbers<[1], [0], [0], [1], [0, 0, 1, 1], [], []>} : vector<2x16xf32>, vector<16x128xf32>, vector<2x128xf32> -> vector<2x128xf32>
    %41 = vector.broadcast %9 : vector<1x128xf32> to vector<2x128xf32>
    %42 = arith.addf %40, %41 : vector<2x128xf32>
    %cst_38 = arith.constant dense<0.000000e+00> : vector<2x128xf32>
    %43 = tpu.matmul %23, %1, %cst_38 {dimension_numbers = #tpu.dot_dimension_numbers<[1], [0], [0], [1], [0, 0, 1, 1], [], []>} : vector<2x16xf32>, vector<16x128xf32>, vector<2x128xf32> -> vector<2x128xf32>
    %44 = vector.broadcast %9 : vector<1x128xf32> to vector<2x128xf32>
    %45 = arith.addf %43, %44 : vector<2x128xf32>
    %cst_39 = arith.constant dense<0.000000e+00> : vector<2x128xf32>
    %46 = tpu.matmul %25, %1, %cst_39 {dimension_numbers = #tpu.dot_dimension_numbers<[1], [0], [0], [1], [0, 0, 1, 1], [], []>} : vector<2x16xf32>, vector<16x128xf32>, vector<2x128xf32> -> vector<2x128xf32>
    %47 = vector.broadcast %9 : vector<1x128xf32> to vector<2x128xf32>
    %48 = arith.addf %46, %47 : vector<2x128xf32>
    %cst_40 = arith.constant dense<0.000000e+00> : vector<2x128xf32>
    %49 = tpu.matmul %27, %1, %cst_40 {dimension_numbers = #tpu.dot_dimension_numbers<[1], [0], [0], [1], [0, 0, 1, 1], [], []>} : vector<2x16xf32>, vector<16x128xf32>, vector<2x128xf32> -> vector<2x128xf32>
    %50 = vector.broadcast %9 : vector<1x128xf32> to vector<2x128xf32>
    %51 = arith.addf %49, %50 : vector<2x128xf32>
    %cst_41 = arith.constant dense<0.000000e+00> : vector<2x128xf32>
    %52 = tpu.matmul %13, %3, %cst_41 {dimension_numbers = #tpu.dot_dimension_numbers<[1], [0], [0], [1], [0, 0, 1, 1], [], []>} : vector<2x16xf32>, vector<16x128xf32>, vector<2x128xf32> -> vector<2x128xf32>
    %53 = vector.broadcast %11 : vector<1x128xf32> to vector<2x128xf32>
    %54 = arith.addf %52, %53 : vector<2x128xf32>
    %cst_42 = arith.constant dense<0.000000e+00> : vector<2x128xf32>
    %55 = tpu.matmul %15, %3, %cst_42 {dimension_numbers = #tpu.dot_dimension_numbers<[1], [0], [0], [1], [0, 0, 1, 1], [], []>} : vector<2x16xf32>, vector<16x128xf32>, vector<2x128xf32> -> vector<2x128xf32>
    %56 = vector.broadcast %11 : vector<1x128xf32> to vector<2x128xf32>
    %57 = arith.addf %55, %56 : vector<2x128xf32>
    %cst_43 = arith.constant dense<0.000000e+00> : vector<2x128xf32>
    %58 = tpu.matmul %17, %3, %cst_43 {dimension_numbers = #tpu.dot_dimension_numbers<[1], [0], [0], [1], [0, 0, 1, 1], [], []>} : vector<2x16xf32>, vector<16x128xf32>, vector<2x128xf32> -> vector<2x128xf32>
    %59 = vector.broadcast %11 : vector<1x128xf32> to vector<2x128xf32>
    %60 = arith.addf %58, %59 : vector<2x128xf32>
    %cst_44 = arith.constant dense<0.000000e+00> : vector<2x128xf32>
    %61 = tpu.matmul %19, %3, %cst_44 {dimension_numbers = #tpu.dot_dimension_numbers<[1], [0], [0], [1], [0, 0, 1, 1], [], []>} : vector<2x16xf32>, vector<16x128xf32>, vector<2x128xf32> -> vector<2x128xf32>
    %62 = vector.broadcast %11 : vector<1x128xf32> to vector<2x128xf32>
    %63 = arith.addf %61, %62 : vector<2x128xf32>
    %cst_45 = arith.constant dense<0.000000e+00> : vector<2x128xf32>
    %64 = tpu.matmul %21, %3, %cst_45 {dimension_numbers = #tpu.dot_dimension_numbers<[1], [0], [0], [1], [0, 0, 1, 1], [], []>} : vector<2x16xf32>, vector<16x128xf32>, vector<2x128xf32> -> vector<2x128xf32>
    %65 = vector.broadcast %11 : vector<1x128xf32> to vector<2x128xf32>
    %66 = arith.addf %64, %65 : vector<2x128xf32>
    %cst_46 = arith.constant dense<0.000000e+00> : vector<2x128xf32>
    %67 = tpu.matmul %23, %3, %cst_46 {dimension_numbers = #tpu.dot_dimension_numbers<[1], [0], [0], [1], [0, 0, 1, 1], [], []>} : vector<2x16xf32>, vector<16x128xf32>, vector<2x128xf32> -> vector<2x128xf32>
    %68 = vector.broadcast %11 : vector<1x128xf32> to vector<2x128xf32>
    %69 = arith.addf %67, %68 : vector<2x128xf32>
    %cst_47 = arith.constant dense<0.000000e+00> : vector<2x128xf32>
    %70 = tpu.matmul %25, %3, %cst_47 {dimension_numbers = #tpu.dot_dimension_numbers<[1], [0], [0], [1], [0, 0, 1, 1], [], []>} : vector<2x16xf32>, vector<16x128xf32>, vector<2x128xf32> -> vector<2x128xf32>
    %71 = vector.broadcast %11 : vector<1x128xf32> to vector<2x128xf32>
    %72 = arith.addf %70, %71 : vector<2x128xf32>
    %cst_48 = arith.constant dense<0.000000e+00> : vector<2x128xf32>
    %73 = tpu.matmul %27, %3, %cst_48 {dimension_numbers = #tpu.dot_dimension_numbers<[1], [0], [0], [1], [0, 0, 1, 1], [], []>} : vector<2x16xf32>, vector<16x128xf32>, vector<2x128xf32> -> vector<2x128xf32>
    %74 = vector.broadcast %11 : vector<1x128xf32> to vector<2x128xf32>
    %75 = arith.addf %73, %74 : vector<2x128xf32>
    %cst_49 = arith.constant 0.000000e+00 : f32
    %76 = vector.broadcast %cst_49 : f32 to vector<2x32xf32>
    %cst_50 = arith.constant 0.000000e+00 : f32
    %77 = vector.broadcast %cst_50 : f32 to vector<2x32xf32>
    %cst_51 = arith.constant dense<0.000000e+00> : vector<2x128xf32>
    %78 = tpu.matmul %76, %5, %cst_51 {dimension_numbers = #tpu.dot_dimension_numbers<[1], [0], [0], [1], [0, 0, 1, 1], [], []>} : vector<2x32xf32>, vector<32x128xf32>, vector<2x128xf32> -> vector<2x128xf32>
    %79 = arith.addf %30, %78 : vector<2x128xf32>
    %80 = vector.extract_strided_slice %79 {offsets = [0, 0], sizes = [2, 32], strides = [1, 1]} : vector<2x128xf32> to vector<2x32xf32>
    %81 = arith.negf %80 : vector<2x32xf32>
    %82 = math.exp %81 : vector<2x32xf32>
    %cst_52 = arith.constant 1.000000e+00 : f32
    %83 = vector.broadcast %cst_52 : f32 to vector<2x32xf32>
    %84 = arith.addf %83, %82 : vector<2x32xf32>
    %85 = arith.divf %83, %84 : vector<2x32xf32>
    %86 = vector.extract_strided_slice %79 {offsets = [0, 32], sizes = [2, 32], strides = [1, 1]} : vector<2x128xf32> to vector<2x32xf32>
    %87 = arith.negf %86 : vector<2x32xf32>
    %88 = math.exp %87 : vector<2x32xf32>
    %cst_53 = arith.constant 1.000000e+00 : f32
    %89 = vector.broadcast %cst_53 : f32 to vector<2x32xf32>
    %90 = arith.addf %89, %88 : vector<2x32xf32>
    %91 = arith.divf %89, %90 : vector<2x32xf32>
    %92 = vector.extract_strided_slice %79 {offsets = [0, 64], sizes = [2, 32], strides = [1, 1]} : vector<2x128xf32> to vector<2x32xf32>
    %93 = math.tanh %92 : vector<2x32xf32>
    %94 = vector.extract_strided_slice %79 {offsets = [0, 96], sizes = [2, 32], strides = [1, 1]} : vector<2x128xf32> to vector<2x32xf32>
    %95 = arith.negf %94 : vector<2x32xf32>
    %96 = math.exp %95 : vector<2x32xf32>
    %cst_54 = arith.constant 1.000000e+00 : f32
    %97 = vector.broadcast %cst_54 : f32 to vector<2x32xf32>
    %98 = arith.addf %97, %96 : vector<2x32xf32>
    %99 = arith.divf %97, %98 : vector<2x32xf32>
    %100 = arith.mulf %91, %77 : vector<2x32xf32>
    %101 = arith.mulf %85, %93 : vector<2x32xf32>
    %102 = arith.addf %100, %101 : vector<2x32xf32>
    %103 = math.tanh %102 : vector<2x32xf32>
    %104 = arith.mulf %99, %103 : vector<2x32xf32>
    %cst_55 = arith.constant dense<0.000000e+00> : vector<2x128xf32>
    %105 = tpu.matmul %104, %5, %cst_55 {dimension_numbers = #tpu.dot_dimension_numbers<[1], [0], [0], [1], [0, 0, 1, 1], [], []>} : vector<2x32xf32>, vector<32x128xf32>, vector<2x128xf32> -> vector<2x128xf32>
    %106 = arith.addf %33, %105 : vector<2x128xf32>
    %107 = vector.extract_strided_slice %106 {offsets = [0, 0], sizes = [2, 32], strides = [1, 1]} : vector<2x128xf32> to vector<2x32xf32>
    %108 = arith.negf %107 : vector<2x32xf32>
    %109 = math.exp %108 : vector<2x32xf32>
    %cst_56 = arith.constant 1.000000e+00 : f32
    %110 = vector.broadcast %cst_56 : f32 to vector<2x32xf32>
    %111 = arith.addf %110, %109 : vector<2x32xf32>
    %112 = arith.divf %110, %111 : vector<2x32xf32>
    %113 = vector.extract_strided_slice %106 {offsets = [0, 32], sizes = [2, 32], strides = [1, 1]} : vector<2x128xf32> to vector<2x32xf32>
    %114 = arith.negf %113 : vector<2x32xf32>
    %115 = math.exp %114 : vector<2x32xf32>
    %cst_57 = arith.constant 1.000000e+00 : f32
    %116 = vector.broadcast %cst_57 : f32 to vector<2x32xf32>
    %117 = arith.addf %116, %115 : vector<2x32xf32>
    %118 = arith.divf %116, %117 : vector<2x32xf32>
    %119 = vector.extract_strided_slice %106 {offsets = [0, 64], sizes = [2, 32], strides = [1, 1]} : vector<2x128xf32> to vector<2x32xf32>
    %120 = math.tanh %119 : vector<2x32xf32>
    %121 = vector.extract_strided_slice %106 {offsets = [0, 96], sizes = [2, 32], strides = [1, 1]} : vector<2x128xf32> to vector<2x32xf32>
    %122 = arith.negf %121 : vector<2x32xf32>
    %123 = math.exp %122 : vector<2x32xf32>
    %cst_58 = arith.constant 1.000000e+00 : f32
    %124 = vector.broadcast %cst_58 : f32 to vector<2x32xf32>
    %125 = arith.addf %124, %123 : vector<2x32xf32>
    %126 = arith.divf %124, %125 : vector<2x32xf32>
    %127 = arith.mulf %118, %102 : vector<2x32xf32>
    %128 = arith.mulf %112, %120 : vector<2x32xf32>
    %129 = arith.addf %127, %128 : vector<2x32xf32>
    %130 = math.tanh %129 : vector<2x32xf32>
    %131 = arith.mulf %126, %130 : vector<2x32xf32>
    %cst_59 = arith.constant dense<0.000000e+00> : vector<2x128xf32>
    %132 = tpu.matmul %131, %5, %cst_59 {dimension_numbers = #tpu.dot_dimension_numbers<[1], [0], [0], [1], [0, 0, 1, 1], [], []>} : vector<2x32xf32>, vector<32x128xf32>, vector<2x128xf32> -> vector<2x128xf32>
    %133 = arith.addf %36, %132 : vector<2x128xf32>
    %134 = vector.extract_strided_slice %133 {offsets = [0, 0], sizes = [2, 32], strides = [1, 1]} : vector<2x128xf32> to vector<2x32xf32>
    %135 = arith.negf %134 : vector<2x32xf32>
    %136 = math.exp %135 : vector<2x32xf32>
    %cst_60 = arith.constant 1.000000e+00 : f32
    %137 = vector.broadcast %cst_60 : f32 to vector<2x32xf32>
    %138 = arith.addf %137, %136 : vector<2x32xf32>
    %139 = arith.divf %137, %138 : vector<2x32xf32>
    %140 = vector.extract_strided_slice %133 {offsets = [0, 32], sizes = [2, 32], strides = [1, 1]} : vector<2x128xf32> to vector<2x32xf32>
    %141 = arith.negf %140 : vector<2x32xf32>
    %142 = math.exp %141 : vector<2x32xf32>
    %cst_61 = arith.constant 1.000000e+00 : f32
    %143 = vector.broadcast %cst_61 : f32 to vector<2x32xf32>
    %144 = arith.addf %143, %142 : vector<2x32xf32>
    %145 = arith.divf %143, %144 : vector<2x32xf32>
    %146 = vector.extract_strided_slice %133 {offsets = [0, 64], sizes = [2, 32], strides = [1, 1]} : vector<2x128xf32> to vector<2x32xf32>
    %147 = math.tanh %146 : vector<2x32xf32>
    %148 = vector.extract_strided_slice %133 {offsets = [0, 96], sizes = [2, 32], strides = [1, 1]} : vector<2x128xf32> to vector<2x32xf32>
    %149 = arith.negf %148 : vector<2x32xf32>
    %150 = math.exp %149 : vector<2x32xf32>
    %cst_62 = arith.constant 1.000000e+00 : f32
    %151 = vector.broadcast %cst_62 : f32 to vector<2x32xf32>
    %152 = arith.addf %151, %150 : vector<2x32xf32>
    %153 = arith.divf %151, %152 : vector<2x32xf32>
    %154 = arith.mulf %145, %129 : vector<2x32xf32>
    %155 = arith.mulf %139, %147 : vector<2x32xf32>
    %156 = arith.addf %154, %155 : vector<2x32xf32>
    %157 = math.tanh %156 : vector<2x32xf32>
    %158 = arith.mulf %153, %157 : vector<2x32xf32>
    %cst_63 = arith.constant dense<0.000000e+00> : vector<2x128xf32>
    %159 = tpu.matmul %158, %5, %cst_63 {dimension_numbers = #tpu.dot_dimension_numbers<[1], [0], [0], [1], [0, 0, 1, 1], [], []>} : vector<2x32xf32>, vector<32x128xf32>, vector<2x128xf32> -> vector<2x128xf32>
    %160 = arith.addf %39, %159 : vector<2x128xf32>
    %161 = vector.extract_strided_slice %160 {offsets = [0, 0], sizes = [2, 32], strides = [1, 1]} : vector<2x128xf32> to vector<2x32xf32>
    %162 = arith.negf %161 : vector<2x32xf32>
    %163 = math.exp %162 : vector<2x32xf32>
    %cst_64 = arith.constant 1.000000e+00 : f32
    %164 = vector.broadcast %cst_64 : f32 to vector<2x32xf32>
    %165 = arith.addf %164, %163 : vector<2x32xf32>
    %166 = arith.divf %164, %165 : vector<2x32xf32>
    %167 = vector.extract_strided_slice %160 {offsets = [0, 32], sizes = [2, 32], strides = [1, 1]} : vector<2x128xf32> to vector<2x32xf32>
    %168 = arith.negf %167 : vector<2x32xf32>
    %169 = math.exp %168 : vector<2x32xf32>
    %cst_65 = arith.constant 1.000000e+00 : f32
    %170 = vector.broadcast %cst_65 : f32 to vector<2x32xf32>
    %171 = arith.addf %170, %169 : vector<2x32xf32>
    %172 = arith.divf %170, %171 : vector<2x32xf32>
    %173 = vector.extract_strided_slice %160 {offsets = [0, 64], sizes = [2, 32], strides = [1, 1]} : vector<2x128xf32> to vector<2x32xf32>
    %174 = math.tanh %173 : vector<2x32xf32>
    %175 = vector.extract_strided_slice %160 {offsets = [0, 96], sizes = [2, 32], strides = [1, 1]} : vector<2x128xf32> to vector<2x32xf32>
    %176 = arith.negf %175 : vector<2x32xf32>
    %177 = math.exp %176 : vector<2x32xf32>
    %cst_66 = arith.constant 1.000000e+00 : f32
    %178 = vector.broadcast %cst_66 : f32 to vector<2x32xf32>
    %179 = arith.addf %178, %177 : vector<2x32xf32>
    %180 = arith.divf %178, %179 : vector<2x32xf32>
    %181 = arith.mulf %172, %156 : vector<2x32xf32>
    %182 = arith.mulf %166, %174 : vector<2x32xf32>
    %183 = arith.addf %181, %182 : vector<2x32xf32>
    %184 = math.tanh %183 : vector<2x32xf32>
    %185 = arith.mulf %180, %184 : vector<2x32xf32>
    %cst_67 = arith.constant dense<0.000000e+00> : vector<2x128xf32>
    %186 = tpu.matmul %185, %5, %cst_67 {dimension_numbers = #tpu.dot_dimension_numbers<[1], [0], [0], [1], [0, 0, 1, 1], [], []>} : vector<2x32xf32>, vector<32x128xf32>, vector<2x128xf32> -> vector<2x128xf32>
    %187 = arith.addf %42, %186 : vector<2x128xf32>
    %188 = vector.extract_strided_slice %187 {offsets = [0, 0], sizes = [2, 32], strides = [1, 1]} : vector<2x128xf32> to vector<2x32xf32>
    %189 = arith.negf %188 : vector<2x32xf32>
    %190 = math.exp %189 : vector<2x32xf32>
    %cst_68 = arith.constant 1.000000e+00 : f32
    %191 = vector.broadcast %cst_68 : f32 to vector<2x32xf32>
    %192 = arith.addf %191, %190 : vector<2x32xf32>
    %193 = arith.divf %191, %192 : vector<2x32xf32>
    %194 = vector.extract_strided_slice %187 {offsets = [0, 32], sizes = [2, 32], strides = [1, 1]} : vector<2x128xf32> to vector<2x32xf32>
    %195 = arith.negf %194 : vector<2x32xf32>
    %196 = math.exp %195 : vector<2x32xf32>
    %cst_69 = arith.constant 1.000000e+00 : f32
    %197 = vector.broadcast %cst_69 : f32 to vector<2x32xf32>
    %198 = arith.addf %197, %196 : vector<2x32xf32>
    %199 = arith.divf %197, %198 : vector<2x32xf32>
    %200 = vector.extract_strided_slice %187 {offsets = [0, 64], sizes = [2, 32], strides = [1, 1]} : vector<2x128xf32> to vector<2x32xf32>
    %201 = math.tanh %200 : vector<2x32xf32>
    %202 = vector.extract_strided_slice %187 {offsets = [0, 96], sizes = [2, 32], strides = [1, 1]} : vector<2x128xf32> to vector<2x32xf32>
    %203 = arith.negf %202 : vector<2x32xf32>
    %204 = math.exp %203 : vector<2x32xf32>
    %cst_70 = arith.constant 1.000000e+00 : f32
    %205 = vector.broadcast %cst_70 : f32 to vector<2x32xf32>
    %206 = arith.addf %205, %204 : vector<2x32xf32>
    %207 = arith.divf %205, %206 : vector<2x32xf32>
    %208 = arith.mulf %199, %183 : vector<2x32xf32>
    %209 = arith.mulf %193, %201 : vector<2x32xf32>
    %210 = arith.addf %208, %209 : vector<2x32xf32>
    %211 = math.tanh %210 : vector<2x32xf32>
    %212 = arith.mulf %207, %211 : vector<2x32xf32>
    %cst_71 = arith.constant dense<0.000000e+00> : vector<2x128xf32>
    %213 = tpu.matmul %212, %5, %cst_71 {dimension_numbers = #tpu.dot_dimension_numbers<[1], [0], [0], [1], [0, 0, 1, 1], [], []>} : vector<2x32xf32>, vector<32x128xf32>, vector<2x128xf32> -> vector<2x128xf32>
    %214 = arith.addf %45, %213 : vector<2x128xf32>
    %215 = vector.extract_strided_slice %214 {offsets = [0, 0], sizes = [2, 32], strides = [1, 1]} : vector<2x128xf32> to vector<2x32xf32>
    %216 = arith.negf %215 : vector<2x32xf32>
    %217 = math.exp %216 : vector<2x32xf32>
    %cst_72 = arith.constant 1.000000e+00 : f32
    %218 = vector.broadcast %cst_72 : f32 to vector<2x32xf32>
    %219 = arith.addf %218, %217 : vector<2x32xf32>
    %220 = arith.divf %218, %219 : vector<2x32xf32>
    %221 = vector.extract_strided_slice %214 {offsets = [0, 32], sizes = [2, 32], strides = [1, 1]} : vector<2x128xf32> to vector<2x32xf32>
    %222 = arith.negf %221 : vector<2x32xf32>
    %223 = math.exp %222 : vector<2x32xf32>
    %cst_73 = arith.constant 1.000000e+00 : f32
    %224 = vector.broadcast %cst_73 : f32 to vector<2x32xf32>
    %225 = arith.addf %224, %223 : vector<2x32xf32>
    %226 = arith.divf %224, %225 : vector<2x32xf32>
    %227 = vector.extract_strided_slice %214 {offsets = [0, 64], sizes = [2, 32], strides = [1, 1]} : vector<2x128xf32> to vector<2x32xf32>
    %228 = math.tanh %227 : vector<2x32xf32>
    %229 = vector.extract_strided_slice %214 {offsets = [0, 96], sizes = [2, 32], strides = [1, 1]} : vector<2x128xf32> to vector<2x32xf32>
    %230 = arith.negf %229 : vector<2x32xf32>
    %231 = math.exp %230 : vector<2x32xf32>
    %cst_74 = arith.constant 1.000000e+00 : f32
    %232 = vector.broadcast %cst_74 : f32 to vector<2x32xf32>
    %233 = arith.addf %232, %231 : vector<2x32xf32>
    %234 = arith.divf %232, %233 : vector<2x32xf32>
    %235 = arith.mulf %226, %210 : vector<2x32xf32>
    %236 = arith.mulf %220, %228 : vector<2x32xf32>
    %237 = arith.addf %235, %236 : vector<2x32xf32>
    %238 = math.tanh %237 : vector<2x32xf32>
    %239 = arith.mulf %234, %238 : vector<2x32xf32>
    %cst_75 = arith.constant dense<0.000000e+00> : vector<2x128xf32>
    %240 = tpu.matmul %239, %5, %cst_75 {dimension_numbers = #tpu.dot_dimension_numbers<[1], [0], [0], [1], [0, 0, 1, 1], [], []>} : vector<2x32xf32>, vector<32x128xf32>, vector<2x128xf32> -> vector<2x128xf32>
    %241 = arith.addf %48, %240 : vector<2x128xf32>
    %242 = vector.extract_strided_slice %241 {offsets = [0, 0], sizes = [2, 32], strides = [1, 1]} : vector<2x128xf32> to vector<2x32xf32>
    %243 = arith.negf %242 : vector<2x32xf32>
    %244 = math.exp %243 : vector<2x32xf32>
    %cst_76 = arith.constant 1.000000e+00 : f32
    %245 = vector.broadcast %cst_76 : f32 to vector<2x32xf32>
    %246 = arith.addf %245, %244 : vector<2x32xf32>
    %247 = arith.divf %245, %246 : vector<2x32xf32>
    %248 = vector.extract_strided_slice %241 {offsets = [0, 32], sizes = [2, 32], strides = [1, 1]} : vector<2x128xf32> to vector<2x32xf32>
    %249 = arith.negf %248 : vector<2x32xf32>
    %250 = math.exp %249 : vector<2x32xf32>
    %cst_77 = arith.constant 1.000000e+00 : f32
    %251 = vector.broadcast %cst_77 : f32 to vector<2x32xf32>
    %252 = arith.addf %251, %250 : vector<2x32xf32>
    %253 = arith.divf %251, %252 : vector<2x32xf32>
    %254 = vector.extract_strided_slice %241 {offsets = [0, 64], sizes = [2, 32], strides = [1, 1]} : vector<2x128xf32> to vector<2x32xf32>
    %255 = math.tanh %254 : vector<2x32xf32>
    %256 = vector.extract_strided_slice %241 {offsets = [0, 96], sizes = [2, 32], strides = [1, 1]} : vector<2x128xf32> to vector<2x32xf32>
    %257 = arith.negf %256 : vector<2x32xf32>
    %258 = math.exp %257 : vector<2x32xf32>
    %cst_78 = arith.constant 1.000000e+00 : f32
    %259 = vector.broadcast %cst_78 : f32 to vector<2x32xf32>
    %260 = arith.addf %259, %258 : vector<2x32xf32>
    %261 = arith.divf %259, %260 : vector<2x32xf32>
    %262 = arith.mulf %253, %237 : vector<2x32xf32>
    %263 = arith.mulf %247, %255 : vector<2x32xf32>
    %264 = arith.addf %262, %263 : vector<2x32xf32>
    %265 = math.tanh %264 : vector<2x32xf32>
    %266 = arith.mulf %261, %265 : vector<2x32xf32>
    %cst_79 = arith.constant dense<0.000000e+00> : vector<2x128xf32>
    %267 = tpu.matmul %266, %5, %cst_79 {dimension_numbers = #tpu.dot_dimension_numbers<[1], [0], [0], [1], [0, 0, 1, 1], [], []>} : vector<2x32xf32>, vector<32x128xf32>, vector<2x128xf32> -> vector<2x128xf32>
    %268 = arith.addf %51, %267 : vector<2x128xf32>
    %269 = vector.extract_strided_slice %268 {offsets = [0, 0], sizes = [2, 32], strides = [1, 1]} : vector<2x128xf32> to vector<2x32xf32>
    %270 = arith.negf %269 : vector<2x32xf32>
    %271 = math.exp %270 : vector<2x32xf32>
    %cst_80 = arith.constant 1.000000e+00 : f32
    %272 = vector.broadcast %cst_80 : f32 to vector<2x32xf32>
    %273 = arith.addf %272, %271 : vector<2x32xf32>
    %274 = arith.divf %272, %273 : vector<2x32xf32>
    %275 = vector.extract_strided_slice %268 {offsets = [0, 32], sizes = [2, 32], strides = [1, 1]} : vector<2x128xf32> to vector<2x32xf32>
    %276 = arith.negf %275 : vector<2x32xf32>
    %277 = math.exp %276 : vector<2x32xf32>
    %cst_81 = arith.constant 1.000000e+00 : f32
    %278 = vector.broadcast %cst_81 : f32 to vector<2x32xf32>
    %279 = arith.addf %278, %277 : vector<2x32xf32>
    %280 = arith.divf %278, %279 : vector<2x32xf32>
    %281 = vector.extract_strided_slice %268 {offsets = [0, 64], sizes = [2, 32], strides = [1, 1]} : vector<2x128xf32> to vector<2x32xf32>
    %282 = math.tanh %281 : vector<2x32xf32>
    %283 = vector.extract_strided_slice %268 {offsets = [0, 96], sizes = [2, 32], strides = [1, 1]} : vector<2x128xf32> to vector<2x32xf32>
    %284 = arith.negf %283 : vector<2x32xf32>
    %285 = math.exp %284 : vector<2x32xf32>
    %cst_82 = arith.constant 1.000000e+00 : f32
    %286 = vector.broadcast %cst_82 : f32 to vector<2x32xf32>
    %287 = arith.addf %286, %285 : vector<2x32xf32>
    %288 = arith.divf %286, %287 : vector<2x32xf32>
    %289 = arith.mulf %280, %264 : vector<2x32xf32>
    %290 = arith.mulf %274, %282 : vector<2x32xf32>
    %291 = arith.addf %289, %290 : vector<2x32xf32>
    %292 = math.tanh %291 : vector<2x32xf32>
    %293 = arith.mulf %288, %292 : vector<2x32xf32>
    %cst_83 = arith.constant 0.000000e+00 : f32
    %294 = vector.broadcast %cst_83 : f32 to vector<2x32xf32>
    %cst_84 = arith.constant 0.000000e+00 : f32
    %295 = vector.broadcast %cst_84 : f32 to vector<2x32xf32>
    %cst_85 = arith.constant dense<0.000000e+00> : vector<2x128xf32>
    %296 = tpu.matmul %294, %7, %cst_85 {dimension_numbers = #tpu.dot_dimension_numbers<[1], [0], [0], [1], [0, 0, 1, 1], [], []>} : vector<2x32xf32>, vector<32x128xf32>, vector<2x128xf32> -> vector<2x128xf32>
    %297 = arith.addf %75, %296 : vector<2x128xf32>
    %298 = vector.extract_strided_slice %297 {offsets = [0, 0], sizes = [2, 32], strides = [1, 1]} : vector<2x128xf32> to vector<2x32xf32>
    %299 = arith.negf %298 : vector<2x32xf32>
    %300 = math.exp %299 : vector<2x32xf32>
    %cst_86 = arith.constant 1.000000e+00 : f32
    %301 = vector.broadcast %cst_86 : f32 to vector<2x32xf32>
    %302 = arith.addf %301, %300 : vector<2x32xf32>
    %303 = arith.divf %301, %302 : vector<2x32xf32>
    %304 = vector.extract_strided_slice %297 {offsets = [0, 32], sizes = [2, 32], strides = [1, 1]} : vector<2x128xf32> to vector<2x32xf32>
    %305 = arith.negf %304 : vector<2x32xf32>
    %306 = math.exp %305 : vector<2x32xf32>
    %cst_87 = arith.constant 1.000000e+00 : f32
    %307 = vector.broadcast %cst_87 : f32 to vector<2x32xf32>
    %308 = arith.addf %307, %306 : vector<2x32xf32>
    %309 = arith.divf %307, %308 : vector<2x32xf32>
    %310 = vector.extract_strided_slice %297 {offsets = [0, 64], sizes = [2, 32], strides = [1, 1]} : vector<2x128xf32> to vector<2x32xf32>
    %311 = math.tanh %310 : vector<2x32xf32>
    %312 = vector.extract_strided_slice %297 {offsets = [0, 96], sizes = [2, 32], strides = [1, 1]} : vector<2x128xf32> to vector<2x32xf32>
    %313 = arith.negf %312 : vector<2x32xf32>
    %314 = math.exp %313 : vector<2x32xf32>
    %cst_88 = arith.constant 1.000000e+00 : f32
    %315 = vector.broadcast %cst_88 : f32 to vector<2x32xf32>
    %316 = arith.addf %315, %314 : vector<2x32xf32>
    %317 = arith.divf %315, %316 : vector<2x32xf32>
    %318 = arith.mulf %309, %295 : vector<2x32xf32>
    %319 = arith.mulf %303, %311 : vector<2x32xf32>
    %320 = arith.addf %318, %319 : vector<2x32xf32>
    %321 = math.tanh %320 : vector<2x32xf32>
    %322 = arith.mulf %317, %321 : vector<2x32xf32>
    %cst_89 = arith.constant dense<0.000000e+00> : vector<2x128xf32>
    %323 = tpu.matmul %322, %7, %cst_89 {dimension_numbers = #tpu.dot_dimension_numbers<[1], [0], [0], [1], [0, 0, 1, 1], [], []>} : vector<2x32xf32>, vector<32x128xf32>, vector<2x128xf32> -> vector<2x128xf32>
    %324 = arith.addf %72, %323 : vector<2x128xf32>
    %325 = vector.extract_strided_slice %324 {offsets = [0, 0], sizes = [2, 32], strides = [1, 1]} : vector<2x128xf32> to vector<2x32xf32>
    %326 = arith.negf %325 : vector<2x32xf32>
    %327 = math.exp %326 : vector<2x32xf32>
    %cst_90 = arith.constant 1.000000e+00 : f32
    %328 = vector.broadcast %cst_90 : f32 to vector<2x32xf32>
    %329 = arith.addf %328, %327 : vector<2x32xf32>
    %330 = arith.divf %328, %329 : vector<2x32xf32>
    %331 = vector.extract_strided_slice %324 {offsets = [0, 32], sizes = [2, 32], strides = [1, 1]} : vector<2x128xf32> to vector<2x32xf32>
    %332 = arith.negf %331 : vector<2x32xf32>
    %333 = math.exp %332 : vector<2x32xf32>
    %cst_91 = arith.constant 1.000000e+00 : f32
    %334 = vector.broadcast %cst_91 : f32 to vector<2x32xf32>
    %335 = arith.addf %334, %333 : vector<2x32xf32>
    %336 = arith.divf %334, %335 : vector<2x32xf32>
    %337 = vector.extract_strided_slice %324 {offsets = [0, 64], sizes = [2, 32], strides = [1, 1]} : vector<2x128xf32> to vector<2x32xf32>
    %338 = math.tanh %337 : vector<2x32xf32>
    %339 = vector.extract_strided_slice %324 {offsets = [0, 96], sizes = [2, 32], strides = [1, 1]} : vector<2x128xf32> to vector<2x32xf32>
    %340 = arith.negf %339 : vector<2x32xf32>
    %341 = math.exp %340 : vector<2x32xf32>
    %cst_92 = arith.constant 1.000000e+00 : f32
    %342 = vector.broadcast %cst_92 : f32 to vector<2x32xf32>
    %343 = arith.addf %342, %341 : vector<2x32xf32>
    %344 = arith.divf %342, %343 : vector<2x32xf32>
    %345 = arith.mulf %336, %320 : vector<2x32xf32>
    %346 = arith.mulf %330, %338 : vector<2x32xf32>
    %347 = arith.addf %345, %346 : vector<2x32xf32>
    %348 = math.tanh %347 : vector<2x32xf32>
    %349 = arith.mulf %344, %348 : vector<2x32xf32>
    %cst_93 = arith.constant dense<0.000000e+00> : vector<2x128xf32>
    %350 = tpu.matmul %349, %7, %cst_93 {dimension_numbers = #tpu.dot_dimension_numbers<[1], [0], [0], [1], [0, 0, 1, 1], [], []>} : vector<2x32xf32>, vector<32x128xf32>, vector<2x128xf32> -> vector<2x128xf32>
    %351 = arith.addf %69, %350 : vector<2x128xf32>
    %352 = vector.extract_strided_slice %351 {offsets = [0, 0], sizes = [2, 32], strides = [1, 1]} : vector<2x128xf32> to vector<2x32xf32>
    %353 = arith.negf %352 : vector<2x32xf32>
    %354 = math.exp %353 : vector<2x32xf32>
    %cst_94 = arith.constant 1.000000e+00 : f32
    %355 = vector.broadcast %cst_94 : f32 to vector<2x32xf32>
    %356 = arith.addf %355, %354 : vector<2x32xf32>
    %357 = arith.divf %355, %356 : vector<2x32xf32>
    %358 = vector.extract_strided_slice %351 {offsets = [0, 32], sizes = [2, 32], strides = [1, 1]} : vector<2x128xf32> to vector<2x32xf32>
    %359 = arith.negf %358 : vector<2x32xf32>
    %360 = math.exp %359 : vector<2x32xf32>
    %cst_95 = arith.constant 1.000000e+00 : f32
    %361 = vector.broadcast %cst_95 : f32 to vector<2x32xf32>
    %362 = arith.addf %361, %360 : vector<2x32xf32>
    %363 = arith.divf %361, %362 : vector<2x32xf32>
    %364 = vector.extract_strided_slice %351 {offsets = [0, 64], sizes = [2, 32], strides = [1, 1]} : vector<2x128xf32> to vector<2x32xf32>
    %365 = math.tanh %364 : vector<2x32xf32>
    %366 = vector.extract_strided_slice %351 {offsets = [0, 96], sizes = [2, 32], strides = [1, 1]} : vector<2x128xf32> to vector<2x32xf32>
    %367 = arith.negf %366 : vector<2x32xf32>
    %368 = math.exp %367 : vector<2x32xf32>
    %cst_96 = arith.constant 1.000000e+00 : f32
    %369 = vector.broadcast %cst_96 : f32 to vector<2x32xf32>
    %370 = arith.addf %369, %368 : vector<2x32xf32>
    %371 = arith.divf %369, %370 : vector<2x32xf32>
    %372 = arith.mulf %363, %347 : vector<2x32xf32>
    %373 = arith.mulf %357, %365 : vector<2x32xf32>
    %374 = arith.addf %372, %373 : vector<2x32xf32>
    %375 = math.tanh %374 : vector<2x32xf32>
    %376 = arith.mulf %371, %375 : vector<2x32xf32>
    %cst_97 = arith.constant dense<0.000000e+00> : vector<2x128xf32>
    %377 = tpu.matmul %376, %7, %cst_97 {dimension_numbers = #tpu.dot_dimension_numbers<[1], [0], [0], [1], [0, 0, 1, 1], [], []>} : vector<2x32xf32>, vector<32x128xf32>, vector<2x128xf32> -> vector<2x128xf32>
    %378 = arith.addf %66, %377 : vector<2x128xf32>
    %379 = vector.extract_strided_slice %378 {offsets = [0, 0], sizes = [2, 32], strides = [1, 1]} : vector<2x128xf32> to vector<2x32xf32>
    %380 = arith.negf %379 : vector<2x32xf32>
    %381 = math.exp %380 : vector<2x32xf32>
    %cst_98 = arith.constant 1.000000e+00 : f32
    %382 = vector.broadcast %cst_98 : f32 to vector<2x32xf32>
    %383 = arith.addf %382, %381 : vector<2x32xf32>
    %384 = arith.divf %382, %383 : vector<2x32xf32>
    %385 = vector.extract_strided_slice %378 {offsets = [0, 32], sizes = [2, 32], strides = [1, 1]} : vector<2x128xf32> to vector<2x32xf32>
    %386 = arith.negf %385 : vector<2x32xf32>
    %387 = math.exp %386 : vector<2x32xf32>
    %cst_99 = arith.constant 1.000000e+00 : f32
    %388 = vector.broadcast %cst_99 : f32 to vector<2x32xf32>
    %389 = arith.addf %388, %387 : vector<2x32xf32>
    %390 = arith.divf %388, %389 : vector<2x32xf32>
    %391 = vector.extract_strided_slice %378 {offsets = [0, 64], sizes = [2, 32], strides = [1, 1]} : vector<2x128xf32> to vector<2x32xf32>
    %392 = math.tanh %391 : vector<2x32xf32>
    %393 = vector.extract_strided_slice %378 {offsets = [0, 96], sizes = [2, 32], strides = [1, 1]} : vector<2x128xf32> to vector<2x32xf32>
    %394 = arith.negf %393 : vector<2x32xf32>
    %395 = math.exp %394 : vector<2x32xf32>
    %cst_100 = arith.constant 1.000000e+00 : f32
    %396 = vector.broadcast %cst_100 : f32 to vector<2x32xf32>
    %397 = arith.addf %396, %395 : vector<2x32xf32>
    %398 = arith.divf %396, %397 : vector<2x32xf32>
    %399 = arith.mulf %390, %374 : vector<2x32xf32>
    %400 = arith.mulf %384, %392 : vector<2x32xf32>
    %401 = arith.addf %399, %400 : vector<2x32xf32>
    %402 = math.tanh %401 : vector<2x32xf32>
    %403 = arith.mulf %398, %402 : vector<2x32xf32>
    %cst_101 = arith.constant dense<0.000000e+00> : vector<2x128xf32>
    %404 = tpu.matmul %403, %7, %cst_101 {dimension_numbers = #tpu.dot_dimension_numbers<[1], [0], [0], [1], [0, 0, 1, 1], [], []>} : vector<2x32xf32>, vector<32x128xf32>, vector<2x128xf32> -> vector<2x128xf32>
    %405 = arith.addf %63, %404 : vector<2x128xf32>
    %406 = vector.extract_strided_slice %405 {offsets = [0, 0], sizes = [2, 32], strides = [1, 1]} : vector<2x128xf32> to vector<2x32xf32>
    %407 = arith.negf %406 : vector<2x32xf32>
    %408 = math.exp %407 : vector<2x32xf32>
    %cst_102 = arith.constant 1.000000e+00 : f32
    %409 = vector.broadcast %cst_102 : f32 to vector<2x32xf32>
    %410 = arith.addf %409, %408 : vector<2x32xf32>
    %411 = arith.divf %409, %410 : vector<2x32xf32>
    %412 = vector.extract_strided_slice %405 {offsets = [0, 32], sizes = [2, 32], strides = [1, 1]} : vector<2x128xf32> to vector<2x32xf32>
    %413 = arith.negf %412 : vector<2x32xf32>
    %414 = math.exp %413 : vector<2x32xf32>
    %cst_103 = arith.constant 1.000000e+00 : f32
    %415 = vector.broadcast %cst_103 : f32 to vector<2x32xf32>
    %416 = arith.addf %415, %414 : vector<2x32xf32>
    %417 = arith.divf %415, %416 : vector<2x32xf32>
    %418 = vector.extract_strided_slice %405 {offsets = [0, 64], sizes = [2, 32], strides = [1, 1]} : vector<2x128xf32> to vector<2x32xf32>
    %419 = math.tanh %418 : vector<2x32xf32>
    %420 = vector.extract_strided_slice %405 {offsets = [0, 96], sizes = [2, 32], strides = [1, 1]} : vector<2x128xf32> to vector<2x32xf32>
    %421 = arith.negf %420 : vector<2x32xf32>
    %422 = math.exp %421 : vector<2x32xf32>
    %cst_104 = arith.constant 1.000000e+00 : f32
    %423 = vector.broadcast %cst_104 : f32 to vector<2x32xf32>
    %424 = arith.addf %423, %422 : vector<2x32xf32>
    %425 = arith.divf %423, %424 : vector<2x32xf32>
    %426 = arith.mulf %417, %401 : vector<2x32xf32>
    %427 = arith.mulf %411, %419 : vector<2x32xf32>
    %428 = arith.addf %426, %427 : vector<2x32xf32>
    %429 = math.tanh %428 : vector<2x32xf32>
    %430 = arith.mulf %425, %429 : vector<2x32xf32>
    %cst_105 = arith.constant dense<0.000000e+00> : vector<2x128xf32>
    %431 = tpu.matmul %430, %7, %cst_105 {dimension_numbers = #tpu.dot_dimension_numbers<[1], [0], [0], [1], [0, 0, 1, 1], [], []>} : vector<2x32xf32>, vector<32x128xf32>, vector<2x128xf32> -> vector<2x128xf32>
    %432 = arith.addf %60, %431 : vector<2x128xf32>
    %433 = vector.extract_strided_slice %432 {offsets = [0, 0], sizes = [2, 32], strides = [1, 1]} : vector<2x128xf32> to vector<2x32xf32>
    %434 = arith.negf %433 : vector<2x32xf32>
    %435 = math.exp %434 : vector<2x32xf32>
    %cst_106 = arith.constant 1.000000e+00 : f32
    %436 = vector.broadcast %cst_106 : f32 to vector<2x32xf32>
    %437 = arith.addf %436, %435 : vector<2x32xf32>
    %438 = arith.divf %436, %437 : vector<2x32xf32>
    %439 = vector.extract_strided_slice %432 {offsets = [0, 32], sizes = [2, 32], strides = [1, 1]} : vector<2x128xf32> to vector<2x32xf32>
    %440 = arith.negf %439 : vector<2x32xf32>
    %441 = math.exp %440 : vector<2x32xf32>
    %cst_107 = arith.constant 1.000000e+00 : f32
    %442 = vector.broadcast %cst_107 : f32 to vector<2x32xf32>
    %443 = arith.addf %442, %441 : vector<2x32xf32>
    %444 = arith.divf %442, %443 : vector<2x32xf32>
    %445 = vector.extract_strided_slice %432 {offsets = [0, 64], sizes = [2, 32], strides = [1, 1]} : vector<2x128xf32> to vector<2x32xf32>
    %446 = math.tanh %445 : vector<2x32xf32>
    %447 = vector.extract_strided_slice %432 {offsets = [0, 96], sizes = [2, 32], strides = [1, 1]} : vector<2x128xf32> to vector<2x32xf32>
    %448 = arith.negf %447 : vector<2x32xf32>
    %449 = math.exp %448 : vector<2x32xf32>
    %cst_108 = arith.constant 1.000000e+00 : f32
    %450 = vector.broadcast %cst_108 : f32 to vector<2x32xf32>
    %451 = arith.addf %450, %449 : vector<2x32xf32>
    %452 = arith.divf %450, %451 : vector<2x32xf32>
    %453 = arith.mulf %444, %428 : vector<2x32xf32>
    %454 = arith.mulf %438, %446 : vector<2x32xf32>
    %455 = arith.addf %453, %454 : vector<2x32xf32>
    %456 = math.tanh %455 : vector<2x32xf32>
    %457 = arith.mulf %452, %456 : vector<2x32xf32>
    %cst_109 = arith.constant dense<0.000000e+00> : vector<2x128xf32>
    %458 = tpu.matmul %457, %7, %cst_109 {dimension_numbers = #tpu.dot_dimension_numbers<[1], [0], [0], [1], [0, 0, 1, 1], [], []>} : vector<2x32xf32>, vector<32x128xf32>, vector<2x128xf32> -> vector<2x128xf32>
    %459 = arith.addf %57, %458 : vector<2x128xf32>
    %460 = vector.extract_strided_slice %459 {offsets = [0, 0], sizes = [2, 32], strides = [1, 1]} : vector<2x128xf32> to vector<2x32xf32>
    %461 = arith.negf %460 : vector<2x32xf32>
    %462 = math.exp %461 : vector<2x32xf32>
    %cst_110 = arith.constant 1.000000e+00 : f32
    %463 = vector.broadcast %cst_110 : f32 to vector<2x32xf32>
    %464 = arith.addf %463, %462 : vector<2x32xf32>
    %465 = arith.divf %463, %464 : vector<2x32xf32>
    %466 = vector.extract_strided_slice %459 {offsets = [0, 32], sizes = [2, 32], strides = [1, 1]} : vector<2x128xf32> to vector<2x32xf32>
    %467 = arith.negf %466 : vector<2x32xf32>
    %468 = math.exp %467 : vector<2x32xf32>
    %cst_111 = arith.constant 1.000000e+00 : f32
    %469 = vector.broadcast %cst_111 : f32 to vector<2x32xf32>
    %470 = arith.addf %469, %468 : vector<2x32xf32>
    %471 = arith.divf %469, %470 : vector<2x32xf32>
    %472 = vector.extract_strided_slice %459 {offsets = [0, 64], sizes = [2, 32], strides = [1, 1]} : vector<2x128xf32> to vector<2x32xf32>
    %473 = math.tanh %472 : vector<2x32xf32>
    %474 = vector.extract_strided_slice %459 {offsets = [0, 96], sizes = [2, 32], strides = [1, 1]} : vector<2x128xf32> to vector<2x32xf32>
    %475 = arith.negf %474 : vector<2x32xf32>
    %476 = math.exp %475 : vector<2x32xf32>
    %cst_112 = arith.constant 1.000000e+00 : f32
    %477 = vector.broadcast %cst_112 : f32 to vector<2x32xf32>
    %478 = arith.addf %477, %476 : vector<2x32xf32>
    %479 = arith.divf %477, %478 : vector<2x32xf32>
    %480 = arith.mulf %471, %455 : vector<2x32xf32>
    %481 = arith.mulf %465, %473 : vector<2x32xf32>
    %482 = arith.addf %480, %481 : vector<2x32xf32>
    %483 = math.tanh %482 : vector<2x32xf32>
    %484 = arith.mulf %479, %483 : vector<2x32xf32>
    %cst_113 = arith.constant dense<0.000000e+00> : vector<2x128xf32>
    %485 = tpu.matmul %484, %7, %cst_113 {dimension_numbers = #tpu.dot_dimension_numbers<[1], [0], [0], [1], [0, 0, 1, 1], [], []>} : vector<2x32xf32>, vector<32x128xf32>, vector<2x128xf32> -> vector<2x128xf32>
    %486 = arith.addf %54, %485 : vector<2x128xf32>
    %487 = vector.extract_strided_slice %486 {offsets = [0, 0], sizes = [2, 32], strides = [1, 1]} : vector<2x128xf32> to vector<2x32xf32>
    %488 = arith.negf %487 : vector<2x32xf32>
    %489 = math.exp %488 : vector<2x32xf32>
    %cst_114 = arith.constant 1.000000e+00 : f32
    %490 = vector.broadcast %cst_114 : f32 to vector<2x32xf32>
    %491 = arith.addf %490, %489 : vector<2x32xf32>
    %492 = arith.divf %490, %491 : vector<2x32xf32>
    %493 = vector.extract_strided_slice %486 {offsets = [0, 32], sizes = [2, 32], strides = [1, 1]} : vector<2x128xf32> to vector<2x32xf32>
    %494 = arith.negf %493 : vector<2x32xf32>
    %495 = math.exp %494 : vector<2x32xf32>
    %cst_115 = arith.constant 1.000000e+00 : f32
    %496 = vector.broadcast %cst_115 : f32 to vector<2x32xf32>
    %497 = arith.addf %496, %495 : vector<2x32xf32>
    %498 = arith.divf %496, %497 : vector<2x32xf32>
    %499 = vector.extract_strided_slice %486 {offsets = [0, 64], sizes = [2, 32], strides = [1, 1]} : vector<2x128xf32> to vector<2x32xf32>
    %500 = math.tanh %499 : vector<2x32xf32>
    %501 = vector.extract_strided_slice %486 {offsets = [0, 96], sizes = [2, 32], strides = [1, 1]} : vector<2x128xf32> to vector<2x32xf32>
    %502 = arith.negf %501 : vector<2x32xf32>
    %503 = math.exp %502 : vector<2x32xf32>
    %cst_116 = arith.constant 1.000000e+00 : f32
    %504 = vector.broadcast %cst_116 : f32 to vector<2x32xf32>
    %505 = arith.addf %504, %503 : vector<2x32xf32>
    %506 = arith.divf %504, %505 : vector<2x32xf32>
    %507 = arith.mulf %498, %482 : vector<2x32xf32>
    %508 = arith.mulf %492, %500 : vector<2x32xf32>
    %509 = arith.addf %507, %508 : vector<2x32xf32>
    %510 = math.tanh %509 : vector<2x32xf32>
    %511 = arith.mulf %506, %510 : vector<2x32xf32>
    %c0_117 = arith.constant 0 : index
    %c0_118 = arith.constant 0 : index
    %512 = vector.load %arg5[%c0_117, %c0_118] : memref<32x32xf32, #tpu.memory_space<vmem>>, vector<32x32xf32>
    %cst_119 = arith.constant dense<0.000000e+00> : vector<2x32xf32>
    %513 = tpu.matmul %293, %512, %cst_119 {dimension_numbers = #tpu.dot_dimension_numbers<[1], [0], [0], [1], [0, 0, 1, 1], [], []>} : vector<2x32xf32>, vector<32x32xf32>, vector<2x32xf32> -> vector<2x32xf32>
    %c0_120 = arith.constant 0 : index
    %c0_121 = arith.constant 0 : index
    %514 = vector.load %arg6[%c0_120, %c0_121] : memref<32x32xf32, #tpu.memory_space<vmem>>, vector<32x32xf32>
    %cst_122 = arith.constant dense<0.000000e+00> : vector<2x32xf32>
    %515 = tpu.matmul %511, %514, %cst_122 {dimension_numbers = #tpu.dot_dimension_numbers<[1], [0], [0], [1], [0, 0, 1, 1], [], []>} : vector<2x32xf32>, vector<32x32xf32>, vector<2x32xf32> -> vector<2x32xf32>
    %516 = arith.addf %513, %515 : vector<2x32xf32>
    %c0_123 = arith.constant 0 : index
    %c0_124 = arith.constant 0 : index
    %517 = vector.load %arg7[%c0_123, %c0_124] : memref<1x32xf32, #tpu.memory_space<vmem>>, vector<1x32xf32>
    %518 = vector.broadcast %517 : vector<1x32xf32> to vector<2x32xf32>
    %519 = arith.addf %516, %518 : vector<2x32xf32>
    %c0_125 = arith.constant 0 : index
    %c0_126 = arith.constant 0 : index
    %520 = vector.load %arg8[%c0_125, %c0_126] : memref<32x32xf32, #tpu.memory_space<vmem>>, vector<32x32xf32>
    %cst_127 = arith.constant dense<0.000000e+00> : vector<2x32xf32>
    %521 = tpu.matmul %291, %520, %cst_127 {dimension_numbers = #tpu.dot_dimension_numbers<[1], [0], [0], [1], [0, 0, 1, 1], [], []>} : vector<2x32xf32>, vector<32x32xf32>, vector<2x32xf32> -> vector<2x32xf32>
    %c0_128 = arith.constant 0 : index
    %c0_129 = arith.constant 0 : index
    %522 = vector.load %arg9[%c0_128, %c0_129] : memref<32x32xf32, #tpu.memory_space<vmem>>, vector<32x32xf32>
    %cst_130 = arith.constant dense<0.000000e+00> : vector<2x32xf32>
    %523 = tpu.matmul %509, %522, %cst_130 {dimension_numbers = #tpu.dot_dimension_numbers<[1], [0], [0], [1], [0, 0, 1, 1], [], []>} : vector<2x32xf32>, vector<32x32xf32>, vector<2x32xf32> -> vector<2x32xf32>
    %524 = arith.addf %521, %523 : vector<2x32xf32>
    %c0_131 = arith.constant 0 : index
    %c0_132 = arith.constant 0 : index
    %525 = vector.load %arg10[%c0_131, %c0_132] : memref<1x32xf32, #tpu.memory_space<vmem>>, vector<1x32xf32>
    %526 = vector.broadcast %525 : vector<1x32xf32> to vector<2x32xf32>
    %527 = arith.addf %524, %526 : vector<2x32xf32>
    %c0_133 = arith.constant 0 : index
    %c0_134 = arith.constant 0 : index
    %528 = vector.load %arg12[%c0_133, %c0_134] : memref<1x32xf32, #tpu.memory_space<vmem>>, vector<1x32xf32>
    %c0_135 = arith.constant 0 : index
    %c0_136 = arith.constant 0 : index
    %529 = vector.load %arg13[%c0_135, %c0_136] : memref<1x32xf32, #tpu.memory_space<vmem>>, vector<1x32xf32>
    %c0_137 = arith.constant 0 : index
    %c0_138 = arith.constant 0 : index
    %530 = vector.load %arg14[%c0_137, %c0_138] : memref<1x1xf32, #tpu.memory_space<vmem>>, vector<1x1xf32>
    %531 = vector.broadcast %528 : vector<1x32xf32> to vector<2x32xf32>
    %532 = arith.mulf %104, %531 : vector<2x32xf32>
    %cst_139 = arith.constant dense<0.000000e+00> : vector<2xf32>
    %533 = vector.multi_reduction <add>, %532, %cst_139 [1] : vector<2x32xf32> to vector<2xf32>
    %534 = vector.shape_cast %533 : vector<2xf32> to vector<2x1xf32>
    %535 = vector.broadcast %529 : vector<1x32xf32> to vector<2x32xf32>
    %536 = arith.mulf %511, %535 : vector<2x32xf32>
    %cst_140 = arith.constant dense<0.000000e+00> : vector<2xf32>
    %537 = vector.multi_reduction <add>, %536, %cst_140 [1] : vector<2x32xf32> to vector<2xf32>
    %538 = vector.shape_cast %537 : vector<2xf32> to vector<2x1xf32>
    %539 = arith.addf %534, %538 : vector<2x1xf32>
    %540 = vector.broadcast %530 : vector<1x1xf32> to vector<2x1xf32>
    %541 = arith.addf %539, %540 : vector<2x1xf32>
    %542 = vector.broadcast %528 : vector<1x32xf32> to vector<2x32xf32>
    %543 = arith.mulf %131, %542 : vector<2x32xf32>
    %cst_141 = arith.constant dense<0.000000e+00> : vector<2xf32>
    %544 = vector.multi_reduction <add>, %543, %cst_141 [1] : vector<2x32xf32> to vector<2xf32>
    %545 = vector.shape_cast %544 : vector<2xf32> to vector<2x1xf32>
    %546 = vector.broadcast %529 : vector<1x32xf32> to vector<2x32xf32>
    %547 = arith.mulf %484, %546 : vector<2x32xf32>
    %cst_142 = arith.constant dense<0.000000e+00> : vector<2xf32>
    %548 = vector.multi_reduction <add>, %547, %cst_142 [1] : vector<2x32xf32> to vector<2xf32>
    %549 = vector.shape_cast %548 : vector<2xf32> to vector<2x1xf32>
    %550 = arith.addf %545, %549 : vector<2x1xf32>
    %551 = vector.broadcast %530 : vector<1x1xf32> to vector<2x1xf32>
    %552 = arith.addf %550, %551 : vector<2x1xf32>
    %553 = vector.broadcast %528 : vector<1x32xf32> to vector<2x32xf32>
    %554 = arith.mulf %158, %553 : vector<2x32xf32>
    %cst_143 = arith.constant dense<0.000000e+00> : vector<2xf32>
    %555 = vector.multi_reduction <add>, %554, %cst_143 [1] : vector<2x32xf32> to vector<2xf32>
    %556 = vector.shape_cast %555 : vector<2xf32> to vector<2x1xf32>
    %557 = vector.broadcast %529 : vector<1x32xf32> to vector<2x32xf32>
    %558 = arith.mulf %457, %557 : vector<2x32xf32>
    %cst_144 = arith.constant dense<0.000000e+00> : vector<2xf32>
    %559 = vector.multi_reduction <add>, %558, %cst_144 [1] : vector<2x32xf32> to vector<2xf32>
    %560 = vector.shape_cast %559 : vector<2xf32> to vector<2x1xf32>
    %561 = arith.addf %556, %560 : vector<2x1xf32>
    %562 = vector.broadcast %530 : vector<1x1xf32> to vector<2x1xf32>
    %563 = arith.addf %561, %562 : vector<2x1xf32>
    %564 = vector.broadcast %528 : vector<1x32xf32> to vector<2x32xf32>
    %565 = arith.mulf %185, %564 : vector<2x32xf32>
    %cst_145 = arith.constant dense<0.000000e+00> : vector<2xf32>
    %566 = vector.multi_reduction <add>, %565, %cst_145 [1] : vector<2x32xf32> to vector<2xf32>
    %567 = vector.shape_cast %566 : vector<2xf32> to vector<2x1xf32>
    %568 = vector.broadcast %529 : vector<1x32xf32> to vector<2x32xf32>
    %569 = arith.mulf %430, %568 : vector<2x32xf32>
    %cst_146 = arith.constant dense<0.000000e+00> : vector<2xf32>
    %570 = vector.multi_reduction <add>, %569, %cst_146 [1] : vector<2x32xf32> to vector<2xf32>
    %571 = vector.shape_cast %570 : vector<2xf32> to vector<2x1xf32>
    %572 = arith.addf %567, %571 : vector<2x1xf32>
    %573 = vector.broadcast %530 : vector<1x1xf32> to vector<2x1xf32>
    %574 = arith.addf %572, %573 : vector<2x1xf32>
    %575 = vector.broadcast %528 : vector<1x32xf32> to vector<2x32xf32>
    %576 = arith.mulf %212, %575 : vector<2x32xf32>
    %cst_147 = arith.constant dense<0.000000e+00> : vector<2xf32>
    %577 = vector.multi_reduction <add>, %576, %cst_147 [1] : vector<2x32xf32> to vector<2xf32>
    %578 = vector.shape_cast %577 : vector<2xf32> to vector<2x1xf32>
    %579 = vector.broadcast %529 : vector<1x32xf32> to vector<2x32xf32>
    %580 = arith.mulf %403, %579 : vector<2x32xf32>
    %cst_148 = arith.constant dense<0.000000e+00> : vector<2xf32>
    %581 = vector.multi_reduction <add>, %580, %cst_148 [1] : vector<2x32xf32> to vector<2xf32>
    %582 = vector.shape_cast %581 : vector<2xf32> to vector<2x1xf32>
    %583 = arith.addf %578, %582 : vector<2x1xf32>
    %584 = vector.broadcast %530 : vector<1x1xf32> to vector<2x1xf32>
    %585 = arith.addf %583, %584 : vector<2x1xf32>
    %586 = vector.broadcast %528 : vector<1x32xf32> to vector<2x32xf32>
    %587 = arith.mulf %239, %586 : vector<2x32xf32>
    %cst_149 = arith.constant dense<0.000000e+00> : vector<2xf32>
    %588 = vector.multi_reduction <add>, %587, %cst_149 [1] : vector<2x32xf32> to vector<2xf32>
    %589 = vector.shape_cast %588 : vector<2xf32> to vector<2x1xf32>
    %590 = vector.broadcast %529 : vector<1x32xf32> to vector<2x32xf32>
    %591 = arith.mulf %376, %590 : vector<2x32xf32>
    %cst_150 = arith.constant dense<0.000000e+00> : vector<2xf32>
    %592 = vector.multi_reduction <add>, %591, %cst_150 [1] : vector<2x32xf32> to vector<2xf32>
    %593 = vector.shape_cast %592 : vector<2xf32> to vector<2x1xf32>
    %594 = arith.addf %589, %593 : vector<2x1xf32>
    %595 = vector.broadcast %530 : vector<1x1xf32> to vector<2x1xf32>
    %596 = arith.addf %594, %595 : vector<2x1xf32>
    %597 = vector.broadcast %528 : vector<1x32xf32> to vector<2x32xf32>
    %598 = arith.mulf %266, %597 : vector<2x32xf32>
    %cst_151 = arith.constant dense<0.000000e+00> : vector<2xf32>
    %599 = vector.multi_reduction <add>, %598, %cst_151 [1] : vector<2x32xf32> to vector<2xf32>
    %600 = vector.shape_cast %599 : vector<2xf32> to vector<2x1xf32>
    %601 = vector.broadcast %529 : vector<1x32xf32> to vector<2x32xf32>
    %602 = arith.mulf %349, %601 : vector<2x32xf32>
    %cst_152 = arith.constant dense<0.000000e+00> : vector<2xf32>
    %603 = vector.multi_reduction <add>, %602, %cst_152 [1] : vector<2x32xf32> to vector<2xf32>
    %604 = vector.shape_cast %603 : vector<2xf32> to vector<2x1xf32>
    %605 = arith.addf %600, %604 : vector<2x1xf32>
    %606 = vector.broadcast %530 : vector<1x1xf32> to vector<2x1xf32>
    %607 = arith.addf %605, %606 : vector<2x1xf32>
    %608 = vector.broadcast %528 : vector<1x32xf32> to vector<2x32xf32>
    %609 = arith.mulf %293, %608 : vector<2x32xf32>
    %cst_153 = arith.constant dense<0.000000e+00> : vector<2xf32>
    %610 = vector.multi_reduction <add>, %609, %cst_153 [1] : vector<2x32xf32> to vector<2xf32>
    %611 = vector.shape_cast %610 : vector<2xf32> to vector<2x1xf32>
    %612 = vector.broadcast %529 : vector<1x32xf32> to vector<2x32xf32>
    %613 = arith.mulf %322, %612 : vector<2x32xf32>
    %cst_154 = arith.constant dense<0.000000e+00> : vector<2xf32>
    %614 = vector.multi_reduction <add>, %613, %cst_154 [1] : vector<2x32xf32> to vector<2xf32>
    %615 = vector.shape_cast %614 : vector<2xf32> to vector<2x1xf32>
    %616 = arith.addf %611, %615 : vector<2x1xf32>
    %617 = vector.broadcast %530 : vector<1x1xf32> to vector<2x1xf32>
    %618 = arith.addf %616, %617 : vector<2x1xf32>
    %c0_155 = arith.constant 0 : index
    %c0_156 = arith.constant 0 : index
    %619 = vector.load %arg11[%c0_155, %c0_156] : memref<1x32xf32, #tpu.memory_space<vmem>>, vector<1x32xf32>
    %c0_157 = arith.constant 0 : index
    %c0_158 = arith.constant 0 : index
    %620 = vector.load %arg15[%c0_157, %c0_158] : memref<32x128xf32, #tpu.memory_space<vmem>>, vector<32x128xf32>
    %c0_159 = arith.constant 0 : index
    %c0_160 = arith.constant 0 : index
    %621 = vector.load %arg16[%c0_159, %c0_160] : memref<32x128xf32, #tpu.memory_space<vmem>>, vector<32x128xf32>
    %c0_161 = arith.constant 0 : index
    %c0_162 = arith.constant 0 : index
    %622 = vector.load %arg17[%c0_161, %c0_162] : memref<16x128xf32, #tpu.memory_space<vmem>>, vector<16x128xf32>
    %c0_163 = arith.constant 0 : index
    %c0_164 = arith.constant 0 : index
    %623 = vector.load %arg18[%c0_163, %c0_164] : memref<32x128xf32, #tpu.memory_space<vmem>>, vector<32x128xf32>
    %c0_165 = arith.constant 0 : index
    %c0_166 = arith.constant 0 : index
    %624 = vector.load %arg19[%c0_165, %c0_166] : memref<1x128xf32, #tpu.memory_space<vmem>>, vector<1x128xf32>
    %c0_167 = arith.constant 0 : index
    %c0_168 = arith.constant 0 : index
    %625 = vector.load %arg20[%c0_167, %c0_168] : memref<128x16xf32, #tpu.memory_space<vmem>>, vector<128x16xf32>
    %c0_169 = arith.constant 0 : index
    %c0_170 = arith.constant 0 : index
    %626 = vector.load %arg21[%c0_169, %c0_170] : memref<32x128xf32, #tpu.memory_space<vmem>>, vector<32x128xf32>
    %c0_171 = arith.constant 0 : index
    %c0_172 = arith.constant 0 : index
    %627 = vector.load %arg22[%c0_171, %c0_172] : memref<1x128xf32, #tpu.memory_space<vmem>>, vector<1x128xf32>
    %628 = tpu.iota {dimensions = array<i32: 1>} : vector<2x128xi32>
    %cst_173 = arith.constant 0.000000e+00 : f32
    %629 = vector.broadcast %cst_173 : f32 to vector<2x128xf32>
    %c0_174 = arith.constant 0 : index
    %c0_175 = arith.constant 0 : index
    %c0_176 = arith.constant 0 : index
    %630 = vector.load %arg23[%c0_174, %c0_175, %c0_176] : memref<6x2x128xf32, #tpu.memory_space<vmem>>, vector<1x2x128xf32>
    %631 = vector.shape_cast %630 : vector<1x2x128xf32> to vector<2x128xf32>
    %632 = vector.shape_cast %629 : vector<2x128xf32> to vector<1x2x128xf32>
    tpu.vector_store %arg23[%c0_174, %c0_175, %c0_176], %632 {strides = array<i32>} : memref<6x2x128xf32, #tpu.memory_space<vmem>>, vector<1x2x128xf32>,
    %c0_177 = arith.constant 0 : index
    %c0_178 = arith.constant 0 : index
    %c0_179 = arith.constant 0 : index
    %633 = vector.load %arg1[%c0_177, %c0_178, %c0_179] : memref<5x2x1xi32, #tpu.memory_space<vmem>>, vector<1x2x1xi32>
    %634 = vector.shape_cast %633 : vector<1x2x1xi32> to vector<2x1xi32>
    %635 = vector.broadcast %634 : vector<2x1xi32> to vector<2x128xi32>
    %636 = arith.cmpi eq, %628, %635 : vector<2x128xi32>
    %637 = arith.extui %636 : vector<2x128xi1> to vector<2x128xi32>
    %638 = arith.sitofp %637 : vector<2x128xi32> to vector<2x128xf32>
    %cst_180 = arith.constant dense<0.000000e+00> : vector<2x16xf32>
    %639 = tpu.matmul %638, %625, %cst_180 {dimension_numbers = #tpu.dot_dimension_numbers<[1], [0], [0], [1], [0, 0, 1, 1], [], []>} : vector<2x128xf32>, vector<128x16xf32>, vector<2x16xf32> -> vector<2x16xf32>
    %640 = vector.broadcast %619 : vector<1x32xf32> to vector<2x32xf32>
    %641 = arith.mulf %519, %640 : vector<2x32xf32>
    %cst_181 = arith.constant dense<0.000000e+00> : vector<2xf32>
    %642 = vector.multi_reduction <add>, %641, %cst_181 [1] : vector<2x32xf32> to vector<2xf32>
    %643 = vector.shape_cast %642 : vector<2xf32> to vector<2x1xf32>
    %644 = arith.addf %541, %643 : vector<2x1xf32>
    %cst_182 = arith.constant 0.000000e+00 : f32
    %645 = vector.broadcast %cst_182 : f32 to vector<2x1xf32>
    %646 = arith.maximumf %644, %645 : vector<2x1xf32>
    %647 = arith.addf %552, %643 : vector<2x1xf32>
    %cst_183 = arith.constant 0.000000e+00 : f32
    %648 = vector.broadcast %cst_183 : f32 to vector<2x1xf32>
    %649 = arith.maximumf %647, %648 : vector<2x1xf32>
    %650 = arith.addf %563, %643 : vector<2x1xf32>
    %cst_184 = arith.constant 0.000000e+00 : f32
    %651 = vector.broadcast %cst_184 : f32 to vector<2x1xf32>
    %652 = arith.maximumf %650, %651 : vector<2x1xf32>
    %653 = arith.addf %574, %643 : vector<2x1xf32>
    %cst_185 = arith.constant 0.000000e+00 : f32
    %654 = vector.broadcast %cst_185 : f32 to vector<2x1xf32>
    %655 = arith.maximumf %653, %654 : vector<2x1xf32>
    %656 = arith.addf %585, %643 : vector<2x1xf32>
    %cst_186 = arith.constant 0.000000e+00 : f32
    %657 = vector.broadcast %cst_186 : f32 to vector<2x1xf32>
    %658 = arith.maximumf %656, %657 : vector<2x1xf32>
    %659 = arith.addf %596, %643 : vector<2x1xf32>
    %cst_187 = arith.constant 0.000000e+00 : f32
    %660 = vector.broadcast %cst_187 : f32 to vector<2x1xf32>
    %661 = arith.maximumf %659, %660 : vector<2x1xf32>
    %662 = arith.addf %607, %643 : vector<2x1xf32>
    %cst_188 = arith.constant 0.000000e+00 : f32
    %663 = vector.broadcast %cst_188 : f32 to vector<2x1xf32>
    %664 = arith.maximumf %662, %663 : vector<2x1xf32>
    %665 = arith.addf %618, %643 : vector<2x1xf32>
    %cst_189 = arith.constant 0.000000e+00 : f32
    %666 = vector.broadcast %cst_189 : f32 to vector<2x1xf32>
    %667 = arith.maximumf %665, %666 : vector<2x1xf32>
    %668 = arith.maximumf %646, %649 : vector<2x1xf32>
    %669 = arith.maximumf %668, %652 : vector<2x1xf32>
    %670 = arith.maximumf %669, %655 : vector<2x1xf32>
    %671 = arith.maximumf %670, %658 : vector<2x1xf32>
    %672 = arith.maximumf %671, %661 : vector<2x1xf32>
    %673 = arith.maximumf %672, %664 : vector<2x1xf32>
    %674 = arith.maximumf %673, %667 : vector<2x1xf32>
    %675 = arith.subf %646, %674 : vector<2x1xf32>
    %676 = math.exp %675 : vector<2x1xf32>
    %677 = arith.subf %649, %674 : vector<2x1xf32>
    %678 = math.exp %677 : vector<2x1xf32>
    %679 = arith.subf %652, %674 : vector<2x1xf32>
    %680 = math.exp %679 : vector<2x1xf32>
    %681 = arith.subf %655, %674 : vector<2x1xf32>
    %682 = math.exp %681 : vector<2x1xf32>
    %683 = arith.subf %658, %674 : vector<2x1xf32>
    %684 = math.exp %683 : vector<2x1xf32>
    %685 = arith.subf %661, %674 : vector<2x1xf32>
    %686 = math.exp %685 : vector<2x1xf32>
    %687 = arith.subf %664, %674 : vector<2x1xf32>
    %688 = math.exp %687 : vector<2x1xf32>
    %689 = arith.subf %667, %674 : vector<2x1xf32>
    %690 = math.exp %689 : vector<2x1xf32>
    %691 = arith.addf %676, %678 : vector<2x1xf32>
    %692 = arith.addf %691, %680 : vector<2x1xf32>
    %693 = arith.addf %692, %682 : vector<2x1xf32>
    %694 = arith.addf %693, %684 : vector<2x1xf32>
    %695 = arith.addf %694, %686 : vector<2x1xf32>
    %696 = arith.addf %695, %688 : vector<2x1xf32>
    %697 = arith.addf %696, %690 : vector<2x1xf32>
    %cst_190 = arith.constant 1.000000e+00 : f32
    %698 = vector.broadcast %cst_190 : f32 to vector<2x1xf32>
    %699 = arith.divf %698, %697 : vector<2x1xf32>
    %cst_191 = arith.constant 0.000000e+00 : f32
    %700 = vector.broadcast %cst_191 : f32 to vector<2x32xf32>
    %cst_192 = arith.constant 0.000000e+00 : f32
    %701 = vector.broadcast %cst_192 : f32 to vector<2x32xf32>
    %702 = arith.mulf %676, %699 : vector<2x1xf32>
    %703 = vector.broadcast %702 : vector<2x1xf32> to vector<2x32xf32>
    %704 = arith.mulf %703, %104 : vector<2x32xf32>
    %705 = arith.addf %700, %704 : vector<2x32xf32>
    %706 = vector.broadcast %702 : vector<2x1xf32> to vector<2x32xf32>
    %707 = arith.mulf %706, %511 : vector<2x32xf32>
    %708 = arith.addf %701, %707 : vector<2x32xf32>
    %709 = arith.mulf %678, %699 : vector<2x1xf32>
    %710 = vector.broadcast %709 : vector<2x1xf32> to vector<2x32xf32>
    %711 = arith.mulf %710, %131 : vector<2x32xf32>
    %712 = arith.addf %705, %711 : vector<2x32xf32>
    %713 = vector.broadcast %709 : vector<2x1xf32> to vector<2x32xf32>
    %714 = arith.mulf %713, %484 : vector<2x32xf32>
    %715 = arith.addf %708, %714 : vector<2x32xf32>
    %716 = arith.mulf %680, %699 : vector<2x1xf32>
    %717 = vector.broadcast %716 : vector<2x1xf32> to vector<2x32xf32>
    %718 = arith.mulf %717, %158 : vector<2x32xf32>
    %719 = arith.addf %712, %718 : vector<2x32xf32>
    %720 = vector.broadcast %716 : vector<2x1xf32> to vector<2x32xf32>
    %721 = arith.mulf %720, %457 : vector<2x32xf32>
    %722 = arith.addf %715, %721 : vector<2x32xf32>
    %723 = arith.mulf %682, %699 : vector<2x1xf32>
    %724 = vector.broadcast %723 : vector<2x1xf32> to vector<2x32xf32>
    %725 = arith.mulf %724, %185 : vector<2x32xf32>
    %726 = arith.addf %719, %725 : vector<2x32xf32>
    %727 = vector.broadcast %723 : vector<2x1xf32> to vector<2x32xf32>
    %728 = arith.mulf %727, %430 : vector<2x32xf32>
    %729 = arith.addf %722, %728 : vector<2x32xf32>
    %730 = arith.mulf %684, %699 : vector<2x1xf32>
    %731 = vector.broadcast %730 : vector<2x1xf32> to vector<2x32xf32>
    %732 = arith.mulf %731, %212 : vector<2x32xf32>
    %733 = arith.addf %726, %732 : vector<2x32xf32>
    %734 = vector.broadcast %730 : vector<2x1xf32> to vector<2x32xf32>
    %735 = arith.mulf %734, %403 : vector<2x32xf32>
    %736 = arith.addf %729, %735 : vector<2x32xf32>
    %737 = arith.mulf %686, %699 : vector<2x1xf32>
    %738 = vector.broadcast %737 : vector<2x1xf32> to vector<2x32xf32>
    %739 = arith.mulf %738, %239 : vector<2x32xf32>
    %740 = arith.addf %733, %739 : vector<2x32xf32>
    %741 = vector.broadcast %737 : vector<2x1xf32> to vector<2x32xf32>
    %742 = arith.mulf %741, %376 : vector<2x32xf32>
    %743 = arith.addf %736, %742 : vector<2x32xf32>
    %744 = arith.mulf %688, %699 : vector<2x1xf32>
    %745 = vector.broadcast %744 : vector<2x1xf32> to vector<2x32xf32>
    %746 = arith.mulf %745, %266 : vector<2x32xf32>
    %747 = arith.addf %740, %746 : vector<2x32xf32>
    %748 = vector.broadcast %744 : vector<2x1xf32> to vector<2x32xf32>
    %749 = arith.mulf %748, %349 : vector<2x32xf32>
    %750 = arith.addf %743, %749 : vector<2x32xf32>
    %751 = arith.mulf %690, %699 : vector<2x1xf32>
    %752 = vector.broadcast %751 : vector<2x1xf32> to vector<2x32xf32>
    %753 = arith.mulf %752, %293 : vector<2x32xf32>
    %754 = arith.addf %747, %753 : vector<2x32xf32>
    %755 = vector.broadcast %751 : vector<2x1xf32> to vector<2x32xf32>
    %756 = arith.mulf %755, %322 : vector<2x32xf32>
    %757 = arith.addf %750, %756 : vector<2x32xf32>
    %cst_193 = arith.constant dense<0.000000e+00> : vector<2x128xf32>
    %758 = tpu.matmul %754, %620, %cst_193 {dimension_numbers = #tpu.dot_dimension_numbers<[1], [0], [0], [1], [0, 0, 1, 1], [], []>} : vector<2x32xf32>, vector<32x128xf32>, vector<2x128xf32> -> vector<2x128xf32>
    %cst_194 = arith.constant dense<0.000000e+00> : vector<2x128xf32>
    %759 = tpu.matmul %757, %621, %cst_194 {dimension_numbers = #tpu.dot_dimension_numbers<[1], [0], [0], [1], [0, 0, 1, 1], [], []>} : vector<2x32xf32>, vector<32x128xf32>, vector<2x128xf32> -> vector<2x128xf32>
    %760 = arith.addf %758, %759 : vector<2x128xf32>
    %cst_195 = arith.constant dense<0.000000e+00> : vector<2x128xf32>
    %761 = tpu.matmul %639, %622, %cst_195 {dimension_numbers = #tpu.dot_dimension_numbers<[1], [0], [0], [1], [0, 0, 1, 1], [], []>} : vector<2x16xf32>, vector<16x128xf32>, vector<2x128xf32> -> vector<2x128xf32>
    %762 = arith.addf %760, %761 : vector<2x128xf32>
    %cst_196 = arith.constant dense<0.000000e+00> : vector<2x128xf32>
    %763 = tpu.matmul %519, %623, %cst_196 {dimension_numbers = #tpu.dot_dimension_numbers<[1], [0], [0], [1], [0, 0, 1, 1], [], []>} : vector<2x32xf32>, vector<32x128xf32>, vector<2x128xf32> -> vector<2x128xf32>
    %764 = arith.addf %762, %763 : vector<2x128xf32>
    %765 = vector.broadcast %624 : vector<1x128xf32> to vector<2x128xf32>
    %766 = arith.addf %764, %765 : vector<2x128xf32>
    %767 = vector.extract_strided_slice %766 {offsets = [0, 0], sizes = [2, 32], strides = [1, 1]} : vector<2x128xf32> to vector<2x32xf32>
    %768 = arith.negf %767 : vector<2x32xf32>
    %769 = math.exp %768 : vector<2x32xf32>
    %cst_197 = arith.constant 1.000000e+00 : f32
    %770 = vector.broadcast %cst_197 : f32 to vector<2x32xf32>
    %771 = arith.addf %770, %769 : vector<2x32xf32>
    %772 = arith.divf %770, %771 : vector<2x32xf32>
    %773 = vector.extract_strided_slice %766 {offsets = [0, 32], sizes = [2, 32], strides = [1, 1]} : vector<2x128xf32> to vector<2x32xf32>
    %774 = arith.negf %773 : vector<2x32xf32>
    %775 = math.exp %774 : vector<2x32xf32>
    %cst_198 = arith.constant 1.000000e+00 : f32
    %776 = vector.broadcast %cst_198 : f32 to vector<2x32xf32>
    %777 = arith.addf %776, %775 : vector<2x32xf32>
    %778 = arith.divf %776, %777 : vector<2x32xf32>
    %779 = vector.extract_strided_slice %766 {offsets = [0, 64], sizes = [2, 32], strides = [1, 1]} : vector<2x128xf32> to vector<2x32xf32>
    %780 = math.tanh %779 : vector<2x32xf32>
    %781 = vector.extract_strided_slice %766 {offsets = [0, 96], sizes = [2, 32], strides = [1, 1]} : vector<2x128xf32> to vector<2x32xf32>
    %782 = arith.negf %781 : vector<2x32xf32>
    %783 = math.exp %782 : vector<2x32xf32>
    %cst_199 = arith.constant 1.000000e+00 : f32
    %784 = vector.broadcast %cst_199 : f32 to vector<2x32xf32>
    %785 = arith.addf %784, %783 : vector<2x32xf32>
    %786 = arith.divf %784, %785 : vector<2x32xf32>
    %787 = arith.mulf %778, %527 : vector<2x32xf32>
    %788 = arith.mulf %772, %780 : vector<2x32xf32>
    %789 = arith.addf %787, %788 : vector<2x32xf32>
    %790 = math.tanh %789 : vector<2x32xf32>
    %791 = arith.mulf %786, %790 : vector<2x32xf32>
    %cst_200 = arith.constant dense<0.000000e+00> : vector<2x128xf32>
    %792 = tpu.matmul %791, %626, %cst_200 {dimension_numbers = #tpu.dot_dimension_numbers<[1], [0], [0], [1], [0, 0, 1, 1], [], []>} : vector<2x32xf32>, vector<32x128xf32>, vector<2x128xf32> -> vector<2x128xf32>
    %793 = vector.broadcast %627 : vector<1x128xf32> to vector<2x128xf32>
    %794 = arith.addf %792, %793 : vector<2x128xf32>
    %cst_201 = arith.constant dense<0xFF800000> : vector<2xf32>
    %795 = vector.multi_reduction <maximumf>, %794, %cst_201 [1] : vector<2x128xf32> to vector<2xf32>
    %796 = vector.shape_cast %795 : vector<2xf32> to vector<2x1xf32>
    %797 = vector.broadcast %796 : vector<2x1xf32> to vector<2x128xf32>
    %798 = arith.subf %794, %797 : vector<2x128xf32>
    %799 = math.exp %798 : vector<2x128xf32>
    %cst_202 = arith.constant dense<0.000000e+00> : vector<2xf32>
    %800 = vector.multi_reduction <add>, %799, %cst_202 [1] : vector<2x128xf32> to vector<2xf32>
    %801 = vector.shape_cast %800 : vector<2xf32> to vector<2x1xf32>
    %802 = vector.broadcast %801 : vector<2x1xf32> to vector<2x128xf32>
    %803 = arith.divf %799, %802 : vector<2x128xf32>
    %c1_203 = arith.constant 1 : index
    %c0_204 = arith.constant 0 : index
    %c0_205 = arith.constant 0 : index
    %804 = vector.load %arg23[%c1_203, %c0_204, %c0_205] : memref<6x2x128xf32, #tpu.memory_space<vmem>>, vector<1x2x128xf32>
    %805 = vector.shape_cast %804 : vector<1x2x128xf32> to vector<2x128xf32>
    %806 = vector.shape_cast %803 : vector<2x128xf32> to vector<1x2x128xf32>
    tpu.vector_store %arg23[%c1_203, %c0_204, %c0_205], %806 {strides = array<i32>} : memref<6x2x128xf32, #tpu.memory_space<vmem>>, vector<1x2x128xf32>,
    %807 = vector.broadcast %796 : vector<2x1xf32> to vector<2x128xf32>
    %808 = arith.cmpf oeq, %794, %807 : vector<2x128xf32>
    %c128_i32 = arith.constant 128 : i32
    %809 = vector.broadcast %c128_i32 : i32 to vector<2x128xi32>
    %810 = arith.select %808, %628, %809 : vector<2x128xi1>, vector<2x128xi32>
    %cst_206 = arith.constant dense<2147483647> : vector<2xi32>
    %811 = vector.multi_reduction <minsi>, %810, %cst_206 [1] : vector<2x128xi32> to vector<2xi32>
    %812 = vector.shape_cast %811 : vector<2xi32> to vector<2x1xi32>
    %813 = vector.broadcast %812 : vector<2x1xi32> to vector<2x128xi32>
    %814 = arith.cmpi eq, %628, %813 : vector<2x128xi32>
    %815 = arith.extui %814 : vector<2x128xi1> to vector<2x128xi32>
    %816 = arith.sitofp %815 : vector<2x128xi32> to vector<2x128xf32>
    %cst_207 = arith.constant dense<0.000000e+00> : vector<2x16xf32>
    %817 = tpu.matmul %816, %625, %cst_207 {dimension_numbers = #tpu.dot_dimension_numbers<[1], [0], [0], [1], [0, 0, 1, 1], [], []>} : vector<2x128xf32>, vector<128x16xf32>, vector<2x16xf32> -> vector<2x16xf32>
    %818 = vector.broadcast %619 : vector<1x32xf32> to vector<2x32xf32>
    %819 = arith.mulf %791, %818 : vector<2x32xf32>
    %cst_208 = arith.constant dense<0.000000e+00> : vector<2xf32>
    %820 = vector.multi_reduction <add>, %819, %cst_208 [1] : vector<2x32xf32> to vector<2xf32>
    %821 = vector.shape_cast %820 : vector<2xf32> to vector<2x1xf32>
    %822 = arith.addf %541, %821 : vector<2x1xf32>
    %cst_209 = arith.constant 0.000000e+00 : f32
    %823 = vector.broadcast %cst_209 : f32 to vector<2x1xf32>
    %824 = arith.maximumf %822, %823 : vector<2x1xf32>
    %825 = arith.addf %552, %821 : vector<2x1xf32>
    %cst_210 = arith.constant 0.000000e+00 : f32
    %826 = vector.broadcast %cst_210 : f32 to vector<2x1xf32>
    %827 = arith.maximumf %825, %826 : vector<2x1xf32>
    %828 = arith.addf %563, %821 : vector<2x1xf32>
    %cst_211 = arith.constant 0.000000e+00 : f32
    %829 = vector.broadcast %cst_211 : f32 to vector<2x1xf32>
    %830 = arith.maximumf %828, %829 : vector<2x1xf32>
    %831 = arith.addf %574, %821 : vector<2x1xf32>
    %cst_212 = arith.constant 0.000000e+00 : f32
    %832 = vector.broadcast %cst_212 : f32 to vector<2x1xf32>
    %833 = arith.maximumf %831, %832 : vector<2x1xf32>
    %834 = arith.addf %585, %821 : vector<2x1xf32>
    %cst_213 = arith.constant 0.000000e+00 : f32
    %835 = vector.broadcast %cst_213 : f32 to vector<2x1xf32>
    %836 = arith.maximumf %834, %835 : vector<2x1xf32>
    %837 = arith.addf %596, %821 : vector<2x1xf32>
    %cst_214 = arith.constant 0.000000e+00 : f32
    %838 = vector.broadcast %cst_214 : f32 to vector<2x1xf32>
    %839 = arith.maximumf %837, %838 : vector<2x1xf32>
    %840 = arith.addf %607, %821 : vector<2x1xf32>
    %cst_215 = arith.constant 0.000000e+00 : f32
    %841 = vector.broadcast %cst_215 : f32 to vector<2x1xf32>
    %842 = arith.maximumf %840, %841 : vector<2x1xf32>
    %843 = arith.addf %618, %821 : vector<2x1xf32>
    %cst_216 = arith.constant 0.000000e+00 : f32
    %844 = vector.broadcast %cst_216 : f32 to vector<2x1xf32>
    %845 = arith.maximumf %843, %844 : vector<2x1xf32>
    %846 = arith.maximumf %824, %827 : vector<2x1xf32>
    %847 = arith.maximumf %846, %830 : vector<2x1xf32>
    %848 = arith.maximumf %847, %833 : vector<2x1xf32>
    %849 = arith.maximumf %848, %836 : vector<2x1xf32>
    %850 = arith.maximumf %849, %839 : vector<2x1xf32>
    %851 = arith.maximumf %850, %842 : vector<2x1xf32>
    %852 = arith.maximumf %851, %845 : vector<2x1xf32>
    %853 = arith.subf %824, %852 : vector<2x1xf32>
    %854 = math.exp %853 : vector<2x1xf32>
    %855 = arith.subf %827, %852 : vector<2x1xf32>
    %856 = math.exp %855 : vector<2x1xf32>
    %857 = arith.subf %830, %852 : vector<2x1xf32>
    %858 = math.exp %857 : vector<2x1xf32>
    %859 = arith.subf %833, %852 : vector<2x1xf32>
    %860 = math.exp %859 : vector<2x1xf32>
    %861 = arith.subf %836, %852 : vector<2x1xf32>
    %862 = math.exp %861 : vector<2x1xf32>
    %863 = arith.subf %839, %852 : vector<2x1xf32>
    %864 = math.exp %863 : vector<2x1xf32>
    %865 = arith.subf %842, %852 : vector<2x1xf32>
    %866 = math.exp %865 : vector<2x1xf32>
    %867 = arith.subf %845, %852 : vector<2x1xf32>
    %868 = math.exp %867 : vector<2x1xf32>
    %869 = arith.addf %854, %856 : vector<2x1xf32>
    %870 = arith.addf %869, %858 : vector<2x1xf32>
    %871 = arith.addf %870, %860 : vector<2x1xf32>
    %872 = arith.addf %871, %862 : vector<2x1xf32>
    %873 = arith.addf %872, %864 : vector<2x1xf32>
    %874 = arith.addf %873, %866 : vector<2x1xf32>
    %875 = arith.addf %874, %868 : vector<2x1xf32>
    %cst_217 = arith.constant 1.000000e+00 : f32
    %876 = vector.broadcast %cst_217 : f32 to vector<2x1xf32>
    %877 = arith.divf %876, %875 : vector<2x1xf32>
    %cst_218 = arith.constant 0.000000e+00 : f32
    %878 = vector.broadcast %cst_218 : f32 to vector<2x32xf32>
    %cst_219 = arith.constant 0.000000e+00 : f32
    %879 = vector.broadcast %cst_219 : f32 to vector<2x32xf32>
    %880 = arith.mulf %854, %877 : vector<2x1xf32>
    %881 = vector.broadcast %880 : vector<2x1xf32> to vector<2x32xf32>
    %882 = arith.mulf %881, %104 : vector<2x32xf32>
    %883 = arith.addf %878, %882 : vector<2x32xf32>
    %884 = vector.broadcast %880 : vector<2x1xf32> to vector<2x32xf32>
    %885 = arith.mulf %884, %511 : vector<2x32xf32>
    %886 = arith.addf %879, %885 : vector<2x32xf32>
    %887 = arith.mulf %856, %877 : vector<2x1xf32>
    %888 = vector.broadcast %887 : vector<2x1xf32> to vector<2x32xf32>
    %889 = arith.mulf %888, %131 : vector<2x32xf32>
    %890 = arith.addf %883, %889 : vector<2x32xf32>
    %891 = vector.broadcast %887 : vector<2x1xf32> to vector<2x32xf32>
    %892 = arith.mulf %891, %484 : vector<2x32xf32>
    %893 = arith.addf %886, %892 : vector<2x32xf32>
    %894 = arith.mulf %858, %877 : vector<2x1xf32>
    %895 = vector.broadcast %894 : vector<2x1xf32> to vector<2x32xf32>
    %896 = arith.mulf %895, %158 : vector<2x32xf32>
    %897 = arith.addf %890, %896 : vector<2x32xf32>
    %898 = vector.broadcast %894 : vector<2x1xf32> to vector<2x32xf32>
    %899 = arith.mulf %898, %457 : vector<2x32xf32>
    %900 = arith.addf %893, %899 : vector<2x32xf32>
    %901 = arith.mulf %860, %877 : vector<2x1xf32>
    %902 = vector.broadcast %901 : vector<2x1xf32> to vector<2x32xf32>
    %903 = arith.mulf %902, %185 : vector<2x32xf32>
    %904 = arith.addf %897, %903 : vector<2x32xf32>
    %905 = vector.broadcast %901 : vector<2x1xf32> to vector<2x32xf32>
    %906 = arith.mulf %905, %430 : vector<2x32xf32>
    %907 = arith.addf %900, %906 : vector<2x32xf32>
    %908 = arith.mulf %862, %877 : vector<2x1xf32>
    %909 = vector.broadcast %908 : vector<2x1xf32> to vector<2x32xf32>
    %910 = arith.mulf %909, %212 : vector<2x32xf32>
    %911 = arith.addf %904, %910 : vector<2x32xf32>
    %912 = vector.broadcast %908 : vector<2x1xf32> to vector<2x32xf32>
    %913 = arith.mulf %912, %403 : vector<2x32xf32>
    %914 = arith.addf %907, %913 : vector<2x32xf32>
    %915 = arith.mulf %864, %877 : vector<2x1xf32>
    %916 = vector.broadcast %915 : vector<2x1xf32> to vector<2x32xf32>
    %917 = arith.mulf %916, %239 : vector<2x32xf32>
    %918 = arith.addf %911, %917 : vector<2x32xf32>
    %919 = vector.broadcast %915 : vector<2x1xf32> to vector<2x32xf32>
    %920 = arith.mulf %919, %376 : vector<2x32xf32>
    %921 = arith.addf %914, %920 : vector<2x32xf32>
    %922 = arith.mulf %866, %877 : vector<2x1xf32>
    %923 = vector.broadcast %922 : vector<2x1xf32> to vector<2x32xf32>
    %924 = arith.mulf %923, %266 : vector<2x32xf32>
    %925 = arith.addf %918, %924 : vector<2x32xf32>
    %926 = vector.broadcast %922 : vector<2x1xf32> to vector<2x32xf32>
    %927 = arith.mulf %926, %349 : vector<2x32xf32>
    %928 = arith.addf %921, %927 : vector<2x32xf32>
    %929 = arith.mulf %868, %877 : vector<2x1xf32>
    %930 = vector.broadcast %929 : vector<2x1xf32> to vector<2x32xf32>
    %931 = arith.mulf %930, %293 : vector<2x32xf32>
    %932 = arith.addf %925, %931 : vector<2x32xf32>
    %933 = vector.broadcast %929 : vector<2x1xf32> to vector<2x32xf32>
    %934 = arith.mulf %933, %322 : vector<2x32xf32>
    %935 = arith.addf %928, %934 : vector<2x32xf32>
    %cst_220 = arith.constant dense<0.000000e+00> : vector<2x128xf32>
    %936 = tpu.matmul %932, %620, %cst_220 {dimension_numbers = #tpu.dot_dimension_numbers<[1], [0], [0], [1], [0, 0, 1, 1], [], []>} : vector<2x32xf32>, vector<32x128xf32>, vector<2x128xf32> -> vector<2x128xf32>
    %cst_221 = arith.constant dense<0.000000e+00> : vector<2x128xf32>
    %937 = tpu.matmul %935, %621, %cst_221 {dimension_numbers = #tpu.dot_dimension_numbers<[1], [0], [0], [1], [0, 0, 1, 1], [], []>} : vector<2x32xf32>, vector<32x128xf32>, vector<2x128xf32> -> vector<2x128xf32>
    %938 = arith.addf %936, %937 : vector<2x128xf32>
    %cst_222 = arith.constant dense<0.000000e+00> : vector<2x128xf32>
    %939 = tpu.matmul %817, %622, %cst_222 {dimension_numbers = #tpu.dot_dimension_numbers<[1], [0], [0], [1], [0, 0, 1, 1], [], []>} : vector<2x16xf32>, vector<16x128xf32>, vector<2x128xf32> -> vector<2x128xf32>
    %940 = arith.addf %938, %939 : vector<2x128xf32>
    %cst_223 = arith.constant dense<0.000000e+00> : vector<2x128xf32>
    %941 = tpu.matmul %791, %623, %cst_223 {dimension_numbers = #tpu.dot_dimension_numbers<[1], [0], [0], [1], [0, 0, 1, 1], [], []>} : vector<2x32xf32>, vector<32x128xf32>, vector<2x128xf32> -> vector<2x128xf32>
    %942 = arith.addf %940, %941 : vector<2x128xf32>
    %943 = vector.broadcast %624 : vector<1x128xf32> to vector<2x128xf32>
    %944 = arith.addf %942, %943 : vector<2x128xf32>
    %945 = vector.extract_strided_slice %944 {offsets = [0, 0], sizes = [2, 32], strides = [1, 1]} : vector<2x128xf32> to vector<2x32xf32>
    %946 = arith.negf %945 : vector<2x32xf32>
    %947 = math.exp %946 : vector<2x32xf32>
    %cst_224 = arith.constant 1.000000e+00 : f32
    %948 = vector.broadcast %cst_224 : f32 to vector<2x32xf32>
    %949 = arith.addf %948, %947 : vector<2x32xf32>
    %950 = arith.divf %948, %949 : vector<2x32xf32>
    %951 = vector.extract_strided_slice %944 {offsets = [0, 32], sizes = [2, 32], strides = [1, 1]} : vector<2x128xf32> to vector<2x32xf32>
    %952 = arith.negf %951 : vector<2x32xf32>
    %953 = math.exp %952 : vector<2x32xf32>
    %cst_225 = arith.constant 1.000000e+00 : f32
    %954 = vector.broadcast %cst_225 : f32 to vector<2x32xf32>
    %955 = arith.addf %954, %953 : vector<2x32xf32>
    %956 = arith.divf %954, %955 : vector<2x32xf32>
    %957 = vector.extract_strided_slice %944 {offsets = [0, 64], sizes = [2, 32], strides = [1, 1]} : vector<2x128xf32> to vector<2x32xf32>
    %958 = math.tanh %957 : vector<2x32xf32>
    %959 = vector.extract_strided_slice %944 {offsets = [0, 96], sizes = [2, 32], strides = [1, 1]} : vector<2x128xf32> to vector<2x32xf32>
    %960 = arith.negf %959 : vector<2x32xf32>
    %961 = math.exp %960 : vector<2x32xf32>
    %cst_226 = arith.constant 1.000000e+00 : f32
    %962 = vector.broadcast %cst_226 : f32 to vector<2x32xf32>
    %963 = arith.addf %962, %961 : vector<2x32xf32>
    %964 = arith.divf %962, %963 : vector<2x32xf32>
    %965 = arith.mulf %956, %789 : vector<2x32xf32>
    %966 = arith.mulf %950, %958 : vector<2x32xf32>
    %967 = arith.addf %965, %966 : vector<2x32xf32>
    %968 = math.tanh %967 : vector<2x32xf32>
    %969 = arith.mulf %964, %968 : vector<2x32xf32>
    %cst_227 = arith.constant dense<0.000000e+00> : vector<2x128xf32>
    %970 = tpu.matmul %969, %626, %cst_227 {dimension_numbers = #tpu.dot_dimension_numbers<[1], [0], [0], [1], [0, 0, 1, 1], [], []>} : vector<2x32xf32>, vector<32x128xf32>, vector<2x128xf32> -> vector<2x128xf32>
    %971 = vector.broadcast %627 : vector<1x128xf32> to vector<2x128xf32>
    %972 = arith.addf %970, %971 : vector<2x128xf32>
    %cst_228 = arith.constant dense<0xFF800000> : vector<2xf32>
    %973 = vector.multi_reduction <maximumf>, %972, %cst_228 [1] : vector<2x128xf32> to vector<2xf32>
    %974 = vector.shape_cast %973 : vector<2xf32> to vector<2x1xf32>
    %975 = vector.broadcast %974 : vector<2x1xf32> to vector<2x128xf32>
    %976 = arith.subf %972, %975 : vector<2x128xf32>
    %977 = math.exp %976 : vector<2x128xf32>
    %cst_229 = arith.constant dense<0.000000e+00> : vector<2xf32>
    %978 = vector.multi_reduction <add>, %977, %cst_229 [1] : vector<2x128xf32> to vector<2xf32>
    %979 = vector.shape_cast %978 : vector<2xf32> to vector<2x1xf32>
    %980 = vector.broadcast %979 : vector<2x1xf32> to vector<2x128xf32>
    %981 = arith.divf %977, %980 : vector<2x128xf32>
    %c2_230 = arith.constant 2 : index
    %c0_231 = arith.constant 0 : index
    %c0_232 = arith.constant 0 : index
    %982 = vector.load %arg23[%c2_230, %c0_231, %c0_232] : memref<6x2x128xf32, #tpu.memory_space<vmem>>, vector<1x2x128xf32>
    %983 = vector.shape_cast %982 : vector<1x2x128xf32> to vector<2x128xf32>
    %984 = vector.shape_cast %981 : vector<2x128xf32> to vector<1x2x128xf32>
    tpu.vector_store %arg23[%c2_230, %c0_231, %c0_232], %984 {strides = array<i32>} : memref<6x2x128xf32, #tpu.memory_space<vmem>>, vector<1x2x128xf32>,
    %985 = vector.broadcast %974 : vector<2x1xf32> to vector<2x128xf32>
    %986 = arith.cmpf oeq, %972, %985 : vector<2x128xf32>
    %c128_i32_233 = arith.constant 128 : i32
    %987 = vector.broadcast %c128_i32_233 : i32 to vector<2x128xi32>
    %988 = arith.select %986, %628, %987 : vector<2x128xi1>, vector<2x128xi32>
    %cst_234 = arith.constant dense<2147483647> : vector<2xi32>
    %989 = vector.multi_reduction <minsi>, %988, %cst_234 [1] : vector<2x128xi32> to vector<2xi32>
    %990 = vector.shape_cast %989 : vector<2xi32> to vector<2x1xi32>
    %991 = vector.broadcast %990 : vector<2x1xi32> to vector<2x128xi32>
    %992 = arith.cmpi eq, %628, %991 : vector<2x128xi32>
    %993 = arith.extui %992 : vector<2x128xi1> to vector<2x128xi32>
    %994 = arith.sitofp %993 : vector<2x128xi32> to vector<2x128xf32>
    %cst_235 = arith.constant dense<0.000000e+00> : vector<2x16xf32>
    %995 = tpu.matmul %994, %625, %cst_235 {dimension_numbers = #tpu.dot_dimension_numbers<[1], [0], [0], [1], [0, 0, 1, 1], [], []>} : vector<2x128xf32>, vector<128x16xf32>, vector<2x16xf32> -> vector<2x16xf32>
    %996 = vector.broadcast %619 : vector<1x32xf32> to vector<2x32xf32>
    %997 = arith.mulf %969, %996 : vector<2x32xf32>
    %cst_236 = arith.constant dense<0.000000e+00> : vector<2xf32>
    %998 = vector.multi_reduction <add>, %997, %cst_236 [1] : vector<2x32xf32> to vector<2xf32>
    %999 = vector.shape_cast %998 : vector<2xf32> to vector<2x1xf32>
    %1000 = arith.addf %541, %999 : vector<2x1xf32>
    %cst_237 = arith.constant 0.000000e+00 : f32
    %1001 = vector.broadcast %cst_237 : f32 to vector<2x1xf32>
    %1002 = arith.maximumf %1000, %1001 : vector<2x1xf32>
    %1003 = arith.addf %552, %999 : vector<2x1xf32>
    %cst_238 = arith.constant 0.000000e+00 : f32
    %1004 = vector.broadcast %cst_238 : f32 to vector<2x1xf32>
    %1005 = arith.maximumf %1003, %1004 : vector<2x1xf32>
    %1006 = arith.addf %563, %999 : vector<2x1xf32>
    %cst_239 = arith.constant 0.000000e+00 : f32
    %1007 = vector.broadcast %cst_239 : f32 to vector<2x1xf32>
    %1008 = arith.maximumf %1006, %1007 : vector<2x1xf32>
    %1009 = arith.addf %574, %999 : vector<2x1xf32>
    %cst_240 = arith.constant 0.000000e+00 : f32
    %1010 = vector.broadcast %cst_240 : f32 to vector<2x1xf32>
    %1011 = arith.maximumf %1009, %1010 : vector<2x1xf32>
    %1012 = arith.addf %585, %999 : vector<2x1xf32>
    %cst_241 = arith.constant 0.000000e+00 : f32
    %1013 = vector.broadcast %cst_241 : f32 to vector<2x1xf32>
    %1014 = arith.maximumf %1012, %1013 : vector<2x1xf32>
    %1015 = arith.addf %596, %999 : vector<2x1xf32>
    %cst_242 = arith.constant 0.000000e+00 : f32
    %1016 = vector.broadcast %cst_242 : f32 to vector<2x1xf32>
    %1017 = arith.maximumf %1015, %1016 : vector<2x1xf32>
    %1018 = arith.addf %607, %999 : vector<2x1xf32>
    %cst_243 = arith.constant 0.000000e+00 : f32
    %1019 = vector.broadcast %cst_243 : f32 to vector<2x1xf32>
    %1020 = arith.maximumf %1018, %1019 : vector<2x1xf32>
    %1021 = arith.addf %618, %999 : vector<2x1xf32>
    %cst_244 = arith.constant 0.000000e+00 : f32
    %1022 = vector.broadcast %cst_244 : f32 to vector<2x1xf32>
    %1023 = arith.maximumf %1021, %1022 : vector<2x1xf32>
    %1024 = arith.maximumf %1002, %1005 : vector<2x1xf32>
    %1025 = arith.maximumf %1024, %1008 : vector<2x1xf32>
    %1026 = arith.maximumf %1025, %1011 : vector<2x1xf32>
    %1027 = arith.maximumf %1026, %1014 : vector<2x1xf32>
    %1028 = arith.maximumf %1027, %1017 : vector<2x1xf32>
    %1029 = arith.maximumf %1028, %1020 : vector<2x1xf32>
    %1030 = arith.maximumf %1029, %1023 : vector<2x1xf32>
    %1031 = arith.subf %1002, %1030 : vector<2x1xf32>
    %1032 = math.exp %1031 : vector<2x1xf32>
    %1033 = arith.subf %1005, %1030 : vector<2x1xf32>
    %1034 = math.exp %1033 : vector<2x1xf32>
    %1035 = arith.subf %1008, %1030 : vector<2x1xf32>
    %1036 = math.exp %1035 : vector<2x1xf32>
    %1037 = arith.subf %1011, %1030 : vector<2x1xf32>
    %1038 = math.exp %1037 : vector<2x1xf32>
    %1039 = arith.subf %1014, %1030 : vector<2x1xf32>
    %1040 = math.exp %1039 : vector<2x1xf32>
    %1041 = arith.subf %1017, %1030 : vector<2x1xf32>
    %1042 = math.exp %1041 : vector<2x1xf32>
    %1043 = arith.subf %1020, %1030 : vector<2x1xf32>
    %1044 = math.exp %1043 : vector<2x1xf32>
    %1045 = arith.subf %1023, %1030 : vector<2x1xf32>
    %1046 = math.exp %1045 : vector<2x1xf32>
    %1047 = arith.addf %1032, %1034 : vector<2x1xf32>
    %1048 = arith.addf %1047, %1036 : vector<2x1xf32>
    %1049 = arith.addf %1048, %1038 : vector<2x1xf32>
    %1050 = arith.addf %1049, %1040 : vector<2x1xf32>
    %1051 = arith.addf %1050, %1042 : vector<2x1xf32>
    %1052 = arith.addf %1051, %1044 : vector<2x1xf32>
    %1053 = arith.addf %1052, %1046 : vector<2x1xf32>
    %cst_245 = arith.constant 1.000000e+00 : f32
    %1054 = vector.broadcast %cst_245 : f32 to vector<2x1xf32>
    %1055 = arith.divf %1054, %1053 : vector<2x1xf32>
    %cst_246 = arith.constant 0.000000e+00 : f32
    %1056 = vector.broadcast %cst_246 : f32 to vector<2x32xf32>
    %cst_247 = arith.constant 0.000000e+00 : f32
    %1057 = vector.broadcast %cst_247 : f32 to vector<2x32xf32>
    %1058 = arith.mulf %1032, %1055 : vector<2x1xf32>
    %1059 = vector.broadcast %1058 : vector<2x1xf32> to vector<2x32xf32>
    %1060 = arith.mulf %1059, %104 : vector<2x32xf32>
    %1061 = arith.addf %1056, %1060 : vector<2x32xf32>
    %1062 = vector.broadcast %1058 : vector<2x1xf32> to vector<2x32xf32>
    %1063 = arith.mulf %1062, %511 : vector<2x32xf32>
    %1064 = arith.addf %1057, %1063 : vector<2x32xf32>
    %1065 = arith.mulf %1034, %1055 : vector<2x1xf32>
    %1066 = vector.broadcast %1065 : vector<2x1xf32> to vector<2x32xf32>
    %1067 = arith.mulf %1066, %131 : vector<2x32xf32>
    %1068 = arith.addf %1061, %1067 : vector<2x32xf32>
    %1069 = vector.broadcast %1065 : vector<2x1xf32> to vector<2x32xf32>
    %1070 = arith.mulf %1069, %484 : vector<2x32xf32>
    %1071 = arith.addf %1064, %1070 : vector<2x32xf32>
    %1072 = arith.mulf %1036, %1055 : vector<2x1xf32>
    %1073 = vector.broadcast %1072 : vector<2x1xf32> to vector<2x32xf32>
    %1074 = arith.mulf %1073, %158 : vector<2x32xf32>
    %1075 = arith.addf %1068, %1074 : vector<2x32xf32>
    %1076 = vector.broadcast %1072 : vector<2x1xf32> to vector<2x32xf32>
    %1077 = arith.mulf %1076, %457 : vector<2x32xf32>
    %1078 = arith.addf %1071, %1077 : vector<2x32xf32>
    %1079 = arith.mulf %1038, %1055 : vector<2x1xf32>
    %1080 = vector.broadcast %1079 : vector<2x1xf32> to vector<2x32xf32>
    %1081 = arith.mulf %1080, %185 : vector<2x32xf32>
    %1082 = arith.addf %1075, %1081 : vector<2x32xf32>
    %1083 = vector.broadcast %1079 : vector<2x1xf32> to vector<2x32xf32>
    %1084 = arith.mulf %1083, %430 : vector<2x32xf32>
    %1085 = arith.addf %1078, %1084 : vector<2x32xf32>
    %1086 = arith.mulf %1040, %1055 : vector<2x1xf32>
    %1087 = vector.broadcast %1086 : vector<2x1xf32> to vector<2x32xf32>
    %1088 = arith.mulf %1087, %212 : vector<2x32xf32>
    %1089 = arith.addf %1082, %1088 : vector<2x32xf32>
    %1090 = vector.broadcast %1086 : vector<2x1xf32> to vector<2x32xf32>
    %1091 = arith.mulf %1090, %403 : vector<2x32xf32>
    %1092 = arith.addf %1085, %1091 : vector<2x32xf32>
    %1093 = arith.mulf %1042, %1055 : vector<2x1xf32>
    %1094 = vector.broadcast %1093 : vector<2x1xf32> to vector<2x32xf32>
    %1095 = arith.mulf %1094, %239 : vector<2x32xf32>
    %1096 = arith.addf %1089, %1095 : vector<2x32xf32>
    %1097 = vector.broadcast %1093 : vector<2x1xf32> to vector<2x32xf32>
    %1098 = arith.mulf %1097, %376 : vector<2x32xf32>
    %1099 = arith.addf %1092, %1098 : vector<2x32xf32>
    %1100 = arith.mulf %1044, %1055 : vector<2x1xf32>
    %1101 = vector.broadcast %1100 : vector<2x1xf32> to vector<2x32xf32>
    %1102 = arith.mulf %1101, %266 : vector<2x32xf32>
    %1103 = arith.addf %1096, %1102 : vector<2x32xf32>
    %1104 = vector.broadcast %1100 : vector<2x1xf32> to vector<2x32xf32>
    %1105 = arith.mulf %1104, %349 : vector<2x32xf32>
    %1106 = arith.addf %1099, %1105 : vector<2x32xf32>
    %1107 = arith.mulf %1046, %1055 : vector<2x1xf32>
    %1108 = vector.broadcast %1107 : vector<2x1xf32> to vector<2x32xf32>
    %1109 = arith.mulf %1108, %293 : vector<2x32xf32>
    %1110 = arith.addf %1103, %1109 : vector<2x32xf32>
    %1111 = vector.broadcast %1107 : vector<2x1xf32> to vector<2x32xf32>
    %1112 = arith.mulf %1111, %322 : vector<2x32xf32>
    %1113 = arith.addf %1106, %1112 : vector<2x32xf32>
    %cst_248 = arith.constant dense<0.000000e+00> : vector<2x128xf32>
    %1114 = tpu.matmul %1110, %620, %cst_248 {dimension_numbers = #tpu.dot_dimension_numbers<[1], [0], [0], [1], [0, 0, 1, 1], [], []>} : vector<2x32xf32>, vector<32x128xf32>, vector<2x128xf32> -> vector<2x128xf32>
    %cst_249 = arith.constant dense<0.000000e+00> : vector<2x128xf32>
    %1115 = tpu.matmul %1113, %621, %cst_249 {dimension_numbers = #tpu.dot_dimension_numbers<[1], [0], [0], [1], [0, 0, 1, 1], [], []>} : vector<2x32xf32>, vector<32x128xf32>, vector<2x128xf32> -> vector<2x128xf32>
    %1116 = arith.addf %1114, %1115 : vector<2x128xf32>
    %cst_250 = arith.constant dense<0.000000e+00> : vector<2x128xf32>
    %1117 = tpu.matmul %995, %622, %cst_250 {dimension_numbers = #tpu.dot_dimension_numbers<[1], [0], [0], [1], [0, 0, 1, 1], [], []>} : vector<2x16xf32>, vector<16x128xf32>, vector<2x128xf32> -> vector<2x128xf32>
    %1118 = arith.addf %1116, %1117 : vector<2x128xf32>
    %cst_251 = arith.constant dense<0.000000e+00> : vector<2x128xf32>
    %1119 = tpu.matmul %969, %623, %cst_251 {dimension_numbers = #tpu.dot_dimension_numbers<[1], [0], [0], [1], [0, 0, 1, 1], [], []>} : vector<2x32xf32>, vector<32x128xf32>, vector<2x128xf32> -> vector<2x128xf32>
    %1120 = arith.addf %1118, %1119 : vector<2x128xf32>
    %1121 = vector.broadcast %624 : vector<1x128xf32> to vector<2x128xf32>
    %1122 = arith.addf %1120, %1121 : vector<2x128xf32>
    %1123 = vector.extract_strided_slice %1122 {offsets = [0, 0], sizes = [2, 32], strides = [1, 1]} : vector<2x128xf32> to vector<2x32xf32>
    %1124 = arith.negf %1123 : vector<2x32xf32>
    %1125 = math.exp %1124 : vector<2x32xf32>
    %cst_252 = arith.constant 1.000000e+00 : f32
    %1126 = vector.broadcast %cst_252 : f32 to vector<2x32xf32>
    %1127 = arith.addf %1126, %1125 : vector<2x32xf32>
    %1128 = arith.divf %1126, %1127 : vector<2x32xf32>
    %1129 = vector.extract_strided_slice %1122 {offsets = [0, 32], sizes = [2, 32], strides = [1, 1]} : vector<2x128xf32> to vector<2x32xf32>
    %1130 = arith.negf %1129 : vector<2x32xf32>
    %1131 = math.exp %1130 : vector<2x32xf32>
    %cst_253 = arith.constant 1.000000e+00 : f32
    %1132 = vector.broadcast %cst_253 : f32 to vector<2x32xf32>
    %1133 = arith.addf %1132, %1131 : vector<2x32xf32>
    %1134 = arith.divf %1132, %1133 : vector<2x32xf32>
    %1135 = vector.extract_strided_slice %1122 {offsets = [0, 64], sizes = [2, 32], strides = [1, 1]} : vector<2x128xf32> to vector<2x32xf32>
    %1136 = math.tanh %1135 : vector<2x32xf32>
    %1137 = vector.extract_strided_slice %1122 {offsets = [0, 96], sizes = [2, 32], strides = [1, 1]} : vector<2x128xf32> to vector<2x32xf32>
    %1138 = arith.negf %1137 : vector<2x32xf32>
    %1139 = math.exp %1138 : vector<2x32xf32>
    %cst_254 = arith.constant 1.000000e+00 : f32
    %1140 = vector.broadcast %cst_254 : f32 to vector<2x32xf32>
    %1141 = arith.addf %1140, %1139 : vector<2x32xf32>
    %1142 = arith.divf %1140, %1141 : vector<2x32xf32>
    %1143 = arith.mulf %1134, %967 : vector<2x32xf32>
    %1144 = arith.mulf %1128, %1136 : vector<2x32xf32>
    %1145 = arith.addf %1143, %1144 : vector<2x32xf32>
    %1146 = math.tanh %1145 : vector<2x32xf32>
    %1147 = arith.mulf %1142, %1146 : vector<2x32xf32>
    %cst_255 = arith.constant dense<0.000000e+00> : vector<2x128xf32>
    %1148 = tpu.matmul %1147, %626, %cst_255 {dimension_numbers = #tpu.dot_dimension_numbers<[1], [0], [0], [1], [0, 0, 1, 1], [], []>} : vector<2x32xf32>, vector<32x128xf32>, vector<2x128xf32> -> vector<2x128xf32>
    %1149 = vector.broadcast %627 : vector<1x128xf32> to vector<2x128xf32>
    %1150 = arith.addf %1148, %1149 : vector<2x128xf32>
    %cst_256 = arith.constant dense<0xFF800000> : vector<2xf32>
    %1151 = vector.multi_reduction <maximumf>, %1150, %cst_256 [1] : vector<2x128xf32> to vector<2xf32>
    %1152 = vector.shape_cast %1151 : vector<2xf32> to vector<2x1xf32>
    %1153 = vector.broadcast %1152 : vector<2x1xf32> to vector<2x128xf32>
    %1154 = arith.subf %1150, %1153 : vector<2x128xf32>
    %1155 = math.exp %1154 : vector<2x128xf32>
    %cst_257 = arith.constant dense<0.000000e+00> : vector<2xf32>
    %1156 = vector.multi_reduction <add>, %1155, %cst_257 [1] : vector<2x128xf32> to vector<2xf32>
    %1157 = vector.shape_cast %1156 : vector<2xf32> to vector<2x1xf32>
    %1158 = vector.broadcast %1157 : vector<2x1xf32> to vector<2x128xf32>
    %1159 = arith.divf %1155, %1158 : vector<2x128xf32>
    %c3_258 = arith.constant 3 : index
    %c0_259 = arith.constant 0 : index
    %c0_260 = arith.constant 0 : index
    %1160 = vector.load %arg23[%c3_258, %c0_259, %c0_260] : memref<6x2x128xf32, #tpu.memory_space<vmem>>, vector<1x2x128xf32>
    %1161 = vector.shape_cast %1160 : vector<1x2x128xf32> to vector<2x128xf32>
    %1162 = vector.shape_cast %1159 : vector<2x128xf32> to vector<1x2x128xf32>
    tpu.vector_store %arg23[%c3_258, %c0_259, %c0_260], %1162 {strides = array<i32>} : memref<6x2x128xf32, #tpu.memory_space<vmem>>, vector<1x2x128xf32>,
    %c3_261 = arith.constant 3 : index
    %c0_262 = arith.constant 0 : index
    %c0_263 = arith.constant 0 : index
    %1163 = vector.load %arg1[%c3_261, %c0_262, %c0_263] : memref<5x2x1xi32, #tpu.memory_space<vmem>>, vector<1x2x1xi32>
    %1164 = vector.shape_cast %1163 : vector<1x2x1xi32> to vector<2x1xi32>
    %1165 = vector.broadcast %1164 : vector<2x1xi32> to vector<2x128xi32>
    %1166 = arith.cmpi eq, %628, %1165 : vector<2x128xi32>
    %1167 = arith.extui %1166 : vector<2x128xi1> to vector<2x128xi32>
    %1168 = arith.sitofp %1167 : vector<2x128xi32> to vector<2x128xf32>
    %cst_264 = arith.constant dense<0.000000e+00> : vector<2x16xf32>
    %1169 = tpu.matmul %1168, %625, %cst_264 {dimension_numbers = #tpu.dot_dimension_numbers<[1], [0], [0], [1], [0, 0, 1, 1], [], []>} : vector<2x128xf32>, vector<128x16xf32>, vector<2x16xf32> -> vector<2x16xf32>
    %1170 = vector.broadcast %619 : vector<1x32xf32> to vector<2x32xf32>
    %1171 = arith.mulf %1147, %1170 : vector<2x32xf32>
    %cst_265 = arith.constant dense<0.000000e+00> : vector<2xf32>
    %1172 = vector.multi_reduction <add>, %1171, %cst_265 [1] : vector<2x32xf32> to vector<2xf32>
    %1173 = vector.shape_cast %1172 : vector<2xf32> to vector<2x1xf32>
    %1174 = arith.addf %541, %1173 : vector<2x1xf32>
    %cst_266 = arith.constant 0.000000e+00 : f32
    %1175 = vector.broadcast %cst_266 : f32 to vector<2x1xf32>
    %1176 = arith.maximumf %1174, %1175 : vector<2x1xf32>
    %1177 = arith.addf %552, %1173 : vector<2x1xf32>
    %cst_267 = arith.constant 0.000000e+00 : f32
    %1178 = vector.broadcast %cst_267 : f32 to vector<2x1xf32>
    %1179 = arith.maximumf %1177, %1178 : vector<2x1xf32>
    %1180 = arith.addf %563, %1173 : vector<2x1xf32>
    %cst_268 = arith.constant 0.000000e+00 : f32
    %1181 = vector.broadcast %cst_268 : f32 to vector<2x1xf32>
    %1182 = arith.maximumf %1180, %1181 : vector<2x1xf32>
    %1183 = arith.addf %574, %1173 : vector<2x1xf32>
    %cst_269 = arith.constant 0.000000e+00 : f32
    %1184 = vector.broadcast %cst_269 : f32 to vector<2x1xf32>
    %1185 = arith.maximumf %1183, %1184 : vector<2x1xf32>
    %1186 = arith.addf %585, %1173 : vector<2x1xf32>
    %cst_270 = arith.constant 0.000000e+00 : f32
    %1187 = vector.broadcast %cst_270 : f32 to vector<2x1xf32>
    %1188 = arith.maximumf %1186, %1187 : vector<2x1xf32>
    %1189 = arith.addf %596, %1173 : vector<2x1xf32>
    %cst_271 = arith.constant 0.000000e+00 : f32
    %1190 = vector.broadcast %cst_271 : f32 to vector<2x1xf32>
    %1191 = arith.maximumf %1189, %1190 : vector<2x1xf32>
    %1192 = arith.addf %607, %1173 : vector<2x1xf32>
    %cst_272 = arith.constant 0.000000e+00 : f32
    %1193 = vector.broadcast %cst_272 : f32 to vector<2x1xf32>
    %1194 = arith.maximumf %1192, %1193 : vector<2x1xf32>
    %1195 = arith.addf %618, %1173 : vector<2x1xf32>
    %cst_273 = arith.constant 0.000000e+00 : f32
    %1196 = vector.broadcast %cst_273 : f32 to vector<2x1xf32>
    %1197 = arith.maximumf %1195, %1196 : vector<2x1xf32>
    %1198 = arith.maximumf %1176, %1179 : vector<2x1xf32>
    %1199 = arith.maximumf %1198, %1182 : vector<2x1xf32>
    %1200 = arith.maximumf %1199, %1185 : vector<2x1xf32>
    %1201 = arith.maximumf %1200, %1188 : vector<2x1xf32>
    %1202 = arith.maximumf %1201, %1191 : vector<2x1xf32>
    %1203 = arith.maximumf %1202, %1194 : vector<2x1xf32>
    %1204 = arith.maximumf %1203, %1197 : vector<2x1xf32>
    %1205 = arith.subf %1176, %1204 : vector<2x1xf32>
    %1206 = math.exp %1205 : vector<2x1xf32>
    %1207 = arith.subf %1179, %1204 : vector<2x1xf32>
    %1208 = math.exp %1207 : vector<2x1xf32>
    %1209 = arith.subf %1182, %1204 : vector<2x1xf32>
    %1210 = math.exp %1209 : vector<2x1xf32>
    %1211 = arith.subf %1185, %1204 : vector<2x1xf32>
    %1212 = math.exp %1211 : vector<2x1xf32>
    %1213 = arith.subf %1188, %1204 : vector<2x1xf32>
    %1214 = math.exp %1213 : vector<2x1xf32>
    %1215 = arith.subf %1191, %1204 : vector<2x1xf32>
    %1216 = math.exp %1215 : vector<2x1xf32>
    %1217 = arith.subf %1194, %1204 : vector<2x1xf32>
    %1218 = math.exp %1217 : vector<2x1xf32>
    %1219 = arith.subf %1197, %1204 : vector<2x1xf32>
    %1220 = math.exp %1219 : vector<2x1xf32>
    %1221 = arith.addf %1206, %1208 : vector<2x1xf32>
    %1222 = arith.addf %1221, %1210 : vector<2x1xf32>
    %1223 = arith.addf %1222, %1212 : vector<2x1xf32>
    %1224 = arith.addf %1223, %1214 : vector<2x1xf32>
    %1225 = arith.addf %1224, %1216 : vector<2x1xf32>
    %1226 = arith.addf %1225, %1218 : vector<2x1xf32>
    %1227 = arith.addf %1226, %1220 : vector<2x1xf32>
    %cst_274 = arith.constant 1.000000e+00 : f32
    %1228 = vector.broadcast %cst_274 : f32 to vector<2x1xf32>
    %1229 = arith.divf %1228, %1227 : vector<2x1xf32>
    %cst_275 = arith.constant 0.000000e+00 : f32
    %1230 = vector.broadcast %cst_275 : f32 to vector<2x32xf32>
    %cst_276 = arith.constant 0.000000e+00 : f32
    %1231 = vector.broadcast %cst_276 : f32 to vector<2x32xf32>
    %1232 = arith.mulf %1206, %1229 : vector<2x1xf32>
    %1233 = vector.broadcast %1232 : vector<2x1xf32> to vector<2x32xf32>
    %1234 = arith.mulf %1233, %104 : vector<2x32xf32>
    %1235 = arith.addf %1230, %1234 : vector<2x32xf32>
    %1236 = vector.broadcast %1232 : vector<2x1xf32> to vector<2x32xf32>
    %1237 = arith.mulf %1236, %511 : vector<2x32xf32>
    %1238 = arith.addf %1231, %1237 : vector<2x32xf32>
    %1239 = arith.mulf %1208, %1229 : vector<2x1xf32>
    %1240 = vector.broadcast %1239 : vector<2x1xf32> to vector<2x32xf32>
    %1241 = arith.mulf %1240, %131 : vector<2x32xf32>
    %1242 = arith.addf %1235, %1241 : vector<2x32xf32>
    %1243 = vector.broadcast %1239 : vector<2x1xf32> to vector<2x32xf32>
    %1244 = arith.mulf %1243, %484 : vector<2x32xf32>
    %1245 = arith.addf %1238, %1244 : vector<2x32xf32>
    %1246 = arith.mulf %1210, %1229 : vector<2x1xf32>
    %1247 = vector.broadcast %1246 : vector<2x1xf32> to vector<2x32xf32>
    %1248 = arith.mulf %1247, %158 : vector<2x32xf32>
    %1249 = arith.addf %1242, %1248 : vector<2x32xf32>
    %1250 = vector.broadcast %1246 : vector<2x1xf32> to vector<2x32xf32>
    %1251 = arith.mulf %1250, %457 : vector<2x32xf32>
    %1252 = arith.addf %1245, %1251 : vector<2x32xf32>
    %1253 = arith.mulf %1212, %1229 : vector<2x1xf32>
    %1254 = vector.broadcast %1253 : vector<2x1xf32> to vector<2x32xf32>
    %1255 = arith.mulf %1254, %185 : vector<2x32xf32>
    %1256 = arith.addf %1249, %1255 : vector<2x32xf32>
    %1257 = vector.broadcast %1253 : vector<2x1xf32> to vector<2x32xf32>
    %1258 = arith.mulf %1257, %430 : vector<2x32xf32>
    %1259 = arith.addf %1252, %1258 : vector<2x32xf32>
    %1260 = arith.mulf %1214, %1229 : vector<2x1xf32>
    %1261 = vector.broadcast %1260 : vector<2x1xf32> to vector<2x32xf32>
    %1262 = arith.mulf %1261, %212 : vector<2x32xf32>
    %1263 = arith.addf %1256, %1262 : vector<2x32xf32>
    %1264 = vector.broadcast %1260 : vector<2x1xf32> to vector<2x32xf32>
    %1265 = arith.mulf %1264, %403 : vector<2x32xf32>
    %1266 = arith.addf %1259, %1265 : vector<2x32xf32>
    %1267 = arith.mulf %1216, %1229 : vector<2x1xf32>
    %1268 = vector.broadcast %1267 : vector<2x1xf32> to vector<2x32xf32>
    %1269 = arith.mulf %1268, %239 : vector<2x32xf32>
    %1270 = arith.addf %1263, %1269 : vector<2x32xf32>
    %1271 = vector.broadcast %1267 : vector<2x1xf32> to vector<2x32xf32>
    %1272 = arith.mulf %1271, %376 : vector<2x32xf32>
    %1273 = arith.addf %1266, %1272 : vector<2x32xf32>
    %1274 = arith.mulf %1218, %1229 : vector<2x1xf32>
    %1275 = vector.broadcast %1274 : vector<2x1xf32> to vector<2x32xf32>
    %1276 = arith.mulf %1275, %266 : vector<2x32xf32>
    %1277 = arith.addf %1270, %1276 : vector<2x32xf32>
    %1278 = vector.broadcast %1274 : vector<2x1xf32> to vector<2x32xf32>
    %1279 = arith.mulf %1278, %349 : vector<2x32xf32>
    %1280 = arith.addf %1273, %1279 : vector<2x32xf32>
    %1281 = arith.mulf %1220, %1229 : vector<2x1xf32>
    %1282 = vector.broadcast %1281 : vector<2x1xf32> to vector<2x32xf32>
    %1283 = arith.mulf %1282, %293 : vector<2x32xf32>
    %1284 = arith.addf %1277, %1283 : vector<2x32xf32>
    %1285 = vector.broadcast %1281 : vector<2x1xf32> to vector<2x32xf32>
    %1286 = arith.mulf %1285, %322 : vector<2x32xf32>
    %1287 = arith.addf %1280, %1286 : vector<2x32xf32>
    %cst_277 = arith.constant dense<0.000000e+00> : vector<2x128xf32>
    %1288 = tpu.matmul %1284, %620, %cst_277 {dimension_numbers = #tpu.dot_dimension_numbers<[1], [0], [0], [1], [0, 0, 1, 1], [], []>} : vector<2x32xf32>, vector<32x128xf32>, vector<2x128xf32> -> vector<2x128xf32>
    %cst_278 = arith.constant dense<0.000000e+00> : vector<2x128xf32>
    %1289 = tpu.matmul %1287, %621, %cst_278 {dimension_numbers = #tpu.dot_dimension_numbers<[1], [0], [0], [1], [0, 0, 1, 1], [], []>} : vector<2x32xf32>, vector<32x128xf32>, vector<2x128xf32> -> vector<2x128xf32>
    %1290 = arith.addf %1288, %1289 : vector<2x128xf32>
    %cst_279 = arith.constant dense<0.000000e+00> : vector<2x128xf32>
    %1291 = tpu.matmul %1169, %622, %cst_279 {dimension_numbers = #tpu.dot_dimension_numbers<[1], [0], [0], [1], [0, 0, 1, 1], [], []>} : vector<2x16xf32>, vector<16x128xf32>, vector<2x128xf32> -> vector<2x128xf32>
    %1292 = arith.addf %1290, %1291 : vector<2x128xf32>
    %cst_280 = arith.constant dense<0.000000e+00> : vector<2x128xf32>
    %1293 = tpu.matmul %1147, %623, %cst_280 {dimension_numbers = #tpu.dot_dimension_numbers<[1], [0], [0], [1], [0, 0, 1, 1], [], []>} : vector<2x32xf32>, vector<32x128xf32>, vector<2x128xf32> -> vector<2x128xf32>
    %1294 = arith.addf %1292, %1293 : vector<2x128xf32>
    %1295 = vector.broadcast %624 : vector<1x128xf32> to vector<2x128xf32>
    %1296 = arith.addf %1294, %1295 : vector<2x128xf32>
    %1297 = vector.extract_strided_slice %1296 {offsets = [0, 0], sizes = [2, 32], strides = [1, 1]} : vector<2x128xf32> to vector<2x32xf32>
    %1298 = arith.negf %1297 : vector<2x32xf32>
    %1299 = math.exp %1298 : vector<2x32xf32>
    %cst_281 = arith.constant 1.000000e+00 : f32
    %1300 = vector.broadcast %cst_281 : f32 to vector<2x32xf32>
    %1301 = arith.addf %1300, %1299 : vector<2x32xf32>
    %1302 = arith.divf %1300, %1301 : vector<2x32xf32>
    %1303 = vector.extract_strided_slice %1296 {offsets = [0, 32], sizes = [2, 32], strides = [1, 1]} : vector<2x128xf32> to vector<2x32xf32>
    %1304 = arith.negf %1303 : vector<2x32xf32>
    %1305 = math.exp %1304 : vector<2x32xf32>
    %cst_282 = arith.constant 1.000000e+00 : f32
    %1306 = vector.broadcast %cst_282 : f32 to vector<2x32xf32>
    %1307 = arith.addf %1306, %1305 : vector<2x32xf32>
    %1308 = arith.divf %1306, %1307 : vector<2x32xf32>
    %1309 = vector.extract_strided_slice %1296 {offsets = [0, 64], sizes = [2, 32], strides = [1, 1]} : vector<2x128xf32> to vector<2x32xf32>
    %1310 = math.tanh %1309 : vector<2x32xf32>
    %1311 = vector.extract_strided_slice %1296 {offsets = [0, 96], sizes = [2, 32], strides = [1, 1]} : vector<2x128xf32> to vector<2x32xf32>
    %1312 = arith.negf %1311 : vector<2x32xf32>
    %1313 = math.exp %1312 : vector<2x32xf32>
    %cst_283 = arith.constant 1.000000e+00 : f32
    %1314 = vector.broadcast %cst_283 : f32 to vector<2x32xf32>
    %1315 = arith.addf %1314, %1313 : vector<2x32xf32>
    %1316 = arith.divf %1314, %1315 : vector<2x32xf32>
    %1317 = arith.mulf %1308, %1145 : vector<2x32xf32>
    %1318 = arith.mulf %1302, %1310 : vector<2x32xf32>
    %1319 = arith.addf %1317, %1318 : vector<2x32xf32>
    %1320 = math.tanh %1319 : vector<2x32xf32>
    %1321 = arith.mulf %1316, %1320 : vector<2x32xf32>
    %cst_284 = arith.constant dense<0.000000e+00> : vector<2x128xf32>
    %1322 = tpu.matmul %1321, %626, %cst_284 {dimension_numbers = #tpu.dot_dimension_numbers<[1], [0], [0], [1], [0, 0, 1, 1], [], []>} : vector<2x32xf32>, vector<32x128xf32>, vector<2x128xf32> -> vector<2x128xf32>
    %1323 = vector.broadcast %627 : vector<1x128xf32> to vector<2x128xf32>
    %1324 = arith.addf %1322, %1323 : vector<2x128xf32>
    %cst_285 = arith.constant dense<0xFF800000> : vector<2xf32>
    %1325 = vector.multi_reduction <maximumf>, %1324, %cst_285 [1] : vector<2x128xf32> to vector<2xf32>
    %1326 = vector.shape_cast %1325 : vector<2xf32> to vector<2x1xf32>
    %1327 = vector.broadcast %1326 : vector<2x1xf32> to vector<2x128xf32>
    %1328 = arith.subf %1324, %1327 : vector<2x128xf32>
    %1329 = math.exp %1328 : vector<2x128xf32>
    %cst_286 = arith.constant dense<0.000000e+00> : vector<2xf32>
    %1330 = vector.multi_reduction <add>, %1329, %cst_286 [1] : vector<2x128xf32> to vector<2xf32>
    %1331 = vector.shape_cast %1330 : vector<2xf32> to vector<2x1xf32>
    %1332 = vector.broadcast %1331 : vector<2x1xf32> to vector<2x128xf32>
    %1333 = arith.divf %1329, %1332 : vector<2x128xf32>
    %c4_287 = arith.constant 4 : index
    %c0_288 = arith.constant 0 : index
    %c0_289 = arith.constant 0 : index
    %1334 = vector.load %arg23[%c4_287, %c0_288, %c0_289] : memref<6x2x128xf32, #tpu.memory_space<vmem>>, vector<1x2x128xf32>
    %1335 = vector.shape_cast %1334 : vector<1x2x128xf32> to vector<2x128xf32>
    %1336 = vector.shape_cast %1333 : vector<2x128xf32> to vector<1x2x128xf32>
    tpu.vector_store %arg23[%c4_287, %c0_288, %c0_289], %1336 {strides = array<i32>} : memref<6x2x128xf32, #tpu.memory_space<vmem>>, vector<1x2x128xf32>,
    %c4_290 = arith.constant 4 : index
    %c0_291 = arith.constant 0 : index
    %c0_292 = arith.constant 0 : index
    %1337 = vector.load %arg1[%c4_290, %c0_291, %c0_292] : memref<5x2x1xi32, #tpu.memory_space<vmem>>, vector<1x2x1xi32>
    %1338 = vector.shape_cast %1337 : vector<1x2x1xi32> to vector<2x1xi32>
    %1339 = vector.broadcast %1338 : vector<2x1xi32> to vector<2x128xi32>
    %1340 = arith.cmpi eq, %628, %1339 : vector<2x128xi32>
    %1341 = arith.extui %1340 : vector<2x128xi1> to vector<2x128xi32>
    %1342 = arith.sitofp %1341 : vector<2x128xi32> to vector<2x128xf32>
    %cst_293 = arith.constant dense<0.000000e+00> : vector<2x16xf32>
    %1343 = tpu.matmul %1342, %625, %cst_293 {dimension_numbers = #tpu.dot_dimension_numbers<[1], [0], [0], [1], [0, 0, 1, 1], [], []>} : vector<2x128xf32>, vector<128x16xf32>, vector<2x16xf32> -> vector<2x16xf32>
    %1344 = vector.broadcast %619 : vector<1x32xf32> to vector<2x32xf32>
    %1345 = arith.mulf %1321, %1344 : vector<2x32xf32>
    %cst_294 = arith.constant dense<0.000000e+00> : vector<2xf32>
    %1346 = vector.multi_reduction <add>, %1345, %cst_294 [1] : vector<2x32xf32> to vector<2xf32>
    %1347 = vector.shape_cast %1346 : vector<2xf32> to vector<2x1xf32>
    %1348 = arith.addf %541, %1347 : vector<2x1xf32>
    %cst_295 = arith.constant 0.000000e+00 : f32
    %1349 = vector.broadcast %cst_295 : f32 to vector<2x1xf32>
    %1350 = arith.maximumf %1348, %1349 : vector<2x1xf32>
    %1351 = arith.addf %552, %1347 : vector<2x1xf32>
    %cst_296 = arith.constant 0.000000e+00 : f32
    %1352 = vector.broadcast %cst_296 : f32 to vector<2x1xf32>
    %1353 = arith.maximumf %1351, %1352 : vector<2x1xf32>
    %1354 = arith.addf %563, %1347 : vector<2x1xf32>
    %cst_297 = arith.constant 0.000000e+00 : f32
    %1355 = vector.broadcast %cst_297 : f32 to vector<2x1xf32>
    %1356 = arith.maximumf %1354, %1355 : vector<2x1xf32>
    %1357 = arith.addf %574, %1347 : vector<2x1xf32>
    %cst_298 = arith.constant 0.000000e+00 : f32
    %1358 = vector.broadcast %cst_298 : f32 to vector<2x1xf32>
    %1359 = arith.maximumf %1357, %1358 : vector<2x1xf32>
    %1360 = arith.addf %585, %1347 : vector<2x1xf32>
    %cst_299 = arith.constant 0.000000e+00 : f32
    %1361 = vector.broadcast %cst_299 : f32 to vector<2x1xf32>
    %1362 = arith.maximumf %1360, %1361 : vector<2x1xf32>
    %1363 = arith.addf %596, %1347 : vector<2x1xf32>
    %cst_300 = arith.constant 0.000000e+00 : f32
    %1364 = vector.broadcast %cst_300 : f32 to vector<2x1xf32>
    %1365 = arith.maximumf %1363, %1364 : vector<2x1xf32>
    %1366 = arith.addf %607, %1347 : vector<2x1xf32>
    %cst_301 = arith.constant 0.000000e+00 : f32
    %1367 = vector.broadcast %cst_301 : f32 to vector<2x1xf32>
    %1368 = arith.maximumf %1366, %1367 : vector<2x1xf32>
    %1369 = arith.addf %618, %1347 : vector<2x1xf32>
    %cst_302 = arith.constant 0.000000e+00 : f32
    %1370 = vector.broadcast %cst_302 : f32 to vector<2x1xf32>
    %1371 = arith.maximumf %1369, %1370 : vector<2x1xf32>
    %1372 = arith.maximumf %1350, %1353 : vector<2x1xf32>
    %1373 = arith.maximumf %1372, %1356 : vector<2x1xf32>
    %1374 = arith.maximumf %1373, %1359 : vector<2x1xf32>
    %1375 = arith.maximumf %1374, %1362 : vector<2x1xf32>
    %1376 = arith.maximumf %1375, %1365 : vector<2x1xf32>
    %1377 = arith.maximumf %1376, %1368 : vector<2x1xf32>
    %1378 = arith.maximumf %1377, %1371 : vector<2x1xf32>
    %1379 = arith.subf %1350, %1378 : vector<2x1xf32>
    %1380 = math.exp %1379 : vector<2x1xf32>
    %1381 = arith.subf %1353, %1378 : vector<2x1xf32>
    %1382 = math.exp %1381 : vector<2x1xf32>
    %1383 = arith.subf %1356, %1378 : vector<2x1xf32>
    %1384 = math.exp %1383 : vector<2x1xf32>
    %1385 = arith.subf %1359, %1378 : vector<2x1xf32>
    %1386 = math.exp %1385 : vector<2x1xf32>
    %1387 = arith.subf %1362, %1378 : vector<2x1xf32>
    %1388 = math.exp %1387 : vector<2x1xf32>
    %1389 = arith.subf %1365, %1378 : vector<2x1xf32>
    %1390 = math.exp %1389 : vector<2x1xf32>
    %1391 = arith.subf %1368, %1378 : vector<2x1xf32>
    %1392 = math.exp %1391 : vector<2x1xf32>
    %1393 = arith.subf %1371, %1378 : vector<2x1xf32>
    %1394 = math.exp %1393 : vector<2x1xf32>
    %1395 = arith.addf %1380, %1382 : vector<2x1xf32>
    %1396 = arith.addf %1395, %1384 : vector<2x1xf32>
    %1397 = arith.addf %1396, %1386 : vector<2x1xf32>
    %1398 = arith.addf %1397, %1388 : vector<2x1xf32>
    %1399 = arith.addf %1398, %1390 : vector<2x1xf32>
    %1400 = arith.addf %1399, %1392 : vector<2x1xf32>
    %1401 = arith.addf %1400, %1394 : vector<2x1xf32>
    %cst_303 = arith.constant 1.000000e+00 : f32
    %1402 = vector.broadcast %cst_303 : f32 to vector<2x1xf32>
    %1403 = arith.divf %1402, %1401 : vector<2x1xf32>
    %cst_304 = arith.constant 0.000000e+00 : f32
    %1404 = vector.broadcast %cst_304 : f32 to vector<2x32xf32>
    %cst_305 = arith.constant 0.000000e+00 : f32
    %1405 = vector.broadcast %cst_305 : f32 to vector<2x32xf32>
    %1406 = arith.mulf %1380, %1403 : vector<2x1xf32>
    %1407 = vector.broadcast %1406 : vector<2x1xf32> to vector<2x32xf32>
    %1408 = arith.mulf %1407, %104 : vector<2x32xf32>
    %1409 = arith.addf %1404, %1408 : vector<2x32xf32>
    %1410 = vector.broadcast %1406 : vector<2x1xf32> to vector<2x32xf32>
    %1411 = arith.mulf %1410, %511 : vector<2x32xf32>
    %1412 = arith.addf %1405, %1411 : vector<2x32xf32>
    %1413 = arith.mulf %1382, %1403 : vector<2x1xf32>
    %1414 = vector.broadcast %1413 : vector<2x1xf32> to vector<2x32xf32>
    %1415 = arith.mulf %1414, %131 : vector<2x32xf32>
    %1416 = arith.addf %1409, %1415 : vector<2x32xf32>
    %1417 = vector.broadcast %1413 : vector<2x1xf32> to vector<2x32xf32>
    %1418 = arith.mulf %1417, %484 : vector<2x32xf32>
    %1419 = arith.addf %1412, %1418 : vector<2x32xf32>
    %1420 = arith.mulf %1384, %1403 : vector<2x1xf32>
    %1421 = vector.broadcast %1420 : vector<2x1xf32> to vector<2x32xf32>
    %1422 = arith.mulf %1421, %158 : vector<2x32xf32>
    %1423 = arith.addf %1416, %1422 : vector<2x32xf32>
    %1424 = vector.broadcast %1420 : vector<2x1xf32> to vector<2x32xf32>
    %1425 = arith.mulf %1424, %457 : vector<2x32xf32>
    %1426 = arith.addf %1419, %1425 : vector<2x32xf32>
    %1427 = arith.mulf %1386, %1403 : vector<2x1xf32>
    %1428 = vector.broadcast %1427 : vector<2x1xf32> to vector<2x32xf32>
    %1429 = arith.mulf %1428, %185 : vector<2x32xf32>
    %1430 = arith.addf %1423, %1429 : vector<2x32xf32>
    %1431 = vector.broadcast %1427 : vector<2x1xf32> to vector<2x32xf32>
    %1432 = arith.mulf %1431, %430 : vector<2x32xf32>
    %1433 = arith.addf %1426, %1432 : vector<2x32xf32>
    %1434 = arith.mulf %1388, %1403 : vector<2x1xf32>
    %1435 = vector.broadcast %1434 : vector<2x1xf32> to vector<2x32xf32>
    %1436 = arith.mulf %1435, %212 : vector<2x32xf32>
    %1437 = arith.addf %1430, %1436 : vector<2x32xf32>
    %1438 = vector.broadcast %1434 : vector<2x1xf32> to vector<2x32xf32>
    %1439 = arith.mulf %1438, %403 : vector<2x32xf32>
    %1440 = arith.addf %1433, %1439 : vector<2x32xf32>
    %1441 = arith.mulf %1390, %1403 : vector<2x1xf32>
    %1442 = vector.broadcast %1441 : vector<2x1xf32> to vector<2x32xf32>
    %1443 = arith.mulf %1442, %239 : vector<2x32xf32>
    %1444 = arith.addf %1437, %1443 : vector<2x32xf32>
    %1445 = vector.broadcast %1441 : vector<2x1xf32> to vector<2x32xf32>
    %1446 = arith.mulf %1445, %376 : vector<2x32xf32>
    %1447 = arith.addf %1440, %1446 : vector<2x32xf32>
    %1448 = arith.mulf %1392, %1403 : vector<2x1xf32>
    %1449 = vector.broadcast %1448 : vector<2x1xf32> to vector<2x32xf32>
    %1450 = arith.mulf %1449, %266 : vector<2x32xf32>
    %1451 = arith.addf %1444, %1450 : vector<2x32xf32>
    %1452 = vector.broadcast %1448 : vector<2x1xf32> to vector<2x32xf32>
    %1453 = arith.mulf %1452, %349 : vector<2x32xf32>
    %1454 = arith.addf %1447, %1453 : vector<2x32xf32>
    %1455 = arith.mulf %1394, %1403 : vector<2x1xf32>
    %1456 = vector.broadcast %1455 : vector<2x1xf32> to vector<2x32xf32>
    %1457 = arith.mulf %1456, %293 : vector<2x32xf32>
    %1458 = arith.addf %1451, %1457 : vector<2x32xf32>
    %1459 = vector.broadcast %1455 : vector<2x1xf32> to vector<2x32xf32>
    %1460 = arith.mulf %1459, %322 : vector<2x32xf32>
    %1461 = arith.addf %1454, %1460 : vector<2x32xf32>
    %cst_306 = arith.constant dense<0.000000e+00> : vector<2x128xf32>
    %1462 = tpu.matmul %1458, %620, %cst_306 {dimension_numbers = #tpu.dot_dimension_numbers<[1], [0], [0], [1], [0, 0, 1, 1], [], []>} : vector<2x32xf32>, vector<32x128xf32>, vector<2x128xf32> -> vector<2x128xf32>
    %cst_307 = arith.constant dense<0.000000e+00> : vector<2x128xf32>
    %1463 = tpu.matmul %1461, %621, %cst_307 {dimension_numbers = #tpu.dot_dimension_numbers<[1], [0], [0], [1], [0, 0, 1, 1], [], []>} : vector<2x32xf32>, vector<32x128xf32>, vector<2x128xf32> -> vector<2x128xf32>
    %1464 = arith.addf %1462, %1463 : vector<2x128xf32>
    %cst_308 = arith.constant dense<0.000000e+00> : vector<2x128xf32>
    %1465 = tpu.matmul %1343, %622, %cst_308 {dimension_numbers = #tpu.dot_dimension_numbers<[1], [0], [0], [1], [0, 0, 1, 1], [], []>} : vector<2x16xf32>, vector<16x128xf32>, vector<2x128xf32> -> vector<2x128xf32>
    %1466 = arith.addf %1464, %1465 : vector<2x128xf32>
    %cst_309 = arith.constant dense<0.000000e+00> : vector<2x128xf32>
    %1467 = tpu.matmul %1321, %623, %cst_309 {dimension_numbers = #tpu.dot_dimension_numbers<[1], [0], [0], [1], [0, 0, 1, 1], [], []>} : vector<2x32xf32>, vector<32x128xf32>, vector<2x128xf32> -> vector<2x128xf32>
    %1468 = arith.addf %1466, %1467 : vector<2x128xf32>
    %1469 = vector.broadcast %624 : vector<1x128xf32> to vector<2x128xf32>
    %1470 = arith.addf %1468, %1469 : vector<2x128xf32>
    %1471 = vector.extract_strided_slice %1470 {offsets = [0, 0], sizes = [2, 32], strides = [1, 1]} : vector<2x128xf32> to vector<2x32xf32>
    %1472 = arith.negf %1471 : vector<2x32xf32>
    %1473 = math.exp %1472 : vector<2x32xf32>
    %cst_310 = arith.constant 1.000000e+00 : f32
    %1474 = vector.broadcast %cst_310 : f32 to vector<2x32xf32>
    %1475 = arith.addf %1474, %1473 : vector<2x32xf32>
    %1476 = arith.divf %1474, %1475 : vector<2x32xf32>
    %1477 = vector.extract_strided_slice %1470 {offsets = [0, 32], sizes = [2, 32], strides = [1, 1]} : vector<2x128xf32> to vector<2x32xf32>
    %1478 = arith.negf %1477 : vector<2x32xf32>
    %1479 = math.exp %1478 : vector<2x32xf32>
    %cst_311 = arith.constant 1.000000e+00 : f32
    %1480 = vector.broadcast %cst_311 : f32 to vector<2x32xf32>
    %1481 = arith.addf %1480, %1479 : vector<2x32xf32>
    %1482 = arith.divf %1480, %1481 : vector<2x32xf32>
    %1483 = vector.extract_strided_slice %1470 {offsets = [0, 64], sizes = [2, 32], strides = [1, 1]} : vector<2x128xf32> to vector<2x32xf32>
    %1484 = math.tanh %1483 : vector<2x32xf32>
    %1485 = vector.extract_strided_slice %1470 {offsets = [0, 96], sizes = [2, 32], strides = [1, 1]} : vector<2x128xf32> to vector<2x32xf32>
    %1486 = arith.negf %1485 : vector<2x32xf32>
    %1487 = math.exp %1486 : vector<2x32xf32>
    %cst_312 = arith.constant 1.000000e+00 : f32
    %1488 = vector.broadcast %cst_312 : f32 to vector<2x32xf32>
    %1489 = arith.addf %1488, %1487 : vector<2x32xf32>
    %1490 = arith.divf %1488, %1489 : vector<2x32xf32>
    %1491 = arith.mulf %1482, %1319 : vector<2x32xf32>
    %1492 = arith.mulf %1476, %1484 : vector<2x32xf32>
    %1493 = arith.addf %1491, %1492 : vector<2x32xf32>
    %1494 = math.tanh %1493 : vector<2x32xf32>
    %1495 = arith.mulf %1490, %1494 : vector<2x32xf32>
    %cst_313 = arith.constant dense<0.000000e+00> : vector<2x128xf32>
    %1496 = tpu.matmul %1495, %626, %cst_313 {dimension_numbers = #tpu.dot_dimension_numbers<[1], [0], [0], [1], [0, 0, 1, 1], [], []>} : vector<2x32xf32>, vector<32x128xf32>, vector<2x128xf32> -> vector<2x128xf32>
    %1497 = vector.broadcast %627 : vector<1x128xf32> to vector<2x128xf32>
    %1498 = arith.addf %1496, %1497 : vector<2x128xf32>
    %cst_314 = arith.constant dense<0xFF800000> : vector<2xf32>
    %1499 = vector.multi_reduction <maximumf>, %1498, %cst_314 [1] : vector<2x128xf32> to vector<2xf32>
    %1500 = vector.shape_cast %1499 : vector<2xf32> to vector<2x1xf32>
    %1501 = vector.broadcast %1500 : vector<2x1xf32> to vector<2x128xf32>
    %1502 = arith.subf %1498, %1501 : vector<2x128xf32>
    %1503 = math.exp %1502 : vector<2x128xf32>
    %cst_315 = arith.constant dense<0.000000e+00> : vector<2xf32>
    %1504 = vector.multi_reduction <add>, %1503, %cst_315 [1] : vector<2x128xf32> to vector<2xf32>
    %1505 = vector.shape_cast %1504 : vector<2xf32> to vector<2x1xf32>
    %1506 = vector.broadcast %1505 : vector<2x1xf32> to vector<2x128xf32>
    %1507 = arith.divf %1503, %1506 : vector<2x128xf32>
    %c5_316 = arith.constant 5 : index
    %c0_317 = arith.constant 0 : index
    %c0_318 = arith.constant 0 : index
    %1508 = vector.load %arg23[%c5_316, %c0_317, %c0_318] : memref<6x2x128xf32, #tpu.memory_space<vmem>>, vector<1x2x128xf32>
    %1509 = vector.shape_cast %1508 : vector<1x2x128xf32> to vector<2x128xf32>
    %1510 = vector.shape_cast %1507 : vector<2x128xf32> to vector<1x2x128xf32>
    tpu.vector_store %arg23[%c5_316, %c0_317, %c0_318], %1510 {strides = array<i32>} : memref<6x2x128xf32, #tpu.memory_space<vmem>>, vector<1x2x128xf32>,
    return
  }
}

</mosaic_0001>

<bundles_post_ra>
// kernel: tpu_custom_call.1
= control target key start
LH: loop header
LB: loop body
LE: loop exit
PB: predicated region body
PF: predicated region fallthrough
CT: control target
= control target key end

     0   :  { %s10591_s0 = inlined_call_operand.hbm [shape: f32[8,2,16], index: 0, kind: input, shape index: {}]   ;;  %s10592_s1 = inlined_call_operand.vmem [shape: s32[5,2,1], index: 1, kind: input, shape index: {}]   ;;  %s10593_s2 = inlined_call_operand.vmem [shape: f32[2,16,128], index: 2, kind: input, shape index: {}]   ;;  %s10594_s3 = inlined_call_operand.vmem [shape: f32[2,32,128], index: 3, kind: input, shape index: {}]   ;;  %s10595_s4 = inlined_call_operand.hbm [shape: f32[2,1,128], index: 4, kind: input, shape index: {}]   ;;  %s10596_s5 = inlined_call_operand.vmem [shape: f32[32,32], index: 5, kind: input, shape index: {}]   ;;  %s10597_s6 = inlined_call_operand.vmem [shape: f32[32,32], index: 6, kind: input, shape index: {}]   ;;  %s10598_s7 = inlined_call_operand.hbm [shape: f32[1,32], index: 7, kind: input, shape index: {}]   ;;  %s10599_s8 = inlined_call_operand.hbm [shape: f32[32,32], index: 8, kind: input, shape index: {}]   ;;  %s10600_s9 = inlined_call_operand.vmem [shape: f32[32,32], index: 9, kind: input, shape index: {}]   ;;  %s10601_s10 = inlined_call_operand.hbm [shape: f32[1,32], index: 10, kind: input, shape index: {}]   ;;  %s10602_s11 = inlined_call_operand.hbm [shape: f32[1,32], index: 11, kind: input, shape index: {}]   ;;  %s10603_s12 = inlined_call_operand.hbm [shape: f32[1,32], index: 12, kind: input, shape index: {}]   ;;  %s10604_s13 = inlined_call_operand.hbm [shape: f32[1,32], index: 13, kind: input, shape index: {}]   ;;  %s10605_s14 = inlined_call_operand.<no memory space> [shape: f32[1,1], index: 14, kind: input, shape index: {}]   ;;  %s10606_s15 = inlined_call_operand.hbm [shape: f32[32,128], index: 15, kind: input, shape index: {}]   ;;  %s10607_s16 = inlined_call_operand.hbm [shape: f32[32,128], index: 16, kind: input, shape index: {}]   ;;  %s10608_s17 = inlined_call_operand.hbm [shape: f32[16,128], index: 17, kind: input, shape index: {}]   ;;  %s10609_s18 = inlined_call_operand.vmem [shape: f32[32,128], index: 18, kind: input, shape index: {}]   ;;  %s10610_s19 = inlined_call_operand.vmem [shape: f32[1,128], index: 19, kind: input, shape index: {}]   ;;  %s10611_s20 = inlined_call_operand.vmem [shape: f32[128,16], index: 20, kind: input, shape index: {}]   ;;  %s10612_s21 = inlined_call_operand.hbm [shape: f32[32,128], index: 21, kind: input, shape index: {}]   ;;  %s10613_s22 = inlined_call_operand.vmem [shape: f32[1,128], index: 22, kind: input, shape index: {}]   ;;  %s10614_s23 = inlined_call_operand.hbm [shape: f32[6,2,128], index: 23, kind: output, shape index: {}]  }
   0x1   :  { %10660 = sst [smem:[#allocation49_spill]] %s10591_s0  ;;  %v28_v0 = vstv %s10605_s14 }
   0x2   :  { %10661 = sst [smem:[#allocation50_spill]] %s10592_s1  ;;  %29 = vst [vmem:[#allocation2] sm:$0x1] %v28_v0 }
   0x3   :  { %10662 = sst [smem:[#allocation51_spill]] %s10593_s2 }
   0x4   :  { %10663 = sst [smem:[#allocation52_spill]] %s10594_s3 }
   0x5   :  { %10664 = sst [smem:[#allocation53_spill]] %s10595_s4 }
   0x6   :  { %10665 = sst [smem:[#allocation54_spill]] %s10596_s5 }
   0x7   :  { %10666 = sst [smem:[#allocation55_spill]] %s10597_s6 }
   0x8   :  { %10667 = sst [smem:[#allocation56_spill]] %s10598_s7 }
   0x9   :  { %30 = vsyncpa [#allocation4], 0 }
   0xa   :  { %31 = vsyncpa [#allocation7], 0 }
   0xb   :  { %32 = vsyncpa [#allocation10], 0 }
   0xc   :  { %33 = vsyncpa [#allocation13], 0 }
   0xd   :  { %34 = vsyncpa [#allocation16], 0 }
   0xe   :  { %35 = vsyncpa [#allocation19], 0 }
   0xf   :  { %36 = vsyncpa [#allocation22], 0 }
  0x10   :  { %37 = vsyncpa [#allocation5], 0  ;;  %s9075_s24 = smov [#allocation6]   ;;  %s10668_s26 = sld [smem:[#allocation53_spill]] }
  0x11   :  { %s61_s25 = sshll.u32 %s9075_s24, 4  ;;  %s62_s25 = int_to_ptr.vmem [resolvable:$true] %s61_s25 }
  0x16   :  { %s8773_s2 = scalar_lea.hbm %s10668_s26, 32 }
  0x17   :  { %p8774_p0 = scmp.ne.s32.totalorder %s10668_s26, %s8773_s2  ;;  %p8777_p1 = scmp.lt.u32.totalorder %s8773_s2, %s10668_s26 }
  0x19   :  { %p8779_p2 = pnand %p8777_p1, %p8774_p0 }
  0x1b   :  { %8782 = shalt.err (!%p8779_p2)
}
  0x1c   :  { %s8783_s28 = scalar_lea.vmem %s62_s25, 32  ;;  %p8788_p4 = scmp.lt.s32.totalorder %s62_s25, %s62_s25 }
  0x1d   :  { %p8784_p3 = scmp.ne.s32.totalorder %s62_s25, %s8783_s28  ;;  %p8789_p5 = scmp.lt.s32.totalorder %s8783_s28, %s8783_s28 }
  0x1f   :  { %p8790_p6 = por %p8789_p5, %p8788_p4 }
  0x21   :  { %p8791_p7 = pnand %p8790_p6, %p8784_p3 }
  0x23   :  { %8794 = shalt.err (!%p8791_p7)
}
  0x24   :  { %s9076_s29 = smov 16   ;;  %s9077_s3 = smov 1  }
  0x25   :  { %67 = dma.hbm_to_vmem [thread:$0]  %s10668_s26, 32, %s62_s25, [#allocation7], %s9076_s29, %s9076_s29, %s9077_s3  }
  0x26   :  { %s9078_s30 = smov [#allocation9]   ;;  %s8795_s2 = scalar_lea.hbm %s10599_s8, 512 }
  0x27   :  { %s87_s24 = sshll.u32 %s9078_s30, 4  ;;  %p8796_p8 = scmp.ne.s32.totalorder %s10599_s8, %s8795_s2  ;;  %s88_s24 = int_to_ptr.vmem [resolvable:$true] %s87_s24 }
  0x28   :  { %p8799_p9 = scmp.lt.u32.totalorder %s8795_s2, %s10599_s8 }
  0x2a   :  { %p8801_p10 = pnand %p8799_p9, %p8796_p8 }
  0x2c   :  { %8804 = shalt.err (!%p8801_p10)
}
  0x2d   :  { %s8805_s28 = scalar_lea.vmem %s88_s24, 512  ;;  %p8810_p12 = scmp.lt.s32.totalorder %s88_s24, %s88_s24 }
  0x2e   :  { %p8806_p11 = scmp.ne.s32.totalorder %s88_s24, %s8805_s28  ;;  %p8811_p13 = scmp.lt.s32.totalorder %s8805_s28, %s8805_s28 }
  0x30   :  { %p8812_p0 = por %p8811_p13, %p8810_p12 }
  0x32   :  { %p8813_p1 = pnand %p8812_p0, %p8806_p11 }
  0x34   :  { %8816 = shalt.err (!%p8813_p1)
}
  0x35   :  { %s9079_s25 = smov 128   ;;  %s9080_s26 = smov 8  }
  0x36   :  { %93 = dma.hbm_to_vmem [thread:$0]  %s10599_s8, 512, %s88_s24, [#allocation10], %s9079_s25, %s9079_s25, %s9080_s26  }
  0x37   :  { %s9081_s0 = smov [#allocation12]   ;;  %s9082_s30 = smov [#allocation15]  }
  0x38   :  { %s112_s4 = sshll.u32 %s9081_s0, 4  ;;  %s132_s5 = sshll.u32 %s9082_s30, 4  ;;  %s113_s4 = int_to_ptr.vmem [resolvable:$true] %s112_s4  ;;  %s133_s5 = int_to_ptr.vmem [resolvable:$true] %s132_s5 }
  0x39   :  { %s8817_s6 = scalar_lea.hbm %s10602_s11, 16 }
  0x3a   :  { %p8818_p2 = scmp.ne.s32.totalorder %s10602_s11, %s8817_s6  ;;  %p8821_p3 = scmp.lt.u32.totalorder %s8817_s6, %s10602_s11 }
  0x3c   :  { %p8823_p4 = pnand %p8821_p3, %p8818_p2 }
  0x3e   :  { %8826 = shalt.err (!%p8823_p4)
}
  0x3f   :  { %s8827_s8 = scalar_lea.vmem %s113_s4, 16  ;;  %s8831_s24 = scalar_lea.vmem %s113_s4, 32 }
  0x40   :  { %p8828_p5 = scmp.ne.s32.totalorder %s113_s4, %s8827_s8  ;;  %p8832_p6 = scmp.lt.s32.totalorder %s113_s4, %s113_s4 }
  0x41   :  { %p8833_p7 = scmp.lt.s32.totalorder %s8831_s24, %s8827_s8 }
  0x43   :  { %p8834_p8 = por %p8833_p7, %p8832_p6 }
  0x45   :  { %p8835_p9 = pnand %p8834_p8, %p8828_p5 }
  0x47   :  { %8838 = shalt.err (!%p8835_p9)
}
  0x48   :  { %115 = dma.hbm_to_vmem [thread:$0]  %s10602_s11, 16, %s113_s4, [#allocation13]  }
  0x49   :  { %s8839_s1 = scalar_lea.hbm %s10604_s13, 16 }
  0x4a   :  { %p8840_p10 = scmp.ne.s32.totalorder %s10604_s13, %s8839_s1  ;;  %p8843_p11 = scmp.lt.u32.totalorder %s8839_s1, %s10604_s13 }
  0x4c   :  { %p8845_p12 = pnand %p8843_p11, %p8840_p10 }
  0x4e   :  { %8848 = shalt.err (!%p8845_p12)
}
  0x4f   :  { %s8849_s7 = scalar_lea.vmem %s133_s5, 16  ;;  %s8853_s28 = scalar_lea.vmem %s133_s5, 32 }
  0x50   :  { %p8850_p13 = scmp.ne.s32.totalorder %s133_s5, %s8849_s7  ;;  %p8854_p0 = scmp.lt.s32.totalorder %s133_s5, %s133_s5 }
  0x51   :  { %p8855_p1 = scmp.lt.s32.totalorder %s8853_s28, %s8849_s7 }
  0x53   :  { %p8856_p2 = por %p8855_p1, %p8854_p0 }
  0x55   :  { %p8857_p3 = pnand %p8856_p2, %p8850_p13 }
  0x57   :  { %8860 = shalt.err (!%p8857_p3)
}
  0x58   :  { %135 = dma.hbm_to_vmem [thread:$0]  %s10604_s13, 16, %s133_s5, [#allocation16]  }
  0x59   :  { %s9083_s8 = smov [#allocation18]   ;;  %s9084_s29 = smov [#allocation3]  }
  0x5a   :  { %s155_s24 = sshll.u32 %s9083_s8, 4  ;;  %s43_s3 = sshll.u32 %s9084_s29, 4  ;;  %s156_s24 = int_to_ptr.vmem [resolvable:$true] %s155_s24  ;;  %s9275_s3 = int_to_ptr.vmem [resolvable:$true] %s43_s3 }
  0x5b   :  { %s8861_s1 = scalar_lea.hbm %s10607_s16, 512 }
  0x5c   :  { %p8862_p4 = scmp.ne.s32.totalorder %s10607_s16, %s8861_s1  ;;  %p8865_p5 = scmp.lt.u32.totalorder %s8861_s1, %s10607_s16 }
  0x5e   :  { %p8867_p6 = pnand %p8865_p5, %p8862_p4 }
  0x60   :  { %8870 = shalt.err (!%p8867_p6)
}
  0x61   :  { %s8871_s13 = scalar_lea.vmem %s156_s24, 512  ;;  %p8876_p8 = scmp.lt.s32.totalorder %s156_s24, %s156_s24 }
  0x62   :  { %p8872_p7 = scmp.ne.s32.totalorder %s156_s24, %s8871_s13  ;;  %p8877_p9 = scmp.lt.s32.totalorder %s8871_s13, %s8871_s13 }
  0x64   :  { %p8878_p10 = por %p8877_p9, %p8876_p8 }
  0x66   :  { %p8879_p11 = pnand %p8878_p10, %p8872_p7 }
  0x68   :  { %8882 = shalt.err (!%p8879_p11)
}
  0x69   :  { %161 = dma.hbm_to_vmem [thread:$0]  %s10607_s16, 512, %s156_s24, [#allocation19], %s9079_s25, %s9079_s25, %s9080_s26  }
  0x6a   :  { %s10669_s4 = sld [smem:[#allocation49_spill]] }
  0x70   :  { %s8883_s8 = scalar_lea.hbm %s10669_s4, 256 }
  0x71   :  { %p8884_p12 = scmp.ne.s32.totalorder %s10669_s4, %s8883_s8  ;;  %p8887_p13 = scmp.lt.u32.totalorder %s8883_s8, %s10669_s4 }
  0x73   :  { %p8889_p0 = pnand %p8887_p13, %p8884_p12 }
  0x75   :  { %8892 = shalt.err (!%p8889_p0)
}
  0x76   :  { %s8893_s2 = scalar_lea.vmem %s9275_s3, 256  ;;  %p8898_p2 = scmp.lt.s32.totalorder %s9275_s3, %s9275_s3 }
  0x77   :  { %p8894_p1 = scmp.ne.s32.totalorder %s9275_s3, %s8893_s2  ;;  %p8899_p3 = scmp.lt.s32.totalorder %s8893_s2, %s8893_s2 }
  0x79   :  { %p8900_p4 = por %p8899_p3, %p8898_p2 }
  0x7b   :  { %p8901_p5 = pnand %p8900_p4, %p8894_p1 }
  0x7d   :  { %8904 = shalt.err (!%p8901_p5)
}
  0x7e   :  { %s9085_s16 = smov 32   ;;  %s9086_s24 = smov 2  }
  0x7f   :  { %49 = dma.hbm_to_vmem [thread:$0]  %s10669_s4, 256, %s9275_s3, [#allocation4], %s9085_s16, %s9085_s16, %s9086_s24  }
  0x80   :  { %s9087_s14 = smov [#allocation8]   ;;  %s9088_s5 = smov [#allocation11]  }
  0x81   :  { %s78_s13 = sshll.u32 %s9087_s14, 4  ;;  %s102_s7 = sshll.u32 %s9088_s5, 4  ;;  %s79_s13 = int_to_ptr.vmem [resolvable:$true] %s78_s13  ;;  %s103_s7 = int_to_ptr.vmem [resolvable:$true] %s102_s7 }
  0x82   :  { %s10670_s8 = sld [smem:[#allocation56_spill]] }
  0x88   :  { %s8905_s29 = scalar_lea.hbm %s10670_s8, 16 }
  0x89   :  { %p8906_p6 = scmp.ne.s32.totalorder %s10670_s8, %s8905_s29  ;;  %p8909_p7 = scmp.lt.u32.totalorder %s8905_s29, %s10670_s8 }
  0x8b   :  { %p8911_p8 = pnand %p8909_p7, %p8906_p6 }
  0x8d   :  { %8914 = shalt.err (!%p8911_p8)
}
  0x8e   :  { %s8915_s3 = scalar_lea.vmem %s79_s13, 16  ;;  %s8919_s4 = scalar_lea.vmem %s79_s13, 32 }
  0x8f   :  { %p8916_p9 = scmp.ne.s32.totalorder %s79_s13, %s8915_s3  ;;  %p8920_p10 = scmp.lt.s32.totalorder %s79_s13, %s79_s13 }
  0x90   :  { %p8921_p11 = scmp.lt.s32.totalorder %s8919_s4, %s8915_s3 }
  0x92   :  { %p8922_p12 = por %p8921_p11, %p8920_p10 }
  0x94   :  { %p8923_p13 = pnand %p8922_p12, %p8916_p9 }
  0x96   :  { %8926 = shalt.err (!%p8923_p13)
}
  0x97   :  { %81 = dma.hbm_to_vmem [thread:$0]  %s10670_s8, 16, %s79_s13, [#allocation7]  }
  0x98   :  { %s8927_s28 = scalar_lea.hbm %s10601_s10, 16 }
  0x99   :  { %p8928_p0 = scmp.ne.s32.totalorder %s10601_s10, %s8927_s28  ;;  %p8931_p1 = scmp.lt.u32.totalorder %s8927_s28, %s10601_s10 }
  0x9b   :  { %p8933_p2 = pnand %p8931_p1, %p8928_p0 }
  0x9d   :  { %8936 = shalt.err (!%p8933_p2)
}
  0x9e   :  { %s8937_s1 = scalar_lea.vmem %s103_s7, 16  ;;  %s8941_s2 = scalar_lea.vmem %s103_s7, 32 }
  0x9f   :  { %p8938_p3 = scmp.ne.s32.totalorder %s103_s7, %s8937_s1  ;;  %p8942_p4 = scmp.lt.s32.totalorder %s103_s7, %s103_s7 }
  0xa0   :  { %p8943_p5 = scmp.lt.s32.totalorder %s8941_s2, %s8937_s1 }
  0xa2   :  { %p8944_p6 = por %p8943_p5, %p8942_p4 }
  0xa4   :  { %p8945_p7 = pnand %p8944_p6, %p8938_p3 }
  0xa6   :  { %8948 = shalt.err (!%p8945_p7)
}
  0xa7   :  { %105 = dma.hbm_to_vmem [thread:$0]  %s10601_s10, 16, %s103_s7, [#allocation10]  }
  0xa8   :  { %s9089_s3 = smov [#allocation14]   ;;  %s9090_s6 = smov [#allocation17]  }
  0xa9   :  { %s122_s4 = sshll.u32 %s9089_s3, 4  ;;  %s143_s27 = sshll.u32 %s9090_s6, 4  ;;  %s123_s4 = int_to_ptr.vmem [resolvable:$true] %s122_s4  ;;  %s9336_s27 = int_to_ptr.vmem [resolvable:$true] %s143_s27 }
  0xaa   :  { %s8949_s28 = scalar_lea.hbm %s10603_s12, 16 }
  0xab   :  { %p8950_p8 = scmp.ne.s32.totalorder %s10603_s12, %s8949_s28  ;;  %p8953_p9 = scmp.lt.u32.totalorder %s8949_s28, %s10603_s12 }
  0xad   :  { %p8955_p10 = pnand %p8953_p9, %p8950_p8 }
  0xaf   :  { %8958 = shalt.err (!%p8955_p10)
}
  0xb0   :  { %s8959_s10 = scalar_lea.vmem %s123_s4, 16  ;;  %s8963_s7 = scalar_lea.vmem %s123_s4, 32 }
  0xb1   :  { %p8960_p11 = scmp.ne.s32.totalorder %s123_s4, %s8959_s10  ;;  %p8964_p12 = scmp.lt.s32.totalorder %s123_s4, %s123_s4 }
  0xb2   :  { %p8965_p13 = scmp.lt.s32.totalorder %s8963_s7, %s8959_s10 }
  0xb4   :  { %p8966_p0 = por %p8965_p13, %p8964_p12 }
  0xb6   :  { %p8967_p1 = pnand %p8966_p0, %p8960_p11 }
  0xb8   :  { %8970 = shalt.err (!%p8967_p1)
}
  0xb9   :  { %125 = dma.hbm_to_vmem [thread:$0]  %s10603_s12, 16, %s123_s4, [#allocation13]  }
  0xba   :  { %s8971_s3 = scalar_lea.hbm %s10606_s15, 512 }
  0xbb   :  { %p8972_p2 = scmp.ne.s32.totalorder %s10606_s15, %s8971_s3  ;;  %p8975_p3 = scmp.lt.u32.totalorder %s8971_s3, %s10606_s15 }
  0xbd   :  { %p8977_p4 = pnand %p8975_p3, %p8972_p2 }
  0xbf   :  { %8980 = shalt.err (!%p8977_p4)
}
  0xc0   :  { %s8981_s11 = scalar_lea.vmem %s9336_s27, 512  ;;  %p8986_p6 = scmp.lt.s32.totalorder %s9336_s27, %s9336_s27 }
  0xc1   :  { %p8982_p5 = scmp.ne.s32.totalorder %s9336_s27, %s8981_s11  ;;  %p8987_p7 = scmp.lt.s32.totalorder %s8981_s11, %s8981_s11 }
  0xc3   :  { %p8988_p8 = por %p8987_p7, %p8986_p6 }
  0xc5   :  { %p8989_p9 = pnand %p8988_p8, %p8982_p5 }
  0xc7   :  { %8992 = shalt.err (!%p8989_p9)
}
  0xc8   :  { %149 = dma.hbm_to_vmem [thread:$0]  %s10606_s15, 512, %s9336_s27, [#allocation16], %s9079_s25, %s9079_s25, %s9080_s26  }
  0xc9   :  { %s9091_s29 = smov [#allocation20]   ;;  %s9092_s30 = smov [#allocation21]  }
  0xca   :  { %s167_s0 = sshll.u32 %s9091_s29, 4  ;;  %s185_s10 = sshll.u32 %s9092_s30, 4  ;;  %s168_s0 = int_to_ptr.vmem [resolvable:$true] %s167_s0  ;;  %s9370_s10 = int_to_ptr.vmem [resolvable:$true] %s185_s10 }
  0xcb   :  { %s8993_s2 = scalar_lea.hbm %s10608_s17, 256 }
  0xcc   :  { %p8994_p10 = scmp.ne.s32.totalorder %s10608_s17, %s8993_s2  ;;  %p8997_p11 = scmp.lt.u32.totalorder %s8993_s2, %s10608_s17 }
  0xce   :  { %p8999_p12 = pnand %p8997_p11, %p8994_p10 }
  0xd0   :  { %9002 = shalt.err (!%p8999_p12)
}
  0xd1   :  { %s9003_s15 = scalar_lea.vmem %s168_s0, 256  ;;  %p9008_p0 = scmp.lt.s32.totalorder %s168_s0, %s168_s0 }
  0xd2   :  { %p9004_p13 = scmp.ne.s32.totalorder %s168_s0, %s9003_s15  ;;  %p9009_p1 = scmp.lt.s32.totalorder %s9003_s15, %s9003_s15 }
  0xd4   :  { %p9010_p2 = por %p9009_p1, %p9008_p0 }
  0xd6   :  { %p9011_p3 = pnand %p9010_p2, %p9004_p13 }
  0xd8   :  { %9014 = shalt.err (!%p9011_p3)
}
  0xd9   :  { %173 = dma.hbm_to_vmem [thread:$0]  %s10608_s17, 256, %s168_s0, [#allocation19], %s9079_s25, %s9079_s25, %s9080_s26  }
  0xda   :  { %s9015_s11 = scalar_lea.hbm %s10612_s21, 512 }
  0xdb   :  { %p9016_p4 = scmp.ne.s32.totalorder %s10612_s21, %s9015_s11  ;;  %p9019_p5 = scmp.lt.u32.totalorder %s9015_s11, %s10612_s21 }
  0xdd   :  { %p9021_p6 = pnand %p9019_p5, %p9016_p4 }
  0xdf   :  { %9024 = shalt.err (!%p9021_p6)
}
  0xe0   :  { %s9025_s7 = scalar_lea.vmem %s9370_s10, 512  ;;  %p9030_p8 = scmp.lt.s32.totalorder %s9370_s10, %s9370_s10 }
  0xe1   :  { %p9026_p7 = scmp.ne.s32.totalorder %s9370_s10, %s9025_s7  ;;  %p9031_p9 = scmp.lt.s32.totalorder %s9025_s7, %s9025_s7 }
  0xe3   :  { %p9032_p10 = por %p9031_p9, %p9030_p8 }
  0xe5   :  { %p9033_p11 = pnand %p9032_p10, %p9026_p7 }
  0xe7   :  { %9036 = shalt.err (!%p9033_p11)
}
  0xe8   :  { %191 = dma.hbm_to_vmem [thread:$0]  %s10612_s21, 512, %s9370_s10, [#allocation22], %s9079_s25, %s9079_s25, %s9080_s26  }
  0xe9   :  { %9059 = dma.done.wait [#allocation4], 256  }
  0xea   :  { %9060 = vsyncadd [#allocation4], 4294967040 }
  0xeb   :  { %9061 = dma.done.wait [#allocation7], 48  }
  0xec   :  { %9062 = vsyncadd [#allocation7], 4294967248 }
  0xed   :  { %9063 = dma.done.wait [#allocation10], 528  }
  0xee   :  { %9064 = vsyncadd [#allocation10], 4294966768 }
  0xef   :  { %9065 = dma.done.wait [#allocation13], 32  }
  0xf0   :  { %9066 = vsyncadd [#allocation13], 4294967264 }
  0xf1   :  { %9067 = dma.done.wait [#allocation16], 528  }
  0xf2   :  { %9068 = vsyncadd [#allocation16], 4294966768 }
  0xf3   :  { %9069 = dma.done.wait [#allocation19], 768  }
  0xf4   :  { %9070 = vsyncadd [#allocation19], 4294966528 }
  0xf5   :  { %9071 = dma.done.wait [#allocation22], 512  }
  0xf6   :  { %9072 = vsyncadd [#allocation22], 4294966784  ;;  %v10623_v1 = vmov 0.0|0.0   ;;  %vm9094_vm0 = vmmov 0   ;;  %v10625_v2 = vmov 0.0   ;;  %s10671_s26 = sld [smem:[#allocation51_spill]] }
  0xf7   :  { %7994 = vmatprep.subr.bf16.mxu0 %v10623_v1  ;;  %7236 = vmatprep.mubr.msk.f32.mxu0 %vm9094_vm0, %v10625_v2  ;;  %3554 = vst [vmem:[#allocation23] sm:$0x3] %v10625_v2  ;;  %v247_v6 = vld [vmem:[#allocation3] sm:$0x3]  ;;  %vm268_vm1 = vcmask 130048   ;;  %s10672_s27 = sld [smem:[#allocation52_spill]] }
  0xf8   :  { %7997 = vmatprep.subr.bf16.mxu1 %v10623_v1  ;;  %7243 = vmatprep.mubr.msk.f32.mxu1 %vm9094_vm0, %v10625_v2  ;;  %v251_v7 = vld [vmem:[#allocation3 + $0x4] sm:$0x3]  ;;  %v255_v8 = vld [vmem:[#allocation3 + $0x8] sm:$0x3]  ;;  %v259_v11 = vld [vmem:[#allocation3 + $0xc] sm:$0x3] }
  0xf9   :  { %v9499_v19 = vld [vmem:[#allocation6] ss:$0 sm:$0xff]  ;;  %s9096_s29 = smov 64   ;;  %v249_v33 = vld [vmem:[#allocation3 + $0x2] sm:$0x3]  ;;  %vm1419_vm2 = vcmask 261120  }
  0xfa   :  { %v253_v34 = vld [vmem:[#allocation3 + $0x6] sm:$0x3]  ;;  %v257_v35 = vld [vmem:[#allocation3 + $0xa] sm:$0x3]  ;;  %v261_v37 = vld [vmem:[#allocation3 + $0xe] sm:$0x3] }
  0xfb   :  { %s10673_s13 = sld [smem:[#allocation54_spill]]  ;;  %s9097_s5 = smov 96   ;;  %vm3361_vm3 = vcmask 254976   ;;  %vm4192_vm5 = vcmask 1041408  }
  0xfc   :  { %v230_v3 = vld [vmem:[%s10671_s26] sm:$0xff]  ;;  %v231_v4 = vld [vmem:[%s10671_s26 + $0x8] sm:$0xff]  ;;  %v6776_v9 = vld [vmem:[%s10671_s26 + $0x10] sm:$0xff]  ;;  %s10674_s12 = sld [smem:[#allocation55_spill]]  ;;  %s10675_s15 = sld [smem:[#allocation50_spill]] }
  0xfd   :  { %v9420_v5 = vpack.c.bf16 %v231_v4, %v230_v3  ;;  %v6777_v10 = vld [vmem:[%s10671_s26 + $0x18] sm:$0xff]  ;;  %v235_v13 = vld [vmem:[%s10672_s27] sm:$0xff]  ;;  %v236_v14 = vld [vmem:[%s10672_s27 + $0x8] sm:$0xff] }
  0xfe   :  { %v9446_v12 = vpack.c.bf16 %v6777_v10, %v6776_v9  ;;  %v9474_v15 = vpack.c.bf16 %v236_v14, %v235_v13  ;;  %v237_v16 = vld [vmem:[%s10672_s27 + $0x10] sm:$0xff]  ;;  %v238_v17 = vld [vmem:[%s10672_s27 + $0x18] sm:$0xff] }
  0xff   :  { %7996 = vmatpush3.bf16.msra.mxu0 %v9420_v5  ;;  %7999 = vmatpush3.bf16.msra.mxu1 %v9420_v5  ;;  %v9485_v18 = vpack.c.bf16 %v238_v17, %v237_v16 }
 0x100   :  { %8000 = vmatprep.subr.bf16.mxu0 %v10623_v1  ;;  %8003 = vmatprep.subr.bf16.mxu1 %v10623_v1 }
 0x102   :  { %7237 = vmatmul.mubr.msk.f32.vlgmr.msra.gmra.mrb[0].mxu0 %vm268_vm1, %v247_v6  ;;  %7244 = vmatmul.mubr.msk.f32.vlgmr.msra.gmra.mrb[0].mxu1 %vm268_vm1, %v249_v33 }
 0x103   :  { %8002 = vmatpush3.bf16.msra.mxu0 %v9420_v5  ;;  %7250 = vmatprep.mubr.msk.f32.mxu0 %vm9094_vm0, %v10625_v2 }
 0x104   :  { %8006 = vmatprep.subr.bf16.mxu0 %v10623_v1  ;;  %8005 = vmatpush3.bf16.msra.mxu1 %v9420_v5 }
 0x105   :  { %7257 = vmatprep.mubr.msk.f32.mxu1 %vm9094_vm0, %v10625_v2  ;;  %8009 = vmatprep.subr.bf16.mxu1 %v10623_v1 }
 0x106   :  { %7251 = vmatmul.mubr.msk.f32.vlgmr.msra.gmra.mrb[2].mxu0 %vm268_vm1, %v251_v7 }
 0x107   :  { %8008 = vmatpush3.bf16.msra.mxu0 %v9420_v5  ;;  %7264 = vmatprep.mubr.msk.f32.mxu0 %vm9094_vm0, %v10625_v2 }
 0x108   :  { %8012 = vmatprep.subr.bf16.mxu0 %v10623_v1  ;;  %7258 = vmatmul.mubr.msk.f32.vlgmr.msra.gmra.mrb[2].mxu1 %vm268_vm1, %v253_v34 }
 0x109   :  { %8011 = vmatpush3.bf16.msra.mxu1 %v9420_v5  ;;  %7271 = vmatprep.mubr.msk.f32.mxu1 %vm9094_vm0, %v10625_v2 }
 0x10a   :  { %7265 = vmatmul.mubr.msk.f32.vlgmr.msra.gmra.mrb[4].mxu0 %vm268_vm1, %v255_v8  ;;  %8015 = vmatprep.subr.bf16.mxu1 %v10623_v1 }
 0x10b   :  { %8014 = vmatpush3.bf16.msra.mxu0 %v9420_v5  ;;  %7278 = vmatprep.mubr.msk.f32.mxu0 %vm9094_vm0, %v10625_v2 }
 0x10c   :  { %8018 = vmatprep.subr.bf16.mxu0 %v10623_v1  ;;  %7272 = vmatmul.mubr.msk.f32.vlgmr.msra.gmra.mrb[4].mxu1 %vm268_vm1, %v257_v35 }
 0x10d   :  { %8017 = vmatpush3.bf16.msra.mxu1 %v9420_v5  ;;  %7285 = vmatprep.mubr.msk.f32.mxu1 %vm9094_vm0, %v10625_v2 }
 0x10e   :  { %7279 = vmatmul.mubr.msk.f32.vlgmr.msra.gmra.mrb[6].mxu0 %vm268_vm1, %v259_v11  ;;  %8021 = vmatprep.subr.bf16.mxu1 %v10623_v1 }
 0x10f   :  { %8020 = vmatpush3.bf16.msra.mxu0 %v9446_v12  ;;  %7292 = vmatprep.mubr.msk.f32.mxu0 %vm9094_vm0, %v10625_v2 }
 0x110   :  { %8024 = vmatprep.subr.bf16.mxu0 %v10623_v1  ;;  %7286 = vmatmul.mubr.msk.f32.vlgmr.msra.gmra.mrb[6].mxu1 %vm268_vm1, %v261_v37 }
 0x111   :  { %8023 = vmatpush3.bf16.msra.mxu1 %v9446_v12  ;;  %7299 = vmatprep.mubr.msk.f32.mxu1 %vm9094_vm0, %v10625_v2 }
 0x112   :  { %7293 = vmatmul.mubr.msk.f32.vlgmr.msra.gmra.mrb[8].mxu0 %vm268_vm1, %v247_v6  ;;  %8027 = vmatprep.subr.bf16.mxu1 %v10623_v1 }
 0x113   :  { %8026 = vmatpush3.bf16.msra.mxu0 %v9446_v12  ;;  %7306 = vmatprep.mubr.msk.f32.mxu0 %vm9094_vm0, %v10625_v2 }
 0x114   :  { %8030 = vmatprep.subr.bf16.mxu0 %v10623_v1  ;;  %7300 = vmatmul.mubr.msk.f32.vlgmr.msra.gmra.mrb[8].mxu1 %vm268_vm1, %v249_v33 }
 0x115   :  { %8029 = vmatpush3.bf16.msra.mxu1 %v9446_v12  ;;  %7313 = vmatprep.mubr.msk.f32.mxu1 %vm9094_vm0, %v10625_v2 }
 0x116   :  { %7307 = vmatmul.mubr.msk.f32.vlgmr.msra.gmra.mrb[10].mxu0 %vm268_vm1, %v251_v7  ;;  %8033 = vmatprep.subr.bf16.mxu1 %v10623_v1 }
 0x117   :  { %8032 = vmatpush3.bf16.msra.mxu0 %v9446_v12  ;;  %7320 = vmatprep.mubr.msk.f32.mxu0 %vm9094_vm0, %v10625_v2 }
 0x118   :  { %8036 = vmatprep.subr.bf16.mxu0 %v10623_v1  ;;  %7314 = vmatmul.mubr.msk.f32.vlgmr.msra.gmra.mrb[10].mxu1 %vm268_vm1, %v253_v34 }
 0x119   :  { %8035 = vmatpush3.bf16.msra.mxu1 %v9446_v12  ;;  %7327 = vmatprep.mubr.msk.f32.mxu1 %vm9094_vm0, %v10625_v2 }
 0x11a   :  { %7321 = vmatmul.mubr.msk.f32.vlgmr.msra.gmra.mrb[12].mxu0 %vm268_vm1, %v255_v8  ;;  %8039 = vmatprep.subr.bf16.mxu1 %v10623_v1 }
 0x11b   :  { %8038 = vmatpush3.bf16.msra.mxu0 %v9446_v12  ;;  %7334 = vmatprep.mubr.msk.f32.mxu0 %vm9094_vm0, %v10625_v2 }
 0x11c   :  { %8042 = vmatprep.subr.bf16.mxu0 %v10623_v1  ;;  %7328 = vmatmul.mubr.msk.f32.vlgmr.msra.gmra.mrb[12].mxu1 %vm268_vm1, %v257_v35 }
 0x11d   :  { %8041 = vmatpush3.bf16.msra.mxu1 %v9446_v12  ;;  %7341 = vmatprep.mubr.msk.f32.mxu1 %vm9094_vm0, %v10625_v2 }
 0x11e   :  { %7335 = vmatmul.mubr.msk.f32.vlgmr.msra.gmra.mrb[14].mxu0 %vm268_vm1, %v259_v11  ;;  %8048 = vmatprep.subr.bf16.mxu1 %v10623_v1 }
 0x11f   :  { %8044 = vmatpush3.bf16.msra.mxu0 %v9474_v15  ;;  %7352 = vmatprep.mubr.msk.f32.mxu0 %vm9094_vm0, %v10625_v2 }
 0x120   :  { %8045 = vmatprep.subr.bf16.mxu0 %v10623_v1  ;;  %7342 = vmatmul.mubr.msk.f32.vlgmr.msra.gmra.mrb[14].mxu1 %vm268_vm1, %v261_v37 }
 0x121   :  { %8050 = vmatpush3.bf16.msra.mxu1 %v9474_v15  ;;  %7363 = vmatprep.mubr.msk.f32.mxu1 %vm9094_vm0, %v10625_v2 }
 0x122   :  { %8051 = vmatprep.subr.bf16.mxu1 %v10623_v1 }
 0x123   :  { %8047 = vmatpush3.bf16.msra.mxu0 %v9485_v18 }
 0x124   :  { %8054 = vmatprep.subr.bf16.mxu0 %v10623_v1 }
 0x125   :  { %8053 = vmatpush3.bf16.msra.mxu1 %v9485_v18 }
 0x126   :  { %7353 = vmatmul.mubr.f32.vlgmr.msra.gmra.mrb[0].mxu0 %v10625_v2  ;;  %8060 = vmatprep.subr.bf16.mxu1 %v10623_v1 }
 0x127   :  { %8056 = vmatpush3.bf16.msra.mxu0 %v9474_v15  ;;  %7374 = vmatprep.mubr.msk.f32.mxu0 %vm9094_vm0, %v10625_v2 }
 0x128   :  { %8057 = vmatprep.subr.bf16.mxu0 %v10623_v1 }
 0x12b   :  { %8059 = vmatpush3.bf16.msra.mxu0 %v9485_v18 }
 0x12c   :  { %8066 = vmatprep.subr.bf16.mxu0 %v10623_v1 }
 0x1f9   :  { %v1489_v20 = vpop.f32.mrb[0].mxu0 }
 0x1fa   :  { %v8417_v21 = vadd.f32 %v9499_v19, %v1489_v20  ;;  %v7354_v22 = vpop.f32.mrb[1].mxu0 }
 0x1fc   :  { %8493 = vtanh.f32 %v8417_v21  ;;  %v6800_v24 = vmul.f32 -1.442695, %v8417_v21 }
 0x1fe   :  { %8495 = vpow2.f32 %v6800_v24 }
 0x206   :  { %v8494_v23 = vpop.eup %8493 }
 0x207   :  { %1503 = vrot.lane.b32.xlu0 %v8494_v23, %s9096_s29 }
 0x208   :  { %v8496_v25 = vpop.eup %8495 }
 0x209   :  { %v1497_v26 = vadd.f32 1.0, %v8496_v25 }
 0x20b   :  { %8497 = vrcp.f32 %v1497_v26 }
 0x215   :  { %v8498_v27 = vpop.eup %8497 }
 0x216   :  { %v1501_v30 = vmul.f32 0.0, %v8498_v27 }
 0x279   :  { %v1504_v28 = vpop.permute.xlu0 %1503 }
 0x27a   :  { %v1506_v29 = vmul.f32 %v8498_v27, %v1504_v28 }
 0x27c   :  { %1508 = vrot.lane.b32.xlu0 %v1506_v29, %s9085_s16 }
 0x2ee   :  { %v1509_v31 = vpop.permute.xlu0 %1508 }
 0x2ef   :  { %v9504_v32 = vadd.f32 %v1509_v31, %v1501_v30 }
 0x2f1   :  { %8499 = vtanh.f32 %v9504_v32 }
 0x2fb   :  { %v8500_v36 = vpop.eup %8499 }
 0x2fc   :  { %1514 = vrot.lane.b32.xlu1 %v8500_v36, %s9096_s29 }
 0x36e   :  { %v1515_v38 = vpop.permute.xlu1 %1514 }
 0x36f   :  { %v9550_v39 = vmul.f32 %v8498_v27, %v1515_v38 }
 0x371   :  { %1519 = vrot.lane.b32.xlu1 %v9550_v39, %s9085_s16 }
 0x3e3   :  { %v1520_v40 = vpop.permute.xlu1 %1519 }
 0x3e4   :  { %7364 = vmatmul.mubr.msk.f32.vlgmr.msra.gmra.mrb[0].mxu1 %vm1419_vm2, %v1520_v40 }
 0x3e5   :  { %8062 = vmatpush3.bf16.msra.mxu1 %v9474_v15  ;;  %7385 = vmatprep.mubr.msk.f32.mxu1 %vm9094_vm0, %v10625_v2 }
 0x3e6   :  { %8063 = vmatprep.subr.bf16.mxu1 %v10623_v1 }
 0x3e9   :  { %8065 = vmatpush3.bf16.msra.mxu1 %v9485_v18 }
 0x3ea   :  { %8072 = vmatprep.subr.bf16.mxu1 %v10623_v1 }
 0x4b7   :  { %v1589_v41 = vpop.f32.mrb[0].mxu1 }
 0x4b8   :  { %v8418_v42 = vadd.f32 %v9499_v19, %v1589_v41  ;;  %v7365_v43 = vpop.f32.mrb[1].mxu1 }
 0x4ba   :  { %8501 = vtanh.f32 %v8418_v42  ;;  %v6802_v45 = vmul.f32 -1.442695, %v8418_v42 }
 0x4bc   :  { %8503 = vpow2.f32 %v6802_v45 }
 0x4c4   :  { %v8502_v44 = vpop.eup %8501 }
 0x4c5   :  { %1603 = vrot.lane.b32.xlu0 %v8502_v44, %s9096_s29 }
 0x4c6   :  { %v8504_v46 = vpop.eup %8503 }
 0x4c7   :  { %v1597_v47 = vadd.f32 1.0, %v8504_v46 }
 0x4c9   :  { %8505 = vrcp.f32 %v1597_v47 }
 0x4d3   :  { %v8506_v48 = vpop.eup %8505 }
 0x4d4   :  { %v1601_v51 = vmul.f32 %v8506_v48, %v9504_v32 }
 0x537   :  { %v1604_v49 = vpop.permute.xlu0 %1603 }
 0x538   :  { %v1606_v50 = vmul.f32 %v8506_v48, %v1604_v49 }
 0x53a   :  { %1608 = vrot.lane.b32.xlu1 %v1606_v50, %s9085_s16 }
 0x5ac   :  { %v1609_v52 = vpop.permute.xlu1 %1608 }
 0x5ad   :  { %v1611_v53 = vadd.f32 %v1609_v52, %v1601_v51 }
 0x5af   :  { %8507 = vtanh.f32 %v1611_v53 }
 0x5b9   :  { %v8508_v54 = vpop.eup %8507 }
 0x5ba   :  { %1614 = vrot.lane.b32.xlu0 %v8508_v54, %s9096_s29 }
 0x62c   :  { %v1615_v55 = vpop.permute.xlu0 %1614 }
 0x62d   :  { %v9566_v56 = vmul.f32 %v8506_v48, %v1615_v55 }
 0x62f   :  { %1619 = vrot.lane.b32.xlu1 %v9566_v56, %s9085_s16 }
 0x6a1   :  { %v1620_v57 = vpop.permute.xlu1 %1619 }
 0x6a2   :  { %7375 = vmatmul.mubr.msk.f32.vlgmr.msra.gmra.mrb[2].mxu0 %vm1419_vm2, %v1620_v57 }
 0x6a3   :  { %8068 = vmatpush3.bf16.msra.mxu0 %v9474_v15  ;;  %7396 = vmatprep.mubr.msk.f32.mxu0 %vm9094_vm0, %v10625_v2 }
 0x6a4   :  { %8069 = vmatprep.subr.bf16.mxu0 %v10623_v1 }
 0x6a7   :  { %8071 = vmatpush3.bf16.msra.mxu0 %v9485_v18 }
 0x6a8   :  { %8078 = vmatprep.subr.bf16.mxu0 %v10623_v1 }
 0x775   :  { %v1689_v58 = vpop.f32.mrb[2].mxu0 }
 0x776   :  { %v8419_v59 = vadd.f32 %v9499_v19, %v1689_v58  ;;  %v7376_v60 = vpop.f32.mrb[3].mxu0 }
 0x778   :  { %8509 = vtanh.f32 %v8419_v59  ;;  %v6804_v62 = vmul.f32 -1.442695, %v8419_v59 }
 0x77a   :  { %8511 = vpow2.f32 %v6804_v62 }
 0x782   :  { %v8510_v61 = vpop.eup %8509 }
 0x783   :  { %1703 = vrot.lane.b32.xlu0 %v8510_v61, %s9096_s29 }
 0x784   :  { %v8512_v63 = vpop.eup %8511 }
 0x785   :  { %v1697_v0 = vadd.f32 1.0, %v8512_v63 }
 0x787   :  { %8513 = vrcp.f32 %v1697_v0 }
 0x791   :  { %v8514_v3 = vpop.eup %8513 }
 0x792   :  { %v1701_v6 = vmul.f32 %v8514_v3, %v1611_v53 }
 0x7f5   :  { %v1704_v4 = vpop.permute.xlu0 %1703 }
 0x7f6   :  { %v1706_v5 = vmul.f32 %v8514_v3, %v1704_v4 }
 0x7f8   :  { %1708 = vrot.lane.b32.xlu1 %v1706_v5, %s9085_s16 }
 0x86a   :  { %v1709_v7 = vpop.permute.xlu1 %1708 }
 0x86b   :  { %v1711_v8 = vadd.f32 %v1709_v7, %v1701_v6 }
 0x86d   :  { %8515 = vtanh.f32 %v1711_v8 }
 0x877   :  { %v8516_v9 = vpop.eup %8515 }
 0x878   :  { %1714 = vrot.lane.b32.xlu0 %v8516_v9, %s9096_s29 }
 0x8ea   :  { %v1715_v10 = vpop.permute.xlu0 %1714 }
 0x8eb   :  { %v9581_v11 = vmul.f32 %v8514_v3, %v1715_v10 }
 0x8ed   :  { %1719 = vrot.lane.b32.xlu1 %v9581_v11, %s9085_s16 }
 0x95f   :  { %v1720_v12 = vpop.permute.xlu1 %1719 }
 0x960   :  { %7386 = vmatmul.mubr.msk.f32.vlgmr.msra.gmra.mrb[2].mxu1 %vm1419_vm2, %v1720_v12 }
 0x961   :  { %8074 = vmatpush3.bf16.msra.mxu1 %v9474_v15  ;;  %7407 = vmatprep.mubr.msk.f32.mxu1 %vm9094_vm0, %v10625_v2 }
 0x962   :  { %8075 = vmatprep.subr.bf16.mxu1 %v10623_v1 }
 0x965   :  { %8077 = vmatpush3.bf16.msra.mxu1 %v9485_v18 }
 0x966   :  { %8084 = vmatprep.subr.bf16.mxu1 %v10623_v1 }
 0xa33   :  { %v1789_v13 = vpop.f32.mrb[2].mxu1 }
 0xa34   :  { %v8420_v14 = vadd.f32 %v9499_v19, %v1789_v13  ;;  %v7387_v16 = vpop.f32.mrb[3].mxu1 }
 0xa36   :  { %8517 = vtanh.f32 %v8420_v14  ;;  %v6806_v20 = vmul.f32 -1.442695, %v8420_v14 }
 0xa38   :  { %8519 = vpow2.f32 %v6806_v20 }
 0xa40   :  { %v8518_v17 = vpop.eup %8517 }
 0xa41   :  { %1803 = vrot.lane.b32.xlu0 %v8518_v17, %s9096_s29 }
 0xa42   :  { %v8520_v21 = vpop.eup %8519 }
 0xa43   :  { %v1797_v22 = vadd.f32 1.0, %v8520_v21 }
 0xa45   :  { %8521 = vrcp.f32 %v1797_v22 }
 0xa4f   :  { %v8522_v23 = vpop.eup %8521 }
 0xa50   :  { %v1801_v26 = vmul.f32 %v8522_v23, %v1711_v8 }
 0xab3   :  { %v1804_v24 = vpop.permute.xlu0 %1803 }
 0xab4   :  { %v1806_v25 = vmul.f32 %v8522_v23, %v1804_v24  ;;  %v6779_v24 = vld [vmem:[%s10672_s27 + $0x28] sm:$0xff] }
 0xab6   :  { %1808 = vrot.lane.b32.xlu1 %v1806_v25, %s9085_s16 }
 0xb28   :  { %v1809_v27 = vpop.permute.xlu1 %1808 }
 0xb29   :  { %v1811_v28 = vadd.f32 %v1809_v27, %v1801_v26  ;;  %v6780_v26 = vld [vmem:[%s10672_s27 + $0x30] sm:$0xff]  ;;  %v6781_v27 = vld [vmem:[%s10672_s27 + $0x38] sm:$0xff] }
 0xb2b   :  { %8523 = vtanh.f32 %v1811_v28 }
 0xb35   :  { %v8524_v29 = vpop.eup %8523 }
 0xb36   :  { %1814 = vrot.lane.b32.xlu0 %v8524_v29, %s9096_s29 }
 0xba8   :  { %v1815_v30 = vpop.permute.xlu0 %1814 }
 0xba9   :  { %v9596_v31 = vmul.f32 %v8522_v23, %v1815_v30  ;;  %v6778_v23 = vld [vmem:[%s10672_s27 + $0x20] sm:$0xff] }
 0xbaa   :  { %v9646_v25 = vpack.c.bf16 %v6779_v24, %v6778_v23 }
 0xbab   :  { %1819 = vrot.lane.b32.xlu1 %v9596_v31, %s9085_s16 }
 0xc1d   :  { %v1820_v32 = vpop.permute.xlu1 %1819 }
 0xc1e   :  { %7397 = vmatmul.mubr.msk.f32.vlgmr.msra.gmra.mrb[4].mxu0 %vm1419_vm2, %v1820_v32 }
 0xc1f   :  { %8080 = vmatpush3.bf16.msra.mxu0 %v9474_v15  ;;  %7418 = vmatprep.mubr.msk.f32.mxu0 %vm9094_vm0, %v10625_v2 }
 0xc20   :  { %8081 = vmatprep.subr.bf16.mxu0 %v10623_v1 }
 0xc23   :  { %8083 = vmatpush3.bf16.msra.mxu0 %v9485_v18 }
 0xc24   :  { %8096 = vmatprep.subr.bf16.mxu0 %v10623_v1 }
 0xcf1   :  { %v1889_v33 = vpop.f32.mrb[4].mxu0 }
 0xcf2   :  { %v8421_v34 = vadd.f32 %v9499_v19, %v1889_v33  ;;  %v7398_v35 = vpop.f32.mrb[5].mxu0 }
 0xcf3   :  { %v9680_v35 = vld [vmem:[#allocation6 + $0x1] ss:$0 sm:$0xff] }
 0xcf4   :  { %8525 = vtanh.f32 %v8421_v34  ;;  %v6808_v37 = vmul.f32 -1.442695, %v8421_v34 }
 0xcf6   :  { %8527 = vpow2.f32 %v6808_v37 }
 0xcfe   :  { %v8526_v36 = vpop.eup %8525 }
 0xcff   :  { %1903 = vrot.lane.b32.xlu0 %v8526_v36, %s9096_s29 }
 0xd00   :  { %v8528_v38 = vpop.eup %8527 }
 0xd01   :  { %v1897_v40 = vadd.f32 1.0, %v8528_v38 }
 0xd03   :  { %8529 = vrcp.f32 %v1897_v40 }
 0xd0d   :  { %v8530_v41 = vpop.eup %8529 }
 0xd0e   :  { %v1901_v44 = vmul.f32 %v8530_v41, %v1811_v28  ;;  %v9656_v28 = vpack.c.bf16 %v6781_v27, %v6780_v26 }
 0xd71   :  { %v1904_v42 = vpop.permute.xlu0 %1903 }
 0xd72   :  { %v1906_v43 = vmul.f32 %v8530_v41, %v1904_v42 }
 0xd74   :  { %1908 = vrot.lane.b32.xlu1 %v1906_v43, %s9085_s16 }
 0xde6   :  { %v1909_v45 = vpop.permute.xlu1 %1908 }
 0xde7   :  { %v1911_v46 = vadd.f32 %v1909_v45, %v1901_v44 }
 0xde9   :  { %8531 = vtanh.f32 %v1911_v46 }
 0xdf3   :  { %v8532_v47 = vpop.eup %8531 }
 0xdf4   :  { %1914 = vrot.lane.b32.xlu0 %v8532_v47, %s9096_s29 }
 0xe66   :  { %v1915_v48 = vpop.permute.xlu0 %1914 }
 0xe67   :  { %v9611_v49 = vmul.f32 %v8530_v41, %v1915_v48 }
 0xe69   :  { %1919 = vrot.lane.b32.xlu1 %v9611_v49, %s9085_s16 }
 0xedb   :  { %v1920_v50 = vpop.permute.xlu1 %1919 }
 0xedc   :  { %7408 = vmatmul.mubr.msk.f32.vlgmr.msra.gmra.mrb[4].mxu1 %vm1419_vm2, %v1920_v50 }
 0xedd   :  { %8086 = vmatpush3.bf16.msra.mxu1 %v9474_v15  ;;  %7429 = vmatprep.mubr.msk.f32.mxu1 %vm9094_vm0, %v10625_v2 }
 0xede   :  { %8087 = vmatprep.subr.bf16.mxu1 %v10623_v1 }
 0xee1   :  { %8089 = vmatpush3.bf16.msra.mxu1 %v9485_v18 }
 0xee2   :  { %8090 = vmatprep.subr.bf16.mxu1 %v10623_v1 }
 0xfaf   :  { %v1989_v51 = vpop.f32.mrb[4].mxu1 }
 0xfb0   :  { %v8422_v52 = vadd.f32 %v9499_v19, %v1989_v51  ;;  %v7409_v53 = vpop.f32.mrb[5].mxu1 }
 0xfb2   :  { %8533 = vtanh.f32 %v8422_v52  ;;  %v6810_v55 = vmul.f32 -1.442695, %v8422_v52 }
 0xfb4   :  { %8535 = vpow2.f32 %v6810_v55 }
 0xfbc   :  { %v8534_v54 = vpop.eup %8533 }
 0xfbd   :  { %2003 = vrot.lane.b32.xlu0 %v8534_v54, %s9096_s29 }
 0xfbe   :  { %v8536_v15 = vpop.eup %8535 }
 0xfbf   :  { %v1997_v57 = vadd.f32 1.0, %v8536_v15 }
 0xfc1   :  { %8537 = vrcp.f32 %v1997_v57 }
 0xfcb   :  { %v8538_v58 = vpop.eup %8537 }
 0xfcc   :  { %v2001_v18 = vmul.f32 %v8538_v58, %v1911_v46 }
0x102f   :  { %v2004_v59 = vpop.permute.xlu0 %2003 }
0x1030   :  { %v2006_v60 = vmul.f32 %v8538_v58, %v2004_v59 }
0x1032   :  { %2008 = vrot.lane.b32.xlu1 %v2006_v60, %s9085_s16 }
0x10a4   :  { %v2009_v61 = vpop.permute.xlu1 %2008 }
0x10a5   :  { %v2011_v62 = vadd.f32 %v2009_v61, %v2001_v18 }
0x10a7   :  { %8539 = vtanh.f32 %v2011_v62 }
0x10b1   :  { %v8540_v63 = vpop.eup %8539 }
0x10b2   :  { %2014 = vrot.lane.b32.xlu0 %v8540_v63, %s9096_s29 }
0x1124   :  { %v2015_v0 = vpop.permute.xlu0 %2014 }
0x1125   :  { %v9626_v3 = vmul.f32 %v8538_v58, %v2015_v0 }
0x1127   :  { %2019 = vrot.lane.b32.xlu1 %v9626_v3, %s9085_s16 }
0x1199   :  { %v2020_v4 = vpop.permute.xlu1 %2019 }
0x119a   :  { %7419 = vmatmul.mubr.msk.f32.vlgmr.msra.gmra.mrb[6].mxu0 %vm1419_vm2, %v2020_v4 }
0x119b   :  { %7451 = vmatprep.mubr.msk.f32.mxu0 %vm9094_vm0, %v10625_v2  ;;  %8098 = vmatpush3.bf16.msra.mxu0 %v9646_v25 }
0x119c   :  { %8099 = vmatprep.subr.bf16.mxu0 %v10623_v1 }
0x119f   :  { %8101 = vmatpush3.bf16.msra.mxu0 %v9656_v28 }
0x11a0   :  { %8108 = vmatprep.subr.bf16.mxu0 %v10623_v1 }
0x126d   :  { %v2089_v5 = vpop.f32.mrb[6].mxu0 }
0x126e   :  { %v8423_v6 = vadd.f32 %v9499_v19, %v2089_v5  ;;  %v7420_v7 = vpop.f32.mrb[7].mxu0 }
0x1270   :  { %8541 = vtanh.f32 %v8423_v6  ;;  %v6812_v9 = vmul.f32 -1.442695, %v8423_v6 }
0x1272   :  { %8543 = vpow2.f32 %v6812_v9 }
0x127a   :  { %v8542_v8 = vpop.eup %8541 }
0x127b   :  { %2103 = vrot.lane.b32.xlu0 %v8542_v8, %s9096_s29 }
0x127c   :  { %v8544_v10 = vpop.eup %8543 }
0x127d   :  { %v2097_v12 = vadd.f32 1.0, %v8544_v10 }
0x127f   :  { %8545 = vrcp.f32 %v2097_v12 }
0x1289   :  { %v8546_v13 = vpop.eup %8545 }
0x128a   :  { %v2101_v17 = vmul.f32 %v8546_v13, %v2011_v62 }
0x12ed   :  { %v2104_v14 = vpop.permute.xlu0 %2103 }
0x12ee   :  { %v2106_v16 = vmul.f32 %v8546_v13, %v2104_v14 }
0x12f0   :  { %2108 = vrot.lane.b32.xlu1 %v2106_v16, %s9085_s16 }
0x1362   :  { %v2109_v20 = vpop.permute.xlu1 %2108 }
0x1363   :  { %v9636_v21 = vadd.f32 %v2109_v20, %v2101_v17 }
0x1365   :  { %8547 = vtanh.f32 %v9636_v21 }
0x136f   :  { %v8548_v22 = vpop.eup %8547 }
0x1370   :  { %2114 = vrot.lane.b32.xlu0 %v8548_v22, %s9096_s29 }
0x13e2   :  { %v2115_v29 = vpop.permute.xlu0 %2114 }
0x13e3   :  { %v9660_v30 = vmul.f32 %v8546_v13, %v2115_v29 }
0x13e5   :  { %2119 = vrot.lane.b32.xlu1 %v9660_v30, %s9085_s16 }
0x1457   :  { %v2120_v32 = vpop.permute.xlu1 %2119 }
0x1458   :  { %7430 = vmatmul.mubr.msk.f32.vlgmr.msra.gmra.mrb[6].mxu1 %vm1419_vm2, %v2120_v32 }
0x1459   :  { %8092 = vmatpush3.bf16.msra.mxu1 %v9646_v25  ;;  %7440 = vmatprep.mubr.msk.f32.mxu1 %vm9094_vm0, %v10625_v2 }
0x145a   :  { %8093 = vmatprep.subr.bf16.mxu1 %v10623_v1 }
0x145d   :  { %8095 = vmatpush3.bf16.msra.mxu1 %v9656_v28 }
0x145e   :  { %8102 = vmatprep.subr.bf16.mxu1 %v10623_v1 }
0x1460   :  { %7441 = vmatmul.mubr.f32.vlgmr.msra.gmra.mrb[14].mxu1 %v10625_v2 }
0x1461   :  { %8104 = vmatpush3.bf16.msra.mxu1 %v9646_v25  ;;  %7462 = vmatprep.mubr.msk.f32.mxu1 %vm9094_vm0, %v10625_v2 }
0x1462   :  { %8105 = vmatprep.subr.bf16.mxu1 %v10623_v1 }
0x1465   :  { %8107 = vmatpush3.bf16.msra.mxu1 %v9656_v28 }
0x1466   :  { %8114 = vmatprep.subr.bf16.mxu1 %v10623_v1 }
0x152b   :  { %v9678_v33 = vpop.f32.mrb[6].mxu1 }
0x152c   :  { %v7431_v34 = vpop.f32.mrb[7].mxu1 }
0x1533   :  { %v2284_v36 = vpop.f32.mrb[14].mxu1 }
0x1534   :  { %v8432_v37 = vadd.f32 %v9680_v35, %v2284_v36  ;;  %v7442_v38 = vpop.f32.mrb[15].mxu1 }
0x1536   :  { %8549 = vtanh.f32 %v8432_v37  ;;  %v6815_v41 = vmul.f32 -1.442695, %v8432_v37 }
0x1538   :  { %8551 = vpow2.f32 %v6815_v41 }
0x1540   :  { %v8550_v40 = vpop.eup %8549 }
0x1541   :  { %2298 = vrot.lane.b32.xlu0 %v8550_v40, %s9096_s29 }
0x1542   :  { %v8552_v42 = vpop.eup %8551 }
0x1543   :  { %v2292_v43 = vadd.f32 1.0, %v8552_v42 }
0x1545   :  { %8553 = vrcp.f32 %v2292_v43 }
0x154f   :  { %v8554_v44 = vpop.eup %8553 }
0x1550   :  { %v2296_v47 = vmul.f32 0.0, %v8554_v44 }
0x15b3   :  { %v2299_v45 = vpop.permute.xlu0 %2298 }
0x15b4   :  { %v2301_v46 = vmul.f32 %v8554_v44, %v2299_v45 }
0x15b6   :  { %2303 = vrot.lane.b32.xlu1 %v2301_v46, %s9085_s16 }
0x1628   :  { %v2304_v48 = vpop.permute.xlu1 %2303 }
0x1629   :  { %v2306_v50 = vadd.f32 %v2304_v48, %v2296_v47 }
0x162b   :  { %8555 = vtanh.f32 %v2306_v50 }
0x1635   :  { %v8556_v51 = vpop.eup %8555 }
0x1636   :  { %2309 = vrot.lane.b32.xlu0 %v8556_v51, %s9096_s29 }
0x16a8   :  { %v2310_v52 = vpop.permute.xlu0 %2309 }
0x16a9   :  { %v9686_v53 = vmul.f32 %v8554_v44, %v2310_v52 }
0x16ab   :  { %2314 = vrot.lane.b32.xlu1 %v9686_v53, %s9085_s16 }
0x171d   :  { %v2315_v54 = vpop.permute.xlu1 %2314 }
0x171e   :  { %7452 = vmatmul.mubr.msk.f32.vlgmr.msra.gmra.mrb[14].mxu0 %vm1419_vm2, %v2315_v54 }
0x171f   :  { %8110 = vmatpush3.bf16.msra.mxu0 %v9646_v25  ;;  %7473 = vmatprep.mubr.msk.f32.mxu0 %vm9094_vm0, %v10625_v2 }
0x1720   :  { %8111 = vmatprep.subr.bf16.mxu0 %v10623_v1 }
0x1723   :  { %8113 = vmatpush3.bf16.msra.mxu0 %v9656_v28 }
0x1724   :  { %8120 = vmatprep.subr.bf16.mxu0 %v10623_v1 }
0x17f1   :  { %v2384_v55 = vpop.f32.mrb[14].mxu0 }
0x17f2   :  { %v8431_v15 = vadd.f32 %v9680_v35, %v2384_v55  ;;  %v7453_v57 = vpop.f32.mrb[15].mxu0 }
0x17f4   :  { %8557 = vtanh.f32 %v8431_v15  ;;  %v6817_v59 = vmul.f32 -1.442695, %v8431_v15 }
0x17f6   :  { %8559 = vpow2.f32 %v6817_v59 }
0x17fe   :  { %v8558_v58 = vpop.eup %8557 }
0x17ff   :  { %2398 = vrot.lane.b32.xlu0 %v8558_v58, %s9096_s29 }
0x1800   :  { %v8560_v60 = vpop.eup %8559 }
0x1801   :  { %v2392_v18 = vadd.f32 1.0, %v8560_v60 }
0x1803   :  { %8561 = vrcp.f32 %v2392_v18 }
0x180d   :  { %v8562_v61 = vpop.eup %8561 }
0x180e   :  { %v2396_v0 = vmul.f32 %v8562_v61, %v2306_v50 }
0x1871   :  { %v2399_v62 = vpop.permute.xlu0 %2398 }
0x1872   :  { %v2401_v63 = vmul.f32 %v8562_v61, %v2399_v62 }
0x1874   :  { %2403 = vrot.lane.b32.xlu1 %v2401_v63, %s9085_s16 }
0x18e6   :  { %v2404_v4 = vpop.permute.xlu1 %2403 }
0x18e7   :  { %v2406_v5 = vadd.f32 %v2404_v4, %v2396_v0 }
0x18e9   :  { %8563 = vtanh.f32 %v2406_v5 }
0x18f3   :  { %v8564_v6 = vpop.eup %8563 }
0x18f4   :  { %2409 = vrot.lane.b32.xlu0 %v8564_v6, %s9096_s29 }
0x1966   :  { %v2410_v7 = vpop.permute.xlu0 %2409 }
0x1967   :  { %v9701_v8 = vmul.f32 %v8562_v61, %v2410_v7 }
0x1969   :  { %2414 = vrot.lane.b32.xlu1 %v9701_v8, %s9085_s16 }
0x19db   :  { %v2415_v9 = vpop.permute.xlu1 %2414 }
0x19dc   :  { %7463 = vmatmul.mubr.msk.f32.vlgmr.msra.gmra.mrb[12].mxu1 %vm1419_vm2, %v2415_v9 }
0x19dd   :  { %8116 = vmatpush3.bf16.msra.mxu1 %v9646_v25  ;;  %7484 = vmatprep.mubr.msk.f32.mxu1 %vm9094_vm0, %v10625_v2 }
0x19de   :  { %8117 = vmatprep.subr.bf16.mxu1 %v10623_v1 }
0x19e1   :  { %8119 = vmatpush3.bf16.msra.mxu1 %v9656_v28 }
0x19e2   :  { %8126 = vmatprep.subr.bf16.mxu1 %v10623_v1 }
0x1aaf   :  { %v2484_v10 = vpop.f32.mrb[12].mxu1 }
0x1ab0   :  { %v8430_v12 = vadd.f32 %v9680_v35, %v2484_v10  ;;  %v7464_v13 = vpop.f32.mrb[13].mxu1 }
0x1ab2   :  { %8565 = vtanh.f32 %v8430_v12  ;;  %v6819_v16 = vmul.f32 -1.442695, %v8430_v12 }
0x1ab4   :  { %8567 = vpow2.f32 %v6819_v16 }
0x1abc   :  { %v8566_v14 = vpop.eup %8565 }
0x1abd   :  { %2498 = vrot.lane.b32.xlu0 %v8566_v14, %s9096_s29 }
0x1abe   :  { %v8568_v17 = vpop.eup %8567 }
0x1abf   :  { %v2492_v20 = vadd.f32 1.0, %v8568_v17 }
0x1ac1   :  { %8569 = vrcp.f32 %v2492_v20 }
0x1acb   :  { %v8570_v22 = vpop.eup %8569 }
0x1acc   :  { %v2496_v26 = vmul.f32 %v8570_v22, %v2406_v5 }
0x1b2f   :  { %v2499_v23 = vpop.permute.xlu0 %2498 }
0x1b30   :  { %v2501_v24 = vmul.f32 %v8570_v22, %v2499_v23 }
0x1b32   :  { %2503 = vrot.lane.b32.xlu1 %v2501_v24, %s9085_s16 }
0x1ba4   :  { %v2504_v27 = vpop.permute.xlu1 %2503 }
0x1ba5   :  { %v2506_v29 = vadd.f32 %v2504_v27, %v2496_v26 }
0x1ba7   :  { %8571 = vtanh.f32 %v2506_v29 }
0x1bb1   :  { %v8572_v32 = vpop.eup %8571 }
0x1bb2   :  { %2509 = vrot.lane.b32.xlu0 %v8572_v32, %s9096_s29 }
0x1c24   :  { %v2510_v34 = vpop.permute.xlu0 %2509 }
0x1c25   :  { %v9716_v36 = vmul.f32 %v8570_v22, %v2510_v34 }
0x1c27   :  { %2514 = vrot.lane.b32.xlu1 %v9716_v36, %s9085_s16 }
0x1c99   :  { %v2515_v37 = vpop.permute.xlu1 %2514 }
0x1c9a   :  { %7474 = vmatmul.mubr.msk.f32.vlgmr.msra.gmra.mrb[12].mxu0 %vm1419_vm2, %v2515_v37 }
0x1c9b   :  { %8122 = vmatpush3.bf16.msra.mxu0 %v9646_v25  ;;  %7495 = vmatprep.mubr.msk.f32.mxu0 %vm9094_vm0, %v10625_v2 }
0x1c9c   :  { %8123 = vmatprep.subr.bf16.mxu0 %v10623_v1 }
0x1c9f   :  { %8125 = vmatpush3.bf16.msra.mxu0 %v9656_v28 }
0x1ca0   :  { %8132 = vmatprep.subr.bf16.mxu0 %v10623_v1 }
0x1d6d   :  { %v2584_v38 = vpop.f32.mrb[12].mxu0 }
0x1d6e   :  { %v8429_v40 = vadd.f32 %v9680_v35, %v2584_v38  ;;  %v7475_v41 = vpop.f32.mrb[13].mxu0 }
0x1d70   :  { %8573 = vtanh.f32 %v8429_v40  ;;  %v6821_v43 = vmul.f32 -1.442695, %v8429_v40 }
0x1d72   :  { %8575 = vpow2.f32 %v6821_v43 }
0x1d7a   :  { %v8574_v42 = vpop.eup %8573 }
0x1d7b   :  { %2598 = vrot.lane.b32.xlu0 %v8574_v42, %s9096_s29 }
0x1d7c   :  { %v8576_v44 = vpop.eup %8575 }
0x1d7d   :  { %v2592_v45 = vadd.f32 1.0, %v8576_v44 }
0x1d7f   :  { %8577 = vrcp.f32 %v2592_v45 }
0x1d89   :  { %v8578_v46 = vpop.eup %8577 }
0x1d8a   :  { %v2596_v50 = vmul.f32 %v8578_v46, %v2506_v29 }
0x1ded   :  { %v2599_v47 = vpop.permute.xlu0 %2598 }
0x1dee   :  { %v2601_v48 = vmul.f32 %v8578_v46, %v2599_v47 }
0x1df0   :  { %2603 = vrot.lane.b32.xlu1 %v2601_v48, %s9085_s16 }
0x1e62   :  { %v2604_v51 = vpop.permute.xlu1 %2603 }
0x1e63   :  { %v2606_v52 = vadd.f32 %v2604_v51, %v2596_v50 }
0x1e65   :  { %8579 = vtanh.f32 %v2606_v52 }
0x1e6f   :  { %v8580_v54 = vpop.eup %8579 }
0x1e70   :  { %2609 = vrot.lane.b32.xlu0 %v8580_v54, %s9096_s29 }
0x1ee2   :  { %v2610_v55 = vpop.permute.xlu0 %2609 }
0x1ee3   :  { %v9731_v15 = vmul.f32 %v8578_v46, %v2610_v55 }
0x1ee5   :  { %2614 = vrot.lane.b32.xlu1 %v9731_v15, %s9085_s16 }
0x1f57   :  { %v2615_v57 = vpop.permute.xlu1 %2614 }
0x1f58   :  { %7485 = vmatmul.mubr.msk.f32.vlgmr.msra.gmra.mrb[10].mxu1 %vm1419_vm2, %v2615_v57 }
0x1f59   :  { %8128 = vmatpush3.bf16.msra.mxu1 %v9646_v25  ;;  %7506 = vmatprep.mubr.msk.f32.mxu1 %vm9094_vm0, %v10625_v2 }
0x1f5a   :  { %8129 = vmatprep.subr.bf16.mxu1 %v10623_v1 }
0x1f5d   :  { %8131 = vmatpush3.bf16.msra.mxu1 %v9656_v28 }
0x1f5e   :  { %8144 = vmatprep.subr.bf16.mxu1 %v10623_v1 }
0x202b   :  { %v2684_v58 = vpop.f32.mrb[10].mxu1 }
0x202c   :  { %v8428_v59 = vadd.f32 %v9680_v35, %v2684_v58  ;;  %v7486_v60 = vpop.f32.mrb[11].mxu1  ;;  %v8424_v58 = vadd.f32 %v9499_v19, %v9678_v33 }
0x202e   :  { %8581 = vtanh.f32 %v8428_v59  ;;  %v6823_v61 = vmul.f32 -1.442695, %v8428_v59 }
0x2030   :  { %8583 = vpow2.f32 %v6823_v61 }
0x2038   :  { %v8582_v18 = vpop.eup %8581 }
0x2039   :  { %2698 = vrot.lane.b32.xlu0 %v8582_v18, %s9096_s29  ;;  %v6814_v18 = vmul.f32 -1.442695, %v8424_v58 }
0x203a   :  { %v8584_v62 = vpop.eup %8583 }
0x203b   :  { %v2692_v63 = vadd.f32 1.0, %v8584_v62 }
0x203d   :  { %8585 = vrcp.f32 %v2692_v63 }
0x2047   :  { %v8586_v0 = vpop.eup %8585 }
0x2048   :  { %v2696_v6 = vmul.f32 %v8586_v0, %v2606_v52 }
0x20ab   :  { %v2699_v4 = vpop.permute.xlu0 %2698 }
0x20ac   :  { %v2701_v5 = vmul.f32 %v8586_v0, %v2699_v4 }
0x20ae   :  { %2703 = vrot.lane.b32.xlu1 %v2701_v5, %s9085_s16 }
0x2120   :  { %v2704_v7 = vpop.permute.xlu1 %2703 }
0x2121   :  { %v2706_v9 = vadd.f32 %v2704_v7, %v2696_v6 }
0x2123   :  { %8587 = vtanh.f32 %v2706_v9 }
0x212d   :  { %v8588_v10 = vpop.eup %8587 }
0x212e   :  { %2709 = vrot.lane.b32.xlu0 %v8588_v10, %s9096_s29 }
0x21a0   :  { %v2710_v12 = vpop.permute.xlu0 %2709 }
0x21a1   :  { %v9746_v13 = vmul.f32 %v8586_v0, %v2710_v12 }
0x21a3   :  { %2714 = vrot.lane.b32.xlu1 %v9746_v13, %s9085_s16 }
0x2215   :  { %v2715_v14 = vpop.permute.xlu1 %2714 }
0x2216   :  { %7496 = vmatmul.mubr.msk.f32.vlgmr.msra.gmra.mrb[10].mxu0 %vm1419_vm2, %v2715_v14 }
0x2217   :  { %8134 = vmatpush3.bf16.msra.mxu0 %v9646_v25  ;;  %7517 = vmatprep.mubr.msk.f32.mxu0 %vm9094_vm0, %v10625_v2 }
0x2218   :  { %8135 = vmatprep.subr.bf16.mxu0 %v10623_v1 }
0x221b   :  { %8137 = vmatpush3.bf16.msra.mxu0 %v9656_v28 }
0x221c   :  { %8138 = vmatprep.subr.bf16.mxu0 %v10623_v1 }
0x22e9   :  { %v2784_v16 = vpop.f32.mrb[10].mxu0 }
0x22ea   :  { %v8427_v17 = vadd.f32 %v9680_v35, %v2784_v16  ;;  %v7497_v20 = vpop.f32.mrb[11].mxu0 }
0x22ec   :  { %8589 = vtanh.f32 %v8427_v17  ;;  %v6825_v23 = vmul.f32 -1.442695, %v8427_v17 }
0x22ee   :  { %8591 = vpow2.f32 %v6825_v23 }
0x22f6   :  { %v8590_v22 = vpop.eup %8589 }
0x22f7   :  { %2798 = vrot.lane.b32.xlu0 %v8590_v22, %s9096_s29 }
0x22f8   :  { %v8592_v25 = vpop.eup %8591 }
0x22f9   :  { %v2792_v24 = vadd.f32 1.0, %v8592_v25 }
0x22fb   :  { %8593 = vrcp.f32 %v2792_v24 }
0x2305   :  { %v8594_v26 = vpop.eup %8593 }
0x2306   :  { %v2796_v28 = vmul.f32 %v8594_v26, %v2706_v9 }
0x2369   :  { %v2799_v27 = vpop.permute.xlu0 %2798 }
0x236a   :  { %v2801_v29 = vmul.f32 %v8594_v26, %v2799_v27 }
0x236c   :  { %2803 = vrot.lane.b32.xlu1 %v2801_v29, %s9085_s16 }
0x23de   :  { %v2804_v32 = vpop.permute.xlu1 %2803 }
0x23df   :  { %v2806_v34 = vadd.f32 %v2804_v32, %v2796_v28  ;;  %v3015_v28 = vld [vmem:[%s10673_s13 + $0x10] sm:$0xff]  ;;  %v3016_v32 = vld [vmem:[%s10673_s13 + $0x18] sm:$0xff] }
0x23e1   :  { %8595 = vtanh.f32 %v2806_v34 }
0x23eb   :  { %v8596_v37 = vpop.eup %8595 }
0x23ec   :  { %2809 = vrot.lane.b32.xlu0 %v8596_v37, %s9096_s29  ;;  %v8148_v37 = vpack.c.bf16 %v3016_v32, %v3015_v28 }
0x245e   :  { %v2810_v38 = vpop.permute.xlu0 %2809 }
0x245f   :  { %v9761_v40 = vmul.f32 %v8594_v26, %v2810_v38  ;;  %v3013_v26 = vld [vmem:[%s10673_s13] sm:$0xff] }
0x2461   :  { %2814 = vrot.lane.b32.xlu1 %v9761_v40, %s9085_s16 }
0x24d3   :  { %v2815_v41 = vpop.permute.xlu1 %2814 }
0x24d4   :  { %7507 = vmatmul.mubr.msk.f32.vlgmr.msra.gmra.mrb[8].mxu1 %vm1419_vm2, %v2815_v41 }
0x24d5   :  { %7539 = vmatprep.mubr.msk.f32.mxu1 %vm9094_vm0, %v10625_v2 }
0x25a7   :  { %v2884_v42 = vpop.f32.mrb[8].mxu1 }
0x25a8   :  { %v8426_v43 = vadd.f32 %v9680_v35, %v2884_v42  ;;  %v7508_v44 = vpop.f32.mrb[9].mxu1 }
0x25a9   :  { %v6837_v44 = vld [vmem:[#allocation15] ss:$0 sm:$0xff] }
0x25aa   :  { %8597 = vtanh.f32 %v8426_v43  ;;  %v6827_v46 = vmul.f32 -1.442695, %v8426_v43 }
0x25ac   :  { %8599 = vpow2.f32 %v6827_v46  ;;  %v3018_v46 = vld [vmem:[%s10674_s12 + $0x8] sm:$0xff] }
0x25b4   :  { %v8598_v45 = vpop.eup %8597 }
0x25b5   :  { %2898 = vrot.lane.b32.xlu0 %v8598_v45, %s9096_s29  ;;  %v3017_v45 = vld [vmem:[%s10674_s12] sm:$0xff] }
0x25b6   :  { %v8600_v47 = vpop.eup %8599 }
0x25b7   :  { %v2892_v48 = vadd.f32 1.0, %v8600_v47  ;;  %v3019_v47 = vld [vmem:[%s10674_s12 + $0x10] sm:$0xff] }
0x25b9   :  { %8601 = vrcp.f32 %v2892_v48  ;;  %v8139_v48 = vpack.c.bf16 %v3018_v46, %v3017_v45 }
0x25c3   :  { %v8602_v50 = vpop.eup %8601 }
0x25c4   :  { %v2896_v54 = vmul.f32 %v8602_v50, %v2806_v34 }
0x2627   :  { %v2899_v51 = vpop.permute.xlu0 %2898 }
0x2628   :  { %v2901_v52 = vmul.f32 %v8602_v50, %v2899_v51 }
0x262a   :  { %2903 = vrot.lane.b32.xlu1 %v2901_v52, %s9085_s16 }
0x269c   :  { %v2904_v55 = vpop.permute.xlu1 %2903 }
0x269d   :  { %v2906_v57 = vadd.f32 %v2904_v55, %v2896_v54 }
0x269f   :  { %8603 = vtanh.f32 %v2906_v57 }
0x26a0   :  { %8605 = vtanh.f32 %v8424_v58 }
0x26a1   :  { %8607 = vpow2.f32 %v6814_v18 }
0x26a9   :  { %v8604_v59 = vpop.eup %8603 }
0x26aa   :  { %2909 = vrot.lane.b32.xlu0 %v8604_v59, %s9096_s29  ;;  %v8606_v60 = vpop.eup %8605 }
0x26ab   :  { %v8608_v61 = vpop.eup %8607 }
0x26ac   :  { %v2197_v62 = vadd.f32 1.0, %v8608_v61 }
0x26ae   :  { %2203 = vrot.lane.b32.xlu0 %v8606_v60, %s9096_s29  ;;  %8609 = vrcp.f32 %v2197_v62 }
0x26b8   :  { %v8610_v19 = vpop.eup %8609 }
0x26b9   :  { %v2201_v6 = vmul.f32 %v8610_v19, %v9636_v21 }
0x271c   :  { %v2910_v63 = vpop.permute.xlu0 %2909 }
0x271d   :  { %v9775_v0 = vmul.f32 %v8602_v50, %v2910_v63  ;;  %v3020_v50 = vld [vmem:[%s10674_s12 + $0x18] sm:$0xff] }
0x271e   :  { %v8142_v51 = vpack.c.bf16 %v3020_v50, %v3019_v47 }
0x271f   :  { %2914 = vrot.lane.b32.xlu1 %v9775_v0, %s9085_s16 }
0x2720   :  { %v2204_v33 = vpop.permute.xlu0 %2203 }
0x2721   :  { %v2206_v4 = vmul.f32 %v8610_v19, %v2204_v33 }
0x2723   :  { %2208 = vrot.lane.b32.xlu0 %v2206_v4, %s9085_s16 }
0x2791   :  { %v2915_v5 = vpop.permute.xlu1 %2914 }
0x2792   :  { %7518 = vmatmul.mubr.msk.f32.vlgmr.msra.gmra.mrb[8].mxu0 %vm1419_vm2, %v2915_v5 }
0x2793   :  { %7528 = vmatprep.mubr.msk.f32.mxu0 %vm9094_vm0, %v10625_v2  ;;  %8140 = vmatpush3.bf16.msra.mxu0 %v8139_v48 }
0x2794   :  { %8141 = vmatprep.subr.bf16.mxu0 %v10623_v1 }
0x2795   :  { %v2209_v7 = vpop.permute.xlu0 %2208 }
0x2796   :  { %v9784_v9 = vadd.f32 %v2209_v7, %v2201_v6 }
0x2797   :  { %8143 = vmatpush3.bf16.msra.mxu0 %v8142_v51 }
0x2798   :  { %8611 = vtanh.f32 %v9784_v9  ;;  %8150 = vmatprep.subr.bf16.mxu0 %v10623_v1 }
0x27a2   :  { %v8612_v10 = vpop.eup %8611 }
0x27a3   :  { %2214 = vrot.lane.b32.xlu0 %v8612_v10, %s9096_s29 }
0x2815   :  { %v2215_v42 = vpop.permute.xlu0 %2214 }
0x2816   :  { %v9809_v43 = vmul.f32 %v8610_v19, %v2215_v42 }
0x2865   :  { %v2984_v12 = vpop.f32.mrb[8].mxu0 }
0x2866   :  { %v8425_v14 = vadd.f32 %v9680_v35, %v2984_v12  ;;  %v7519_v16 = vpop.f32.mrb[9].mxu0  ;;  %v3014_v35 = vld [vmem:[%s10673_s13 + $0x8] sm:$0xff]  ;;  %v3183_v12 = vld [vmem:[%s10600_s9] sm:$0xff] }
0x2867   :  { %v8145_v27 = vpack.c.bf16 %v3014_v35, %v3013_v26 }
0x2868   :  { %8613 = vtanh.f32 %v8425_v14  ;;  %v6829_v20 = vmul.f32 -1.442695, %v8425_v14  ;;  %v3184_v14 = vld [vmem:[%s10600_s9 + $0x8] sm:$0xff] }
0x2869   :  { %8146 = vmatpush3.bf16.msra.mxu1 %v8145_v27  ;;  %v8151_v16 = vpack.c.bf16 %v3184_v14, %v3183_v12  ;;  %v6832_v12 = vld [vmem:[#allocation8] ss:$0 sm:$0xff] }
0x286a   :  { %8615 = vpow2.f32 %v6829_v20  ;;  %8147 = vmatprep.subr.bf16.mxu1 %v10623_v1  ;;  %v3185_v20 = vld [vmem:[%s10600_s9 + $0x10] sm:$0xff] }
0x286d   :  { %8149 = vmatpush3.bf16.msra.mxu1 %v8148_v37 }
0x286e   :  { %8156 = vmatprep.subr.bf16.mxu1 %v10623_v1 }
0x2872   :  { %v8614_v17 = vpop.eup %8613 }
0x2873   :  { %2998 = vrot.lane.b32.xlu1 %v8614_v17, %s9096_s29 }
0x2874   :  { %v8616_v22 = vpop.eup %8615 }
0x2875   :  { %v2992_v21 = vadd.f32 1.0, %v8616_v22  ;;  %v3186_v22 = vld [vmem:[%s10600_s9 + $0x18] sm:$0xff] }
0x2877   :  { %8617 = vrcp.f32 %v2992_v21  ;;  %v8154_v21 = vpack.c.bf16 %v3186_v22, %v3185_v20 }
0x2881   :  { %v8618_v23 = vpop.eup %8617 }
0x2882   :  { %v2996_v29 = vmul.f32 %v8618_v23, %v2906_v57  ;;  %v6836_v57 = vld [vmem:[#allocation14] ss:$0 sm:$0xff] }
0x28e5   :  { %v2999_v25 = vpop.permute.xlu1 %2998 }
0x28e6   :  { %v3001_v24 = vmul.f32 %v8618_v23, %v2999_v25 }
0x28e8   :  { %3003 = vrot.lane.b32.xlu1 %v3001_v24, %s9085_s16 }
0x295a   :  { %v3004_v34 = vpop.permute.xlu1 %3003 }
0x295b   :  { %v9804_v38 = vadd.f32 %v3004_v34, %v2996_v29 }
0x295d   :  { %8619 = vtanh.f32 %v9804_v38 }
0x2967   :  { %v8620_v41 = vpop.eup %8619 }
0x2968   :  { %3009 = vrot.lane.b32.xlu1 %v8620_v41, %s9096_s29 }
0x296c   :  { %3097 = vrot.lane.b32.xlu1 %v9809_v43, %s9085_s16 }
0x2970   :  { %3370 = vrot.lane.b32.xlu1 %v6837_v44, %s9097_s5 }
0x29da   :  { %v3010_v52 = vpop.permute.xlu1 %3009 }
0x29db   :  { %v9828_v54 = vmul.f32 %v8618_v23, %v3010_v52 }
0x29dd   :  { %3022 = vrot.lane.b32.xlu0 %v9828_v54, %s9085_s16 }
0x29de   :  { %v3098_v55 = vpop.permute.xlu1 %3097 }
0x29df   :  { %7540 = vmatmul.mubr.msk.f32.vlgmr.msra.gmra.mrb[16].mxu1 %vm1419_vm2, %v3098_v55 }
0x29e0   :  { %7561 = vmatprep.mubr.msk.f32.mxu1 %vm9094_vm0, %v10625_v2 }
0x29e1   :  { %3353 = vrot.lane.b32.xlu0 %v6836_v57, %s9097_s5 }
0x29e2   :  { %v9836_v58 = vpop.permute.xlu1 %3370 }
0x29e3   :  { %v3397_v59 = vmul.f32 %v9836_v58, %v9775_v0  ;;  %v3415_v60 = vmul.f32 %v9836_v58, %v9761_v40  ;;  %v3433_v18 = vmul.f32 %v9836_v58, %v9746_v13  ;;  %v3451_v61 = vmul.f32 %v9836_v58, %v9731_v15 }
0x29e4   :  { %v3469_v62 = vmul.f32 %v9836_v58, %v9716_v36  ;;  %v3487_v63 = vmul.f32 %v9836_v58, %v9701_v8  ;;  %v3505_v19 = vmul.f32 %v9836_v58, %v9686_v53  ;;  %v3373_v50 = vmul.f32 %v9836_v58, %v9828_v54 }
0x29e5   :  { %3399 = vrot.lane.b32.xlu1 %v3397_v59, %s9085_s16 }
0x29e9   :  { %3417 = vrot.lane.b32.xlu1 %v3415_v60, %s9085_s16 }
0x29ed   :  { %3435 = vrot.lane.b32.xlu1 %v3433_v18, %s9085_s16 }
0x29f1   :  { %3453 = vrot.lane.b32.xlu1 %v3451_v61, %s9085_s16 }
0x29f5   :  { %3471 = vrot.lane.b32.xlu1 %v3469_v62, %s9085_s16 }
0x29f9   :  { %3489 = vrot.lane.b32.xlu1 %v3487_v63, %s9085_s16 }
0x29fd   :  { %3507 = vrot.lane.b32.xlu1 %v3505_v19, %s9085_s16 }
0x2a4f   :  { %v3023_v33 = vpop.permute.xlu0 %3022 }
0x2a50   :  { %7529 = vmatmul.mubr.msk.f32.vlgmr.msra.gmra.mrb[16].mxu0 %vm1419_vm2, %v3023_v33 }
0x2a51   :  { %7550 = vmatprep.mubr.msk.f32.mxu0 %vm9094_vm0, %v10625_v2  ;;  %8152 = vmatpush3.bf16.msra.mxu0 %v8151_v16 }
0x2a52   :  { %8153 = vmatprep.subr.bf16.mxu0 %v10623_v1 }
0x2a53   :  { %v3354_v4 = vpop.permute.xlu0 %3353 }
0x2a54   :  { %v3356_v5 = vmul.f32 %v3354_v4, %v9550_v39  ;;  %v3389_v6 = vmul.f32 %v3354_v4, %v9566_v56  ;;  %v3407_v7 = vmul.f32 %v3354_v4, %v9581_v11  ;;  %v3425_v10 = vmul.f32 %v3354_v4, %v9596_v31 }
0x2a55   :  { %v3443_v17 = vmul.f32 %v3354_v4, %v9611_v49  ;;  %8155 = vmatpush3.bf16.msra.mxu0 %v8154_v21  ;;  %v3461_v23 = vmul.f32 %v3354_v4, %v9626_v3  ;;  %v3479_v25 = vmul.f32 %v3354_v4, %v9660_v30  ;;  %v3497_v24 = vmul.f32 %v3354_v4, %v9809_v43 }
0x2a56   :  { %3358 = vrot.lane.b32.xlu0 %v3356_v5, %s9085_s16  ;;  %8162 = vmatprep.subr.bf16.mxu0 %v10623_v1 }
0x2a57   :  { %v3400_v27 = vpop.permute.xlu1 %3399 }
0x2a58   :  { %v3402_v58 = vsel %vm3361_vm3, %v3400_v27, 0.0 }
0x2a5a   :  { %3391 = vrot.lane.b32.xlu0 %v3389_v6, %s9085_s16 }
0x2a5b   :  { %v3418_v29 = vpop.permute.xlu1 %3417 }
0x2a5c   :  { %v3420_v63 = vsel %vm3361_vm3, %v3418_v29, 0.0 }
0x2a5e   :  { %3409 = vrot.lane.b32.xlu0 %v3407_v7, %s9085_s16 }
0x2a5f   :  { %v3436_v41 = vpop.permute.xlu1 %3435 }
0x2a60   :  { %v3438_v19 = vsel %vm3361_vm3, %v3436_v41, 0.0  ;;  %v3533_v41 = vld [vmem:[%s10611_s20 + $0x10] sm:$0xff] }
0x2a62   :  { %3427 = vrot.lane.b32.xlu0 %v3425_v10, %s9085_s16 }
0x2a63   :  { %v3454_v45 = vpop.permute.xlu1 %3453 }
0x2a64   :  { %v3456_v48 = vsel %vm3361_vm3, %v3454_v45, 0.0 }
0x2a66   :  { %3445 = vrot.lane.b32.xlu0 %v3443_v17, %s9085_s16  ;;  %v9917_v17 = vld [vmem:[#allocation12] ss:$0 sm:$0xff] }
0x2a67   :  { %v3472_v51 = vpop.permute.xlu1 %3471 }
0x2a68   :  { %v3474_v55 = vsel %vm3361_vm3, %v3472_v51, 0.0  ;;  %v3538_v51 = vld [vmem:[%s10611_s20 + $0x38] sm:$0xff] }
0x2a6a   :  { %3463 = vrot.lane.b32.xlu0 %v3461_v23, %s9085_s16 }
0x2a6b   :  { %v3490_v60 = vpop.permute.xlu1 %3489 }
0x2a6c   :  { %v3492_v61 = vsel %vm3361_vm3, %v3490_v60, 0.0  ;;  %v3540_v60 = vld [vmem:[%s10611_s20 + $0x48] sm:$0xff] }
0x2a6e   :  { %3481 = vrot.lane.b32.xlu0 %v3479_v25, %s9085_s16 }
0x2a6f   :  { %v3508_v10 = vpop.permute.xlu1 %3507 }
0x2a72   :  { %3499 = vrot.lane.b32.xlu0 %v3497_v24, %s9085_s16  ;;  %v3510_v24 = vsel %vm3361_vm3, %v3508_v10, 0.0  ;;  %v3545_v10 = vld [vmem:[%s10611_s20 + $0x70] sm:$0xff] }
0x2a76   :  { %3188 = vrot.lane.b32.xlu0 %v9804_v38, %s9097_s5 }
0x2ab2   :  { %v3167_v26 = vpop.f32.mrb[16].mxu1 }
0x2ab3   :  { %v7541_v35 = vpop.f32.mrb[17].mxu1 }
0x2ab4   :  { %v3555_v35 = vld [vmem:[%s10675_s15] sm:$0x3] }
0x2ac8   :  { %v3359_v28 = vpop.permute.xlu0 %3358 }
0x2ac9   :  { %v3362_v32 = vsel %vm3361_vm3, %v3359_v28, 0.0 }
0x2aca   :  { %3363 = vadd.xlane.f32.xlu1 %v3362_v32 }
0x2acc   :  { %v3392_v34 = vpop.permute.xlu0 %3391 }
0x2acd   :  { %v3394_v37 = vsel %vm3361_vm3, %v3392_v34, 0.0  ;;  %v3531_v34 = vld [vmem:[%s10611_s20] sm:$0xff] }
0x2ace   :  { %3395 = vadd.xlane.f32.xlu0 %v3394_v37  ;;  %v3532_v37 = vld [vmem:[%s10611_s20 + $0x8] sm:$0xff] }
0x2ad0   :  { %v3410_v42 = vpop.permute.xlu0 %3409 }
0x2ad1   :  { %v3412_v44 = vsel %vm3361_vm3, %v3410_v42, 0.0  ;;  %v9939_v42 = vpack.c.bf16 %v3532_v37, %v3531_v34  ;;  %v6838_v34 = vld [vmem:[#allocation2] ss:$0 sm:$0xff] }
0x2ad2   :  { %3413 = vadd.xlane.f32.xlu0 %v3412_v44  ;;  %v3534_v44 = vld [vmem:[%s10611_s20 + $0x18] sm:$0xff] }
0x2ad3   :  { %v9945_v45 = vpack.c.bf16 %v3534_v44, %v3533_v41 }
0x2ad4   :  { %v3428_v38 = vpop.permute.xlu0 %3427 }
0x2ad5   :  { %v3430_v46 = vsel %vm3361_vm3, %v3428_v38, 0.0  ;;  %v3535_v38 = vld [vmem:[%s10611_s20 + $0x20] sm:$0xff] }
0x2ad6   :  { %3431 = vadd.xlane.f32.xlu0 %v3430_v46  ;;  %v3536_v46 = vld [vmem:[%s10611_s20 + $0x28] sm:$0xff] }
0x2ad8   :  { %v3446_v47 = vpop.permute.xlu0 %3445 }
0x2ad9   :  { %v3448_v33 = vsel %vm3361_vm3, %v3446_v47, 0.0 }
0x2ada   :  { %3457 = vadd.xlane.f32.xlu0 %v3456_v48  ;;  %v9955_v48 = vpack.c.bf16 %v3536_v46, %v3535_v38 }
0x2adb   :  { %3375 = vrot.lane.b32.xlu1 %v3373_v50, %s9085_s16  ;;  %v3537_v50 = vld [vmem:[%s10611_s20 + $0x30] sm:$0xff] }
0x2adc   :  { %v3464_v52 = vpop.permute.xlu0 %3463 }
0x2add   :  { %v3466_v4 = vsel %vm3361_vm3, %v3464_v52, 0.0 }
0x2ade   :  { %3475 = vadd.xlane.f32.xlu0 %v3474_v55 }
0x2ae0   :  { %v3482_v57 = vpop.permute.xlu0 %3481 }
0x2ae1   :  { %v3484_v59 = vsel %vm3361_vm3, %v3482_v57, 0.0  ;;  %v9965_v57 = vpack.c.bf16 %v3538_v51, %v3537_v50 }
0x2ae2   :  { %3485 = vadd.xlane.f32.xlu0 %v3484_v59  ;;  %v3539_v59 = vld [vmem:[%s10611_s20 + $0x40] sm:$0xff] }
0x2ae4   :  { %v3500_v18 = vpop.permute.xlu0 %3499 }
0x2ae5   :  { %v3502_v25 = vsel %vm3361_vm3, %v3500_v18, 0.0  ;;  %v9975_v18 = vpack.c.bf16 %v3540_v60, %v3539_v59 }
0x2ae6   :  { %3493 = vadd.xlane.f32.xlu0 %v3492_v61  ;;  %v3541_v61 = vld [vmem:[%s10611_s20 + $0x50] sm:$0xff] }
0x2ae8   :  { %v3189_v62 = vpop.permute.xlu0 %3188 }
0x2ae9   :  { %7551 = vmatmul.mubr.msk.f32.vlgmr.msra.gmra.mrb[18].mxu0 %vm1419_vm2, %v3189_v62  ;;  %v3542_v62 = vld [vmem:[%s10611_s20 + $0x58] sm:$0xff] }
0x2aea   :  { %7596 = vmatprep.mubr.msk.f32.mxu0 %vm9094_vm0, %v10625_v2  ;;  %8164 = vmatpush3.bf16.msra.mxu0 %v9939_v42 }
0x2aeb   :  { %8165 = vmatprep.subr.bf16.mxu0 %v10623_v1 }
0x2aee   :  { %8167 = vmatpush3.bf16.msra.mxu0 %v9945_v45 }
0x2aef   :  { %8168 = vmatprep.subr.bf16.mxu0 %v10623_v1 }
0x2af2   :  { %8170 = vmatpush3.bf16.msra.mxu0 %v9955_v48 }
0x2af3   :  { %8171 = vmatprep.subr.bf16.mxu0 %v10623_v1 }
0x2af6   :  { %8173 = vmatpush3.bf16.msra.mxu0 %v9965_v57 }
0x2af7   :  { %8174 = vmatprep.subr.bf16.mxu0 %v10623_v1 }
0x2afa   :  { %8176 = vmatpush3.bf16.msra.mxu0 %v9975_v18 }
0x2afb   :  { %8177 = vmatprep.subr.bf16.mxu0 %v10623_v1 }
0x2aff   :  { %3403 = vadd.xlane.f32.xlu1 %v3402_v58 }
0x2b03   :  { %3421 = vadd.xlane.f32.xlu1 %v3420_v63 }
0x2b07   :  { %3439 = vadd.xlane.f32.xlu1 %v3438_v19  ;;  %v9985_v19 = vpack.c.bf16 %v3542_v62, %v3541_v61 }
0x2b09   :  { %8179 = vmatpush3.bf16.msra.mxu0 %v9985_v19 }
0x2b0a   :  { %8180 = vmatprep.subr.bf16.mxu0 %v10623_v1 }
0x2b0b   :  { %3449 = vadd.xlane.f32.xlu1 %v3448_v33  ;;  %v3543_v33 = vld [vmem:[%s10611_s20 + $0x60] sm:$0xff] }
0x2b0f   :  { %3467 = vadd.xlane.f32.xlu1 %v3466_v4  ;;  %v3544_v4 = vld [vmem:[%s10611_s20 + $0x68] sm:$0xff] }
0x2b23   :  { %v3092_v5 = vpop.f32.mrb[16].mxu0 }
0x2b24   :  { %v3168_v6 = vadd.f32 %v3167_v26, %v3092_v5  ;;  %v7530_v7 = vpop.f32.mrb[17].mxu0  ;;  %v9098_v26 = vmov 0  }
0x2b25   :  { %8491 = vset.pattern.permute.xlu1 %v9098_v26  ;;  %8492 = vset.pattern.permute.xlu0 %v9098_v26  ;;  %v9995_v7 = vpack.c.bf16 %v3544_v4, %v3543_v33 }
0x2b26   :  { %v9915_v16 = vadd.f32 %v6832_v12, %v3168_v6  ;;  %3557 = vperm.xlu1 %8491, %v3555_v35   ;;  %v3546_v12 = vld [vmem:[%s10611_s20 + $0x78] sm:$0xff]  ;;  %v3552_v35 = vlaneseq }
0x2b27   :  { %8182 = vmatpush3.bf16.msra.mxu0 %v9995_v7 }
0x2b28   :  { %v3638_v21 = vmul.f32 %v9917_v17, %v9915_v16  ;;  %8183 = vmatprep.subr.bf16.mxu0 %v10623_v1 }
0x2b2a   :  { %v3639_v23 = vsel %vm3361_vm3, %v3638_v21, 0.0 }
0x2b57   :  { %v9913_v14 = vpop.xlane.xlu1 %3363 }
0x2b5b   :  { %v3376_v20 = vpop.permute.xlu1 %3375  ;;  %v3396_v28 = vpop.xlane.xlu0 %3395 }
0x2b5c   :  { %v3378_v22 = vsel %vm3361_vm3, %v3376_v20, 0.0  ;;  %v10005_v20 = vpack.c.bf16 %v3546_v12, %v3545_v10  ;;  %v10627_v12 = vmov 1.0  }
0x2b5d   :  { %3379 = vadd.xlane.f32.xlu0 %v3378_v22 }
0x2b5e   :  { %8185 = vmatpush3.bf16.msra.mxu0 %v10005_v20 }
0x2b5f   :  { %v3414_v32 = vpop.xlane.xlu0 %3413  ;;  %8213 = vmatprep.subr.bf16.mxu0 %v10623_v1 }
0x2b61   :  { %3640 = vadd.xlane.f32.xlu0 %v3639_v23 }
0x2b63   :  { %v3432_v47 = vpop.xlane.xlu0 %3431 }
0x2b65   :  { %3503 = vadd.xlane.f32.xlu0 %v3502_v25 }
0x2b67   :  { %v3458_v52 = vpop.xlane.xlu0 %3457 }
0x2b69   :  { %3511 = vadd.xlane.f32.xlu0 %v3510_v24 }
0x2b6b   :  { %v3476_v58 = vpop.xlane.xlu0 %3475 }
0x2b6f   :  { %v3486_v5 = vpop.xlane.xlu0 %3485 }
0x2b73   :  { %v3494_v22 = vpop.xlane.xlu0 %3493 }
0x2b74   :  { %v3495_v59 = vadd.f32 %v3494_v22, %v3486_v5 }
0x2b76   :  { %v10035_v5 = vadd.f32 %v6838_v34, %v3495_v59 }
0x2b78   :  { %10683 = vst [vmem:[#allocation39_spill] sm:$0xff] %v10035_v5 }
0x2b8c   :  { %v3404_v55 = vpop.xlane.xlu1 %3403 }
0x2b8d   :  { %v3405_v23 = vadd.f32 %v3404_v55, %v3396_v28 }
0x2b8f   :  { %v10011_v41 = vadd.f32 %v6838_v34, %v3405_v23 }
0x2b90   :  { %v3422_v63 = vpop.xlane.xlu1 %3421 }
0x2b91   :  { %v3423_v25 = vadd.f32 %v3422_v63, %v3414_v32  ;;  %10676 = vst [vmem:[#allocation32_spill] sm:$0xff] %v10011_v41  ;;  %v10019_v32 = vand.u32 127, %v3552_v35 }
0x2b93   :  { %v10013_v44 = vadd.f32 %v6838_v34, %v3423_v25  ;;  %10680 = vst [vmem:[#allocation36_spill] sm:$0xff] %v10019_v32 }
0x2b94   :  { %v3440_v6 = vpop.xlane.xlu1 %3439 }
0x2b95   :  { %v3441_v24 = vadd.f32 %v3440_v6, %v3432_v47  ;;  %10677 = vst [vmem:[#allocation33_spill] sm:$0xff] %v10013_v44 }
0x2b97   :  { %v10017_v50 = vadd.f32 %v6838_v34, %v3441_v24 }
0x2b98   :  { %v3450_v21 = vpop.xlane.xlu1 %3449 }
0x2b99   :  { %v3459_v38 = vadd.f32 %v3458_v52, %v3450_v21  ;;  %10679 = vst [vmem:[#allocation35_spill] sm:$0xff] %v10017_v50 }
0x2b9b   :  { %v10024_v61 = vadd.f32 %v6838_v34, %v3459_v38 }
0x2b9c   :  { %v3468_v37 = vpop.xlane.xlu1 %3467 }
0x2b9d   :  { %v3477_v51 = vadd.f32 %v3476_v58, %v3468_v37  ;;  %10681 = vst [vmem:[#allocation37_spill] sm:$0xff] %v10024_v61 }
0x2b9f   :  { %v10028_v4 = vadd.f32 %v6838_v34, %v3477_v51 }
0x2ba1   :  { %10682 = vst [vmem:[#allocation38_spill] sm:$0xff] %v10028_v4 }
0x2ba5   :  { %v3558_v60 = vpop.permute.xlu1 %3557 }
0x2ba6   :  { %vm3559_vm4 = vcmp.eq.s32.totalorder %v10019_v32, %v3558_v60 }
0x2ba7   :  { %7597 = vmatmul.mubr.msk.f32.vlgmr.msra.gmra.mrb[20].mxu0 %vm3559_vm4, %v10627_v12 }
0x2ba8   :  { %8215 = vmatpush3.bf16.msra.mxu0 %v9939_v42  ;;  %7682 = vmatprep.mubr.msk.f32.mxu0 %vm9094_vm0, %v10625_v2 }
0x2ba9   :  { %8216 = vmatprep.subr.bf16.mxu0 %v10623_v1 }
0x2bac   :  { %8218 = vmatpush3.bf16.msra.mxu0 %v9945_v45 }
0x2bad   :  { %8219 = vmatprep.subr.bf16.mxu0 %v10623_v1 }
0x2bb0   :  { %8221 = vmatpush3.bf16.msra.mxu0 %v9955_v48 }
0x2bb1   :  { %8222 = vmatprep.subr.bf16.mxu0 %v10623_v1 }
0x2bb4   :  { %8224 = vmatpush3.bf16.msra.mxu0 %v9965_v57 }
0x2bb5   :  { %8225 = vmatprep.subr.bf16.mxu0 %v10623_v1 }
0x2bb8   :  { %8227 = vmatpush3.bf16.msra.mxu0 %v9975_v18 }
0x2bb9   :  { %8228 = vmatprep.subr.bf16.mxu0 %v10623_v1 }
0x2bbc   :  { %v9928_v27 = vpop.f32.mrb[18].mxu0  ;;  %8230 = vmatpush3.bf16.msra.mxu0 %v9985_v19 }
0x2bbd   :  { %v7552_v29 = vpop.f32.mrb[19].mxu0  ;;  %8231 = vmatprep.subr.bf16.mxu0 %v10623_v1 }
0x2bc0   :  { %8233 = vmatpush3.bf16.msra.mxu0 %v9995_v7 }
0x2bc1   :  { %8234 = vmatprep.subr.bf16.mxu0 %v10623_v1 }
0x2bc4   :  { %8236 = vmatpush3.bf16.msra.mxu0 %v10005_v20 }
0x2bc5   :  { %8258 = vmatprep.subr.bf16.mxu0 %v10623_v1 }
0x2bea   :  { %v3380_v26 = vpop.xlane.xlu0 %3379 }
0x2beb   :  { %v3381_v29 = vadd.f32 %v3380_v26, %v9913_v14 }
0x2bed   :  { %v10015_v46 = vadd.f32 %v6838_v34, %v3381_v29 }
0x2bee   :  { %v3641_v28 = vpop.xlane.xlu0 %3640 }
0x2bef   :  { %10678 = vst [vmem:[#allocation34_spill] sm:$0xff] %v10015_v46  ;;  %v3642_v47 = vadd.f32 %v3641_v28, %v10015_v46  ;;  %v3644_v55 = vadd.f32 %v3641_v28, %v10011_v41  ;;  %v3646_v14 = vadd.f32 %v3641_v28, %v10013_v44  ;;  %v3648_v63 = vadd.f32 %v3641_v28, %v10017_v50 }
0x2bf0   :  { %v3650_v6 = vadd.f32 %v3641_v28, %v10024_v61  ;;  %v3652_v21 = vadd.f32 %v3641_v28, %v10028_v4  ;;  %v3654_v26 = vadd.f32 %v3641_v28, %v10035_v5 }
0x2bf1   :  { %v3643_v62 = vmax.f32 %v3642_v47, 0.0  ;;  %v3645_v52 = vmax.f32 %v3644_v55, 0.0  ;;  %v3647_v58 = vmax.f32 %v3646_v14, 0.0  ;;  %v3649_v22 = vmax.f32 %v3648_v63, 0.0 }
0x2bf2   :  { %v3504_v33 = vpop.xlane.xlu0 %3503  ;;  %v3651_v24 = vmax.f32 %v3650_v6, 0.0  ;;  %v3653_v37 = vmax.f32 %v3652_v21, 0.0  ;;  %v3655_v47 = vmax.f32 %v3654_v26, 0.0 }
0x2bf3   :  { %v3658_v10 = vmax.f32 %v3643_v62, %v3645_v52 }
0x2bf5   :  { %v3659_v23 = vmax.f32 %v3658_v10, %v3647_v58 }
0x2bf6   :  { %v3512_v25 = vpop.xlane.xlu0 %3511 }
0x2bf7   :  { %v3660_v35 = vmax.f32 %v3659_v23, %v3649_v22  ;;  %v3513_v29 = vadd.f32 %v3512_v25, %v3504_v33 }
0x2bf9   :  { %v3661_v38 = vmax.f32 %v3660_v35, %v3651_v24  ;;  %v10041_v51 = vadd.f32 %v6838_v34, %v3513_v29 }
0x2bfb   :  { %v3662_v55 = vmax.f32 %v3661_v38, %v3653_v37  ;;  %v3656_v14 = vadd.f32 %v3641_v28, %v10041_v51 }
0x2bfd   :  { %v3663_v59 = vmax.f32 %v3662_v55, %v3655_v47  ;;  %v3657_v60 = vmax.f32 %v3656_v14, 0.0 }
0x2bff   :  { %v3664_v63 = vmax.f32 %v3663_v59, %v3657_v60 }
0x2c01   :  { %v3665_v33 = vsub.f32 %v3643_v62, %v3664_v63  ;;  %v3668_v6 = vsub.f32 %v3645_v52, %v3664_v63  ;;  %v3671_v34 = vsub.f32 %v3647_v58, %v3664_v63  ;;  %v3674_v21 = vsub.f32 %v3649_v22, %v3664_v63 }
0x2c02   :  { %v3677_v25 = vsub.f32 %v3651_v24, %v3664_v63  ;;  %v3680_v35 = vsub.f32 %v3653_v37, %v3664_v63  ;;  %v3683_v62 = vsub.f32 %v3655_v47, %v3664_v63  ;;  %v3686_v58 = vsub.f32 %v3657_v60, %v3664_v63 }
0x2c03   :  { %v3666_v10 = vmul.f32 1.442695, %v3665_v33  ;;  %v3669_v23 = vmul.f32 1.442695, %v3668_v6  ;;  %v3672_v28 = vmul.f32 1.442695, %v3671_v34 }
0x2c04   :  { %v3675_v26 = vmul.f32 1.442695, %v3674_v21  ;;  %v3678_v52 = vmul.f32 1.442695, %v3677_v25  ;;  %v3681_v22 = vmul.f32 1.442695, %v3680_v35 }
0x2c05   :  { %8621 = vpow2.f32 %v3666_v10  ;;  %v3684_v29 = vmul.f32 1.442695, %v3683_v62  ;;  %v3687_v24 = vmul.f32 1.442695, %v3686_v58 }
0x2c06   :  { %8623 = vpow2.f32 %v3669_v23 }
0x2c07   :  { %8625 = vpow2.f32 %v3672_v28 }
0x2c08   :  { %8627 = vpow2.f32 %v3675_v26 }
0x2c09   :  { %8629 = vpow2.f32 %v3678_v52 }
0x2c0a   :  { %8631 = vpow2.f32 %v3681_v22 }
0x2c0b   :  { %8633 = vpow2.f32 %v3684_v29 }
0x2c0c   :  { %8635 = vpow2.f32 %v3687_v24 }
0x2c0f   :  { %v8622_v38 = vpop.eup %8621 }
0x2c10   :  { %v8624_v37 = vpop.eup %8623 }
0x2c11   :  { %v3689_v47 = vadd.f32 %v8624_v37, %v8622_v38  ;;  %v8626_v55 = vpop.eup %8625 }
0x2c12   :  { %v8628_v59 = vpop.eup %8627 }
0x2c13   :  { %v3690_v14 = vadd.f32 %v8626_v55, %v3689_v47  ;;  %v8630_v63 = vpop.eup %8629  ;;  %v3179_v47 = vld [vmem:[#allocation9] sm:$0xff] }
0x2c14   :  { %v8632_v6 = vpop.eup %8631 }
0x2c15   :  { %v3691_v60 = vadd.f32 %v8628_v59, %v3690_v14  ;;  %v8634_v10 = vpop.eup %8633  ;;  %v3180_v14 = vld [vmem:[#allocation9 + $0x8] sm:$0xff] }
0x2c16   :  { %v8636_v23 = vpop.eup %8635 }
0x2c17   :  { %v3692_v33 = vadd.f32 %v8630_v63, %v3691_v60  ;;  %v8157_v60 = vpack.c.bf16 %v3180_v14, %v3179_v47 }
0x2c19   :  { %v3693_v34 = vadd.f32 %v8632_v6, %v3692_v33  ;;  %v3181_v33 = vld [vmem:[#allocation9 + $0x10] sm:$0xff]  ;;  %8158 = vmatpush3.bf16.msra.mxu1 %v8157_v60 }
0x2c1a   :  { %8159 = vmatprep.subr.bf16.mxu1 %v10623_v1 }
0x2c1b   :  { %v3694_v21 = vadd.f32 %v8634_v10, %v3693_v34 }
0x2c1d   :  { %v3695_v28 = vadd.f32 %v8636_v23, %v3694_v21 }
0x2c1f   :  { %8637 = vrcp.f32 %v3695_v28 }
0x2c29   :  { %v8638_v25 = vpop.eup %8637 }
0x2c2a   :  { %v3708_v26 = vmul.f32 %v8638_v25, %v8624_v37  ;;  %v3698_v35 = vmul.f32 %v8638_v25, %v8622_v38  ;;  %v3718_v62 = vmul.f32 %v8638_v25, %v8626_v55  ;;  %v3728_v52 = vmul.f32 %v8638_v25, %v8628_v59  ;;  %v3182_v37 = vld [vmem:[#allocation9 + $0x18] sm:$0xff] }
0x2c2b   :  { %v3738_v58 = vmul.f32 %v8638_v25, %v8630_v63  ;;  %v3748_v22 = vmul.f32 %v8638_v25, %v8632_v6  ;;  %v3758_v29 = vmul.f32 %v8638_v25, %v8634_v10  ;;  %v3768_v24 = vmul.f32 %v8638_v25, %v8636_v23 }
0x2c2c   :  { %3711 = vperm.xlu0 %8492, %v3708_v26   ;;  %3701 = vperm.xlu1 %8491, %v3698_v35   ;;  %v8160_v38 = vpack.c.bf16 %v3182_v37, %v3181_v33 }
0x2c2e   :  { %8161 = vmatpush3.bf16.msra.mxu1 %v8160_v38 }
0x2c2f   :  { %8186 = vmatprep.subr.bf16.mxu1 %v10623_v1 }
0x2c30   :  { %3721 = vperm.xlu1 %8491, %v3718_v62  }
0x2c34   :  { %3731 = vperm.xlu1 %8491, %v3728_v52  }
0x2c38   :  { %3741 = vperm.xlu1 %8491, %v3738_v58  }
0x2c3c   :  { %3751 = vperm.xlu1 %8491, %v3748_v22  }
0x2c40   :  { %3761 = vperm.xlu1 %8491, %v3758_v29  }
0x2c44   :  { %3771 = vperm.xlu1 %8491, %v3768_v24  }
0x2c48   :  { %3263 = vrot.lane.b32.xlu1 %v9784_v9, %s9097_s5 }
0x2cab   :  { %v3702_v55 = vpop.permute.xlu1 %3701  ;;  %v3712_v63 = vpop.permute.xlu0 %3711 }
0x2cac   :  { %v3716_v34 = vmul.f32 %v3712_v63, %v9775_v0  ;;  %v3706_v10 = vmul.f32 %v3702_v55, %v9828_v54  ;;  %v3714_v28 = vmul.f32 %v3712_v63, %v9566_v56  ;;  %v3704_v25 = vmul.f32 %v3702_v55, %v9550_v39 }
0x2cae   :  { %v3717_v26 = vadd.f32 %v3716_v34, %v3706_v10  ;;  %v3715_v22 = vadd.f32 %v3714_v28, %v3704_v25  ;;  %v3520_v34 = vld [vmem:[#allocation18] sm:$0xff]  ;;  %v3521_v10 = vld [vmem:[#allocation18 + $0x8] sm:$0xff] }
0x2caf   :  { %v3722_v59 = vpop.permute.xlu1 %3721 }
0x2cb0   :  { %v3726_v23 = vmul.f32 %v3722_v59, %v9761_v40  ;;  %v3724_v62 = vmul.f32 %v3722_v59, %v9581_v11 }
0x2cb2   :  { %v3727_v52 = vadd.f32 %v3726_v23, %v3717_v26  ;;  %v3725_v60 = vadd.f32 %v3724_v62, %v3715_v22  ;;  %v3628_v62 = vpop.f32.mrb[20].mxu0  ;;  %v3522_v22 = vld [vmem:[#allocation18 + $0x10] sm:$0xff] }
0x2cb3   :  { %v3732_v6 = vpop.permute.xlu1 %3731 }
0x2cb4   :  { %v3736_v9 = vmul.f32 %v3732_v6, %v9746_v13  ;;  %v3734_v29 = vmul.f32 %v3732_v6, %v9596_v31 }
0x2cb6   :  { %v3737_v24 = vadd.f32 %v3736_v9, %v3727_v52  ;;  %v3735_v55 = vadd.f32 %v3734_v29, %v3725_v60  ;;  %v10076_v9 = vpack.c.bf16 %v3521_v10, %v3520_v34  ;;  %v3523_v29 = vld [vmem:[#allocation18 + $0x18] sm:$0xff]  ;;  %v3524_v10 = vld [vmem:[#allocation20] sm:$0xff] }
0x2cb7   :  { %v3742_v21 = vpop.permute.xlu1 %3741 }
0x2cb8   :  { %v3746_v58 = vmul.f32 %v3742_v21, %v9731_v15  ;;  %v3744_v33 = vmul.f32 %v3742_v21, %v9611_v49  ;;  %10684 = vst [vmem:[#allocation40_spill] sm:$0xff] %v10076_v9 }
0x2cba   :  { %v3747_v37 = vadd.f32 %v3746_v58, %v3737_v24  ;;  %v3745_v28 = vadd.f32 %v3744_v33, %v3735_v55  ;;  %v3516_v33 = vld [vmem:[#allocation17] sm:$0xff]  ;;  %v3518_v55 = vld [vmem:[#allocation17 + $0x10] sm:$0xff] }
0x2cbb   :  { %v3752_v35 = vpop.permute.xlu1 %3751 }
0x2cbc   :  { %v3756_v47 = vmul.f32 %v3752_v35, %v9716_v36  ;;  %v3754_v63 = vmul.f32 %v3752_v35, %v9626_v3  ;;  %v7598_v35 = vpop.f32.mrb[21].mxu0 }
0x2cbe   :  { %v3757_v59 = vadd.f32 %v3756_v47, %v3747_v37  ;;  %v3755_v21 = vadd.f32 %v3754_v63, %v3745_v28  ;;  %v3517_v37 = vld [vmem:[#allocation17 + $0x8] sm:$0xff]  ;;  %v3519_v63 = vld [vmem:[#allocation17 + $0x18] sm:$0xff] }
0x2cbf   :  { %v3762_v14 = vpop.permute.xlu1 %3761  ;;  %v10094_v34 = vpack.c.bf16 %v3519_v63, %v3518_v55 }
0x2cc0   :  { %v3766_v38 = vmul.f32 %v3762_v14, %v9701_v8  ;;  %v3764_v6 = vmul.f32 %v3762_v14, %v9660_v30  ;;  %v10082_v14 = vpack.c.bf16 %v3523_v29, %v3522_v22 }
0x2cc2   :  { %v3767_v25 = vadd.f32 %v3766_v38, %v3757_v59  ;;  %v3765_v47 = vadd.f32 %v3764_v6, %v3755_v21  ;;  %10685 = vst [vmem:[#allocation41_spill] sm:$0xff] %v10082_v14  ;;  %v10090_v38 = vpack.c.bf16 %v3517_v37, %v3516_v33  ;;  %v3526_v6 = vld [vmem:[%s10609_s18] sm:$0xff] }
0x2cc3   :  { %v3772_v23 = vpop.permute.xlu1 %3771 }
0x2cc4   :  { %v3776_v26 = vmul.f32 %v3772_v23, %v9686_v53  ;;  %v3774_v52 = vmul.f32 %v3772_v23, %v9809_v43  ;;  %v3525_v23 = vld [vmem:[#allocation20 + $0x8] sm:$0xff] }
0x2cc5   :  { %v10100_v28 = vpack.c.bf16 %v3525_v23, %v3524_v10  ;;  %v10139_v10 = vld [vmem:[%s10610_s19] ss:$0 sm:$0xff] }
0x2cc6   :  { %v3777_v58 = vadd.f32 %v3776_v26, %v3767_v25  ;;  %v3775_v60 = vadd.f32 %v3774_v52, %v3765_v47  ;;  %v3527_v25 = vld [vmem:[%s10609_s18 + $0x8] sm:$0xff]  ;;  %v3528_v52 = vld [vmem:[%s10609_s18 + $0x10] sm:$0xff] }
0x2cc7   :  { %v3264_v24 = vpop.permute.xlu1 %3263  ;;  %v10113_v21 = vpack.c.bf16 %v3527_v25, %v3526_v6 }
0x2cc8   :  { %3779 = vrot.lane.b32.xlu1 %v3777_v58, %s9085_s16  ;;  %7562 = vmatmul.mubr.msk.f32.vlgmr.msra.gmra.mrb[18].mxu1 %vm1419_vm2, %v3264_v24  ;;  %v3529_v58 = vld [vmem:[%s10609_s18 + $0x18] sm:$0xff] }
0x2cc9   :  { %8188 = vmatpush3.bf16.msra.mxu1 %v10076_v9  ;;  %7607 = vmatprep.mubr.msk.f32.mxu1 %vm9094_vm0, %v10625_v2  ;;  %v10124_v22 = vpack.c.bf16 %v3529_v58, %v3528_v52 }
0x2cca   :  { %8189 = vmatprep.subr.bf16.mxu1 %v10623_v1 }
0x2ccc   :  { %3854 = vrot.lane.b32.xlu1 %v3775_v60, %s9085_s16 }
0x2ccd   :  { %8191 = vmatpush3.bf16.msra.mxu1 %v10082_v14 }
0x2cce   :  { %8192 = vmatprep.subr.bf16.mxu1 %v10623_v1 }
0x2d3a   :  { %v3780_v59 = vpop.permute.xlu1 %3779 }
0x2d3b   :  { %7608 = vmatmul.mubr.msk.f32.vlgmr.msra.gmra.mrb[20].mxu1 %vm1419_vm2, %v3780_v59 }
0x2d3c   :  { %8194 = vmatpush3.bf16.msra.mxu1 %v10090_v38  ;;  %7618 = vmatprep.mubr.msk.f32.mxu1 %vm9094_vm0, %v10625_v2 }
0x2d3d   :  { %8195 = vmatprep.subr.bf16.mxu1 %v10623_v1 }
0x2d3e   :  { %v3855_v26 = vpop.permute.xlu1 %3854 }
0x2d40   :  { %8197 = vmatpush3.bf16.msra.mxu1 %v10094_v34 }
0x2d41   :  { %8198 = vmatprep.subr.bf16.mxu1 %v10623_v1 }
0x2d43   :  { %7619 = vmatmul.mubr.msk.f32.vlgmr.msra.gmra.mrb[22].mxu1 %vm1419_vm2, %v3855_v26  ;;  %v6835_v26 = vld [vmem:[#allocation11] ss:$0 sm:$0xff] }
0x2d44   :  { %8200 = vmatpush3.bf16.msra.mxu1 %v10100_v28  ;;  %7625 = vmatprep.mubr.msk.f32.mxu1 %vm9094_vm0, %v10625_v2 }
0x2d45   :  { %8201 = vmatprep.subr.bf16.mxu1 %v10623_v1 }
0x2d47   :  { %7626 = vmatmul.mubr.msk.f32.vlgmr.msra.gmra.mrb[24].mxu1 %vm268_vm1, %v3628_v62 }
0x2d48   :  { %8203 = vmatpush3.bf16.msra.mxu1 %v10113_v21  ;;  %7636 = vmatprep.mubr.msk.f32.mxu1 %vm9094_vm0, %v10625_v2 }
0x2d49   :  { %8204 = vmatprep.subr.bf16.mxu1 %v10623_v1 }
0x2d4c   :  { %8206 = vmatpush3.bf16.msra.mxu1 %v10124_v22 }
0x2d4d   :  { %8207 = vmatprep.subr.bf16.mxu1 %v10623_v1 }
0x2d4f   :  { %7637 = vmatmul.mubr.msk.f32.vlgmr.msra.gmra.mrb[26].mxu1 %vm1419_vm2, %v9915_v16 }
0x2d50   :  { %7647 = vmatprep.mubr.msk.f32.mxu1 %vm9094_vm0, %v10625_v2 }
0x2d9b   :  { %v3333_v62 = vpop.f32.mrb[18].mxu1 }
0x2d9c   :  { %v3334_v29 = vadd.f32 %v3333_v62, %v9928_v27  ;;  %v7563_v35 = vpop.f32.mrb[19].mxu1 }
0x2d9e   :  { %v3344_v52 = vadd.f32 %v6835_v26, %v3334_v29  ;;  %v3547_v29 = vld [vmem:[#allocation21] sm:$0xff] }
0x2e0e   :  { %v3849_v24 = vpop.f32.mrb[20].mxu1 }
0x2e0f   :  { %v7609_v47 = vpop.f32.mrb[21].mxu1 }
0x2e16   :  { %v3924_v60 = vpop.f32.mrb[22].mxu1 }
0x2e17   :  { %v3925_v33 = vadd.f32 %v3924_v60, %v3849_v24  ;;  %v7620_v37 = vpop.f32.mrb[23].mxu1 }
0x2e1a   :  { %v3997_v55 = vpop.f32.mrb[24].mxu1 }
0x2e1b   :  { %v4001_v63 = vadd.f32 %v3997_v55, %v3925_v33  ;;  %v7627_v59 = vpop.f32.mrb[25].mxu1 }
0x2e1c   :  { %v3548_v59 = vld [vmem:[#allocation21 + $0x8] sm:$0xff] }
0x2e22   :  { %v4071_v16 = vpop.f32.mrb[26].mxu1 }
0x2e23   :  { %v4075_v23 = vadd.f32 %v4071_v16, %v4001_v63  ;;  %v7638_v6 = vpop.f32.mrb[27].mxu1  ;;  %v3549_v16 = vld [vmem:[#allocation21 + $0x10] sm:$0xff] }
0x2e24   :  { %v3550_v6 = vld [vmem:[#allocation21 + $0x18] sm:$0xff] }
0x2e25   :  { %v4082_v25 = vadd.f32 %v10139_v10, %v4075_v23  ;;  %v10148_v23 = vpack.c.bf16 %v3548_v59, %v3547_v29 }
0x2e27   :  { %8639 = vtanh.f32 %v4082_v25  ;;  %v6847_v58 = vmul.f32 -1.442695, %v4082_v25  ;;  %10686 = vst [vmem:[#allocation42_spill] sm:$0xff] %v10148_v23  ;;  %8209 = vmatpush3.bf16.msra.mxu1 %v10148_v23  ;;  %v10151_v25 = vpack.c.bf16 %v3550_v6, %v3549_v16 }
0x2e28   :  { %8210 = vmatprep.subr.bf16.mxu1 %v10623_v1 }
0x2e29   :  { %8641 = vpow2.f32 %v6847_v58  ;;  %10687 = vst [vmem:[#allocation43_spill] sm:$0xff] %v10151_v25 }
0x2e2b   :  { %8212 = vmatpush3.bf16.msra.mxu1 %v10151_v25 }
0x2e2c   :  { %8237 = vmatprep.subr.bf16.mxu1 %v10623_v1 }
0x2e31   :  { %v8640_v27 = vpop.eup %8639 }
0x2e32   :  { %4096 = vrot.lane.b32.xlu1 %v8640_v27, %s9096_s29 }
0x2e33   :  { %v8642_v62 = vpop.eup %8641 }
0x2e34   :  { %v4086_v35 = vadd.f32 1.0, %v8642_v62 }
0x2e36   :  { %4091 = vrot.lane.b32.xlu1 %v3344_v52, %s9085_s16  ;;  %8643 = vrcp.f32 %v4086_v35 }
0x2e40   :  { %v8644_v24 = vpop.eup %8643 }
0x2ea4   :  { %v4097_v47 = vpop.permute.xlu1 %4096 }
0x2ea5   :  { %v4099_v60 = vmul.f32 %v8644_v24, %v4097_v47 }
0x2ea7   :  { %4101 = vrot.lane.b32.xlu0 %v4099_v60, %s9085_s16 }
0x2ea8   :  { %v4092_v33 = vpop.permute.xlu1 %4091 }
0x2ea9   :  { %v4094_v37 = vmul.f32 %v8644_v24, %v4092_v33 }
0x2f19   :  { %v4102_v55 = vpop.permute.xlu0 %4101 }
0x2f1a   :  { %v10145_v63 = vadd.f32 %v4102_v55, %v4094_v37 }
0x2f1c   :  { %8645 = vtanh.f32 %v10145_v63 }
0x2f26   :  { %v8646_v27 = vpop.eup %8645 }
0x2f27   :  { %4107 = vrot.lane.b32.xlu1 %v8646_v27, %s9096_s29 }
0x2f99   :  { %v4108_v26 = vpop.permute.xlu1 %4107 }
0x2f9a   :  { %v4110_v52 = vmul.f32 %v8644_v24, %v4108_v26 }
0x2f9c   :  { %4118 = vrot.lane.b32.xlu0 %v4110_v52, %s9085_s16 }
0x2fa0   :  { %4296 = vrot.lane.b32.xlu0 %v9917_v17, %s9097_s5  ;;  %v10173_v17 = vld [vmem:[%s10613_s22] ss:$0 sm:$0xff] }
0x2fa1   :  { %10688 = vst [vmem:[#allocation44_spill] sm:$0xff] %v10173_v17 }
0x300e   :  { %v10160_v58 = vpop.permute.xlu0 %4118 }
0x300f   :  { %7648 = vmatmul.mubr.msk.f32.vlgmr.msra.gmra.mrb[28].mxu1 %vm1419_vm2, %v10160_v58 }
0x3010   :  { %8239 = vmatpush3.bf16.msra.mxu1 %v10076_v9  ;;  %7693 = vmatprep.mubr.msk.f32.mxu1 %vm9094_vm0, %v10625_v2 }
0x3011   :  { %8240 = vmatprep.subr.bf16.mxu1 %v10623_v1 }
0x3012   :  { %v10180_v60 = vpop.permute.xlu0 %4296 }
0x3013   :  { %10690 = vst [vmem:[#allocation46_spill] sm:$0xff] %v10180_v60  ;;  %v4299_v33 = vmul.f32 %v10180_v60, %v4110_v52 }
0x3014   :  { %8242 = vmatpush3.bf16.msra.mxu1 %v10082_v14 }
0x3015   :  { %8243 = vmatprep.subr.bf16.mxu1 %v10623_v1 }
0x30e2   :  { %v4188_v62 = vpop.f32.mrb[28].mxu1 }
0x30e3   :  { %v10176_v35 = vadd.f32 %v10173_v17, %v4188_v62  ;;  %v7649_v24 = vpop.f32.mrb[29].mxu1 }
0x30e5   :  { %10689 = vst [vmem:[#allocation45_spill] sm:$0xff] %v10176_v35  ;;  %v4193_v47 = vsel %vm4192_vm5, %v10176_v35, -inf }
0x30e6   :  { %4194 = vmax.xlane.f32.xlu1 %v4193_v47 }
0x30f7   :  { %4301 = vrot.lane.b32.xlu1 %v4299_v33, %s9085_s16 }
0x3173   :  { %v10184_v37 = vpop.xlane.xlu1 %4194 }
0x3174   :  { %10691 = vst [vmem:[#allocation47_spill] sm:$0xff] %v10184_v37  ;;  %vm4206_vm6 = vcmp.eq.f32.partialorder %v10176_v35, %v10184_v37 }
0x3175   :  { %v4207_v55 = vsel %vm4206_vm6, %v10019_v32, 128 }
0x3176   :  { %v4208_v29 = vsel %vm4192_vm5, %v4207_v55, 2147483647 }
0x3177   :  { %v4210_v59 = vshra.s32 %v4208_v29, 16  ;;  %v4209_v6 = vand.u32 65535, %v4208_v29  ;;  %v4302_v52 = vpop.permute.xlu1 %4301 }
0x3178   :  { %v4304_v24 = vsel %vm3361_vm3, %v4302_v52, 0.0 }
0x3179   :  { %v4212_v16 = vcvt.s32.f32 %v4210_v59  ;;  %v4211_v26 = vcvt.s32.f32 %v4209_v6 }
0x317b   :  { %4213 = vmin.xlane.f32.xlu0 %v4212_v16 }
0x3208   :  { %v4214_v27 = vpop.xlane.xlu0 %4213 }
0x3209   :  { %vm4215_vm7 = vcmp.eq.f32.partialorder %v4212_v16, %v4214_v27  ;;  %v4220_v47 = vcvt.f32.s32 %v4214_v27  ;;  %v10692_v16 = vmov 1.0   ;;  %v10693_v27 = vmov 0.0  }
0x320a   :  { %v4216_v62 = vsel %vm4215_vm7, %v4211_v26, inf }
0x320b   :  { %4217 = vmin.xlane.f32.xlu0 %v4216_v62  ;;  %v4221_v1 = vshll.u32 %v4220_v47, 16 }
0x320f   :  { %4305 = vadd.xlane.f32.xlu0 %v4304_v24 }
0x3298   :  { %v4218_v33 = vpop.xlane.xlu0 %4217 }
0x3299   :  { %v4219_v2 = vcvt.f32.s32 %v4218_v33 }
0x329b   :  { %v4222_v12 = vadd.s32 %v4221_v1, %v4219_v2  ;;  %v10694_v1 = vmov 0.0|0.0  }
0x329c   :  { %v4306_v35 = vpop.xlane.xlu0 %4305 }
0x329d   :  { %vm4223_vm8 = vcmp.eq.s32.totalorder %v10019_v32, %v4222_v12  ;;  %v4307_v55 = vadd.f32 %v4306_v35, %v10015_v46  ;;  %v4309_v29 = vadd.f32 %v4306_v35, %v10011_v41  ;;  %v4311_v59 = vadd.f32 %v4306_v35, %v10013_v44 }
0x329e   :  { %7683 = vmatmul.mubr.msk.f32.vlgmr.msra.gmra.mrb[22].mxu0 %vm4223_vm8, %v10692_v16  ;;  %v4313_v62 = vadd.f32 %v4306_v35, %v10017_v50  ;;  %v4315_v12 = vadd.f32 %v4306_v35, %v10024_v61  ;;  %v4317_v47 = vadd.f32 %v4306_v35, %v10028_v4  ;;  %v4321_v50 = vadd.f32 %v4306_v35, %v10041_v51 }
0x329f   :  { %v4308_v6 = vmax.f32 %v4307_v55, 0.0  ;;  %v4310_v26 = vmax.f32 %v4309_v29, 0.0  ;;  %8260 = vmatpush3.bf16.msra.mxu0 %v10148_v23  ;;  %7733 = vmatprep.mubr.msk.f32.mxu0 %vm9094_vm0, %v10693_v27  ;;  %v4312_v2 = vmax.f32 %v4311_v59, 0.0  ;;  %v4319_v29 = vadd.f32 %v4306_v35, %v10035_v5 }
0x32a0   :  { %8261 = vmatprep.subr.bf16.mxu0 %v10694_v1  ;;  %v4314_v24 = vmax.f32 %v4313_v62, 0.0  ;;  %v4316_v55 = vmax.f32 %v4315_v12, 0.0  ;;  %v4318_v23 = vmax.f32 %v4317_v47, 0.0  ;;  %v4322_v61 = vmax.f32 %v4321_v50, 0.0 }
0x32a1   :  { %v4323_v52 = vmax.f32 %v4308_v6, %v4310_v26  ;;  %v4320_v59 = vmax.f32 %v4319_v29, 0.0 }
0x32a3   :  { %v4324_v33 = vmax.f32 %v4323_v52, %v4312_v2  ;;  %8263 = vmatpush3.bf16.msra.mxu0 %v10151_v25 }
0x32a4   :  { %8288 = vmatprep.subr.bf16.mxu0 %v10694_v1 }
0x32a5   :  { %v4325_v37 = vmax.f32 %v4324_v33, %v4314_v24 }
0x32a7   :  { %v4326_v16 = vmax.f32 %v4325_v37, %v4316_v55 }
0x32a9   :  { %v4327_v44 = vmax.f32 %v4326_v16, %v4318_v23 }
0x32ab   :  { %v4328_v41 = vmax.f32 %v4327_v44, %v4320_v59 }
0x32ad   :  { %v4329_v62 = vmax.f32 %v4328_v41, %v4322_v61 }
0x32af   :  { %v4330_v46 = vsub.f32 %v4308_v6, %v4329_v62  ;;  %v4333_v4 = vsub.f32 %v4310_v26, %v4329_v62  ;;  %v4336_v60 = vsub.f32 %v4312_v2, %v4329_v62  ;;  %v4339_v25 = vsub.f32 %v4314_v24, %v4329_v62 }
0x32b0   :  { %v4342_v17 = vsub.f32 %v4316_v55, %v4329_v62  ;;  %v4345_v33 = vsub.f32 %v4318_v23, %v4329_v62  ;;  %v4348_v37 = vsub.f32 %v4320_v59, %v4329_v62  ;;  %v4351_v50 = vsub.f32 %v4322_v61, %v4329_v62 }
0x32b1   :  { %v4331_v52 = vmul.f32 1.442695, %v4330_v46  ;;  %v4334_v32 = vmul.f32 1.442695, %v4333_v4  ;;  %v4337_v12 = vmul.f32 1.442695, %v4336_v60 }
0x32b2   :  { %v4340_v5 = vmul.f32 1.442695, %v4339_v25  ;;  %v4343_v35 = vmul.f32 1.442695, %v4342_v17  ;;  %v4346_v16 = vmul.f32 1.442695, %v4345_v33 }
0x32b3   :  { %8647 = vpow2.f32 %v4331_v52  ;;  %v4349_v41 = vmul.f32 1.442695, %v4348_v37  ;;  %v4352_v46 = vmul.f32 1.442695, %v4351_v50 }
0x32b4   :  { %8649 = vpow2.f32 %v4334_v32 }
0x32b5   :  { %8651 = vpow2.f32 %v4337_v12 }
0x32b6   :  { %8653 = vpow2.f32 %v4340_v5 }
0x32b7   :  { %8655 = vpow2.f32 %v4343_v35 }
0x32b8   :  { %8657 = vpow2.f32 %v4346_v16 }
0x32b9   :  { %8659 = vpow2.f32 %v4349_v41 }
0x32ba   :  { %8661 = vpow2.f32 %v4352_v46 }
0x32bd   :  { %v8648_v44 = vpop.eup %8647 }
0x32be   :  { %v8650_v6 = vpop.eup %8649 }
0x32bf   :  { %v4354_v4 = vadd.f32 %v8650_v6, %v8648_v44  ;;  %v8652_v26 = vpop.eup %8651 }
0x32c0   :  { %v8654_v25 = vpop.eup %8653 }
0x32c1   :  { %v4355_v60 = vadd.f32 %v8652_v26, %v4354_v4  ;;  %v8656_v32 = vpop.eup %8655 }
0x32c2   :  { %v8658_v17 = vpop.eup %8657 }
0x32c3   :  { %v4356_v23 = vadd.f32 %v8654_v25, %v4355_v60  ;;  %v8660_v5 = vpop.eup %8659 }
0x32c4   :  { %v8662_v61 = vpop.eup %8661 }
0x32c5   :  { %v4357_v2 = vadd.f32 %v8656_v32, %v4356_v23 }
0x32c7   :  { %v4358_v24 = vadd.f32 %v8658_v17, %v4357_v2 }
0x32c9   :  { %v4359_v47 = vadd.f32 %v8660_v5, %v4358_v24 }
0x32cb   :  { %v4360_v55 = vadd.f32 %v8662_v61, %v4359_v47 }
0x32cd   :  { %8663 = vrcp.f32 %v4360_v55 }
0x32d7   :  { %v8664_v29 = vpop.eup %8663 }
0x32d8   :  { %v4373_v59 = vmul.f32 %v8664_v29, %v8650_v6  ;;  %v4363_v62 = vmul.f32 %v8664_v29, %v8648_v44  ;;  %v4383_v52 = vmul.f32 %v8664_v29, %v8652_v26  ;;  %v4413_v12 = vmul.f32 %v8664_v29, %v8658_v17 }
0x32d9   :  { %v4393_v33 = vmul.f32 %v8664_v29, %v8654_v25  ;;  %v4433_v35 = vmul.f32 %v8664_v29, %v8662_v61  ;;  %v4403_v37 = vmul.f32 %v8664_v29, %v8656_v32  ;;  %v4423_v16 = vmul.f32 %v8664_v29, %v8660_v5 }
0x32da   :  { %4376 = vperm.xlu1 %8491, %v4373_v59   ;;  %4366 = vperm.xlu0 %8492, %v4363_v62  }
0x32de   :  { %4386 = vperm.xlu1 %8491, %v4383_v52   ;;  %4416 = vperm.xlu0 %8492, %v4413_v12  }
0x32e2   :  { %4396 = vperm.xlu1 %8491, %v4393_v33   ;;  %4436 = vperm.xlu0 %8492, %v4433_v35  }
0x32e6   :  { %4406 = vperm.xlu1 %8491, %v4403_v37  }
0x32ea   :  { %4426 = vperm.xlu1 %8491, %v4423_v16  }
0x3359   :  { %v4377_v50 = vpop.permute.xlu1 %4376  ;;  %v4367_v41 = vpop.permute.xlu0 %4366 }
0x335a   :  { %v4379_v6 = vmul.f32 %v4377_v50, %v9566_v56  ;;  %v4381_v44 = vmul.f32 %v4377_v50, %v9775_v0  ;;  %v4369_v4 = vmul.f32 %v4367_v41, %v9550_v39  ;;  %v4371_v26 = vmul.f32 %v4367_v41, %v9828_v54 }
0x335c   :  { %v4380_v32 = vadd.f32 %v4379_v6, %v4369_v4  ;;  %v4382_v2 = vadd.f32 %v4381_v44, %v4371_v26 }
0x335d   :  { %v4387_v46 = vpop.permute.xlu1 %4386  ;;  %v4417_v5 = vpop.permute.xlu0 %4416 }
0x335e   :  { %v4389_v60 = vmul.f32 %v4387_v46, %v9581_v11  ;;  %v4391_v25 = vmul.f32 %v4387_v46, %v9761_v40  ;;  %v4419_v12 = vmul.f32 %v4417_v5, %v9626_v3  ;;  %v4421_v33 = vmul.f32 %v4417_v5, %v9716_v36 }
0x3360   :  { %v4390_v47 = vadd.f32 %v4389_v60, %v4380_v32  ;;  %v4392_v61 = vadd.f32 %v4391_v25, %v4382_v2 }
0x3361   :  { %v4397_v23 = vpop.permute.xlu1 %4396  ;;  %v4437_v16 = vpop.permute.xlu0 %4436 }
0x3362   :  { %v4399_v17 = vmul.f32 %v4397_v23, %v9596_v31  ;;  %v4401_v24 = vmul.f32 %v4397_v23, %v9746_v13  ;;  %v4439_v26 = vmul.f32 %v4437_v16, %v9809_v43  ;;  %v4441_v60 = vmul.f32 %v4437_v16, %v9686_v53 }
0x3364   :  { %v4400_v29 = vadd.f32 %v4399_v17, %v4390_v47  ;;  %v4402_v59 = vadd.f32 %v4401_v24, %v4392_v61 }
0x3365   :  { %v4407_v55 = vpop.permute.xlu1 %4406 }
0x3366   :  { %v4409_v62 = vmul.f32 %v4407_v55, %v9611_v49  ;;  %v4411_v52 = vmul.f32 %v4407_v55, %v9731_v15 }
0x3368   :  { %v4410_v35 = vadd.f32 %v4409_v62, %v4400_v29  ;;  %v4412_v37 = vadd.f32 %v4411_v52, %v4402_v59 }
0x3369   :  { %v4427_v50 = vpop.permute.xlu1 %4426 }
0x336a   :  { %v4420_v41 = vadd.f32 %v4419_v12, %v4410_v35  ;;  %v4422_v46 = vadd.f32 %v4421_v33, %v4412_v37  ;;  %v4429_v6 = vmul.f32 %v4427_v50, %v9660_v30  ;;  %v4431_v44 = vmul.f32 %v4427_v50, %v9701_v8 }
0x336c   :  { %v4430_v25 = vadd.f32 %v4429_v6, %v4420_v41  ;;  %v4432_v23 = vadd.f32 %v4431_v44, %v4422_v46 }
0x336e   :  { %v4442_v2 = vadd.f32 %v4441_v60, %v4432_v23  ;;  %v4440_v17 = vadd.f32 %v4439_v26, %v4430_v25 }
0x3370   :  { %4444 = vrot.lane.b32.xlu1 %v4442_v2, %s9085_s16  ;;  %4519 = vrot.lane.b32.xlu0 %v4440_v17, %s9085_s16 }
0x3371   :  { %v4292_v4 = vpop.f32.mrb[22].mxu0 }
0x3372   :  { %v7684_v32 = vpop.f32.mrb[23].mxu0 }
0x33e2   :  { %v4445_v24 = vpop.permute.xlu1 %4444  ;;  %v4520_v5 = vpop.permute.xlu0 %4519 }
0x33e3   :  { %7694 = vmatmul.mubr.msk.f32.vlgmr.msra.gmra.mrb[30].mxu1 %vm1419_vm2, %v4445_v24  ;;  %v10695_v24 = vld [vmem:[#allocation44_spill] sm:$0xff] }
0x33e4   :  { %8245 = vmatpush3.bf16.msra.mxu1 %v10090_v38  ;;  %7704 = vmatprep.mubr.msk.f32.mxu1 %vm9094_vm0, %v10693_v27 }
0x33e5   :  { %8246 = vmatprep.subr.bf16.mxu1 %v10694_v1 }
0x33e8   :  { %8248 = vmatpush3.bf16.msra.mxu1 %v10094_v34 }
0x33e9   :  { %8249 = vmatprep.subr.bf16.mxu1 %v10694_v1 }
0x33eb   :  { %7705 = vmatmul.mubr.msk.f32.vlgmr.msra.gmra.mrb[32].mxu1 %vm1419_vm2, %v4520_v5 }
0x33ec   :  { %8251 = vmatpush3.bf16.msra.mxu1 %v10100_v28  ;;  %7711 = vmatprep.mubr.msk.f32.mxu1 %vm9094_vm0, %v10693_v27 }
0x33ed   :  { %8252 = vmatprep.subr.bf16.mxu1 %v10694_v1 }
0x33ef   :  { %7712 = vmatmul.mubr.msk.f32.vlgmr.msra.gmra.mrb[34].mxu1 %vm268_vm1, %v4292_v4 }
0x33f0   :  { %8254 = vmatpush3.bf16.msra.mxu1 %v10113_v21  ;;  %7722 = vmatprep.mubr.msk.f32.mxu1 %vm9094_vm0, %v10693_v27 }
0x33f1   :  { %8255 = vmatprep.subr.bf16.mxu1 %v10694_v1 }
0x33f4   :  { %8257 = vmatpush3.bf16.msra.mxu1 %v10124_v22 }
0x33f5   :  { %8264 = vmatprep.subr.bf16.mxu1 %v10694_v1 }
0x33f7   :  { %7723 = vmatmul.mubr.msk.f32.vlgmr.msra.gmra.mrb[36].mxu1 %vm1419_vm2, %v10160_v58 }
0x33f8   :  { %8266 = vmatpush3.bf16.msra.mxu1 %v9939_v42  ;;  %7768 = vmatprep.mubr.msk.f32.mxu1 %vm9094_vm0, %v10693_v27 }
0x33f9   :  { %8267 = vmatprep.subr.bf16.mxu1 %v10694_v1 }
0x33fc   :  { %8269 = vmatpush3.bf16.msra.mxu1 %v9945_v45 }
0x33fd   :  { %8270 = vmatprep.subr.bf16.mxu1 %v10694_v1 }
0x3400   :  { %8272 = vmatpush3.bf16.msra.mxu1 %v9955_v48 }
0x3401   :  { %8273 = vmatprep.subr.bf16.mxu1 %v10694_v1 }
0x3404   :  { %8275 = vmatpush3.bf16.msra.mxu1 %v9965_v57 }
0x3405   :  { %8276 = vmatprep.subr.bf16.mxu1 %v10694_v1 }
0x3408   :  { %8278 = vmatpush3.bf16.msra.mxu1 %v9975_v18 }
0x3409   :  { %8279 = vmatprep.subr.bf16.mxu1 %v10694_v1 }
0x340c   :  { %8281 = vmatpush3.bf16.msra.mxu1 %v9985_v19 }
0x340d   :  { %8282 = vmatprep.subr.bf16.mxu1 %v10694_v1 }
0x3410   :  { %8284 = vmatpush3.bf16.msra.mxu1 %v9995_v7 }
0x3411   :  { %8285 = vmatprep.subr.bf16.mxu1 %v10694_v1 }
0x3414   :  { %8287 = vmatpush3.bf16.msra.mxu1 %v10005_v20 }
0x3415   :  { %8309 = vmatprep.subr.bf16.mxu1 %v10694_v1 }
0x34b6   :  { %v4514_v58 = vpop.f32.mrb[30].mxu1 }
0x34b7   :  { %v7695_v47 = vpop.f32.mrb[31].mxu1 }
0x34be   :  { %v4589_v61 = vpop.f32.mrb[32].mxu1 }
0x34bf   :  { %v4590_v55 = vadd.f32 %v4589_v61, %v4514_v58  ;;  %v7706_v29 = vpop.f32.mrb[33].mxu1 }
0x34c2   :  { %v4662_v59 = vpop.f32.mrb[34].mxu1 }
0x34c3   :  { %v4666_v62 = vadd.f32 %v4662_v59, %v4590_v55  ;;  %v7713_v52 = vpop.f32.mrb[35].mxu1  ;;  %v10698_v55 = vld [vmem:[#allocation36_spill] sm:$0xff] }
0x34ca   :  { %v4733_v12 = vpop.f32.mrb[36].mxu1 }
0x34cb   :  { %v4737_v33 = vadd.f32 %v4733_v12, %v4666_v62  ;;  %v7724_v35 = vpop.f32.mrb[37].mxu1  ;;  %v10699_v12 = vld [vmem:[#allocation46_spill] sm:$0xff] }
0x34cd   :  { %v4738_v37 = vadd.f32 %v10139_v10, %v4737_v33 }
0x34cf   :  { %8665 = vtanh.f32 %v4738_v37  ;;  %v6856_v50 = vmul.f32 -1.442695, %v4738_v37 }
0x34d1   :  { %8667 = vpow2.f32 %v6856_v50 }
0x34d9   :  { %v8666_v16 = vpop.eup %8665 }
0x34da   :  { %4748 = vrot.lane.b32.xlu1 %v8666_v16, %s9096_s29 }
0x34db   :  { %v8668_v41 = vpop.eup %8667 }
0x34dc   :  { %v4742_v46 = vadd.f32 1.0, %v8668_v41 }
0x34de   :  { %8669 = vrcp.f32 %v4742_v46 }
0x34e8   :  { %v8670_v6 = vpop.eup %8669 }
0x34e9   :  { %v4746_v26 = vmul.f32 %v8670_v6, %v10145_v63 }
0x354c   :  { %v4749_v44 = vpop.permute.xlu1 %4748 }
0x354d   :  { %v4751_v4 = vmul.f32 %v8670_v6, %v4749_v44 }
0x354f   :  { %4753 = vrot.lane.b32.xlu0 %v4751_v4, %s9085_s16 }
0x35c1   :  { %v4754_v60 = vpop.permute.xlu0 %4753 }
0x35c2   :  { %v10268_v25 = vadd.f32 %v4754_v60, %v4746_v26 }
0x35c4   :  { %8671 = vtanh.f32 %v10268_v25 }
0x35ce   :  { %v8672_v23 = vpop.eup %8671 }
0x35cf   :  { %4759 = vrot.lane.b32.xlu1 %v8672_v23, %s9096_s29 }
0x3641   :  { %v4760_v32 = vpop.permute.xlu1 %4759 }
0x3642   :  { %v4762_v2 = vmul.f32 %v8670_v6, %v4760_v32  ;;  %v10700_v32 = vld [vmem:[#allocation34_spill] sm:$0xff] }
0x3644   :  { %4764 = vrot.lane.b32.xlu0 %v4762_v2, %s9085_s16  ;;  %v4941_v33 = vmul.f32 %v4762_v2, %v10699_v12 }
0x36b6   :  { %v10273_v17 = vpop.permute.xlu0 %4764 }
0x36b7   :  { %7734 = vmatmul.mubr.msk.f32.vlgmr.msra.gmra.mrb[24].mxu0 %vm1419_vm2, %v10273_v17 }
0x36b8   :  { %8290 = vmatpush3.bf16.msra.mxu0 %v10076_v9  ;;  %7779 = vmatprep.mubr.msk.f32.mxu0 %vm9094_vm0, %v10693_v27 }
0x36b9   :  { %8291 = vmatprep.subr.bf16.mxu0 %v10694_v1 }
0x36bc   :  { %8293 = vmatpush3.bf16.msra.mxu0 %v10082_v14 }
0x36bd   :  { %8294 = vmatprep.subr.bf16.mxu0 %v10694_v1 }
0x378a   :  { %v4834_v63 = vpop.f32.mrb[24].mxu0 }
0x378b   :  { %v10284_v5 = vadd.f32 %v10695_v24, %v4834_v63  ;;  %v7735_v58 = vpop.f32.mrb[25].mxu0  ;;  %v10701_v63 = vld [vmem:[#allocation32_spill] sm:$0xff] }
0x378c   :  { %v10702_v58 = vld [vmem:[#allocation33_spill] sm:$0xff] }
0x378d   :  { %10696 = vst [vmem:[#allocation44_spill] sm:$0xff] %v10284_v5  ;;  %v4838_v47 = vsel %vm4192_vm5, %v10284_v5, -inf }
0x378e   :  { %4839 = vmax.xlane.f32.xlu1 %v4838_v47 }
0x381b   :  { %v10288_v61 = vpop.xlane.xlu1 %4839 }
0x381c   :  { %10697 = vst [vmem:[#allocation48_spill] sm:$0xff] %v10288_v61  ;;  %vm4851_vm9 = vcmp.eq.f32.partialorder %v10284_v5, %v10288_v61 }
0x381d   :  { %v4852_v29 = vsel %vm4851_vm9, %v10698_v55, 128 }
0x381e   :  { %v4853_v59 = vsel %vm4192_vm5, %v4852_v29, 2147483647  ;;  %v10703_v29 = vmov 1.0  }
0x381f   :  { %v4855_v62 = vshra.s32 %v4853_v59, 16  ;;  %v4854_v35 = vand.u32 65535, %v4853_v59 }
0x3821   :  { %v4857_v52 = vcvt.s32.f32 %v4855_v62  ;;  %v4856_v16 = vcvt.s32.f32 %v4854_v35  ;;  %v10705_v35 = vld [vmem:[#allocation42_spill] sm:$0xff] }
0x3823   :  { %4858 = vmin.xlane.f32.xlu0 %v4857_v52 }
0x3839   :  { %4943 = vrot.lane.b32.xlu0 %v4941_v33, %s9085_s16 }
0x38b0   :  { %v4859_v37 = vpop.xlane.xlu0 %4858 }
0x38b1   :  { %vm4860_vm10 = vcmp.eq.f32.partialorder %v4857_v52, %v4859_v37  ;;  %v4865_v6 = vcvt.f32.s32 %v4859_v37  ;;  %v10704_v52 = vld [vmem:[#allocation35_spill] sm:$0xff] }
0x38b2   :  { %v4861_v50 = vsel %vm4860_vm10, %v4856_v16, inf  ;;  %v10706_v16 = vld [vmem:[#allocation37_spill] sm:$0xff] }
0x38b3   :  { %4862 = vmin.xlane.f32.xlu1 %v4861_v50  ;;  %v4866_v4 = vshll.u32 %v4865_v6, 16  ;;  %v10707_v6 = vld [vmem:[#allocation38_spill] sm:$0xff] }
0x38b4   :  { %v4944_v41 = vpop.permute.xlu0 %4943 }
0x38b5   :  { %v4946_v46 = vsel %vm3361_vm3, %v4944_v41, 0.0 }
0x38b7   :  { %4947 = vadd.xlane.f32.xlu1 %v4946_v46 }
0x3940   :  { %v4863_v44 = vpop.xlane.xlu1 %4862 }
0x3941   :  { %v4864_v26 = vcvt.f32.s32 %v4863_v44 }
0x3943   :  { %v4867_v60 = vadd.s32 %v4866_v4, %v4864_v26  ;;  %v10708_v26 = vld [vmem:[#allocation43_spill] sm:$0xff] }
0x3944   :  { %v4948_v23 = vpop.xlane.xlu1 %4947 }
0x3945   :  { %vm4868_vm11 = vcmp.eq.s32.totalorder %v10698_v55, %v4867_v60  ;;  %v4949_v2 = vadd.f32 %v4948_v23, %v10700_v32  ;;  %v4951_v24 = vadd.f32 %v4948_v23, %v10701_v63  ;;  %v4953_v47 = vadd.f32 %v4948_v23, %v10702_v58 }
0x3946   :  { %7769 = vmatmul.mubr.msk.f32.vlgmr.msra.gmra.mrb[38].mxu1 %vm4868_vm11, %v10703_v29  ;;  %v4955_v33 = vadd.f32 %v4948_v23, %v10704_v52  ;;  %v4957_v50 = vadd.f32 %v4948_v23, %v10706_v16  ;;  %v4959_v44 = vadd.f32 %v4948_v23, %v10707_v6  ;;  %v4963_v14 = vadd.f32 %v4948_v23, %v10041_v51 }
0x3947   :  { %v4950_v59 = vmax.f32 %v4949_v2, 0.0  ;;  %v4952_v62 = vmax.f32 %v4951_v24, 0.0  ;;  %8311 = vmatpush3.bf16.msra.mxu1 %v10705_v35  ;;  %7819 = vmatprep.mubr.msk.f32.mxu1 %vm9094_vm0, %v10693_v27  ;;  %v4954_v37 = vmax.f32 %v4953_v47, 0.0  ;;  %v10709_v2 = vld [vmem:[#allocation39_spill] sm:$0xff] }
0x3948   :  { %8312 = vmatprep.subr.bf16.mxu1 %v10694_v1  ;;  %v4956_v46 = vmax.f32 %v4955_v33, 0.0  ;;  %v4958_v60 = vmax.f32 %v4957_v50, 0.0  ;;  %v4961_v24 = vadd.f32 %v4948_v23, %v10709_v2  ;;  %v4960_v61 = vmax.f32 %v4959_v44, 0.0 }
0x3949   :  { %v4965_v41 = vmax.f32 %v4950_v59, %v4952_v62  ;;  %v4964_v16 = vmax.f32 %v4963_v14, 0.0 }
0x394a   :  { %v4962_v47 = vmax.f32 %v4961_v24, 0.0 }
0x394b   :  { %v4966_v4 = vmax.f32 %v4965_v41, %v4954_v37  ;;  %8314 = vmatpush3.bf16.msra.mxu1 %v10708_v26 }
0x394c   :  { %8339 = vmatprep.subr.bf16.mxu1 %v10694_v1 }
0x394d   :  { %v4967_v5 = vmax.f32 %v4966_v4, %v4956_v46 }
0x394f   :  { %v4968_v9 = vmax.f32 %v4967_v5, %v4958_v60 }
0x3951   :  { %v4969_v52 = vmax.f32 %v4968_v9, %v4960_v61 }
0x3953   :  { %v4970_v58 = vmax.f32 %v4969_v52, %v4962_v47 }
0x3955   :  { %v4971_v33 = vmax.f32 %v4970_v58, %v4964_v16 }
0x3957   :  { %v4972_v63 = vsub.f32 %v4950_v59, %v4971_v33  ;;  %v4975_v6 = vsub.f32 %v4952_v62, %v4971_v33  ;;  %v4978_v32 = vsub.f32 %v4954_v37, %v4971_v33  ;;  %v4981_v26 = vsub.f32 %v4956_v46, %v4971_v33 }
0x3958   :  { %v4984_v29 = vsub.f32 %v4958_v60, %v4971_v33  ;;  %v4987_v4 = vsub.f32 %v4960_v61, %v4971_v33  ;;  %v4990_v5 = vsub.f32 %v4962_v47, %v4971_v33  ;;  %v4993_v14 = vsub.f32 %v4964_v16, %v4971_v33 }
0x3959   :  { %v4973_v41 = vmul.f32 1.442695, %v4972_v63  ;;  %v4976_v35 = vmul.f32 1.442695, %v4975_v6  ;;  %v4979_v50 = vmul.f32 1.442695, %v4978_v32 }
0x395a   :  { %v4982_v2 = vmul.f32 1.442695, %v4981_v26  ;;  %v4985_v23 = vmul.f32 1.442695, %v4984_v29  ;;  %v4988_v9 = vmul.f32 1.442695, %v4987_v4 }
0x395b   :  { %8673 = vpow2.f32 %v4973_v41  ;;  %v4991_v58 = vmul.f32 1.442695, %v4990_v5  ;;  %v4994_v63 = vmul.f32 1.442695, %v4993_v14 }
0x395c   :  { %8675 = vpow2.f32 %v4976_v35 }
0x395d   :  { %8677 = vpow2.f32 %v4979_v50 }
0x395e   :  { %8679 = vpow2.f32 %v4982_v2 }
0x395f   :  { %8681 = vpow2.f32 %v4985_v23 }
0x3960   :  { %8683 = vpow2.f32 %v4988_v9 }
0x3961   :  { %8685 = vpow2.f32 %v4991_v58 }
0x3962   :  { %8687 = vpow2.f32 %v4994_v63 }
0x3965   :  { %v8674_v59 = vpop.eup %8673 }
0x3966   :  { %v8676_v62 = vpop.eup %8675 }
0x3967   :  { %v4996_v52 = vadd.f32 %v8676_v62, %v8674_v59  ;;  %v8678_v37 = vpop.eup %8677 }
0x3968   :  { %v8680_v46 = vpop.eup %8679 }
0x3969   :  { %v4997_v32 = vadd.f32 %v8678_v37, %v4996_v52  ;;  %v8682_v35 = vpop.eup %8681 }
0x396a   :  { %v8684_v29 = vpop.eup %8683 }
0x396b   :  { %v4998_v61 = vadd.f32 %v8680_v46, %v4997_v32  ;;  %v8686_v26 = vpop.eup %8685 }
0x396c   :  { %v8688_v16 = vpop.eup %8687 }
0x396d   :  { %v4999_v6 = vadd.f32 %v8682_v35, %v4998_v61 }
0x396f   :  { %v5000_v44 = vadd.f32 %v8684_v29, %v4999_v6 }
0x3971   :  { %v5001_v60 = vadd.f32 %v8686_v26, %v5000_v44 }
0x3973   :  { %v5002_v2 = vadd.f32 %v8688_v16, %v5001_v60 }
0x3975   :  { %8689 = vrcp.f32 %v5002_v2 }
0x397f   :  { %v8690_v24 = vpop.eup %8689 }
0x3980   :  { %v5015_v47 = vmul.f32 %v8690_v24, %v8676_v62  ;;  %v5005_v33 = vmul.f32 %v8690_v24, %v8674_v59  ;;  %v5025_v41 = vmul.f32 %v8690_v24, %v8678_v37  ;;  %v5035_v50 = vmul.f32 %v8690_v24, %v8680_v46 }
0x3981   :  { %v5045_v4 = vmul.f32 %v8690_v24, %v8682_v35  ;;  %v5055_v23 = vmul.f32 %v8690_v24, %v8684_v29  ;;  %v5065_v5 = vmul.f32 %v8690_v24, %v8686_v26  ;;  %v5075_v9 = vmul.f32 %v8690_v24, %v8688_v16 }
0x3982   :  { %5018 = vperm.xlu0 %8492, %v5015_v47   ;;  %5008 = vperm.xlu1 %8491, %v5005_v33  }
0x3986   :  { %5028 = vperm.xlu0 %8492, %v5025_v41   ;;  %5038 = vperm.xlu1 %8491, %v5035_v50  }
0x398a   :  { %5048 = vperm.xlu0 %8492, %v5045_v4   ;;  %5058 = vperm.xlu1 %8491, %v5055_v23  }
0x398e   :  { %5068 = vperm.xlu0 %8492, %v5065_v5   ;;  %5078 = vperm.xlu1 %8491, %v5075_v9  }
0x3a01   :  { %v5019_v14 = vpop.permute.xlu0 %5018  ;;  %v5009_v58 = vpop.permute.xlu1 %5008 }
0x3a02   :  { %v5021_v63 = vmul.f32 %v5019_v14, %v9566_v56  ;;  %v5023_v59 = vmul.f32 %v5019_v14, %v9775_v0  ;;  %v5011_v62 = vmul.f32 %v5009_v58, %v9550_v39  ;;  %v5013_v52 = vmul.f32 %v5009_v58, %v9828_v54 }
0x3a04   :  { %v5022_v46 = vadd.f32 %v5021_v63, %v5011_v62  ;;  %v5024_v61 = vadd.f32 %v5023_v59, %v5013_v52 }
0x3a05   :  { %v5029_v37 = vpop.permute.xlu0 %5028  ;;  %v5039_v32 = vpop.permute.xlu1 %5038 }
0x3a06   :  { %v5031_v35 = vmul.f32 %v5029_v37, %v9581_v11  ;;  %v5033_v6 = vmul.f32 %v5029_v37, %v9761_v40  ;;  %v5041_v26 = vmul.f32 %v5039_v32, %v9596_v31  ;;  %v5043_v60 = vmul.f32 %v5039_v32, %v9746_v13 }
0x3a08   :  { %v5032_v29 = vadd.f32 %v5031_v35, %v5022_v46  ;;  %v5034_v44 = vadd.f32 %v5033_v6, %v5024_v61 }
0x3a09   :  { %v5049_v16 = vpop.permute.xlu0 %5048  ;;  %v5059_v2 = vpop.permute.xlu1 %5058 }
0x3a0a   :  { %v5042_v24 = vadd.f32 %v5041_v26, %v5032_v29  ;;  %v5044_v47 = vadd.f32 %v5043_v60, %v5034_v44  ;;  %v5051_v33 = vmul.f32 %v5049_v16, %v9611_v49  ;;  %v5053_v41 = vmul.f32 %v5049_v16, %v9731_v15 }
0x3a0b   :  { %v5061_v23 = vmul.f32 %v5059_v2, %v9626_v3  ;;  %v5063_v5 = vmul.f32 %v5059_v2, %v9716_v36 }
0x3a0c   :  { %v5052_v50 = vadd.f32 %v5051_v33, %v5042_v24  ;;  %v5054_v4 = vadd.f32 %v5053_v41, %v5044_v47 }
0x3a0d   :  { %v5069_v9 = vpop.permute.xlu0 %5068  ;;  %v5079_v14 = vpop.permute.xlu1 %5078 }
0x3a0e   :  { %v5062_v58 = vadd.f32 %v5061_v23, %v5052_v50  ;;  %v5064_v63 = vadd.f32 %v5063_v5, %v5054_v4  ;;  %v5071_v59 = vmul.f32 %v5069_v9, %v9660_v30  ;;  %v5073_v62 = vmul.f32 %v5069_v9, %v9701_v8 }
0x3a0f   :  { %v5081_v32 = vmul.f32 %v5079_v14, %v9809_v43  ;;  %v5083_v46 = vmul.f32 %v5079_v14, %v9686_v53 }
0x3a10   :  { %v5072_v52 = vadd.f32 %v5071_v59, %v5062_v58  ;;  %v5074_v37 = vadd.f32 %v5073_v62, %v5064_v63 }
0x3a12   :  { %v5082_v61 = vadd.f32 %v5081_v32, %v5072_v52  ;;  %v5084_v35 = vadd.f32 %v5083_v46, %v5074_v37 }
0x3a14   :  { %5086 = vrot.lane.b32.xlu0 %v5084_v35, %s9085_s16  ;;  %5161 = vrot.lane.b32.xlu1 %v5082_v61, %s9085_s16 }
0x3a19   :  { %v4937_v6 = vpop.f32.mrb[38].mxu1 }
0x3a1a   :  { %v7770_v29 = vpop.f32.mrb[39].mxu1 }
0x3a86   :  { %v5087_v44 = vpop.permute.xlu0 %5086  ;;  %v5162_v26 = vpop.permute.xlu1 %5161 }
0x3a87   :  { %7780 = vmatmul.mubr.msk.f32.vlgmr.msra.gmra.mrb[26].mxu0 %vm1419_vm2, %v5087_v44 }
0x3a88   :  { %8296 = vmatpush3.bf16.msra.mxu0 %v10090_v38  ;;  %7790 = vmatprep.mubr.msk.f32.mxu0 %vm9094_vm0, %v10693_v27 }
0x3a89   :  { %8297 = vmatprep.subr.bf16.mxu0 %v10694_v1 }
0x3a8c   :  { %8299 = vmatpush3.bf16.msra.mxu0 %v10094_v34 }
0x3a8d   :  { %8300 = vmatprep.subr.bf16.mxu0 %v10694_v1 }
0x3a8f   :  { %7791 = vmatmul.mubr.msk.f32.vlgmr.msra.gmra.mrb[28].mxu0 %vm1419_vm2, %v5162_v26 }
0x3a90   :  { %8302 = vmatpush3.bf16.msra.mxu0 %v10100_v28  ;;  %7797 = vmatprep.mubr.msk.f32.mxu0 %vm9094_vm0, %v10693_v27 }
0x3a91   :  { %8303 = vmatprep.subr.bf16.mxu0 %v10694_v1 }
0x3a93   :  { %7798 = vmatmul.mubr.msk.f32.vlgmr.msra.gmra.mrb[30].mxu0 %vm268_vm1, %v4937_v6 }
0x3a94   :  { %8305 = vmatpush3.bf16.msra.mxu0 %v10113_v21  ;;  %7808 = vmatprep.mubr.msk.f32.mxu0 %vm9094_vm0, %v10693_v27 }
0x3a95   :  { %8306 = vmatprep.subr.bf16.mxu0 %v10694_v1 }
0x3a98   :  { %8308 = vmatpush3.bf16.msra.mxu0 %v10124_v22 }
0x3a99   :  { %8315 = vmatprep.subr.bf16.mxu0 %v10694_v1 }
0x3a9b   :  { %7809 = vmatmul.mubr.msk.f32.vlgmr.msra.gmra.mrb[32].mxu0 %vm1419_vm2, %v10273_v17 }
0x3a9c   :  { %8317 = vmatpush3.bf16.msra.mxu0 %v9939_v42  ;;  %7854 = vmatprep.mubr.msk.f32.mxu0 %vm9094_vm0, %v10693_v27 }
0x3a9d   :  { %8318 = vmatprep.subr.bf16.mxu0 %v10694_v1 }
0x3aa0   :  { %8320 = vmatpush3.bf16.msra.mxu0 %v9945_v45 }
0x3aa1   :  { %8321 = vmatprep.subr.bf16.mxu0 %v10694_v1 }
0x3aa4   :  { %8323 = vmatpush3.bf16.msra.mxu0 %v9955_v48 }
0x3aa5   :  { %8324 = vmatprep.subr.bf16.mxu0 %v10694_v1 }
0x3aa8   :  { %8326 = vmatpush3.bf16.msra.mxu0 %v9965_v57 }
0x3aa9   :  { %8327 = vmatprep.subr.bf16.mxu0 %v10694_v1 }
0x3aac   :  { %8329 = vmatpush3.bf16.msra.mxu0 %v9975_v18 }
0x3aad   :  { %8330 = vmatprep.subr.bf16.mxu0 %v10694_v1 }
0x3ab0   :  { %8332 = vmatpush3.bf16.msra.mxu0 %v9985_v19 }
0x3ab1   :  { %8333 = vmatprep.subr.bf16.mxu0 %v10694_v1 }
0x3ab4   :  { %8335 = vmatpush3.bf16.msra.mxu0 %v9995_v7 }
0x3ab5   :  { %8336 = vmatprep.subr.bf16.mxu0 %v10694_v1 }
0x3ab8   :  { %8338 = vmatpush3.bf16.msra.mxu0 %v10005_v20 }
0x3ab9   :  { %8360 = vmatprep.subr.bf16.mxu0 %v10694_v1 }
0x3b5a   :  { %v5156_v17 = vpop.f32.mrb[26].mxu0 }
0x3b5b   :  { %v7781_v60 = vpop.f32.mrb[27].mxu0 }
0x3b5c   :  { %v10711_v60 = vld [vmem:[#allocation42_spill] sm:$0xff] }
0x3b62   :  { %v5231_v16 = vpop.f32.mrb[28].mxu0 }
0x3b63   :  { %v5232_v2 = vadd.f32 %v5231_v16, %v5156_v17  ;;  %v7792_v24 = vpop.f32.mrb[29].mxu0  ;;  %v10710_v17 = vmov 1.0   ;;  %v10712_v16 = vld [vmem:[#allocation43_spill] sm:$0xff] }
0x3b64   :  { %v10713_v24 = vld [vmem:[#allocation34_spill] sm:$0xff] }
0x3b66   :  { %v5304_v47 = vpop.f32.mrb[30].mxu0 }
0x3b67   :  { %v5308_v33 = vadd.f32 %v5304_v47, %v5232_v2  ;;  %v7799_v41 = vpop.f32.mrb[31].mxu0 }
0x3b6e   :  { %v5375_v50 = vpop.f32.mrb[32].mxu0 }
0x3b6f   :  { %v5379_v4 = vadd.f32 %v5375_v50, %v5308_v33  ;;  %v7810_v23 = vpop.f32.mrb[33].mxu0  ;;  %v10714_v33 = vld [vmem:[#allocation32_spill] sm:$0xff]  ;;  %v10715_v50 = vld [vmem:[#allocation33_spill] sm:$0xff] }
0x3b71   :  { %v5380_v5 = vadd.f32 %v10139_v10, %v5379_v4 }
0x3b73   :  { %8691 = vtanh.f32 %v5380_v5  ;;  %v6864_v14 = vmul.f32 -1.442695, %v5380_v5 }
0x3b75   :  { %8693 = vpow2.f32 %v6864_v14 }
0x3b7d   :  { %v8692_v9 = vpop.eup %8691 }
0x3b7e   :  { %5390 = vrot.lane.b32.xlu0 %v8692_v9, %s9096_s29  ;;  %v10716_v9 = vld [vmem:[#allocation35_spill] sm:$0xff] }
0x3b7f   :  { %v8694_v58 = vpop.eup %8693 }
0x3b80   :  { %v5384_v63 = vadd.f32 1.0, %v8694_v58 }
0x3b82   :  { %8695 = vrcp.f32 %v5384_v63  ;;  %v10717_v63 = vld [vmem:[#allocation37_spill] sm:$0xff] }
0x3b8c   :  { %v8696_v59 = vpop.eup %8695 }
0x3b8d   :  { %v5388_v37 = vmul.f32 %v8696_v59, %v10268_v25  ;;  %v6866_v25 = vld [vmem:[%s10675_s15 + $0x6] sm:$0x3] }
0x3bf0   :  { %v5391_v62 = vpop.permute.xlu0 %5390 }
0x3bf1   :  { %v5393_v52 = vmul.f32 %v8696_v59, %v5391_v62 }
0x3bf3   :  { %5395 = vrot.lane.b32.xlu1 %v5393_v52, %s9085_s16 }
0x3c65   :  { %v5396_v32 = vpop.permute.xlu1 %5395 }
0x3c66   :  { %v10374_v46 = vadd.f32 %v5396_v32, %v5388_v37  ;;  %v10718_v37 = vld [vmem:[#allocation38_spill] sm:$0xff] }
0x3c68   :  { %8697 = vtanh.f32 %v10374_v46 }
0x3c72   :  { %v8698_v10 = vpop.eup %8697 }
0x3c73   :  { %5401 = vrot.lane.b32.xlu0 %v8698_v10, %s9096_s29 }
0x3ce5   :  { %v5402_v61 = vpop.permute.xlu0 %5401 }
0x3ce6   :  { %v10378_v35 = vmul.f32 %v8696_v59, %v5402_v61 }
0x3ce8   :  { %v5571_v6 = vmul.f32 %v10378_v35, %v10699_v12 }
0x3cea   :  { %5573 = vrot.lane.b32.xlu1 %v5571_v6, %s9085_s16  ;;  %v10719_v6 = vld [vmem:[#allocation39_spill] sm:$0xff] }
0x3cee   :  { %5496 = vperm.xlu1 %8491, %v6866_v25  }
0x3d5c   :  { %v5574_v29 = vpop.permute.xlu1 %5573 }
0x3d5d   :  { %v5576_v44 = vsel %vm3361_vm3, %v5574_v29, 0.0 }
0x3d5e   :  { %5577 = vadd.xlane.f32.xlu0 %v5576_v44 }
0x3d6d   :  { %v5497_v26 = vpop.permute.xlu1 %5496 }
0x3d6e   :  { %vm5498_vm12 = vcmp.eq.s32.totalorder %v10698_v55, %v5497_v26 }
0x3d6f   :  { %7855 = vmatmul.mubr.msk.f32.vlgmr.msra.gmra.mrb[34].mxu0 %vm5498_vm12, %v10710_v17 }
0x3d70   :  { %8362 = vmatpush3.bf16.msra.mxu0 %v10711_v60  ;;  %7905 = vmatprep.mubr.msk.f32.mxu0 %vm9094_vm0, %v10693_v27 }
0x3d71   :  { %8363 = vmatprep.subr.bf16.mxu0 %v10694_v1 }
0x3d74   :  { %8365 = vmatpush3.bf16.msra.mxu0 %v10712_v16 }
0x3d75   :  { %8390 = vmatprep.subr.bf16.mxu0 %v10694_v1 }
0x3deb   :  { %v5578_v2 = vpop.xlane.xlu0 %5577 }
0x3dec   :  { %v5579_v47 = vadd.f32 %v5578_v2, %v10713_v24  ;;  %v5581_v41 = vadd.f32 %v5578_v2, %v10714_v33  ;;  %v5583_v4 = vadd.f32 %v5578_v2, %v10715_v50  ;;  %v5585_v14 = vadd.f32 %v5578_v2, %v10716_v9 }
0x3ded   :  { %v5587_v59 = vadd.f32 %v5578_v2, %v10717_v63  ;;  %v5589_v32 = vadd.f32 %v5578_v2, %v10718_v37  ;;  %v5591_v25 = vadd.f32 %v5578_v2, %v10719_v6  ;;  %v5593_v26 = vadd.f32 %v5578_v2, %v10041_v51 }
0x3dee   :  { %v5580_v23 = vmax.f32 %v5579_v47, 0.0  ;;  %v5582_v5 = vmax.f32 %v5581_v41, 0.0  ;;  %v5584_v58 = vmax.f32 %v5583_v4, 0.0  ;;  %v5586_v52 = vmax.f32 %v5585_v14, 0.0 }
0x3def   :  { %v5588_v61 = vmax.f32 %v5587_v59, 0.0  ;;  %v5590_v44 = vmax.f32 %v5589_v32, 0.0  ;;  %v5592_v47 = vmax.f32 %v5591_v25, 0.0  ;;  %v5594_v33 = vmax.f32 %v5593_v26, 0.0 }
0x3df0   :  { %v5595_v62 = vmax.f32 %v5580_v23, %v5582_v5 }
0x3df2   :  { %v5596_v10 = vmax.f32 %v5595_v62, %v5584_v58 }
0x3df4   :  { %v5597_v29 = vmax.f32 %v5596_v10, %v5586_v52 }
0x3df6   :  { %v5598_v50 = vmax.f32 %v5597_v29, %v5588_v61 }
0x3df8   :  { %v5599_v41 = vmax.f32 %v5598_v50, %v5590_v44 }
0x3dfa   :  { %v5600_v9 = vmax.f32 %v5599_v41, %v5592_v47 }
0x3dfc   :  { %v5601_v4 = vmax.f32 %v5600_v9, %v5594_v33 }
0x3dfe   :  { %v5602_v24 = vsub.f32 %v5580_v23, %v5601_v4  ;;  %v5605_v63 = vsub.f32 %v5582_v5, %v5601_v4  ;;  %v5608_v16 = vsub.f32 %v5584_v58, %v5601_v4  ;;  %v5611_v14 = vsub.f32 %v5586_v52, %v5601_v4 }
0x3dff   :  { %v5614_v59 = vsub.f32 %v5588_v61, %v5601_v4  ;;  %v5617_v32 = vsub.f32 %v5590_v44, %v5601_v4  ;;  %v5620_v29 = vsub.f32 %v5592_v47, %v5601_v4  ;;  %v5623_v25 = vsub.f32 %v5594_v33, %v5601_v4 }
0x3e00   :  { %v5603_v60 = vmul.f32 1.442695, %v5602_v24  ;;  %v5606_v37 = vmul.f32 1.442695, %v5605_v63  ;;  %v5609_v62 = vmul.f32 1.442695, %v5608_v16 }
0x3e01   :  { %v5612_v10 = vmul.f32 1.442695, %v5611_v14  ;;  %v5615_v2 = vmul.f32 1.442695, %v5614_v59  ;;  %v5618_v50 = vmul.f32 1.442695, %v5617_v32 }
0x3e02   :  { %8699 = vpow2.f32 %v5603_v60  ;;  %v5621_v9 = vmul.f32 1.442695, %v5620_v29  ;;  %v5624_v23 = vmul.f32 1.442695, %v5623_v25 }
0x3e03   :  { %8701 = vpow2.f32 %v5606_v37 }
0x3e04   :  { %8703 = vpow2.f32 %v5609_v62 }
0x3e05   :  { %8705 = vpow2.f32 %v5612_v10 }
0x3e06   :  { %8707 = vpow2.f32 %v5615_v2 }
0x3e07   :  { %8709 = vpow2.f32 %v5618_v50 }
0x3e08   :  { %8711 = vpow2.f32 %v5621_v9 }
0x3e09   :  { %8713 = vpow2.f32 %v5624_v23 }
0x3e0c   :  { %v8700_v5 = vpop.eup %8699 }
0x3e0d   :  { %v8702_v58 = vpop.eup %8701 }
0x3e0e   :  { %v5626_v24 = vadd.f32 %v8702_v58, %v8700_v5  ;;  %v8704_v16 = vpop.eup %8703 }
0x3e0f   :  { %v8706_v63 = vpop.eup %8705 }
0x3e10   :  { %v5627_v60 = vadd.f32 %v8704_v16, %v5626_v24  ;;  %v8708_v37 = vpop.eup %8707 }
0x3e11   :  { %v8710_v44 = vpop.eup %8709 }
0x3e12   :  { %v5628_v52 = vadd.f32 %v8706_v63, %v5627_v60  ;;  %v8712_v47 = vpop.eup %8711 }
0x3e13   :  { %v8714_v33 = vpop.eup %8713 }
0x3e14   :  { %v5629_v61 = vadd.f32 %v8708_v37, %v5628_v52 }
0x3e16   :  { %v5630_v26 = vadd.f32 %v8710_v44, %v5629_v61 }
0x3e18   :  { %v5631_v41 = vadd.f32 %v8712_v47, %v5630_v26 }
0x3e1a   :  { %v5632_v4 = vadd.f32 %v8714_v33, %v5631_v41 }
0x3e1c   :  { %8715 = vrcp.f32 %v5632_v4 }
0x3e26   :  { %v8716_v14 = vpop.eup %8715 }
0x3e27   :  { %v5705_v62 = vmul.f32 %v8716_v14, %v8714_v33  ;;  %v5635_v59 = vmul.f32 %v8716_v14, %v8700_v5  ;;  %v5645_v10 = vmul.f32 %v8716_v14, %v8702_v58  ;;  %v5655_v32 = vmul.f32 %v8716_v14, %v8704_v16 }
0x3e28   :  { %v5665_v2 = vmul.f32 %v8716_v14, %v8706_v63  ;;  %v5675_v29 = vmul.f32 %v8716_v14, %v8708_v37  ;;  %v5685_v50 = vmul.f32 %v8716_v14, %v8710_v44  ;;  %v5695_v25 = vmul.f32 %v8716_v14, %v8712_v47 }
0x3e29   :  { %5708 = vperm.xlu0 %8492, %v5705_v62   ;;  %5638 = vperm.xlu1 %8491, %v5635_v59  }
0x3e2d   :  { %5648 = vperm.xlu1 %8491, %v5645_v10  }
0x3e31   :  { %5658 = vperm.xlu1 %8491, %v5655_v32  }
0x3e35   :  { %5668 = vperm.xlu1 %8491, %v5665_v2  }
0x3e39   :  { %5678 = vperm.xlu1 %8491, %v5675_v29  }
0x3e3d   :  { %5688 = vperm.xlu1 %8491, %v5685_v50  }
0x3e41   :  { %5698 = vperm.xlu1 %8491, %v5695_v25  }
0x3e42   :  { %v5567_v9 = vpop.f32.mrb[34].mxu0 }
0x3e43   :  { %v7856_v23 = vpop.f32.mrb[35].mxu0 }
0x3e45   :  { %5406 = vrot.lane.b32.xlu1 %v10378_v35, %s9085_s16 }
0x3ea8   :  { %v5639_v5 = vpop.permute.xlu1 %5638  ;;  %v5709_v23 = vpop.permute.xlu0 %5708 }
0x3ea9   :  { %v5643_v63 = vmul.f32 %v5639_v5, %v9828_v54  ;;  %v5641_v44 = vmul.f32 %v5639_v5, %v9550_v39 }
0x3eac   :  { %v5649_v24 = vpop.permute.xlu1 %5648 }
0x3ead   :  { %v5653_v16 = vmul.f32 %v5649_v24, %v9775_v0  ;;  %v5651_v52 = vmul.f32 %v5649_v24, %v9566_v56 }
0x3eaf   :  { %v5654_v26 = vadd.f32 %v5653_v16, %v5643_v63  ;;  %v5652_v41 = vadd.f32 %v5651_v52, %v5641_v44  ;;  %v5713_v63 = vmul.f32 %v5709_v23, %v9686_v53 }
0x3eb0   :  { %v5659_v60 = vpop.permute.xlu1 %5658 }
0x3eb1   :  { %v5663_v37 = vmul.f32 %v5659_v60, %v9761_v40  ;;  %v5661_v47 = vmul.f32 %v5659_v60, %v9581_v11 }
0x3eb3   :  { %v5664_v33 = vadd.f32 %v5663_v37, %v5654_v26  ;;  %v5662_v59 = vadd.f32 %v5661_v47, %v5652_v41  ;;  %v10720_v47 = vld [vmem:[#allocation40_spill] sm:$0xff] }
0x3eb4   :  { %v5669_v58 = vpop.permute.xlu1 %5668 }
0x3eb5   :  { %v5673_v35 = vmul.f32 %v5669_v58, %v9746_v13  ;;  %v5671_v4 = vmul.f32 %v5669_v58, %v9596_v31 }
0x3eb7   :  { %v5674_v10 = vadd.f32 %v5673_v35, %v5664_v33  ;;  %v5672_v29 = vadd.f32 %v5671_v4, %v5662_v59  ;;  %v5711_v35 = vmul.f32 %v5709_v23, %v9809_v43  ;;  %v10721_v33 = vld [vmem:[#allocation41_spill] sm:$0xff] }
0x3eb8   :  { %v5679_v61 = vpop.permute.xlu1 %5678 }
0x3eb9   :  { %v5683_v14 = vmul.f32 %v5679_v61, %v9731_v15  ;;  %v5681_v32 = vmul.f32 %v5679_v61, %v9611_v49 }
0x3ebb   :  { %v5684_v50 = vadd.f32 %v5683_v14, %v5674_v10  ;;  %v5682_v24 = vadd.f32 %v5681_v32, %v5672_v29 }
0x3ebc   :  { %v5689_v62 = vpop.permute.xlu1 %5688 }
0x3ebd   :  { %v5693_v2 = vmul.f32 %v5689_v62, %v9716_v36  ;;  %v5691_v25 = vmul.f32 %v5689_v62, %v9626_v3 }
0x3ebf   :  { %v5694_v60 = vadd.f32 %v5693_v2, %v5684_v50  ;;  %v5692_v52 = vadd.f32 %v5691_v25, %v5682_v24 }
0x3ec0   :  { %v5699_v5 = vpop.permute.xlu1 %5698 }
0x3ec1   :  { %v5701_v16 = vmul.f32 %v5699_v5, %v9660_v30  ;;  %v5703_v58 = vmul.f32 %v5699_v5, %v9701_v8 }
0x3ec3   :  { %v5704_v37 = vadd.f32 %v5703_v58, %v5694_v60  ;;  %v5702_v61 = vadd.f32 %v5701_v16, %v5692_v52 }
0x3ec4   :  { %v5407_v44 = vpop.permute.xlu1 %5406 }
0x3ec5   :  { %7820 = vmatmul.mubr.msk.f32.vlgmr.msra.gmra.mrb[40].mxu1 %vm1419_vm2, %v5407_v44  ;;  %v5714_v26 = vadd.f32 %v5713_v63, %v5704_v37  ;;  %v5712_v41 = vadd.f32 %v5711_v35, %v5702_v61 }
0x3ec6   :  { %8341 = vmatpush3.bf16.msra.mxu1 %v10720_v47  ;;  %7865 = vmatprep.mubr.msk.f32.mxu1 %vm9094_vm0, %v10693_v27 }
0x3ec7   :  { %5716 = vrot.lane.b32.xlu1 %v5714_v26, %s9085_s16  ;;  %8342 = vmatprep.subr.bf16.mxu1 %v10694_v1 }
0x3eca   :  { %8344 = vmatpush3.bf16.msra.mxu1 %v10721_v33 }
0x3ecb   :  { %5791 = vrot.lane.b32.xlu1 %v5712_v41, %s9085_s16  ;;  %8345 = vmatprep.subr.bf16.mxu1 %v10694_v1 }
0x3f39   :  { %v5717_v4 = vpop.permute.xlu1 %5716 }
0x3f3a   :  { %7866 = vmatmul.mubr.msk.f32.vlgmr.msra.gmra.mrb[42].mxu1 %vm1419_vm2, %v5717_v4 }
0x3f3b   :  { %8347 = vmatpush3.bf16.msra.mxu1 %v10090_v38  ;;  %7876 = vmatprep.mubr.msk.f32.mxu1 %vm9094_vm0, %v10693_v27 }
0x3f3c   :  { %8348 = vmatprep.subr.bf16.mxu1 %v10694_v1 }
0x3f3d   :  { %v5792_v14 = vpop.permute.xlu1 %5791 }
0x3f3f   :  { %8350 = vmatpush3.bf16.msra.mxu1 %v10094_v34 }
0x3f40   :  { %8351 = vmatprep.subr.bf16.mxu1 %v10694_v1 }
0x3f42   :  { %7877 = vmatmul.mubr.msk.f32.vlgmr.msra.gmra.mrb[44].mxu1 %vm1419_vm2, %v5792_v14  ;;  %v10722_v14 = vld [vmem:[#allocation42_spill] sm:$0xff] }
0x3f43   :  { %8353 = vmatpush3.bf16.msra.mxu1 %v10100_v28  ;;  %7883 = vmatprep.mubr.msk.f32.mxu1 %vm9094_vm0, %v10693_v27 }
0x3f44   :  { %8354 = vmatprep.subr.bf16.mxu1 %v10694_v1 }
0x3f46   :  { %7884 = vmatmul.mubr.msk.f32.vlgmr.msra.gmra.mrb[46].mxu1 %vm268_vm1, %v5567_v9 }
0x3f47   :  { %8356 = vmatpush3.bf16.msra.mxu1 %v10113_v21  ;;  %7894 = vmatprep.mubr.msk.f32.mxu1 %vm9094_vm0, %v10693_v27 }
0x3f48   :  { %8357 = vmatprep.subr.bf16.mxu1 %v10694_v1 }
0x3f4b   :  { %8359 = vmatpush3.bf16.msra.mxu1 %v10124_v22 }
0x3f4c   :  { %8366 = vmatprep.subr.bf16.mxu1 %v10694_v1 }
0x3f4e   :  { %7895 = vmatmul.mubr.msk.f32.vlgmr.msra.gmra.mrb[48].mxu1 %vm1419_vm2, %v5407_v44 }
0x3f4f   :  { %8368 = vmatpush3.bf16.msra.mxu1 %v9939_v42  ;;  %7940 = vmatprep.mubr.msk.f32.mxu1 %vm9094_vm0, %v10693_v27 }
0x3f50   :  { %8369 = vmatprep.subr.bf16.mxu1 %v10694_v1 }
0x3f53   :  { %8371 = vmatpush3.bf16.msra.mxu1 %v9945_v45 }
0x3f54   :  { %8372 = vmatprep.subr.bf16.mxu1 %v10694_v1 }
0x3f57   :  { %8374 = vmatpush3.bf16.msra.mxu1 %v9955_v48 }
0x3f58   :  { %8375 = vmatprep.subr.bf16.mxu1 %v10694_v1 }
0x3f5b   :  { %8377 = vmatpush3.bf16.msra.mxu1 %v9965_v57 }
0x3f5c   :  { %8378 = vmatprep.subr.bf16.mxu1 %v10694_v1 }
0x3f5f   :  { %8380 = vmatpush3.bf16.msra.mxu1 %v9975_v18 }
0x3f60   :  { %8381 = vmatprep.subr.bf16.mxu1 %v10694_v1 }
0x3f63   :  { %8383 = vmatpush3.bf16.msra.mxu1 %v9985_v19 }
0x3f64   :  { %8384 = vmatprep.subr.bf16.mxu1 %v10694_v1 }
0x3f67   :  { %8386 = vmatpush3.bf16.msra.mxu1 %v9995_v7 }
0x3f68   :  { %8387 = vmatprep.subr.bf16.mxu1 %v10694_v1 }
0x3f6b   :  { %8389 = vmatpush3.bf16.msra.mxu1 %v10005_v20  ;;  %v10473_v20 = vld [vmem:[%s10610_s19] ss:$0 sm:$0xff] }
0x3f6c   :  { %8411 = vmatprep.subr.bf16.mxu1 %v10694_v1 }
0x3f98   :  { %v10468_v42 = vpop.f32.mrb[40].mxu1 }
0x3f99   :  { %v7821_v45 = vpop.f32.mrb[41].mxu1 }
0x400d   :  { %v5786_v48 = vpop.f32.mrb[42].mxu1 }
0x400e   :  { %v7867_v57 = vpop.f32.mrb[43].mxu1 }
0x4015   :  { %v5861_v18 = vpop.f32.mrb[44].mxu1 }
0x4016   :  { %v5862_v9 = vadd.f32 %v5861_v18, %v5786_v48  ;;  %v7878_v62 = vpop.f32.mrb[45].mxu1  ;;  %v10724_v48 = vld [vmem:[#allocation34_spill] sm:$0xff]  ;;  %v10725_v18 = vld [vmem:[#allocation32_spill] sm:$0xff] }
0x4017   :  { %v10726_v62 = vld [vmem:[#allocation33_spill] sm:$0xff] }
0x4019   :  { %v5934_v59 = vpop.f32.mrb[46].mxu1 }
0x401a   :  { %v5938_v19 = vadd.f32 %v5934_v59, %v5862_v9  ;;  %v7885_v10 = vpop.f32.mrb[47].mxu1 }
0x401b   :  { %v10727_v10 = vld [vmem:[#allocation35_spill] sm:$0xff] }
0x4021   :  { %v6005_v32 = vpop.f32.mrb[48].mxu1 }
0x4022   :  { %v6009_v2 = vadd.f32 %v6005_v32, %v5938_v19  ;;  %v7896_v7 = vpop.f32.mrb[49].mxu1 }
0x4024   :  { %v6010_v29 = vadd.f32 %v10473_v20, %v6009_v2  ;;  %v10728_v2 = vld [vmem:[#allocation37_spill] sm:$0xff] }
0x4026   :  { %8717 = vtanh.f32 %v6010_v29  ;;  %v6873_v25 = vmul.f32 -1.442695, %v6010_v29 }
0x4028   :  { %8719 = vpow2.f32 %v6873_v25  ;;  %v10729_v25 = vld [vmem:[#allocation38_spill] sm:$0xff] }
0x4030   :  { %v8718_v50 = vpop.eup %8717 }
0x4031   :  { %6020 = vrot.lane.b32.xlu1 %v8718_v50, %s9096_s29 }
0x4032   :  { %v8720_v23 = vpop.eup %8719 }
0x4033   :  { %v6014_v5 = vadd.f32 1.0, %v8720_v23 }
0x4035   :  { %8721 = vrcp.f32 %v6014_v5 }
0x403f   :  { %v8722_v24 = vpop.eup %8721 }
0x4040   :  { %v6018_v58 = vmul.f32 %v8722_v24, %v10374_v46  ;;  %v6875_v46 = vld [vmem:[%s10675_s15 + $0x8] sm:$0x3] }
0x40a3   :  { %v6021_v60 = vpop.permute.xlu1 %6020 }
0x40a4   :  { %v6023_v16 = vmul.f32 %v8722_v24, %v6021_v60 }
0x40a6   :  { %6025 = vrot.lane.b32.xlu1 %v6023_v16, %s9085_s16 }
0x4118   :  { %v6026_v63 = vpop.permute.xlu1 %6025 }
0x4119   :  { %v10479_v52 = vadd.f32 %v6026_v63, %v6018_v58 }
0x411b   :  { %8723 = vtanh.f32 %v10479_v52 }
0x4125   :  { %v8724_v37 = vpop.eup %8723 }
0x4126   :  { %6031 = vrot.lane.b32.xlu0 %v8724_v37, %s9096_s29 }
0x4198   :  { %v6032_v44 = vpop.permute.xlu0 %6031 }
0x4199   :  { %v10483_v61 = vmul.f32 %v8722_v24, %v6032_v44 }
0x419b   :  { %v6201_v26 = vmul.f32 %v10483_v61, %v10699_v12  ;;  %v10723_v12 = vld [vmem:[#allocation43_spill] sm:$0xff] }
0x419d   :  { %6203 = vrot.lane.b32.xlu1 %v6201_v26, %s9085_s16 }
0x41a1   :  { %6126 = vperm.xlu1 %8491, %v6875_v46  }
0x420f   :  { %v6204_v35 = vpop.permute.xlu1 %6203 }
0x4210   :  { %v6206_v41 = vsel %vm3361_vm3, %v6204_v35, 0.0 }
0x4211   :  { %6207 = vadd.xlane.f32.xlu0 %v6206_v41 }
0x4220   :  { %v6127_v4 = vpop.permute.xlu1 %6126 }
0x4221   :  { %vm6128_vm13 = vcmp.eq.s32.totalorder %v10698_v55, %v6127_v4 }
0x4222   :  { %7941 = vmatmul.mubr.msk.f32.vlgmr.msra.gmra.mrb[50].mxu1 %vm6128_vm13, %v10710_v17 }
0x4223   :  { %8413 = vmatpush3.bf16.msra.mxu1 %v10722_v14  ;;  %7991 = vmatprep.mubr.msk.f32.mxu1 %vm9094_vm0, %v10693_v27 }
0x4224   :  { %8414 = vmatprep.subr.bf16.mxu1 %v10694_v1 }
0x4227   :  { %8416 = vmatpush3.bf16.msra.mxu1 %v10723_v12 }
0x429e   :  { %v6208_v45 = vpop.xlane.xlu0 %6207 }
0x429f   :  { %v6209_v57 = vadd.f32 %v6208_v45, %v10724_v48  ;;  %v6211_v9 = vadd.f32 %v6208_v45, %v10725_v18  ;;  %v6213_v59 = vadd.f32 %v6208_v45, %v10726_v62  ;;  %v6215_v17 = vadd.f32 %v6208_v45, %v10727_v10 }
0x42a0   :  { %v6217_v7 = vadd.f32 %v6208_v45, %v10728_v2  ;;  %v6219_v23 = vadd.f32 %v6208_v45, %v10729_v25  ;;  %v6221_v60 = vadd.f32 %v6208_v45, %v10719_v6  ;;  %v6223_v63 = vadd.f32 %v6208_v45, %v10041_v51 }
0x42a1   :  { %v6210_v19 = vmax.f32 %v6209_v57, 0.0  ;;  %v6212_v55 = vmax.f32 %v6211_v9, 0.0  ;;  %v6214_v32 = vmax.f32 %v6213_v59, 0.0  ;;  %v6216_v50 = vmax.f32 %v6215_v17, 0.0 }
0x42a2   :  { %v6218_v24 = vmax.f32 %v6217_v7, 0.0  ;;  %v6220_v58 = vmax.f32 %v6219_v23, 0.0  ;;  %v6222_v44 = vmax.f32 %v6221_v60, 0.0  ;;  %v6224_v46 = vmax.f32 %v6223_v63, 0.0 }
0x42a3   :  { %v6225_v29 = vmax.f32 %v6210_v19, %v6212_v55 }
0x42a5   :  { %v6226_v5 = vmax.f32 %v6225_v29, %v6214_v32 }
0x42a7   :  { %v6227_v16 = vmax.f32 %v6226_v5, %v6216_v50 }
0x42a9   :  { %v6228_v37 = vmax.f32 %v6227_v16, %v6218_v24 }
0x42ab   :  { %v6229_v26 = vmax.f32 %v6228_v37, %v6220_v58 }
0x42ad   :  { %v6230_v35 = vmax.f32 %v6229_v26, %v6222_v44 }
0x42af   :  { %v6231_v41 = vmax.f32 %v6230_v35, %v6224_v46 }
0x42b1   :  { %v6232_v4 = vsub.f32 %v6210_v19, %v6231_v41  ;;  %v6235_v14 = vsub.f32 %v6212_v55, %v6231_v41  ;;  %v6238_v12 = vsub.f32 %v6214_v32, %v6231_v41  ;;  %v6241_v48 = vsub.f32 %v6216_v50, %v6231_v41 }
0x42b2   :  { %v6244_v62 = vsub.f32 %v6218_v24, %v6231_v41  ;;  %v6247_v59 = vsub.f32 %v6220_v58, %v6231_v41  ;;  %v6250_v45 = vsub.f32 %v6222_v44, %v6231_v41  ;;  %v6253_v17 = vsub.f32 %v6224_v46, %v6231_v41 }
0x42b3   :  { %v6233_v57 = vmul.f32 1.442695, %v6232_v4  ;;  %v6236_v18 = vmul.f32 1.442695, %v6235_v14  ;;  %v6239_v9 = vmul.f32 1.442695, %v6238_v12 }
0x42b4   :  { %v6242_v6 = vmul.f32 1.442695, %v6241_v48  ;;  %v6245_v51 = vmul.f32 1.442695, %v6244_v62  ;;  %v6248_v10 = vmul.f32 1.442695, %v6247_v59 }
0x42b5   :  { %8725 = vpow2.f32 %v6233_v57  ;;  %v6251_v2 = vmul.f32 1.442695, %v6250_v45  ;;  %v6254_v19 = vmul.f32 1.442695, %v6253_v17 }
0x42b6   :  { %8727 = vpow2.f32 %v6236_v18 }
0x42b7   :  { %8729 = vpow2.f32 %v6239_v9 }
0x42b8   :  { %8731 = vpow2.f32 %v6242_v6 }
0x42b9   :  { %8733 = vpow2.f32 %v6245_v51 }
0x42ba   :  { %8735 = vpow2.f32 %v6248_v10 }
0x42bb   :  { %8737 = vpow2.f32 %v6251_v2 }
0x42bc   :  { %8739 = vpow2.f32 %v6254_v19 }
0x42bf   :  { %v8726_v55 = vpop.eup %8725 }
0x42c0   :  { %v8728_v32 = vpop.eup %8727 }
0x42c1   :  { %v6256_v7 = vadd.f32 %v8728_v32, %v8726_v55  ;;  %v8730_v29 = vpop.eup %8729 }
0x42c2   :  { %v8732_v25 = vpop.eup %8731 }
0x42c3   :  { %v6257_v50 = vadd.f32 %v8730_v29, %v6256_v7  ;;  %v8734_v5 = vpop.eup %8733 }
0x42c4   :  { %v8736_v60 = vpop.eup %8735 }
0x42c5   :  { %v6258_v23 = vadd.f32 %v8732_v25, %v6257_v50  ;;  %v8738_v58 = vpop.eup %8737 }
0x42c6   :  { %v8740_v37 = vpop.eup %8739 }
0x42c7   :  { %v6259_v24 = vadd.f32 %v8734_v5, %v6258_v23 }
0x42c9   :  { %v6260_v16 = vadd.f32 %v8736_v60, %v6259_v24 }
0x42cb   :  { %v6261_v63 = vadd.f32 %v8738_v58, %v6260_v16 }
0x42cd   :  { %v6262_v44 = vadd.f32 %v8740_v37, %v6261_v63 }
0x42cf   :  { %8741 = vrcp.f32 %v6262_v44 }
0x42d9   :  { %v8742_v26 = vpop.eup %8741 }
0x42da   :  { %v6335_v46 = vmul.f32 %v8742_v26, %v8740_v37  ;;  %v6265_v35 = vmul.f32 %v8742_v26, %v8726_v55  ;;  %v6275_v41 = vmul.f32 %v8742_v26, %v8728_v32  ;;  %v6285_v4 = vmul.f32 %v8742_v26, %v8730_v29 }
0x42db   :  { %v6295_v14 = vmul.f32 %v8742_v26, %v8732_v25  ;;  %v6305_v12 = vmul.f32 %v8742_v26, %v8734_v5  ;;  %v6315_v48 = vmul.f32 %v8742_v26, %v8736_v60  ;;  %v6325_v57 = vmul.f32 %v8742_v26, %v8738_v58 }
0x42dc   :  { %6338 = vperm.xlu0 %8492, %v6335_v46   ;;  %6268 = vperm.xlu1 %8491, %v6265_v35  }
0x42e0   :  { %6278 = vperm.xlu1 %8491, %v6275_v41  }
0x42e4   :  { %6288 = vperm.xlu1 %8491, %v6285_v4  }
0x42e8   :  { %6298 = vperm.xlu1 %8491, %v6295_v14  }
0x42ec   :  { %6308 = vperm.xlu1 %8491, %v6305_v12  }
0x42f0   :  { %6318 = vperm.xlu1 %8491, %v6315_v48  }
0x42f4   :  { %6328 = vperm.xlu1 %8491, %v6325_v57  }
0x42f5   :  { %v6197_v18 = vpop.f32.mrb[50].mxu1 }
0x42f6   :  { %v7942_v9 = vpop.f32.mrb[51].mxu1 }
0x42f8   :  { %6036 = vrot.lane.b32.xlu1 %v10483_v61, %s9085_s16 }
0x435b   :  { %v6269_v62 = vpop.permute.xlu1 %6268 }
0x435c   :  { %v6273_v10 = vmul.f32 %v6269_v62, %v9828_v54  ;;  %v6271_v55 = vmul.f32 %v6269_v62, %v9550_v39 }
0x435f   :  { %v6279_v6 = vpop.permute.xlu1 %6278 }
0x4360   :  { %v6283_v45 = vmul.f32 %v6279_v6, %v9775_v0  ;;  %v6281_v17 = vmul.f32 %v6279_v6, %v9566_v56 }
0x4362   :  { %v6284_v32 = vadd.f32 %v6283_v45, %v6273_v10  ;;  %v6282_v29 = vadd.f32 %v6281_v17, %v6271_v55  ;;  %v10730_v45 = vld [vmem:[#allocation47_spill] sm:$0xff]  ;;  %v10731_v10 = vld [vmem:[#allocation45_spill] sm:$0xff]  ;;  %v8772_v55 = vld [vmem:[%s10613_s22] ss:$0 sm:$0xff]  ;;  %s9100_s22 = smov [#allocation23]  }
0x4363   :  { %v6289_v59 = vpop.permute.xlu1 %6288  ;;  %v4196_v17 = vsub.f32 %v10731_v10, %v10730_v45 }
0x4364   :  { %v6293_v2 = vmul.f32 %v6289_v59, %v9761_v40  ;;  %v6291_v7 = vmul.f32 %v6289_v59, %v9581_v11  ;;  %v6339_v11 = vpop.permute.xlu0 %6338 }
0x4366   :  { %v6294_v50 = vadd.f32 %v6293_v2, %v6284_v32  ;;  %v6292_v54 = vadd.f32 %v6291_v7, %v6282_v29  ;;  %v4197_v2 = vmul.f32 1.442695, %v4196_v17  ;;  %v5477_v32 = vadd.f32 %v8772_v55, %v10468_v42 }
0x4367   :  { %v6299_v51 = vpop.permute.xlu1 %6298 }
0x4368   :  { %v6303_v61 = vmul.f32 %v6299_v51, %v9746_v13  ;;  %v6301_v25 = vmul.f32 %v6299_v51, %v9596_v31  ;;  %v5480_v7 = vsel %vm4192_vm5, %v5477_v32, -inf }
0x436a   :  { %v6304_v5 = vadd.f32 %v6303_v61, %v6294_v50  ;;  %v6302_v24 = vadd.f32 %v6301_v25, %v6292_v54  ;;  %v10732_v50 = vld [vmem:[#allocation48_spill] sm:$0xff] }
0x436b   :  { %v6309_v19 = vpop.permute.xlu1 %6308  ;;  %v10733_v25 = vld [vmem:[#allocation44_spill] sm:$0xff] }
0x436c   :  { %v6313_v0 = vmul.f32 %v6309_v19, %v9731_v15  ;;  %v6311_v56 = vmul.f32 %v6309_v19, %v9611_v49  ;;  %v6343_v15 = vmul.f32 %v6339_v11, %v9686_v53 }
0x436e   :  { %v6314_v39 = vadd.f32 %v6313_v0, %v6304_v5  ;;  %v6312_v13 = vadd.f32 %v6311_v56, %v6302_v24  ;;  %v4841_v0 = vsub.f32 %v10733_v25, %v10732_v50 }
0x436f   :  { %v6319_v23 = vpop.permute.xlu1 %6318 }
0x4370   :  { %v6323_v40 = vmul.f32 %v6319_v23, %v9716_v36  ;;  %v6321_v60 = vmul.f32 %v6319_v23, %v9626_v3  ;;  %v6341_v3 = vmul.f32 %v6339_v11, %v9809_v43  ;;  %v4842_v23 = vmul.f32 1.442695, %v4841_v0 }
0x4372   :  { %v6324_v58 = vadd.f32 %v6323_v40, %v6314_v39  ;;  %v6322_v37 = vadd.f32 %v6321_v60, %v6312_v13 }
0x4373   :  { %v6329_v16 = vpop.permute.xlu1 %6328 }
0x4374   :  { %v6331_v63 = vmul.f32 %v6329_v16, %v9660_v30  ;;  %v6333_v31 = vmul.f32 %v6329_v16, %v9701_v8 }
0x4376   :  { %v6334_v44 = vadd.f32 %v6333_v31, %v6324_v58  ;;  %v6332_v49 = vadd.f32 %v6331_v63, %v6322_v37 }
0x4377   :  { %v6037_v26 = vpop.permute.xlu1 %6036 }
0x4378   :  { %7906 = vmatmul.mubr.msk.f32.vlgmr.msra.gmra.mrb[36].mxu0 %vm1419_vm2, %v6037_v26  ;;  %v6344_v36 = vadd.f32 %v6343_v15, %v6334_v44  ;;  %v6342_v30 = vadd.f32 %v6341_v3, %v6332_v49 }
0x4379   :  { %8392 = vmatpush3.bf16.msra.mxu0 %v10720_v47  ;;  %7951 = vmatprep.mubr.msk.f32.mxu0 %vm9094_vm0, %v10693_v27 }
0x437a   :  { %6346 = vrot.lane.b32.xlu1 %v6344_v36, %s9085_s16  ;;  %8393 = vmatprep.subr.bf16.mxu0 %v10694_v1 }
0x437d   :  { %8395 = vmatpush3.bf16.msra.mxu0 %v10721_v33 }
0x437e   :  { %6421 = vrot.lane.b32.xlu1 %v6342_v30, %s9085_s16  ;;  %8396 = vmatprep.subr.bf16.mxu0 %v10694_v1 }
0x43ec   :  { %v6347_v53 = vpop.permute.xlu1 %6346 }
0x43ed   :  { %7952 = vmatmul.mubr.msk.f32.vlgmr.msra.gmra.mrb[38].mxu0 %vm1419_vm2, %v6347_v53 }
0x43ee   :  { %8398 = vmatpush3.bf16.msra.mxu0 %v10090_v38  ;;  %7962 = vmatprep.mubr.msk.f32.mxu0 %vm9094_vm0, %v10693_v27 }
0x43ef   :  { %8399 = vmatprep.subr.bf16.mxu0 %v10694_v1 }
0x43f0   :  { %v6422_v8 = vpop.permute.xlu1 %6421 }
0x43f2   :  { %8401 = vmatpush3.bf16.msra.mxu0 %v10094_v34 }
0x43f3   :  { %8402 = vmatprep.subr.bf16.mxu0 %v10694_v1 }
0x43f5   :  { %7963 = vmatmul.mubr.msk.f32.vlgmr.msra.gmra.mrb[40].mxu0 %vm1419_vm2, %v6422_v8 }
0x43f6   :  { %8404 = vmatpush3.bf16.msra.mxu0 %v10100_v28  ;;  %7969 = vmatprep.mubr.msk.f32.mxu0 %vm9094_vm0, %v10693_v27 }
0x43f7   :  { %8405 = vmatprep.subr.bf16.mxu0 %v10694_v1 }
0x43f9   :  { %7970 = vmatmul.mubr.msk.f32.vlgmr.msra.gmra.mrb[42].mxu0 %vm268_vm1, %v6197_v18 }
0x43fa   :  { %8407 = vmatpush3.bf16.msra.mxu0 %v10113_v21  ;;  %7980 = vmatprep.mubr.msk.f32.mxu0 %vm9094_vm0, %v10693_v27 }
0x43fb   :  { %8408 = vmatprep.subr.bf16.mxu0 %v10694_v1 }
0x43fe   :  { %8410 = vmatpush3.bf16.msra.mxu0 %v10124_v22 }
0x4401   :  { %7981 = vmatmul.mubr.msk.f32.vlgmr.msra.gmra.mrb[44].mxu0 %vm1419_vm2, %v6037_v26 }
0x444b   :  { %v6106_v43 = vpop.f32.mrb[36].mxu0 }
0x444c   :  { %v7907_v38 = vpop.f32.mrb[37].mxu0  ;;  %v6107_v5 = vadd.f32 %v8772_v55, %v6106_v43 }
0x444e   :  { %v6110_v42 = vsel %vm4192_vm5, %v6107_v5, -inf }
0x44c0   :  { %v6416_v34 = vpop.f32.mrb[38].mxu0 }
0x44c1   :  { %v7953_v28 = vpop.f32.mrb[39].mxu0 }
0x44c8   :  { %v6491_v47 = vpop.f32.mrb[40].mxu0 }
0x44c9   :  { %v6492_v33 = vadd.f32 %v6491_v47, %v6416_v34  ;;  %v7964_v46 = vpop.f32.mrb[41].mxu0 }
0x44cc   :  { %v6564_v35 = vpop.f32.mrb[42].mxu0 }
0x44cd   :  { %v6568_v41 = vadd.f32 %v6564_v35, %v6492_v33  ;;  %v7971_v4 = vpop.f32.mrb[43].mxu0 }
0x44d4   :  { %v6635_v21 = vpop.f32.mrb[44].mxu0 }
0x44d5   :  { %v6639_v14 = vadd.f32 %v6635_v21, %v6568_v41  ;;  %v7982_v12 = vpop.f32.mrb[45].mxu0 }
0x44d7   :  { %v6640_v27 = vadd.f32 %v10473_v20, %v6639_v14 }
0x44d9   :  { %8743 = vtanh.f32 %v6640_v27  ;;  %v6882_v22 = vmul.f32 -1.442695, %v6640_v27 }
0x44db   :  { %8745 = vpow2.f32 %v6882_v22 }
0x44e3   :  { %v8744_v1 = vpop.eup %8743 }
0x44e4   :  { %6650 = vrot.lane.b32.xlu1 %v8744_v1, %s9096_s29 }
0x44e5   :  { %v8746_v48 = vpop.eup %8745 }
0x44e6   :  { %v6644_v57 = vadd.f32 1.0, %v8746_v48 }
0x44e8   :  { %8747 = vrcp.f32 %v6644_v57 }
0x44f2   :  { %v8748_v18 = vpop.eup %8747 }
0x44f3   :  { %v6648_v6 = vmul.f32 %v8748_v18, %v10479_v52 }
0x4556   :  { %v6651_v9 = vpop.permute.xlu1 %6650 }
0x4557   :  { %v6653_v62 = vmul.f32 %v8748_v18, %v6651_v9 }
0x4559   :  { %6655 = vrot.lane.b32.xlu1 %v6653_v62, %s9085_s16 }
0x45cb   :  { %v6656_v59 = vpop.permute.xlu1 %6655 }
0x45cc   :  { %v6658_v51 = vadd.f32 %v6656_v59, %v6648_v6 }
0x45ce   :  { %8749 = vtanh.f32 %v6658_v51 }
0x45cf   :  { %8751 = vpow2.f32 %v4197_v2 }
0x45d0   :  { %8753 = vpow2.f32 %v4842_v23 }
0x45d8   :  { %v8750_v20 = vpop.eup %8749 }
0x45d9   :  { %6661 = vrot.lane.b32.xlu0 %v8750_v20, %s9096_s29  ;;  %v8752_v19 = vpop.eup %8751  ;;  %s6758_s29 = sshll.u32 %s9100_s22, 4  ;;  %s6759_s29 = int_to_ptr.vmem [resolvable:$true] %s6758_s29 }
0x45da   :  { %v4199_v52 = vsel %vm4192_vm5, %v8752_v19, 0.0  ;;  %v8754_v54 = vpop.eup %8753  ;;  %s9037_s4 = scalar_lea.vmem %s6759_s29, 192  ;;  %p9042_p13 = scmp.lt.s32.totalorder %s6759_s29, %s6759_s29 }
0x45db   :  { %v4844_v56 = vsel %vm4192_vm5, %v8754_v54, 0.0  ;;  %p9038_p12 = scmp.ne.s32.totalorder %s6759_s29, %s9037_s4  ;;  %p9043_p0 = scmp.lt.s32.totalorder %s9037_s4, %s9037_s4 }
0x45dd   :  { %p9044_p1 = por %p9043_p0, %p9042_p13 }
0x45df   :  { %p9045_p2 = pnand %p9044_p1, %p9038_p12 }
0x45f8   :  { %4200 = vadd.xlane.f32.xlu0 %v4199_v52 }
0x45fc   :  { %5481 = vmax.xlane.f32.xlu0 %v5480_v7 }
0x464b   :  { %v6662_v61 = vpop.permute.xlu0 %6661 }
0x464c   :  { %v6664_v29 = vmul.f32 %v8748_v18, %v6662_v61 }
0x464e   :  { %6666 = vrot.lane.b32.xlu1 %v6664_v29, %s9085_s16 }
0x4672   :  { %4845 = vadd.xlane.f32.xlu1 %v4844_v56 }
0x4676   :  { %6111 = vmax.xlane.f32.xlu1 %v6110_v42 }
0x4685   :  { %v4201_v40 = vpop.xlane.xlu0 %4200 }
0x4686   :  { %8755 = vrcp.f32 %v4201_v40 }
0x4689   :  { %v5482_v24 = vpop.xlane.xlu0 %5481 }
0x468a   :  { %v5483_v39 = vsub.f32 %v5477_v32, %v5482_v24 }
0x468c   :  { %v5484_v60 = vmul.f32 1.442695, %v5483_v39 }
0x468e   :  { %8757 = vpow2.f32 %v5484_v60 }
0x4690   :  { %v8756_v11 = vpop.eup %8755 }
0x4691   :  { %v4203_v16 = vmul.f32 %v8756_v11, %v8752_v19 }
0x4693   :  { %4205 = vst [vmem:[#allocation23 + $0x2] sm:$0x3] %v4203_v16 }
0x4698   :  { %v8758_v13 = vpop.eup %8757 }
0x4699   :  { %v5486_v58 = vsel %vm4192_vm5, %v8758_v13, 0.0 }
0x469a   :  { %5487 = vadd.xlane.f32.xlu0 %v5486_v58 }
0x46c0   :  { %v6667_v63 = vpop.permute.xlu1 %6666 }
0x46c1   :  { %7992 = vmatmul.mubr.msk.f32.vlgmr.msra.gmra.mrb[52].mxu1 %vm1419_vm2, %v6667_v63 }
0x46ff   :  { %v4846_v31 = vpop.xlane.xlu1 %4845 }
0x4700   :  { %8759 = vrcp.f32 %v4846_v31 }
0x4703   :  { %v6112_v15 = vpop.xlane.xlu1 %6111 }
0x4704   :  { %v6113_v37 = vsub.f32 %v6107_v5, %v6112_v15 }
0x4706   :  { %v6114_v44 = vmul.f32 1.442695, %v6113_v37 }
0x4708   :  { %8761 = vpow2.f32 %v6114_v44 }
0x470a   :  { %v8760_v26 = vpop.eup %8759 }
0x470b   :  { %v4848_v49 = vmul.f32 %v8760_v26, %v8754_v54 }
0x470d   :  { %4850 = vst [vmem:[#allocation23 + $0x4] sm:$0x3] %v4848_v49 }
0x4712   :  { %v8762_v36 = vpop.eup %8761 }
0x4713   :  { %v6116_v3 = vsel %vm4192_vm5, %v8762_v36, 0.0 }
0x4714   :  { %6117 = vadd.xlane.f32.xlu0 %v6116_v3 }
0x4727   :  { %v5488_v30 = vpop.xlane.xlu0 %5487 }
0x4728   :  { %8763 = vrcp.f32 %v5488_v30 }
0x4732   :  { %v8764_v53 = vpop.eup %8763 }
0x4733   :  { %v5490_v8 = vmul.f32 %v8764_v53, %v8758_v13 }
0x4735   :  { %5492 = vst [vmem:[#allocation23 + $0x6] sm:$0x3] %v5490_v8 }
0x4794   :  { %v6736_v43 = vpop.f32.mrb[52].mxu1 }
0x4795   :  { %v6737_v38 = vadd.f32 %v8772_v55, %v6736_v43  ;;  %v7993_v34 = vpop.f32.mrb[53].mxu1 }
0x4797   :  { %v6740_v28 = vsel %vm4192_vm5, %v6737_v38, -inf }
0x4798   :  { %6741 = vmax.xlane.f32.xlu1 %v6740_v28 }
0x47a1   :  { %v6118_v47 = vpop.xlane.xlu0 %6117 }
0x47a2   :  { %8765 = vrcp.f32 %v6118_v47 }
0x47ac   :  { %v8766_v33 = vpop.eup %8765 }
0x47ad   :  { %v6120_v46 = vmul.f32 %v8766_v33, %v8762_v36 }
0x47af   :  { %6122 = vst [vmem:[#allocation23 + $0x8] sm:$0x3] %v6120_v46 }
0x4825   :  { %v6742_v35 = vpop.xlane.xlu1 %6741 }
0x4826   :  { %v6743_v41 = vsub.f32 %v6737_v38, %v6742_v35 }
0x4828   :  { %v6744_v4 = vmul.f32 1.442695, %v6743_v41 }
0x482a   :  { %8767 = vpow2.f32 %v6744_v4 }
0x4834   :  { %v8768_v21 = vpop.eup %8767 }
0x4835   :  { %v6746_v14 = vsel %vm4192_vm5, %v8768_v21, 0.0 }
0x4836   :  { %6747 = vadd.xlane.f32.xlu0 %v6746_v14 }
0x48c3   :  { %v6748_v12 = vpop.xlane.xlu0 %6747 }
0x48c4   :  { %8769 = vrcp.f32 %v6748_v12 }
0x48ce   :  { %v8770_v27 = vpop.eup %8769 }
0x48cf   :  { %v6750_v1 = vmul.f32 %v8770_v27, %v8768_v21 }
0x48d1   :  { %6752 = vst [vmem:[#allocation23 + $0xa] sm:$0x3] %v6750_v1 }
0x48d2   :  { %9048 = shalt.err (!%p9045_p2)
}
0x48d3   :  { %s9049_s17 = scalar_lea.hbm %s10614_s23, 192 }
0x48d4   :  { %p9050_p3 = scmp.ne.s32.totalorder %s10614_s23, %s9049_s17  ;;  %p9053_p4 = scmp.lt.u32.totalorder %s9049_s17, %s10614_s23 }
0x48d6   :  { %p9055_p5 = pnand %p9053_p4, %p9050_p3 }
0x48d8   :  { %9058 = shalt.err (!%p9055_p5)
}
0x48d9   :  { %6764 = dma.vmem_to_hbm [thread:$0]  %s6759_s29, 192, %s10614_s23, [#allocation5], %s9085_s16, %s9085_s16, %s9086_s24  }
0x48da   :  { %9073 = dma.done.wait [#allocation5], 192  }
0x48db   :  { %9074 = vsyncadd [#allocation5], 4294967104 }
0x48dc   :  { %6768 = vsyncpa [#allocation4], 1 }
0x48dd   :  { %6769 = vsyncpa [#allocation7], 1 }
0x48de   :  { %6770 = vsyncpa [#allocation10], 1 }
0x48df   :  { %6771 = vsyncpa [#allocation13], 1 }
0x48e0   :  { %6772 = vsyncpa [#allocation16], 1 }
0x48e1   :  { %6773 = vsyncpa [#allocation19], 1 }
0x48e2   :  { %6774 = vsyncpa [#allocation22], 1 }
0x48e3   :  { %6775 = vsyncpa [#allocation5], 1 }

</bundles_post_ra>
